<compile_context>
chip_gen: v7x
topology: tpu7x:2x2x1
jax: 0.10.0
libtpu: 0.0.40
codegen_flags: <defaults>
</compile_context>

<pallas_src>
import numpy as np
import jax
import jax.numpy as jnp
from jax.experimental import pallas as pl
from jax.experimental.pallas import tpu as pltpu


T_CHUNK = 8  # timesteps per grid step: amortizes ~0.35us/step, fits v7x 64MiB VMEM


# ----------------------------------------------------------------------------
# static helpers
# ----------------------------------------------------------------------------
def _round_up(x, m):
    return ((x + m - 1) // m) * m


def _pad_last(a, n):
    pad = n - a.shape[-1]
    if pad == 0:
        return a
    return jnp.pad(a, [(0, 0)] * (a.ndim - 1) + [(0, pad)])


def _pad_axis(a, axis, n):
    pad = n - a.shape[axis]
    if pad == 0:
        return a
    cfg = [(0, 0)] * a.ndim
    cfg[axis] = (0, pad)
    return jnp.pad(a, cfg)


def _pick_row_tile(R):
    # R is always a multiple of 64 here (T_pad % 8 == 0 and B_pad % 8 == 0),
    # so the worst case is a 64-row tile -- no 8-row perf cliff.
    for cand in (512, 256, 128, 64):
        if R % cand == 0:
            return cand
    return 8


def _vmem_limit_bytes():
    # Explicit scoped-VMEM limit with headroom (v5e default ~16 MiB, v7x
    # physical 64 MiB).  Falls back to the compiler default if unavailable.
    try:
        cap = int(pltpu.get_tpu_info().vmem_capacity_bytes)
        return min(48 * 1024 * 1024, (cap * 3) // 4)
    except Exception:
        return None


# ----------------------------------------------------------------------------
# Pallas kernels
# ----------------------------------------------------------------------------
def make_bigru_kernel(num_halves, t_chunk, Hp, B_pad, T_real, T_pad):
    """Fused (input projection + fwd/bwd GRU recurrence) over one time chunk.

    All activation rows are flattened to 2-D (time-major, batch contiguous) so
    the chunk projection is a single lane/sublane-aligned GEMM per direction
    and no in-kernel reshapes are needed.
    """
    need_mask = (T_pad != T_real)
    nh = num_halves

    def kernel(*args):
        xf = args[0:nh]                      # (t_chunk*B_pad, Din_i) bf16, chunk c
        xb = args[nh:2 * nh]                 # same arrays, chunk nc-1-c
        wf = args[2 * nh:3 * nh]             # (Din_i, 3Hp) bf16  (fwd dir)
        wb = args[3 * nh:4 * nh]             # (Din_i, 3Hp) bf16  (bwd dir)
        bias_ref = args[4 * nh]              # (2, 1, 3Hp) f32   (b_ih + b_hh for r,z)
        whh_ref = args[4 * nh + 1]           # (2, Hp, 3Hp) bf16
        bhn_ref = args[4 * nh + 2]           # (2, 1, Hp) f32    (b_hh for n gate)
        out_f_ref, out_b_ref = args[4 * nh + 3:4 * nh + 5]
        hf_scr, hb_scr, gif_scr, gib_scr = args[4 * nh + 5:]

        c = pl.program_id(0)
        nc = pl.num_programs(0)

        @pl.when(c == 0)
        def _():
            hf_scr[...] = jnp.zeros_like(hf_scr)
            hb_scr[...] = jnp.zeros_like(hb_scr)

        # ---- fused input projection: one big bf16 GEMM per half per direction,
        # f32 accumulate, staged into VMEM scratch (never touches HBM).
        def project(x_refs, w_refs, bias):
            acc = jnp.dot(x_refs[0][...], w_refs[0][...],
                          preferred_element_type=jnp.float32)
            for xr, wr in zip(x_refs[1:], w_refs[1:]):
                acc = acc + jnp.dot(xr[...], wr[...],
                                    preferred_element_type=jnp.float32)
            return acc + bias

        gif_scr[...] = project(xf, wf, bias_ref[0])
        gib_scr[...] = project(xb, wb, bias_ref[1])

        w_hh_f = whh_ref[0]
        w_hh_b = whh_ref[1]
        bhn_f = bhn_ref[0]
        bhn_b = bhn_ref[1]

        def cell(gi, h, w_hh, bhn):
            gh = jnp.dot(h.astype(jnp.bfloat16), w_hh,
                         preferred_element_type=jnp.float32)
            rz = jax.nn.sigmoid(gi[:, :2 * Hp] + gh[:, :2 * Hp])   # fused r|z
            r = rz[:, :Hp]
            z = rz[:, Hp:]
            n = jnp.tanh(gi[:, 2 * Hp:] + r * (gh[:, 2 * Hp:] + bhn))
            return n + z * (h - n)          # == (1-z)*n + z*h, one fewer VPU op

        h_f = hf_scr[...]
        h_b = hb_scr[...]
        t0_b = (nc - 1 - c) * t_chunk       # global time of the bwd chunk's row 0

        # Short static loop (t_chunk = 8): fully unrolled, fwd/bwd interleaved.
        for j in range(t_chunk):
            rf = pl.ds(j * B_pad, B_pad)
            h_f = cell(gif_scr[rf, :], h_f, w_hh_f, bhn_f)
            out_f_ref[rf, :] = h_f.astype(out_f_ref.dtype)

            jj = t_chunk - 1 - j
            rb = pl.ds(jj * B_pad, B_pad)
            h_new = cell(gib_scr[rb, :], h_b, w_hh_b, bhn_b)
            if need_mask:
                # Padded timesteps (t >= T_real) are traversed FIRST by the
                # backward direction; keep its state at the initial zeros there.
                h_b = jnp.where(t0_b + jj < T_real, h_new, h_b)
            else:
                h_b = h_new
            out_b_ref[rb, :] = h_b.astype(out_b_ref.dtype)

        hf_scr[...] = h_f
        hb_scr[...] = h_b

    return kernel


def head_kernel(a_ref, c_ref, wa_ref, wc_ref, b_ref, std_ref, mean_ref, o_ref):
    """Output Linear (split over fwd/bwd halves) followed by y*std + mean."""
    y = (jnp.dot(a_ref[...], wa_ref[...], preferred_element_type=jnp.float32)
         + jnp.dot(c_ref[...], wc_ref[...], preferred_element_type=jnp.float32)
         + b_ref[...])
    o_ref[...] = y * std_ref[...] + mean_ref[...]


# ----------------------------------------------------------------------------
# pallas_call wrappers
# ----------------------------------------------------------------------------
def bigru_layer(x_halves, packed, *, Hp, B_pad, t_chunk, T_real, T_pad, vmem_limit):
    """x_halves: tuple of (T_pad*B_pad, Din_i) bf16 arrays (flattened time-major).

    Returns (out_fwd, out_bwd), each (T_pad*B_pad, Hp) bf16, natural time order.
    """
    w_f, w_b = packed["w_f"], packed["w_b"]
    bias, whh, bhn = packed["bias"], packed["whh"], packed["bhn"]

    rows_total = T_pad * B_pad
    rows_blk = t_chunk * B_pad
    nc = T_pad // t_chunk
    threeH = 3 * Hp
    nh = len(x_halves)

    in_specs = (
        [pl.BlockSpec((rows_blk, x.shape[-1]), lambda c: (c, 0)) for x in x_halves]
        + [pl.BlockSpec((rows_blk, x.shape[-1]), lambda c: (nc - 1 - c, 0))
           for x in x_halves]
        + [pl.BlockSpec((w.shape[0], threeH), lambda c: (0, 0)) for w in w_f]
        + [pl.BlockSpec((w.shape[0], threeH), lambda c: (0, 0)) for w in w_b]
        # TODO(synk): pipeline_mode=pl.Buffered(1) on the constant-index weight
        # specs below would halve their VMEM at large H (left default for safety).
        + [pl.BlockSpec((2, 1, threeH), lambda c: (0, 0, 0)),
           pl.BlockSpec((2, Hp, threeH), lambda c: (0, 0, 0)),
           pl.BlockSpec((2, 1, Hp), lambda c: (0, 0, 0))]
    )
    out_specs = (pl.BlockSpec((rows_blk, Hp), lambda c: (c, 0)),
                 pl.BlockSpec((rows_blk, Hp), lambda c: (nc - 1 - c, 0)))

    din_total = sum(x.shape[-1] for x in x_halves)
    flops = 4 * rows_total * threeH * (din_total + Hp)
    transc = 2 * rows_total * threeH
    bytes_acc = int(2 * rows_total * din_total * 2
                    + 2 * rows_total * Hp * 2
                    + sum(int(np.prod(w.shape)) for w in (*w_f, *w_b)) * 2
                    + int(np.prod(whh.shape)) * 2
                    + (int(np.prod(bias.shape)) + int(np.prod(bhn.shape))) * 4)

    out_f, out_b = pl.pallas_call(
        make_bigru_kernel(nh, t_chunk, Hp, B_pad, T_real, T_pad),
        out_shape=(jax.ShapeDtypeStruct((rows_total, Hp), jnp.bfloat16),
                   jax.ShapeDtypeStruct((rows_total, Hp), jnp.bfloat16)),
        grid_spec=pltpu.PrefetchScalarGridSpec(
            num_scalar_prefetch=0,
            grid=(nc,),
            in_specs=in_specs,
            out_specs=out_specs,
            scratch_shapes=[
                pltpu.VMEM((B_pad, Hp), jnp.float32),          # h_fwd carry
                pltpu.VMEM((B_pad, Hp), jnp.float32),          # h_bwd carry
                pltpu.VMEM((rows_blk, threeH), jnp.float32),   # gi fwd (chunk)
                pltpu.VMEM((rows_blk, threeH), jnp.float32),   # gi bwd (chunk)
            ]),
        compiler_params=pltpu.CompilerParams(
            dimension_semantics=("arbitrary",),
            vmem_limit_bytes=vmem_limit),
        cost_estimate=pl.CostEstimate(flops=int(flops), transcendentals=int(transc),
                                      bytes_accessed=bytes_acc),
    )(*x_halves, *x_halves, *w_f, *w_b, bias, whh, bhn)
    # TODO(synk): on v7x a leading "parallel" batch-block grid axis would split
    # the serial recurrence across the two TensorCores when B_pad >= 16.
    return out_f, out_b


def out_head(a_flat, c_flat, hd, row_tile, vmem_limit):
    R, Hp = a_flat.shape
    N = hd["wa"].shape[-1]                    # padded to 128 -> lane-dense stores
    flops = 2 * R * 2 * Hp * N + 3 * R * N
    bytes_acc = int(2 * R * Hp * 2 + 2 * Hp * N * 2 + 3 * N * 4 + R * N * 4)
    return pl.pallas_call(
        head_kernel,
        out_shape=jax.ShapeDtypeStruct((R, N), jnp.float32),
        grid_spec=pltpu.PrefetchScalarGridSpec(
            num_scalar_prefetch=0,
            grid=(R // row_tile,),
            in_specs=[
                pl.BlockSpec((row_tile, Hp), lambda r: (r, 0)),
                pl.BlockSpec((row_tile, Hp), lambda r: (r, 0)),
                pl.BlockSpec((Hp, N), lambda r: (0, 0)),
                pl.BlockSpec((Hp, N), lambda r: (0, 0)),
                pl.BlockSpec((1, N), lambda r: (0, 0)),
                pl.BlockSpec((1, N), lambda r: (0, 0)),
                pl.BlockSpec((1, N), lambda r: (0, 0)),
            ],
            out_specs=pl.BlockSpec((row_tile, N), lambda r: (r, 0)),
        ),
        compiler_params=pltpu.CompilerParams(
            dimension_semantics=("parallel",),
            vmem_limit_bytes=vmem_limit),
        cost_estimate=pl.CostEstimate(flops=int(flops), transcendentals=0,
                                      bytes_accessed=bytes_acc),
    )(a_flat, c_flat, hd["wa"], hd["wc"], hd["b"], hd["std"], hd["mean"])


# ----------------------------------------------------------------------------
# parameter packing (logical PyTorch-shaped params -> padded kernel params)
# ----------------------------------------------------------------------------
def pack_direction(dirp, Hp):
    """dirp = (w_ih (3,in,H), w_hh (3,H,H), b_ih (3,1,H), b_hh (3,1,H))."""
    w_ih, w_hh, b_ih, b_hh = dirp
    wih = jnp.concatenate([_pad_last(w_ih[g], Hp) for g in range(3)], axis=1)
    whh = jnp.concatenate([_pad_last(w_hh[g], Hp) for g in range(3)], axis=1)
    whh = _pad_axis(whh, 0, Hp)
    # b_ih + b_hh fold into gi for r,z; b_hh_n stays separate (r*(W_hn h + b_hn)).
    b_r = _pad_last(b_ih[0] + b_hh[0], Hp)
    b_z = _pad_last(b_ih[1] + b_hh[1], Hp)
    b_n = _pad_last(b_ih[2], Hp)
    bias = jnp.concatenate([b_r, b_z, b_n], axis=1)      # (1, 3*Hp)
    bhn = _pad_last(b_hh[2], Hp)                          # (1, Hp)
    return wih, whh, bias, bhn


def pack_layer(layer_params, Hp, in_sizes, in_pads):
    """Pack both directions; split W_ih rows into one block per input half so
    the layer consumes the previous layer's fwd/bwd outputs without a concat.
    Weight matrices are cast to bf16 for the MXU; biases stay f32."""
    fwd, bwd = layer_params
    wih_f, whh_f, bias_f, bhn_f = pack_direction(fwd, Hp)
    wih_b, whh_b, bias_b, bhn_b = pack_direction(bwd, Hp)

    def split(wih):
        out, r0 = [], 0
        for size, padr in zip(in_sizes, in_pads):
            out.append(_pad_axis(wih[r0:r0 + size], 0, padr).astype(jnp.bfloat16))
            r0 += size
        return tuple(out)

    return dict(
        w_f=split(wih_f), w_b=split(wih_b),
        bias=jnp.stack([bias_f, bias_b], axis=0),                    # (2,1,3Hp) f32
        whh=jnp.stack([whh_f, whh_b], axis=0).astype(jnp.bfloat16),  # (2,Hp,3Hp)
        bhn=jnp.stack([bhn_f, bhn_b], axis=0),                       # (2,1,Hp) f32
    )


def pack_head(w_out, b_out, std, mean, H, Hp, n_pad=128):
    n_out = w_out.shape[-1]
    wa = _pad_last(_pad_axis(w_out[:H], 0, Hp), n_pad).astype(jnp.bfloat16)
    wc = _pad_last(_pad_axis(w_out[H:], 0, Hp), n_pad).astype(jnp.bfloat16)
    return dict(wa=wa, wc=wc, b=_pad_last(b_out, n_pad),
                std=_pad_last(std, n_pad), mean=_pad_last(mean, n_pad),
                n_out=n_out)


# ----------------------------------------------------------------------------
# forward
# ----------------------------------------------------------------------------
def count_rnn_forward(inp, style, params):
    """inp: (T, B, class_size), style: (B, style_size) -> (T, B, n_out)."""
    T, B, _ = inp.shape
    H = params["layer0"][0][1].shape[-1]          # w_hh: (3, H, H)
    Hp = _round_up(H, 128)                        # lane-aligned gates / MXU N dim
    B_pad = _round_up(B, 8)                       # sublane-aligned matmul M dim
    t_chunk = T_CHUNK
    T_pad = _round_up(T, t_chunk)                 # pad+mask, never t_chunk=1
    R = T_pad * B_pad
    vmem_limit = _vmem_limit_bytes()

    # [input ; broadcast(style)] (module semantics); pad batch/time/features
    # and cast to bf16 for the MXU path.
    style_exp = jnp.broadcast_to(style[None, ...], (T,) + style.shape)
    x0 = jnp.concatenate([inp, style_exp], axis=2).astype(jnp.float32)
    D0 = x0.shape[-1]
    D0_pad = _round_up(D0, 128)                   # all matmul K dims % 128 == 0
    x0 = _pad_last(_pad_axis(_pad_axis(x0, 1, B_pad), 0, T_pad), D0_pad)
    x0 = x0.reshape(R, D0_pad).astype(jnp.bfloat16)

    l0 = pack_layer(params["layer0"], Hp, in_sizes=(D0,), in_pads=(D0_pad,))
    l1 = pack_layer(params["layer1"], Hp, in_sizes=(H, H), in_pads=(Hp, Hp))
    hd = pack_head(params["w_out"], params["b_out"], params["std"],
                   params["mean"], H, Hp)

    # ---- layer 0: fused (input-projection GEMM + bidirectional recurrence)
    hf0, hb0 = bigru_layer((x0,), l0, Hp=Hp, B_pad=B_pad, t_chunk=t_chunk,
                           T_real=T, T_pad=T_pad, vmem_limit=vmem_limit)
    # TODO(synk): nn.GRU inter-layer dropout (p=0.25) is train-only; eval forward omits it.

    # ---- layer 1 (consumes fwd/bwd halves directly, no concat, no flip)
    hf1, hb1 = bigru_layer((hf0, hb0), l1, Hp=Hp, B_pad=B_pad, t_chunk=t_chunk,
                           T_real=T, T_pad=T_pad, vmem_limit=vmem_limit)

    # ---- output Linear + y*std + mean (lanes padded to 128 -> unmasked stores)
    row_tile = _pick_row_tile(R)
    y = out_head(hf1, hb1, hd, row_tile, vmem_limit)
    y = y.reshape(T_pad, B_pad, -1)
    return y[:T, :B, :hd["n_out"]]


# ----------------------------------------------------------------------------
# deterministic parameter init (PyTorch-shaped; uniform(-1/sqrt(H), 1/sqrt(H)))
# ----------------------------------------------------------------------------
def init_gru_dir(key, in_dim, hidden):
    k = 1.0 / np.sqrt(hidden)
    k0, k1, k2, k3 = jax.random.split(key, 4)
    w_ih = jax.random.uniform(k0, (3, in_dim, hidden), jnp.float32, -k, k)
    w_hh = jax.random.uniform(k1, (3, hidden, hidden), jnp.float32, -k, k)
    b_ih = jax.random.uniform(k2, (3, 1, hidden), jnp.float32, -k, k)
    b_hh = jax.random.uniform(k3, (3, 1, hidden), jnp.float32, -k, k)
    return (w_ih, w_hh, b_ih, b_hh)


def init_params(key, class_size, style_size, hidden, n_out):
    in0 = class_size + style_size
    keys = jax.random.split(key, 6)
    params = {
        "layer0": (init_gru_dir(keys[0], in0, hidden),
                   init_gru_dir(keys[1], in0, hidden)),
        "layer1": (init_gru_dir(keys[2], 2 * hidden, hidden),
                   init_gru_dir(keys[3], 2 * hidden, hidden)),
    }
    k = 1.0 / np.sqrt(2 * hidden)
    params["w_out"] = jax.random.uniform(keys[4], (2 * hidden, n_out),
                                         jnp.float32, -k, k)
    params["b_out"] = jax.random.uniform(keys[5], (1, n_out), jnp.float32, -k, k)
    params["mean"] = jnp.full((1, n_out), 2.0, jnp.float32)  # nn.Parameter fill_(2)
    params["std"] = jnp.full((1, n_out), 1.0, jnp.float32)   # nn.Parameter fill_(1)
    return params


# ----------------------------------------------------------------------------
# pure-JAX f32 reference (sanity check of the Pallas kernels)
# ----------------------------------------------------------------------------
def gru_dir_ref(x_seq, w_ih, w_hh, b_ih, b_hh):
    B = x_seq.shape[1]
    H = w_hh.shape[-1]

    def step(h, x):
        gi = [x @ w_ih[g] + b_ih[g] for g in range(3)]
        gh = [h @ w_hh[g] + b_hh[g] for g in range(3)]
        r = jax.nn.sigmoid(gi[0] + gh[0])
        z = jax.nn.sigmoid(gi[1] + gh[1])
        n = jnp.tanh(gi[2] + r * gh[2])
        h_new = (1.0 - z) * n + z * h
        return h_new, h_new

    _, hs = jax.lax.scan(step, jnp.zeros((B, H), jnp.float32), x_seq)
    return hs


def count_rnn_ref(inp, style, params):
    T = inp.shape[0]
    style_exp = jnp.broadcast_to(style[None, ...], (T,) + style.shape)
    x = jnp.concatenate([inp, style_exp], axis=2).astype(jnp.float32)
    for lname in ("layer0", "layer1"):
        fwd, bwd = params[lname]
        hf = gru_dir_ref(x, *fwd)
        hb = jnp.flip(gru_dir_ref(jnp.flip(x, axis=0), *bwd), axis=0)
        x = jnp.concatenate([hf, hb], axis=-1)
    y = x @ params["w_out"] + params["b_out"]
    return y * params["std"] + params["mean"]


# ----------------------------------------------------------------------------
if __name__ == "__main__":
    class_size, style_size = 4, 4
    hidden, n_out = 32, 1

    key = jax.random.PRNGKey(0)
    k_in, k_st, k_par = jax.random.split(key, 3)
    params = init_params(k_par, class_size, style_size, hidden, n_out)
    fwd_fn = jax.jit(count_rnn_forward)

    def check(T, B, tag):
        ki, ks = jax.random.split(jax.random.fold_in(k_in, T * 131 + B), 2)
        inp = jax.random.normal(ki, (T, B, class_size), jnp.float32)
        style = jax.random.normal(ks, (B, style_size), jnp.float32)
        out = jax.block_until_ready(fwd_fn(inp, style, params))
        assert out.shape == (T, B, n_out), out.shape
        ref = jax.block_until_ready(count_rnn_ref(inp, style, params))
        # bf16 MXU path vs f32 reference -> slightly looser tolerance than pure f32.
        if not np.allclose(np.asarray(out), np.asarray(ref), rtol=3e-2, atol=3e-2):
            err = float(np.max(np.abs(np.asarray(out) - np.asarray(ref))))
            raise AssertionError(f"Pallas mismatch vs reference ({tag}), max err {err}")

    check(T=8, B=2, tag="aligned")      # divides the chunk exactly
    check(T=11, B=3, tag="padded")      # exercises the pad+mask path

    print("KERNEL_OK")
</pallas_src>

<mosaic_0001>
module attributes {stable_mosaic.version = 11 : i64} {
  func.func @kernel(%arg0: i32, %arg1: memref<64x128xbf16, #tpu.memory_space<vmem>>, %arg2: memref<64x128xbf16, #tpu.memory_space<vmem>>, %arg3: memref<128x384xbf16, #tpu.memory_space<vmem>>, %arg4: memref<128x384xbf16, #tpu.memory_space<vmem>>, %arg5: memref<2x1x384xf32, #tpu.memory_space<vmem>>, %arg6: memref<2x128x384xbf16, #tpu.memory_space<vmem>>, %arg7: memref<2x1x128xf32, #tpu.memory_space<vmem>>, %arg8: memref<64x128xbf16, #tpu.memory_space<vmem>>, %arg9: memref<64x128xbf16, #tpu.memory_space<vmem>>, %arg10: memref<8x128xf32, #tpu.memory_space<vmem>>, %arg11: memref<8x128xf32, #tpu.memory_space<vmem>>, %arg12: memref<64x384xf32, #tpu.memory_space<vmem>>, %arg13: memref<64x384xf32, #tpu.memory_space<vmem>>) attributes {dimension_semantics = [#tpu.dimension_semantics<arbitrary>], iteration_bounds = array<i64: 1>, scalar_prefetch = 0 : i64, scratch_operands = 4 : i64, tpu.core_type = #tpu.core_type<tc>, window_params = [{transform_indices = @transform_0, window_bounds = array<i64: 64, 128>}, {transform_indices = @transform_1, window_bounds = array<i64: 64, 128>}, {pipeline_mode = #tpu.pipeline_mode<synchronous>, transform_indices = @transform_2, window_bounds = array<i64: 128, 384>}, {pipeline_mode = #tpu.pipeline_mode<synchronous>, transform_indices = @transform_3, window_bounds = array<i64: 128, 384>}, {pipeline_mode = #tpu.pipeline_mode<synchronous>, transform_indices = @transform_4, window_bounds = array<i64: 2, 1, 384>}, {pipeline_mode = #tpu.pipeline_mode<synchronous>, transform_indices = @transform_5, window_bounds = array<i64: 2, 128, 384>}, {pipeline_mode = #tpu.pipeline_mode<synchronous>, transform_indices = @transform_6, window_bounds = array<i64: 2, 1, 128>}, {transform_indices = @transform_7, window_bounds = array<i64: 64, 128>}, {transform_indices = @transform_8, window_bounds = array<i64: 64, 128>}]} {
    %c0_i32 = arith.constant 0 : i32
    %0 = arith.cmpi eq, %arg0, %c0_i32 : i32
    %1 = arith.extui %0 : i1 to i32
    %c0_i32_0 = arith.constant 0 : i32
    %2 = arith.cmpi ne, %1, %c0_i32_0 : i32
    scf.if %2 {
      %cst_127 = arith.constant 0.000000e+00 : f32
      %431 = vector.broadcast %cst_127 : f32 to vector<8x128xf32>
      %c0_128 = arith.constant 0 : index
      %c0_129 = arith.constant 0 : index
      %432 = vector.load %arg10[%c0_128, %c0_129] : memref<8x128xf32, #tpu.memory_space<vmem>>, vector<8x128xf32>
      tpu.vector_store %arg10[%c0_128, %c0_129], %431 {strides = array<i32>} : memref<8x128xf32, #tpu.memory_space<vmem>>, vector<8x128xf32>,
      %cst_130 = arith.constant 0.000000e+00 : f32
      %433 = vector.broadcast %cst_130 : f32 to vector<8x128xf32>
      %c0_131 = arith.constant 0 : index
      %c0_132 = arith.constant 0 : index
      %434 = vector.load %arg11[%c0_131, %c0_132] : memref<8x128xf32, #tpu.memory_space<vmem>>, vector<8x128xf32>
      tpu.vector_store %arg11[%c0_131, %c0_132], %433 {strides = array<i32>} : memref<8x128xf32, #tpu.memory_space<vmem>>, vector<8x128xf32>,
    } else {
    }
    %c0 = arith.constant 0 : index
    %c0_1 = arith.constant 0 : index
    %c0_2 = arith.constant 0 : index
    %3 = vector.load %arg5[%c0, %c0_1, %c0_2] : memref<2x1x384xf32, #tpu.memory_space<vmem>>, vector<1x1x384xf32>
    %4 = vector.shape_cast %3 : vector<1x1x384xf32> to vector<1x384xf32>
    %c0_3 = arith.constant 0 : index
    %c0_4 = arith.constant 0 : index
    %5 = vector.load %arg1[%c0_3, %c0_4] : memref<64x128xbf16, #tpu.memory_space<vmem>>, vector<64x128xbf16>
    %c0_5 = arith.constant 0 : index
    %c0_6 = arith.constant 0 : index
    %6 = vector.load %arg3[%c0_5, %c0_6] : memref<128x384xbf16, #tpu.memory_space<vmem>>, vector<128x384xbf16>
    %cst = arith.constant dense<0.000000e+00> : vector<64x384xf32>
    %7 = tpu.matmul %5, %6, %cst {dimension_numbers = #tpu.dot_dimension_numbers<[1], [0], [0], [1], [0, 0, 1, 1], [], []>} : vector<64x128xbf16>, vector<128x384xbf16>, vector<64x384xf32> -> vector<64x384xf32>
    %8 = vector.broadcast %4 : vector<1x384xf32> to vector<64x384xf32>
    %9 = arith.addf %7, %8 : vector<64x384xf32>
    %c0_7 = arith.constant 0 : index
    %c0_8 = arith.constant 0 : index
    %10 = vector.load %arg12[%c0_7, %c0_8] : memref<64x384xf32, #tpu.memory_space<vmem>>, vector<64x384xf32>
    tpu.vector_store %arg12[%c0_7, %c0_8], %9 {strides = array<i32>} : memref<64x384xf32, #tpu.memory_space<vmem>>, vector<64x384xf32>,
    %c1 = arith.constant 1 : index
    %c0_9 = arith.constant 0 : index
    %c0_10 = arith.constant 0 : index
    %11 = vector.load %arg5[%c1, %c0_9, %c0_10] : memref<2x1x384xf32, #tpu.memory_space<vmem>>, vector<1x1x384xf32>
    %12 = vector.shape_cast %11 : vector<1x1x384xf32> to vector<1x384xf32>
    %c0_11 = arith.constant 0 : index
    %c0_12 = arith.constant 0 : index
    %13 = vector.load %arg2[%c0_11, %c0_12] : memref<64x128xbf16, #tpu.memory_space<vmem>>, vector<64x128xbf16>
    %c0_13 = arith.constant 0 : index
    %c0_14 = arith.constant 0 : index
    %14 = vector.load %arg4[%c0_13, %c0_14] : memref<128x384xbf16, #tpu.memory_space<vmem>>, vector<128x384xbf16>
    %cst_15 = arith.constant dense<0.000000e+00> : vector<64x384xf32>
    %15 = tpu.matmul %13, %14, %cst_15 {dimension_numbers = #tpu.dot_dimension_numbers<[1], [0], [0], [1], [0, 0, 1, 1], [], []>} : vector<64x128xbf16>, vector<128x384xbf16>, vector<64x384xf32> -> vector<64x384xf32>
    %16 = vector.broadcast %12 : vector<1x384xf32> to vector<64x384xf32>
    %17 = arith.addf %15, %16 : vector<64x384xf32>
    %c0_16 = arith.constant 0 : index
    %c0_17 = arith.constant 0 : index
    %18 = vector.load %arg13[%c0_16, %c0_17] : memref<64x384xf32, #tpu.memory_space<vmem>>, vector<64x384xf32>
    tpu.vector_store %arg13[%c0_16, %c0_17], %17 {strides = array<i32>} : memref<64x384xf32, #tpu.memory_space<vmem>>, vector<64x384xf32>,
    %c0_18 = arith.constant 0 : index
    %c0_19 = arith.constant 0 : index
    %c0_20 = arith.constant 0 : index
    %19 = vector.load %arg6[%c0_18, %c0_19, %c0_20] : memref<2x128x384xbf16, #tpu.memory_space<vmem>>, vector<1x128x384xbf16>
    %20 = vector.shape_cast %19 : vector<1x128x384xbf16> to vector<128x384xbf16>
    %c1_21 = arith.constant 1 : index
    %c0_22 = arith.constant 0 : index
    %c0_23 = arith.constant 0 : index
    %21 = vector.load %arg6[%c1_21, %c0_22, %c0_23] : memref<2x128x384xbf16, #tpu.memory_space<vmem>>, vector<1x128x384xbf16>
    %22 = vector.shape_cast %21 : vector<1x128x384xbf16> to vector<128x384xbf16>
    %c0_24 = arith.constant 0 : index
    %c0_25 = arith.constant 0 : index
    %c0_26 = arith.constant 0 : index
    %23 = vector.load %arg7[%c0_24, %c0_25, %c0_26] : memref<2x1x128xf32, #tpu.memory_space<vmem>>, vector<1x1x128xf32>
    %24 = vector.shape_cast %23 : vector<1x1x128xf32> to vector<1x128xf32>
    %c1_27 = arith.constant 1 : index
    %c0_28 = arith.constant 0 : index
    %c0_29 = arith.constant 0 : index
    %25 = vector.load %arg7[%c1_27, %c0_28, %c0_29] : memref<2x1x128xf32, #tpu.memory_space<vmem>>, vector<1x1x128xf32>
    %26 = vector.shape_cast %25 : vector<1x1x128xf32> to vector<1x128xf32>
    %c0_30 = arith.constant 0 : index
    %c0_31 = arith.constant 0 : index
    %27 = vector.load %arg10[%c0_30, %c0_31] : memref<8x128xf32, #tpu.memory_space<vmem>>, vector<8x128xf32>
    %c0_32 = arith.constant 0 : index
    %c0_33 = arith.constant 0 : index
    %28 = vector.load %arg11[%c0_32, %c0_33] : memref<8x128xf32, #tpu.memory_space<vmem>>, vector<8x128xf32>
    %c0_34 = arith.constant 0 : index
    %c0_35 = arith.constant 0 : index
    %29 = vector.load %arg12[%c0_34, %c0_35] : memref<64x384xf32, #tpu.memory_space<vmem>>, vector<8x384xf32>
    %30 = arith.truncf %27 : vector<8x128xf32> to vector<8x128xbf16>
    %cst_36 = arith.constant dense<0.000000e+00> : vector<8x384xf32>
    %31 = tpu.matmul %30, %20, %cst_36 {dimension_numbers = #tpu.dot_dimension_numbers<[1], [0], [0], [1], [0, 0, 1, 1], [], []>} : vector<8x128xbf16>, vector<128x384xbf16>, vector<8x384xf32> -> vector<8x384xf32>
    %32 = vector.extract_strided_slice %29 {offsets = [0, 0], sizes = [8, 256], strides = [1, 1]} : vector<8x384xf32> to vector<8x256xf32>
    %33 = vector.extract_strided_slice %31 {offsets = [0, 0], sizes = [8, 256], strides = [1, 1]} : vector<8x384xf32> to vector<8x256xf32>
    %34 = arith.addf %32, %33 : vector<8x256xf32>
    %35 = arith.negf %34 : vector<8x256xf32>
    %36 = math.exp %35 : vector<8x256xf32>
    %cst_37 = arith.constant 1.000000e+00 : f32
    %37 = vector.broadcast %cst_37 : f32 to vector<8x256xf32>
    %38 = arith.addf %37, %36 : vector<8x256xf32>
    %39 = arith.divf %37, %38 : vector<8x256xf32>
    %40 = vector.extract_strided_slice %39 {offsets = [0, 0], sizes = [8, 128], strides = [1, 1]} : vector<8x256xf32> to vector<8x128xf32>
    %41 = vector.extract_strided_slice %39 {offsets = [0, 128], sizes = [8, 128], strides = [1, 1]} : vector<8x256xf32> to vector<8x128xf32>
    %42 = vector.extract_strided_slice %29 {offsets = [0, 256], sizes = [8, 128], strides = [1, 1]} : vector<8x384xf32> to vector<8x128xf32>
    %43 = vector.extract_strided_slice %31 {offsets = [0, 256], sizes = [8, 128], strides = [1, 1]} : vector<8x384xf32> to vector<8x128xf32>
    %44 = vector.broadcast %24 : vector<1x128xf32> to vector<8x128xf32>
    %45 = arith.addf %43, %44 : vector<8x128xf32>
    %46 = arith.mulf %40, %45 : vector<8x128xf32>
    %47 = arith.addf %42, %46 : vector<8x128xf32>
    %48 = math.tanh %47 : vector<8x128xf32>
    %49 = arith.subf %27, %48 : vector<8x128xf32>
    %50 = arith.mulf %41, %49 : vector<8x128xf32>
    %51 = arith.addf %48, %50 : vector<8x128xf32>
    %52 = arith.truncf %51 : vector<8x128xf32> to vector<8x128xbf16>
    %c0_38 = arith.constant 0 : index
    %c0_39 = arith.constant 0 : index
    %53 = vector.load %arg8[%c0_38, %c0_39] : memref<64x128xbf16, #tpu.memory_space<vmem>>, vector<8x128xbf16>
    tpu.vector_store %arg8[%c0_38, %c0_39], %52 {strides = array<i32>} : memref<64x128xbf16, #tpu.memory_space<vmem>>, vector<8x128xbf16>,
    %c56 = arith.constant 56 : index
    %c0_40 = arith.constant 0 : index
    %54 = vector.load %arg13[%c56, %c0_40] : memref<64x384xf32, #tpu.memory_space<vmem>>, vector<8x384xf32>
    %55 = arith.truncf %28 : vector<8x128xf32> to vector<8x128xbf16>
    %cst_41 = arith.constant dense<0.000000e+00> : vector<8x384xf32>
    %56 = tpu.matmul %55, %22, %cst_41 {dimension_numbers = #tpu.dot_dimension_numbers<[1], [0], [0], [1], [0, 0, 1, 1], [], []>} : vector<8x128xbf16>, vector<128x384xbf16>, vector<8x384xf32> -> vector<8x384xf32>
    %57 = vector.extract_strided_slice %54 {offsets = [0, 0], sizes = [8, 256], strides = [1, 1]} : vector<8x384xf32> to vector<8x256xf32>
    %58 = vector.extract_strided_slice %56 {offsets = [0, 0], sizes = [8, 256], strides = [1, 1]} : vector<8x384xf32> to vector<8x256xf32>
    %59 = arith.addf %57, %58 : vector<8x256xf32>
    %60 = arith.negf %59 : vector<8x256xf32>
    %61 = math.exp %60 : vector<8x256xf32>
    %cst_42 = arith.constant 1.000000e+00 : f32
    %62 = vector.broadcast %cst_42 : f32 to vector<8x256xf32>
    %63 = arith.addf %62, %61 : vector<8x256xf32>
    %64 = arith.divf %62, %63 : vector<8x256xf32>
    %65 = vector.extract_strided_slice %64 {offsets = [0, 0], sizes = [8, 128], strides = [1, 1]} : vector<8x256xf32> to vector<8x128xf32>
    %66 = vector.extract_strided_slice %64 {offsets = [0, 128], sizes = [8, 128], strides = [1, 1]} : vector<8x256xf32> to vector<8x128xf32>
    %67 = vector.extract_strided_slice %54 {offsets = [0, 256], sizes = [8, 128], strides = [1, 1]} : vector<8x384xf32> to vector<8x128xf32>
    %68 = vector.extract_strided_slice %56 {offsets = [0, 256], sizes = [8, 128], strides = [1, 1]} : vector<8x384xf32> to vector<8x128xf32>
    %69 = vector.broadcast %26 : vector<1x128xf32> to vector<8x128xf32>
    %70 = arith.addf %68, %69 : vector<8x128xf32>
    %71 = arith.mulf %65, %70 : vector<8x128xf32>
    %72 = arith.addf %67, %71 : vector<8x128xf32>
    %73 = math.tanh %72 : vector<8x128xf32>
    %74 = arith.subf %28, %73 : vector<8x128xf32>
    %75 = arith.mulf %66, %74 : vector<8x128xf32>
    %76 = arith.addf %73, %75 : vector<8x128xf32>
    %77 = arith.truncf %76 : vector<8x128xf32> to vector<8x128xbf16>
    %c56_43 = arith.constant 56 : index
    %c0_44 = arith.constant 0 : index
    %78 = vector.load %arg9[%c56_43, %c0_44] : memref<64x128xbf16, #tpu.memory_space<vmem>>, vector<8x128xbf16>
    tpu.vector_store %arg9[%c56_43, %c0_44], %77 {strides = array<i32>} : memref<64x128xbf16, #tpu.memory_space<vmem>>, vector<8x128xbf16>,
    %c8 = arith.constant 8 : index
    %c0_45 = arith.constant 0 : index
    %79 = vector.load %arg12[%c8, %c0_45] : memref<64x384xf32, #tpu.memory_space<vmem>>, vector<8x384xf32>
    %80 = arith.truncf %51 : vector<8x128xf32> to vector<8x128xbf16>
    %cst_46 = arith.constant dense<0.000000e+00> : vector<8x384xf32>
    %81 = tpu.matmul %80, %20, %cst_46 {dimension_numbers = #tpu.dot_dimension_numbers<[1], [0], [0], [1], [0, 0, 1, 1], [], []>} : vector<8x128xbf16>, vector<128x384xbf16>, vector<8x384xf32> -> vector<8x384xf32>
    %82 = vector.extract_strided_slice %79 {offsets = [0, 0], sizes = [8, 256], strides = [1, 1]} : vector<8x384xf32> to vector<8x256xf32>
    %83 = vector.extract_strided_slice %81 {offsets = [0, 0], sizes = [8, 256], strides = [1, 1]} : vector<8x384xf32> to vector<8x256xf32>
    %84 = arith.addf %82, %83 : vector<8x256xf32>
    %85 = arith.negf %84 : vector<8x256xf32>
    %86 = math.exp %85 : vector<8x256xf32>
    %cst_47 = arith.constant 1.000000e+00 : f32
    %87 = vector.broadcast %cst_47 : f32 to vector<8x256xf32>
    %88 = arith.addf %87, %86 : vector<8x256xf32>
    %89 = arith.divf %87, %88 : vector<8x256xf32>
    %90 = vector.extract_strided_slice %89 {offsets = [0, 0], sizes = [8, 128], strides = [1, 1]} : vector<8x256xf32> to vector<8x128xf32>
    %91 = vector.extract_strided_slice %89 {offsets = [0, 128], sizes = [8, 128], strides = [1, 1]} : vector<8x256xf32> to vector<8x128xf32>
    %92 = vector.extract_strided_slice %79 {offsets = [0, 256], sizes = [8, 128], strides = [1, 1]} : vector<8x384xf32> to vector<8x128xf32>
    %93 = vector.extract_strided_slice %81 {offsets = [0, 256], sizes = [8, 128], strides = [1, 1]} : vector<8x384xf32> to vector<8x128xf32>
    %94 = vector.broadcast %24 : vector<1x128xf32> to vector<8x128xf32>
    %95 = arith.addf %93, %94 : vector<8x128xf32>
    %96 = arith.mulf %90, %95 : vector<8x128xf32>
    %97 = arith.addf %92, %96 : vector<8x128xf32>
    %98 = math.tanh %97 : vector<8x128xf32>
    %99 = arith.subf %51, %98 : vector<8x128xf32>
    %100 = arith.mulf %91, %99 : vector<8x128xf32>
    %101 = arith.addf %98, %100 : vector<8x128xf32>
    %102 = arith.truncf %101 : vector<8x128xf32> to vector<8x128xbf16>
    %c8_48 = arith.constant 8 : index
    %c0_49 = arith.constant 0 : index
    %103 = vector.load %arg8[%c8_48, %c0_49] : memref<64x128xbf16, #tpu.memory_space<vmem>>, vector<8x128xbf16>
    tpu.vector_store %arg8[%c8_48, %c0_49], %102 {strides = array<i32>} : memref<64x128xbf16, #tpu.memory_space<vmem>>, vector<8x128xbf16>,
    %c48 = arith.constant 48 : index
    %c0_50 = arith.constant 0 : index
    %104 = vector.load %arg13[%c48, %c0_50] : memref<64x384xf32, #tpu.memory_space<vmem>>, vector<8x384xf32>
    %105 = arith.truncf %76 : vector<8x128xf32> to vector<8x128xbf16>
    %cst_51 = arith.constant dense<0.000000e+00> : vector<8x384xf32>
    %106 = tpu.matmul %105, %22, %cst_51 {dimension_numbers = #tpu.dot_dimension_numbers<[1], [0], [0], [1], [0, 0, 1, 1], [], []>} : vector<8x128xbf16>, vector<128x384xbf16>, vector<8x384xf32> -> vector<8x384xf32>
    %107 = vector.extract_strided_slice %104 {offsets = [0, 0], sizes = [8, 256], strides = [1, 1]} : vector<8x384xf32> to vector<8x256xf32>
    %108 = vector.extract_strided_slice %106 {offsets = [0, 0], sizes = [8, 256], strides = [1, 1]} : vector<8x384xf32> to vector<8x256xf32>
    %109 = arith.addf %107, %108 : vector<8x256xf32>
    %110 = arith.negf %109 : vector<8x256xf32>
    %111 = math.exp %110 : vector<8x256xf32>
    %cst_52 = arith.constant 1.000000e+00 : f32
    %112 = vector.broadcast %cst_52 : f32 to vector<8x256xf32>
    %113 = arith.addf %112, %111 : vector<8x256xf32>
    %114 = arith.divf %112, %113 : vector<8x256xf32>
    %115 = vector.extract_strided_slice %114 {offsets = [0, 0], sizes = [8, 128], strides = [1, 1]} : vector<8x256xf32> to vector<8x128xf32>
    %116 = vector.extract_strided_slice %114 {offsets = [0, 128], sizes = [8, 128], strides = [1, 1]} : vector<8x256xf32> to vector<8x128xf32>
    %117 = vector.extract_strided_slice %104 {offsets = [0, 256], sizes = [8, 128], strides = [1, 1]} : vector<8x384xf32> to vector<8x128xf32>
    %118 = vector.extract_strided_slice %106 {offsets = [0, 256], sizes = [8, 128], strides = [1, 1]} : vector<8x384xf32> to vector<8x128xf32>
    %119 = vector.broadcast %26 : vector<1x128xf32> to vector<8x128xf32>
    %120 = arith.addf %118, %119 : vector<8x128xf32>
    %121 = arith.mulf %115, %120 : vector<8x128xf32>
    %122 = arith.addf %117, %121 : vector<8x128xf32>
    %123 = math.tanh %122 : vector<8x128xf32>
    %124 = arith.subf %76, %123 : vector<8x128xf32>
    %125 = arith.mulf %116, %124 : vector<8x128xf32>
    %126 = arith.addf %123, %125 : vector<8x128xf32>
    %127 = arith.truncf %126 : vector<8x128xf32> to vector<8x128xbf16>
    %c48_53 = arith.constant 48 : index
    %c0_54 = arith.constant 0 : index
    %128 = vector.load %arg9[%c48_53, %c0_54] : memref<64x128xbf16, #tpu.memory_space<vmem>>, vector<8x128xbf16>
    tpu.vector_store %arg9[%c48_53, %c0_54], %127 {strides = array<i32>} : memref<64x128xbf16, #tpu.memory_space<vmem>>, vector<8x128xbf16>,
    %c16 = arith.constant 16 : index
    %c0_55 = arith.constant 0 : index
    %129 = vector.load %arg12[%c16, %c0_55] : memref<64x384xf32, #tpu.memory_space<vmem>>, vector<8x384xf32>
    %130 = arith.truncf %101 : vector<8x128xf32> to vector<8x128xbf16>
    %cst_56 = arith.constant dense<0.000000e+00> : vector<8x384xf32>
    %131 = tpu.matmul %130, %20, %cst_56 {dimension_numbers = #tpu.dot_dimension_numbers<[1], [0], [0], [1], [0, 0, 1, 1], [], []>} : vector<8x128xbf16>, vector<128x384xbf16>, vector<8x384xf32> -> vector<8x384xf32>
    %132 = vector.extract_strided_slice %129 {offsets = [0, 0], sizes = [8, 256], strides = [1, 1]} : vector<8x384xf32> to vector<8x256xf32>
    %133 = vector.extract_strided_slice %131 {offsets = [0, 0], sizes = [8, 256], strides = [1, 1]} : vector<8x384xf32> to vector<8x256xf32>
    %134 = arith.addf %132, %133 : vector<8x256xf32>
    %135 = arith.negf %134 : vector<8x256xf32>
    %136 = math.exp %135 : vector<8x256xf32>
    %cst_57 = arith.constant 1.000000e+00 : f32
    %137 = vector.broadcast %cst_57 : f32 to vector<8x256xf32>
    %138 = arith.addf %137, %136 : vector<8x256xf32>
    %139 = arith.divf %137, %138 : vector<8x256xf32>
    %140 = vector.extract_strided_slice %139 {offsets = [0, 0], sizes = [8, 128], strides = [1, 1]} : vector<8x256xf32> to vector<8x128xf32>
    %141 = vector.extract_strided_slice %139 {offsets = [0, 128], sizes = [8, 128], strides = [1, 1]} : vector<8x256xf32> to vector<8x128xf32>
    %142 = vector.extract_strided_slice %129 {offsets = [0, 256], sizes = [8, 128], strides = [1, 1]} : vector<8x384xf32> to vector<8x128xf32>
    %143 = vector.extract_strided_slice %131 {offsets = [0, 256], sizes = [8, 128], strides = [1, 1]} : vector<8x384xf32> to vector<8x128xf32>
    %144 = vector.broadcast %24 : vector<1x128xf32> to vector<8x128xf32>
    %145 = arith.addf %143, %144 : vector<8x128xf32>
    %146 = arith.mulf %140, %145 : vector<8x128xf32>
    %147 = arith.addf %142, %146 : vector<8x128xf32>
    %148 = math.tanh %147 : vector<8x128xf32>
    %149 = arith.subf %101, %148 : vector<8x128xf32>
    %150 = arith.mulf %141, %149 : vector<8x128xf32>
    %151 = arith.addf %148, %150 : vector<8x128xf32>
    %152 = arith.truncf %151 : vector<8x128xf32> to vector<8x128xbf16>
    %c16_58 = arith.constant 16 : index
    %c0_59 = arith.constant 0 : index
    %153 = vector.load %arg8[%c16_58, %c0_59] : memref<64x128xbf16, #tpu.memory_space<vmem>>, vector<8x128xbf16>
    tpu.vector_store %arg8[%c16_58, %c0_59], %152 {strides = array<i32>} : memref<64x128xbf16, #tpu.memory_space<vmem>>, vector<8x128xbf16>,
    %c40 = arith.constant 40 : index
    %c0_60 = arith.constant 0 : index
    %154 = vector.load %arg13[%c40, %c0_60] : memref<64x384xf32, #tpu.memory_space<vmem>>, vector<8x384xf32>
    %155 = arith.truncf %126 : vector<8x128xf32> to vector<8x128xbf16>
    %cst_61 = arith.constant dense<0.000000e+00> : vector<8x384xf32>
    %156 = tpu.matmul %155, %22, %cst_61 {dimension_numbers = #tpu.dot_dimension_numbers<[1], [0], [0], [1], [0, 0, 1, 1], [], []>} : vector<8x128xbf16>, vector<128x384xbf16>, vector<8x384xf32> -> vector<8x384xf32>
    %157 = vector.extract_strided_slice %154 {offsets = [0, 0], sizes = [8, 256], strides = [1, 1]} : vector<8x384xf32> to vector<8x256xf32>
    %158 = vector.extract_strided_slice %156 {offsets = [0, 0], sizes = [8, 256], strides = [1, 1]} : vector<8x384xf32> to vector<8x256xf32>
    %159 = arith.addf %157, %158 : vector<8x256xf32>
    %160 = arith.negf %159 : vector<8x256xf32>
    %161 = math.exp %160 : vector<8x256xf32>
    %cst_62 = arith.constant 1.000000e+00 : f32
    %162 = vector.broadcast %cst_62 : f32 to vector<8x256xf32>
    %163 = arith.addf %162, %161 : vector<8x256xf32>
    %164 = arith.divf %162, %163 : vector<8x256xf32>
    %165 = vector.extract_strided_slice %164 {offsets = [0, 0], sizes = [8, 128], strides = [1, 1]} : vector<8x256xf32> to vector<8x128xf32>
    %166 = vector.extract_strided_slice %164 {offsets = [0, 128], sizes = [8, 128], strides = [1, 1]} : vector<8x256xf32> to vector<8x128xf32>
    %167 = vector.extract_strided_slice %154 {offsets = [0, 256], sizes = [8, 128], strides = [1, 1]} : vector<8x384xf32> to vector<8x128xf32>
    %168 = vector.extract_strided_slice %156 {offsets = [0, 256], sizes = [8, 128], strides = [1, 1]} : vector<8x384xf32> to vector<8x128xf32>
    %169 = vector.broadcast %26 : vector<1x128xf32> to vector<8x128xf32>
    %170 = arith.addf %168, %169 : vector<8x128xf32>
    %171 = arith.mulf %165, %170 : vector<8x128xf32>
    %172 = arith.addf %167, %171 : vector<8x128xf32>
    %173 = math.tanh %172 : vector<8x128xf32>
    %174 = arith.subf %126, %173 : vector<8x128xf32>
    %175 = arith.mulf %166, %174 : vector<8x128xf32>
    %176 = arith.addf %173, %175 : vector<8x128xf32>
    %177 = arith.truncf %176 : vector<8x128xf32> to vector<8x128xbf16>
    %c40_63 = arith.constant 40 : index
    %c0_64 = arith.constant 0 : index
    %178 = vector.load %arg9[%c40_63, %c0_64] : memref<64x128xbf16, #tpu.memory_space<vmem>>, vector<8x128xbf16>
    tpu.vector_store %arg9[%c40_63, %c0_64], %177 {strides = array<i32>} : memref<64x128xbf16, #tpu.memory_space<vmem>>, vector<8x128xbf16>,
    %c24 = arith.constant 24 : index
    %c0_65 = arith.constant 0 : index
    %179 = vector.load %arg12[%c24, %c0_65] : memref<64x384xf32, #tpu.memory_space<vmem>>, vector<8x384xf32>
    %180 = arith.truncf %151 : vector<8x128xf32> to vector<8x128xbf16>
    %cst_66 = arith.constant dense<0.000000e+00> : vector<8x384xf32>
    %181 = tpu.matmul %180, %20, %cst_66 {dimension_numbers = #tpu.dot_dimension_numbers<[1], [0], [0], [1], [0, 0, 1, 1], [], []>} : vector<8x128xbf16>, vector<128x384xbf16>, vector<8x384xf32> -> vector<8x384xf32>
    %182 = vector.extract_strided_slice %179 {offsets = [0, 0], sizes = [8, 256], strides = [1, 1]} : vector<8x384xf32> to vector<8x256xf32>
    %183 = vector.extract_strided_slice %181 {offsets = [0, 0], sizes = [8, 256], strides = [1, 1]} : vector<8x384xf32> to vector<8x256xf32>
    %184 = arith.addf %182, %183 : vector<8x256xf32>
    %185 = arith.negf %184 : vector<8x256xf32>
    %186 = math.exp %185 : vector<8x256xf32>
    %cst_67 = arith.constant 1.000000e+00 : f32
    %187 = vector.broadcast %cst_67 : f32 to vector<8x256xf32>
    %188 = arith.addf %187, %186 : vector<8x256xf32>
    %189 = arith.divf %187, %188 : vector<8x256xf32>
    %190 = vector.extract_strided_slice %189 {offsets = [0, 0], sizes = [8, 128], strides = [1, 1]} : vector<8x256xf32> to vector<8x128xf32>
    %191 = vector.extract_strided_slice %189 {offsets = [0, 128], sizes = [8, 128], strides = [1, 1]} : vector<8x256xf32> to vector<8x128xf32>
    %192 = vector.extract_strided_slice %179 {offsets = [0, 256], sizes = [8, 128], strides = [1, 1]} : vector<8x384xf32> to vector<8x128xf32>
    %193 = vector.extract_strided_slice %181 {offsets = [0, 256], sizes = [8, 128], strides = [1, 1]} : vector<8x384xf32> to vector<8x128xf32>
    %194 = vector.broadcast %24 : vector<1x128xf32> to vector<8x128xf32>
    %195 = arith.addf %193, %194 : vector<8x128xf32>
    %196 = arith.mulf %190, %195 : vector<8x128xf32>
    %197 = arith.addf %192, %196 : vector<8x128xf32>
    %198 = math.tanh %197 : vector<8x128xf32>
    %199 = arith.subf %151, %198 : vector<8x128xf32>
    %200 = arith.mulf %191, %199 : vector<8x128xf32>
    %201 = arith.addf %198, %200 : vector<8x128xf32>
    %202 = arith.truncf %201 : vector<8x128xf32> to vector<8x128xbf16>
    %c24_68 = arith.constant 24 : index
    %c0_69 = arith.constant 0 : index
    %203 = vector.load %arg8[%c24_68, %c0_69] : memref<64x128xbf16, #tpu.memory_space<vmem>>, vector<8x128xbf16>
    tpu.vector_store %arg8[%c24_68, %c0_69], %202 {strides = array<i32>} : memref<64x128xbf16, #tpu.memory_space<vmem>>, vector<8x128xbf16>,
    %c32 = arith.constant 32 : index
    %c0_70 = arith.constant 0 : index
    %204 = vector.load %arg13[%c32, %c0_70] : memref<64x384xf32, #tpu.memory_space<vmem>>, vector<8x384xf32>
    %205 = arith.truncf %176 : vector<8x128xf32> to vector<8x128xbf16>
    %cst_71 = arith.constant dense<0.000000e+00> : vector<8x384xf32>
    %206 = tpu.matmul %205, %22, %cst_71 {dimension_numbers = #tpu.dot_dimension_numbers<[1], [0], [0], [1], [0, 0, 1, 1], [], []>} : vector<8x128xbf16>, vector<128x384xbf16>, vector<8x384xf32> -> vector<8x384xf32>
    %207 = vector.extract_strided_slice %204 {offsets = [0, 0], sizes = [8, 256], strides = [1, 1]} : vector<8x384xf32> to vector<8x256xf32>
    %208 = vector.extract_strided_slice %206 {offsets = [0, 0], sizes = [8, 256], strides = [1, 1]} : vector<8x384xf32> to vector<8x256xf32>
    %209 = arith.addf %207, %208 : vector<8x256xf32>
    %210 = arith.negf %209 : vector<8x256xf32>
    %211 = math.exp %210 : vector<8x256xf32>
    %cst_72 = arith.constant 1.000000e+00 : f32
    %212 = vector.broadcast %cst_72 : f32 to vector<8x256xf32>
    %213 = arith.addf %212, %211 : vector<8x256xf32>
    %214 = arith.divf %212, %213 : vector<8x256xf32>
    %215 = vector.extract_strided_slice %214 {offsets = [0, 0], sizes = [8, 128], strides = [1, 1]} : vector<8x256xf32> to vector<8x128xf32>
    %216 = vector.extract_strided_slice %214 {offsets = [0, 128], sizes = [8, 128], strides = [1, 1]} : vector<8x256xf32> to vector<8x128xf32>
    %217 = vector.extract_strided_slice %204 {offsets = [0, 256], sizes = [8, 128], strides = [1, 1]} : vector<8x384xf32> to vector<8x128xf32>
    %218 = vector.extract_strided_slice %206 {offsets = [0, 256], sizes = [8, 128], strides = [1, 1]} : vector<8x384xf32> to vector<8x128xf32>
    %219 = vector.broadcast %26 : vector<1x128xf32> to vector<8x128xf32>
    %220 = arith.addf %218, %219 : vector<8x128xf32>
    %221 = arith.mulf %215, %220 : vector<8x128xf32>
    %222 = arith.addf %217, %221 : vector<8x128xf32>
    %223 = math.tanh %222 : vector<8x128xf32>
    %224 = arith.subf %176, %223 : vector<8x128xf32>
    %225 = arith.mulf %216, %224 : vector<8x128xf32>
    %226 = arith.addf %223, %225 : vector<8x128xf32>
    %227 = arith.truncf %226 : vector<8x128xf32> to vector<8x128xbf16>
    %c32_73 = arith.constant 32 : index
    %c0_74 = arith.constant 0 : index
    %228 = vector.load %arg9[%c32_73, %c0_74] : memref<64x128xbf16, #tpu.memory_space<vmem>>, vector<8x128xbf16>
    tpu.vector_store %arg9[%c32_73, %c0_74], %227 {strides = array<i32>} : memref<64x128xbf16, #tpu.memory_space<vmem>>, vector<8x128xbf16>,
    %c32_75 = arith.constant 32 : index
    %c0_76 = arith.constant 0 : index
    %229 = vector.load %arg12[%c32_75, %c0_76] : memref<64x384xf32, #tpu.memory_space<vmem>>, vector<8x384xf32>
    %230 = arith.truncf %201 : vector<8x128xf32> to vector<8x128xbf16>
    %cst_77 = arith.constant dense<0.000000e+00> : vector<8x384xf32>
    %231 = tpu.matmul %230, %20, %cst_77 {dimension_numbers = #tpu.dot_dimension_numbers<[1], [0], [0], [1], [0, 0, 1, 1], [], []>} : vector<8x128xbf16>, vector<128x384xbf16>, vector<8x384xf32> -> vector<8x384xf32>
    %232 = vector.extract_strided_slice %229 {offsets = [0, 0], sizes = [8, 256], strides = [1, 1]} : vector<8x384xf32> to vector<8x256xf32>
    %233 = vector.extract_strided_slice %231 {offsets = [0, 0], sizes = [8, 256], strides = [1, 1]} : vector<8x384xf32> to vector<8x256xf32>
    %234 = arith.addf %232, %233 : vector<8x256xf32>
    %235 = arith.negf %234 : vector<8x256xf32>
    %236 = math.exp %235 : vector<8x256xf32>
    %cst_78 = arith.constant 1.000000e+00 : f32
    %237 = vector.broadcast %cst_78 : f32 to vector<8x256xf32>
    %238 = arith.addf %237, %236 : vector<8x256xf32>
    %239 = arith.divf %237, %238 : vector<8x256xf32>
    %240 = vector.extract_strided_slice %239 {offsets = [0, 0], sizes = [8, 128], strides = [1, 1]} : vector<8x256xf32> to vector<8x128xf32>
    %241 = vector.extract_strided_slice %239 {offsets = [0, 128], sizes = [8, 128], strides = [1, 1]} : vector<8x256xf32> to vector<8x128xf32>
    %242 = vector.extract_strided_slice %229 {offsets = [0, 256], sizes = [8, 128], strides = [1, 1]} : vector<8x384xf32> to vector<8x128xf32>
    %243 = vector.extract_strided_slice %231 {offsets = [0, 256], sizes = [8, 128], strides = [1, 1]} : vector<8x384xf32> to vector<8x128xf32>
    %244 = vector.broadcast %24 : vector<1x128xf32> to vector<8x128xf32>
    %245 = arith.addf %243, %244 : vector<8x128xf32>
    %246 = arith.mulf %240, %245 : vector<8x128xf32>
    %247 = arith.addf %242, %246 : vector<8x128xf32>
    %248 = math.tanh %247 : vector<8x128xf32>
    %249 = arith.subf %201, %248 : vector<8x128xf32>
    %250 = arith.mulf %241, %249 : vector<8x128xf32>
    %251 = arith.addf %248, %250 : vector<8x128xf32>
    %252 = arith.truncf %251 : vector<8x128xf32> to vector<8x128xbf16>
    %c32_79 = arith.constant 32 : index
    %c0_80 = arith.constant 0 : index
    %253 = vector.load %arg8[%c32_79, %c0_80] : memref<64x128xbf16, #tpu.memory_space<vmem>>, vector<8x128xbf16>
    tpu.vector_store %arg8[%c32_79, %c0_80], %252 {strides = array<i32>} : memref<64x128xbf16, #tpu.memory_space<vmem>>, vector<8x128xbf16>,
    %c24_81 = arith.constant 24 : index
    %c0_82 = arith.constant 0 : index
    %254 = vector.load %arg13[%c24_81, %c0_82] : memref<64x384xf32, #tpu.memory_space<vmem>>, vector<8x384xf32>
    %255 = arith.truncf %226 : vector<8x128xf32> to vector<8x128xbf16>
    %cst_83 = arith.constant dense<0.000000e+00> : vector<8x384xf32>
    %256 = tpu.matmul %255, %22, %cst_83 {dimension_numbers = #tpu.dot_dimension_numbers<[1], [0], [0], [1], [0, 0, 1, 1], [], []>} : vector<8x128xbf16>, vector<128x384xbf16>, vector<8x384xf32> -> vector<8x384xf32>
    %257 = vector.extract_strided_slice %254 {offsets = [0, 0], sizes = [8, 256], strides = [1, 1]} : vector<8x384xf32> to vector<8x256xf32>
    %258 = vector.extract_strided_slice %256 {offsets = [0, 0], sizes = [8, 256], strides = [1, 1]} : vector<8x384xf32> to vector<8x256xf32>
    %259 = arith.addf %257, %258 : vector<8x256xf32>
    %260 = arith.negf %259 : vector<8x256xf32>
    %261 = math.exp %260 : vector<8x256xf32>
    %cst_84 = arith.constant 1.000000e+00 : f32
    %262 = vector.broadcast %cst_84 : f32 to vector<8x256xf32>
    %263 = arith.addf %262, %261 : vector<8x256xf32>
    %264 = arith.divf %262, %263 : vector<8x256xf32>
    %265 = vector.extract_strided_slice %264 {offsets = [0, 0], sizes = [8, 128], strides = [1, 1]} : vector<8x256xf32> to vector<8x128xf32>
    %266 = vector.extract_strided_slice %264 {offsets = [0, 128], sizes = [8, 128], strides = [1, 1]} : vector<8x256xf32> to vector<8x128xf32>
    %267 = vector.extract_strided_slice %254 {offsets = [0, 256], sizes = [8, 128], strides = [1, 1]} : vector<8x384xf32> to vector<8x128xf32>
    %268 = vector.extract_strided_slice %256 {offsets = [0, 256], sizes = [8, 128], strides = [1, 1]} : vector<8x384xf32> to vector<8x128xf32>
    %269 = vector.broadcast %26 : vector<1x128xf32> to vector<8x128xf32>
    %270 = arith.addf %268, %269 : vector<8x128xf32>
    %271 = arith.mulf %265, %270 : vector<8x128xf32>
    %272 = arith.addf %267, %271 : vector<8x128xf32>
    %273 = math.tanh %272 : vector<8x128xf32>
    %274 = arith.subf %226, %273 : vector<8x128xf32>
    %275 = arith.mulf %266, %274 : vector<8x128xf32>
    %276 = arith.addf %273, %275 : vector<8x128xf32>
    %277 = arith.truncf %276 : vector<8x128xf32> to vector<8x128xbf16>
    %c24_85 = arith.constant 24 : index
    %c0_86 = arith.constant 0 : index
    %278 = vector.load %arg9[%c24_85, %c0_86] : memref<64x128xbf16, #tpu.memory_space<vmem>>, vector<8x128xbf16>
    tpu.vector_store %arg9[%c24_85, %c0_86], %277 {strides = array<i32>} : memref<64x128xbf16, #tpu.memory_space<vmem>>, vector<8x128xbf16>,
    %c40_87 = arith.constant 40 : index
    %c0_88 = arith.constant 0 : index
    %279 = vector.load %arg12[%c40_87, %c0_88] : memref<64x384xf32, #tpu.memory_space<vmem>>, vector<8x384xf32>
    %280 = arith.truncf %251 : vector<8x128xf32> to vector<8x128xbf16>
    %cst_89 = arith.constant dense<0.000000e+00> : vector<8x384xf32>
    %281 = tpu.matmul %280, %20, %cst_89 {dimension_numbers = #tpu.dot_dimension_numbers<[1], [0], [0], [1], [0, 0, 1, 1], [], []>} : vector<8x128xbf16>, vector<128x384xbf16>, vector<8x384xf32> -> vector<8x384xf32>
    %282 = vector.extract_strided_slice %279 {offsets = [0, 0], sizes = [8, 256], strides = [1, 1]} : vector<8x384xf32> to vector<8x256xf32>
    %283 = vector.extract_strided_slice %281 {offsets = [0, 0], sizes = [8, 256], strides = [1, 1]} : vector<8x384xf32> to vector<8x256xf32>
    %284 = arith.addf %282, %283 : vector<8x256xf32>
    %285 = arith.negf %284 : vector<8x256xf32>
    %286 = math.exp %285 : vector<8x256xf32>
    %cst_90 = arith.constant 1.000000e+00 : f32
    %287 = vector.broadcast %cst_90 : f32 to vector<8x256xf32>
    %288 = arith.addf %287, %286 : vector<8x256xf32>
    %289 = arith.divf %287, %288 : vector<8x256xf32>
    %290 = vector.extract_strided_slice %289 {offsets = [0, 0], sizes = [8, 128], strides = [1, 1]} : vector<8x256xf32> to vector<8x128xf32>
    %291 = vector.extract_strided_slice %289 {offsets = [0, 128], sizes = [8, 128], strides = [1, 1]} : vector<8x256xf32> to vector<8x128xf32>
    %292 = vector.extract_strided_slice %279 {offsets = [0, 256], sizes = [8, 128], strides = [1, 1]} : vector<8x384xf32> to vector<8x128xf32>
    %293 = vector.extract_strided_slice %281 {offsets = [0, 256], sizes = [8, 128], strides = [1, 1]} : vector<8x384xf32> to vector<8x128xf32>
    %294 = vector.broadcast %24 : vector<1x128xf32> to vector<8x128xf32>
    %295 = arith.addf %293, %294 : vector<8x128xf32>
    %296 = arith.mulf %290, %295 : vector<8x128xf32>
    %297 = arith.addf %292, %296 : vector<8x128xf32>
    %298 = math.tanh %297 : vector<8x128xf32>
    %299 = arith.subf %251, %298 : vector<8x128xf32>
    %300 = arith.mulf %291, %299 : vector<8x128xf32>
    %301 = arith.addf %298, %300 : vector<8x128xf32>
    %302 = arith.truncf %301 : vector<8x128xf32> to vector<8x128xbf16>
    %c40_91 = arith.constant 40 : index
    %c0_92 = arith.constant 0 : index
    %303 = vector.load %arg8[%c40_91, %c0_92] : memref<64x128xbf16, #tpu.memory_space<vmem>>, vector<8x128xbf16>
    tpu.vector_store %arg8[%c40_91, %c0_92], %302 {strides = array<i32>} : memref<64x128xbf16, #tpu.memory_space<vmem>>, vector<8x128xbf16>,
    %c16_93 = arith.constant 16 : index
    %c0_94 = arith.constant 0 : index
    %304 = vector.load %arg13[%c16_93, %c0_94] : memref<64x384xf32, #tpu.memory_space<vmem>>, vector<8x384xf32>
    %305 = arith.truncf %276 : vector<8x128xf32> to vector<8x128xbf16>
    %cst_95 = arith.constant dense<0.000000e+00> : vector<8x384xf32>
    %306 = tpu.matmul %305, %22, %cst_95 {dimension_numbers = #tpu.dot_dimension_numbers<[1], [0], [0], [1], [0, 0, 1, 1], [], []>} : vector<8x128xbf16>, vector<128x384xbf16>, vector<8x384xf32> -> vector<8x384xf32>
    %307 = vector.extract_strided_slice %304 {offsets = [0, 0], sizes = [8, 256], strides = [1, 1]} : vector<8x384xf32> to vector<8x256xf32>
    %308 = vector.extract_strided_slice %306 {offsets = [0, 0], sizes = [8, 256], strides = [1, 1]} : vector<8x384xf32> to vector<8x256xf32>
    %309 = arith.addf %307, %308 : vector<8x256xf32>
    %310 = arith.negf %309 : vector<8x256xf32>
    %311 = math.exp %310 : vector<8x256xf32>
    %cst_96 = arith.constant 1.000000e+00 : f32
    %312 = vector.broadcast %cst_96 : f32 to vector<8x256xf32>
    %313 = arith.addf %312, %311 : vector<8x256xf32>
    %314 = arith.divf %312, %313 : vector<8x256xf32>
    %315 = vector.extract_strided_slice %314 {offsets = [0, 0], sizes = [8, 128], strides = [1, 1]} : vector<8x256xf32> to vector<8x128xf32>
    %316 = vector.extract_strided_slice %314 {offsets = [0, 128], sizes = [8, 128], strides = [1, 1]} : vector<8x256xf32> to vector<8x128xf32>
    %317 = vector.extract_strided_slice %304 {offsets = [0, 256], sizes = [8, 128], strides = [1, 1]} : vector<8x384xf32> to vector<8x128xf32>
    %318 = vector.extract_strided_slice %306 {offsets = [0, 256], sizes = [8, 128], strides = [1, 1]} : vector<8x384xf32> to vector<8x128xf32>
    %319 = vector.broadcast %26 : vector<1x128xf32> to vector<8x128xf32>
    %320 = arith.addf %318, %319 : vector<8x128xf32>
    %321 = arith.mulf %315, %320 : vector<8x128xf32>
    %322 = arith.addf %317, %321 : vector<8x128xf32>
    %323 = math.tanh %322 : vector<8x128xf32>
    %324 = arith.subf %276, %323 : vector<8x128xf32>
    %325 = arith.mulf %316, %324 : vector<8x128xf32>
    %326 = arith.addf %323, %325 : vector<8x128xf32>
    %327 = arith.truncf %326 : vector<8x128xf32> to vector<8x128xbf16>
    %c16_97 = arith.constant 16 : index
    %c0_98 = arith.constant 0 : index
    %328 = vector.load %arg9[%c16_97, %c0_98] : memref<64x128xbf16, #tpu.memory_space<vmem>>, vector<8x128xbf16>
    tpu.vector_store %arg9[%c16_97, %c0_98], %327 {strides = array<i32>} : memref<64x128xbf16, #tpu.memory_space<vmem>>, vector<8x128xbf16>,
    %c48_99 = arith.constant 48 : index
    %c0_100 = arith.constant 0 : index
    %329 = vector.load %arg12[%c48_99, %c0_100] : memref<64x384xf32, #tpu.memory_space<vmem>>, vector<8x384xf32>
    %330 = arith.truncf %301 : vector<8x128xf32> to vector<8x128xbf16>
    %cst_101 = arith.constant dense<0.000000e+00> : vector<8x384xf32>
    %331 = tpu.matmul %330, %20, %cst_101 {dimension_numbers = #tpu.dot_dimension_numbers<[1], [0], [0], [1], [0, 0, 1, 1], [], []>} : vector<8x128xbf16>, vector<128x384xbf16>, vector<8x384xf32> -> vector<8x384xf32>
    %332 = vector.extract_strided_slice %329 {offsets = [0, 0], sizes = [8, 256], strides = [1, 1]} : vector<8x384xf32> to vector<8x256xf32>
    %333 = vector.extract_strided_slice %331 {offsets = [0, 0], sizes = [8, 256], strides = [1, 1]} : vector<8x384xf32> to vector<8x256xf32>
    %334 = arith.addf %332, %333 : vector<8x256xf32>
    %335 = arith.negf %334 : vector<8x256xf32>
    %336 = math.exp %335 : vector<8x256xf32>
    %cst_102 = arith.constant 1.000000e+00 : f32
    %337 = vector.broadcast %cst_102 : f32 to vector<8x256xf32>
    %338 = arith.addf %337, %336 : vector<8x256xf32>
    %339 = arith.divf %337, %338 : vector<8x256xf32>
    %340 = vector.extract_strided_slice %339 {offsets = [0, 0], sizes = [8, 128], strides = [1, 1]} : vector<8x256xf32> to vector<8x128xf32>
    %341 = vector.extract_strided_slice %339 {offsets = [0, 128], sizes = [8, 128], strides = [1, 1]} : vector<8x256xf32> to vector<8x128xf32>
    %342 = vector.extract_strided_slice %329 {offsets = [0, 256], sizes = [8, 128], strides = [1, 1]} : vector<8x384xf32> to vector<8x128xf32>
    %343 = vector.extract_strided_slice %331 {offsets = [0, 256], sizes = [8, 128], strides = [1, 1]} : vector<8x384xf32> to vector<8x128xf32>
    %344 = vector.broadcast %24 : vector<1x128xf32> to vector<8x128xf32>
    %345 = arith.addf %343, %344 : vector<8x128xf32>
    %346 = arith.mulf %340, %345 : vector<8x128xf32>
    %347 = arith.addf %342, %346 : vector<8x128xf32>
    %348 = math.tanh %347 : vector<8x128xf32>
    %349 = arith.subf %301, %348 : vector<8x128xf32>
    %350 = arith.mulf %341, %349 : vector<8x128xf32>
    %351 = arith.addf %348, %350 : vector<8x128xf32>
    %352 = arith.truncf %351 : vector<8x128xf32> to vector<8x128xbf16>
    %c48_103 = arith.constant 48 : index
    %c0_104 = arith.constant 0 : index
    %353 = vector.load %arg8[%c48_103, %c0_104] : memref<64x128xbf16, #tpu.memory_space<vmem>>, vector<8x128xbf16>
    tpu.vector_store %arg8[%c48_103, %c0_104], %352 {strides = array<i32>} : memref<64x128xbf16, #tpu.memory_space<vmem>>, vector<8x128xbf16>,
    %c8_105 = arith.constant 8 : index
    %c0_106 = arith.constant 0 : index
    %354 = vector.load %arg13[%c8_105, %c0_106] : memref<64x384xf32, #tpu.memory_space<vmem>>, vector<8x384xf32>
    %355 = arith.truncf %326 : vector<8x128xf32> to vector<8x128xbf16>
    %cst_107 = arith.constant dense<0.000000e+00> : vector<8x384xf32>
    %356 = tpu.matmul %355, %22, %cst_107 {dimension_numbers = #tpu.dot_dimension_numbers<[1], [0], [0], [1], [0, 0, 1, 1], [], []>} : vector<8x128xbf16>, vector<128x384xbf16>, vector<8x384xf32> -> vector<8x384xf32>
    %357 = vector.extract_strided_slice %354 {offsets = [0, 0], sizes = [8, 256], strides = [1, 1]} : vector<8x384xf32> to vector<8x256xf32>
    %358 = vector.extract_strided_slice %356 {offsets = [0, 0], sizes = [8, 256], strides = [1, 1]} : vector<8x384xf32> to vector<8x256xf32>
    %359 = arith.addf %357, %358 : vector<8x256xf32>
    %360 = arith.negf %359 : vector<8x256xf32>
    %361 = math.exp %360 : vector<8x256xf32>
    %cst_108 = arith.constant 1.000000e+00 : f32
    %362 = vector.broadcast %cst_108 : f32 to vector<8x256xf32>
    %363 = arith.addf %362, %361 : vector<8x256xf32>
    %364 = arith.divf %362, %363 : vector<8x256xf32>
    %365 = vector.extract_strided_slice %364 {offsets = [0, 0], sizes = [8, 128], strides = [1, 1]} : vector<8x256xf32> to vector<8x128xf32>
    %366 = vector.extract_strided_slice %364 {offsets = [0, 128], sizes = [8, 128], strides = [1, 1]} : vector<8x256xf32> to vector<8x128xf32>
    %367 = vector.extract_strided_slice %354 {offsets = [0, 256], sizes = [8, 128], strides = [1, 1]} : vector<8x384xf32> to vector<8x128xf32>
    %368 = vector.extract_strided_slice %356 {offsets = [0, 256], sizes = [8, 128], strides = [1, 1]} : vector<8x384xf32> to vector<8x128xf32>
    %369 = vector.broadcast %26 : vector<1x128xf32> to vector<8x128xf32>
    %370 = arith.addf %368, %369 : vector<8x128xf32>
    %371 = arith.mulf %365, %370 : vector<8x128xf32>
    %372 = arith.addf %367, %371 : vector<8x128xf32>
    %373 = math.tanh %372 : vector<8x128xf32>
    %374 = arith.subf %326, %373 : vector<8x128xf32>
    %375 = arith.mulf %366, %374 : vector<8x128xf32>
    %376 = arith.addf %373, %375 : vector<8x128xf32>
    %377 = arith.truncf %376 : vector<8x128xf32> to vector<8x128xbf16>
    %c8_109 = arith.constant 8 : index
    %c0_110 = arith.constant 0 : index
    %378 = vector.load %arg9[%c8_109, %c0_110] : memref<64x128xbf16, #tpu.memory_space<vmem>>, vector<8x128xbf16>
    tpu.vector_store %arg9[%c8_109, %c0_110], %377 {strides = array<i32>} : memref<64x128xbf16, #tpu.memory_space<vmem>>, vector<8x128xbf16>,
    %c56_111 = arith.constant 56 : index
    %c0_112 = arith.constant 0 : index
    %379 = vector.load %arg12[%c56_111, %c0_112] : memref<64x384xf32, #tpu.memory_space<vmem>>, vector<8x384xf32>
    %380 = arith.truncf %351 : vector<8x128xf32> to vector<8x128xbf16>
    %cst_113 = arith.constant dense<0.000000e+00> : vector<8x384xf32>
    %381 = tpu.matmul %380, %20, %cst_113 {dimension_numbers = #tpu.dot_dimension_numbers<[1], [0], [0], [1], [0, 0, 1, 1], [], []>} : vector<8x128xbf16>, vector<128x384xbf16>, vector<8x384xf32> -> vector<8x384xf32>
    %382 = vector.extract_strided_slice %379 {offsets = [0, 0], sizes = [8, 256], strides = [1, 1]} : vector<8x384xf32> to vector<8x256xf32>
    %383 = vector.extract_strided_slice %381 {offsets = [0, 0], sizes = [8, 256], strides = [1, 1]} : vector<8x384xf32> to vector<8x256xf32>
    %384 = arith.addf %382, %383 : vector<8x256xf32>
    %385 = arith.negf %384 : vector<8x256xf32>
    %386 = math.exp %385 : vector<8x256xf32>
    %cst_114 = arith.constant 1.000000e+00 : f32
    %387 = vector.broadcast %cst_114 : f32 to vector<8x256xf32>
    %388 = arith.addf %387, %386 : vector<8x256xf32>
    %389 = arith.divf %387, %388 : vector<8x256xf32>
    %390 = vector.extract_strided_slice %389 {offsets = [0, 0], sizes = [8, 128], strides = [1, 1]} : vector<8x256xf32> to vector<8x128xf32>
    %391 = vector.extract_strided_slice %389 {offsets = [0, 128], sizes = [8, 128], strides = [1, 1]} : vector<8x256xf32> to vector<8x128xf32>
    %392 = vector.extract_strided_slice %379 {offsets = [0, 256], sizes = [8, 128], strides = [1, 1]} : vector<8x384xf32> to vector<8x128xf32>
    %393 = vector.extract_strided_slice %381 {offsets = [0, 256], sizes = [8, 128], strides = [1, 1]} : vector<8x384xf32> to vector<8x128xf32>
    %394 = vector.broadcast %24 : vector<1x128xf32> to vector<8x128xf32>
    %395 = arith.addf %393, %394 : vector<8x128xf32>
    %396 = arith.mulf %390, %395 : vector<8x128xf32>
    %397 = arith.addf %392, %396 : vector<8x128xf32>
    %398 = math.tanh %397 : vector<8x128xf32>
    %399 = arith.subf %351, %398 : vector<8x128xf32>
    %400 = arith.mulf %391, %399 : vector<8x128xf32>
    %401 = arith.addf %398, %400 : vector<8x128xf32>
    %402 = arith.truncf %401 : vector<8x128xf32> to vector<8x128xbf16>
    %c56_115 = arith.constant 56 : index
    %c0_116 = arith.constant 0 : index
    %403 = vector.load %arg8[%c56_115, %c0_116] : memref<64x128xbf16, #tpu.memory_space<vmem>>, vector<8x128xbf16>
    tpu.vector_store %arg8[%c56_115, %c0_116], %402 {strides = array<i32>} : memref<64x128xbf16, #tpu.memory_space<vmem>>, vector<8x128xbf16>,
    %c0_117 = arith.constant 0 : index
    %c0_118 = arith.constant 0 : index
    %404 = vector.load %arg13[%c0_117, %c0_118] : memref<64x384xf32, #tpu.memory_space<vmem>>, vector<8x384xf32>
    %405 = arith.truncf %376 : vector<8x128xf32> to vector<8x128xbf16>
    %cst_119 = arith.constant dense<0.000000e+00> : vector<8x384xf32>
    %406 = tpu.matmul %405, %22, %cst_119 {dimension_numbers = #tpu.dot_dimension_numbers<[1], [0], [0], [1], [0, 0, 1, 1], [], []>} : vector<8x128xbf16>, vector<128x384xbf16>, vector<8x384xf32> -> vector<8x384xf32>
    %407 = vector.extract_strided_slice %404 {offsets = [0, 0], sizes = [8, 256], strides = [1, 1]} : vector<8x384xf32> to vector<8x256xf32>
    %408 = vector.extract_strided_slice %406 {offsets = [0, 0], sizes = [8, 256], strides = [1, 1]} : vector<8x384xf32> to vector<8x256xf32>
    %409 = arith.addf %407, %408 : vector<8x256xf32>
    %410 = arith.negf %409 : vector<8x256xf32>
    %411 = math.exp %410 : vector<8x256xf32>
    %cst_120 = arith.constant 1.000000e+00 : f32
    %412 = vector.broadcast %cst_120 : f32 to vector<8x256xf32>
    %413 = arith.addf %412, %411 : vector<8x256xf32>
    %414 = arith.divf %412, %413 : vector<8x256xf32>
    %415 = vector.extract_strided_slice %414 {offsets = [0, 0], sizes = [8, 128], strides = [1, 1]} : vector<8x256xf32> to vector<8x128xf32>
    %416 = vector.extract_strided_slice %414 {offsets = [0, 128], sizes = [8, 128], strides = [1, 1]} : vector<8x256xf32> to vector<8x128xf32>
    %417 = vector.extract_strided_slice %404 {offsets = [0, 256], sizes = [8, 128], strides = [1, 1]} : vector<8x384xf32> to vector<8x128xf32>
    %418 = vector.extract_strided_slice %406 {offsets = [0, 256], sizes = [8, 128], strides = [1, 1]} : vector<8x384xf32> to vector<8x128xf32>
    %419 = vector.broadcast %26 : vector<1x128xf32> to vector<8x128xf32>
    %420 = arith.addf %418, %419 : vector<8x128xf32>
    %421 = arith.mulf %415, %420 : vector<8x128xf32>
    %422 = arith.addf %417, %421 : vector<8x128xf32>
    %423 = math.tanh %422 : vector<8x128xf32>
    %424 = arith.subf %376, %423 : vector<8x128xf32>
    %425 = arith.mulf %416, %424 : vector<8x128xf32>
    %426 = arith.addf %423, %425 : vector<8x128xf32>
    %427 = arith.truncf %426 : vector<8x128xf32> to vector<8x128xbf16>
    %c0_121 = arith.constant 0 : index
    %c0_122 = arith.constant 0 : index
    %428 = vector.load %arg9[%c0_121, %c0_122] : memref<64x128xbf16, #tpu.memory_space<vmem>>, vector<8x128xbf16>
    tpu.vector_store %arg9[%c0_121, %c0_122], %427 {strides = array<i32>} : memref<64x128xbf16, #tpu.memory_space<vmem>>, vector<8x128xbf16>,
    %c0_123 = arith.constant 0 : index
    %c0_124 = arith.constant 0 : index
    %429 = vector.load %arg10[%c0_123, %c0_124] : memref<8x128xf32, #tpu.memory_space<vmem>>, vector<8x128xf32>
    tpu.vector_store %arg10[%c0_123, %c0_124], %401 {strides = array<i32>} : memref<8x128xf32, #tpu.memory_space<vmem>>, vector<8x128xf32>,
    %c0_125 = arith.constant 0 : index
    %c0_126 = arith.constant 0 : index
    %430 = vector.load %arg11[%c0_125, %c0_126] : memref<8x128xf32, #tpu.memory_space<vmem>>, vector<8x128xf32>
    tpu.vector_store %arg11[%c0_125, %c0_126], %426 {strides = array<i32>} : memref<8x128xf32, #tpu.memory_space<vmem>>, vector<8x128xf32>,
    return
  }
  func.func @transform_0(%arg0: i32) -> (i32, i32) {
    %c0_i32 = arith.constant 0 : i32
    %c0_i32_0 = arith.constant 0 : i32
    return %arg0, %c0_i32 : i32, i32
  }
  func.func @transform_1(%arg0: i32) -> (i32, i32) {
    %c0_i32 = arith.constant 0 : i32
    %0 = arith.subi %c0_i32, %arg0 : i32
    %c0_i32_0 = arith.constant 0 : i32
    %c0_i32_1 = arith.constant 0 : i32
    return %0, %c0_i32_0 : i32, i32
  }
  func.func @transform_2(%arg0: i32) -> (i32, i32) {
    %c0_i32 = arith.constant 0 : i32
    %c0_i32_0 = arith.constant 0 : i32
    %c0_i32_1 = arith.constant 0 : i32
    return %c0_i32, %c0_i32_0 : i32, i32
  }
  func.func @transform_3(%arg0: i32) -> (i32, i32) {
    %c0_i32 = arith.constant 0 : i32
    %c0_i32_0 = arith.constant 0 : i32
    %c0_i32_1 = arith.constant 0 : i32
    return %c0_i32, %c0_i32_0 : i32, i32
  }
  func.func @transform_4(%arg0: i32) -> (i32, i32, i32) {
    %c0_i32 = arith.constant 0 : i32
    %c0_i32_0 = arith.constant 0 : i32
    %c0_i32_1 = arith.constant 0 : i32
    %c0_i32_2 = arith.constant 0 : i32
    return %c0_i32, %c0_i32_0, %c0_i32_1 : i32, i32, i32
  }
  func.func @transform_5(%arg0: i32) -> (i32, i32, i32) {
    %c0_i32 = arith.constant 0 : i32
    %c0_i32_0 = arith.constant 0 : i32
    %c0_i32_1 = arith.constant 0 : i32
    %c0_i32_2 = arith.constant 0 : i32
    return %c0_i32, %c0_i32_0, %c0_i32_1 : i32, i32, i32
  }
  func.func @transform_6(%arg0: i32) -> (i32, i32, i32) {
    %c0_i32 = arith.constant 0 : i32
    %c0_i32_0 = arith.constant 0 : i32
    %c0_i32_1 = arith.constant 0 : i32
    %c0_i32_2 = arith.constant 0 : i32
    return %c0_i32, %c0_i32_0, %c0_i32_1 : i32, i32, i32
  }
  func.func @transform_7(%arg0: i32) -> (i32, i32) {
    %c0_i32 = arith.constant 0 : i32
    %c0_i32_0 = arith.constant 0 : i32
    return %arg0, %c0_i32 : i32, i32
  }
  func.func @transform_8(%arg0: i32) -> (i32, i32) {
    %c0_i32 = arith.constant 0 : i32
    %0 = arith.subi %c0_i32, %arg0 : i32
    %c0_i32_0 = arith.constant 0 : i32
    %c0_i32_1 = arith.constant 0 : i32
    return %0, %c0_i32_0 : i32, i32
  }
}

module attributes {stable_mosaic.version = 11 : i64} {
  func.func @head_kernel(%arg0: i32, %arg1: memref<64x128xbf16, #tpu.memory_space<vmem>>, %arg2: memref<64x128xbf16, #tpu.memory_space<vmem>>, %arg3: memref<128x128xbf16, #tpu.memory_space<vmem>>, %arg4: memref<128x128xbf16, #tpu.memory_space<vmem>>, %arg5: memref<1x128xf32, #tpu.memory_space<vmem>>, %arg6: memref<1x128xf32, #tpu.memory_space<vmem>>, %arg7: memref<1x128xf32, #tpu.memory_space<vmem>>, %arg8: memref<64x128xf32, #tpu.memory_space<vmem>>) attributes {dimension_semantics = [#tpu.dimension_semantics<parallel>], iteration_bounds = array<i64: 1>, scalar_prefetch = 0 : i64, scratch_operands = 0 : i64, tpu.core_type = #tpu.core_type<tc>, window_params = [{transform_indices = @transform_0, window_bounds = array<i64: 64, 128>}, {transform_indices = @transform_1, window_bounds = array<i64: 64, 128>}, {pipeline_mode = #tpu.pipeline_mode<synchronous>, transform_indices = @transform_2, window_bounds = array<i64: 128, 128>}, {pipeline_mode = #tpu.pipeline_mode<synchronous>, transform_indices = @transform_3, window_bounds = array<i64: 128, 128>}, {pipeline_mode = #tpu.pipeline_mode<synchronous>, transform_indices = @transform_4, window_bounds = array<i64: 1, 128>}, {pipeline_mode = #tpu.pipeline_mode<synchronous>, transform_indices = @transform_5, window_bounds = array<i64: 1, 128>}, {pipeline_mode = #tpu.pipeline_mode<synchronous>, transform_indices = @transform_6, window_bounds = array<i64: 1, 128>}, {transform_indices = @transform_7, window_bounds = array<i64: 64, 128>}]} {
    %c0 = arith.constant 0 : index
    %c0_0 = arith.constant 0 : index
    %0 = vector.load %arg1[%c0, %c0_0] : memref<64x128xbf16, #tpu.memory_space<vmem>>, vector<64x128xbf16>
    %c0_1 = arith.constant 0 : index
    %c0_2 = arith.constant 0 : index
    %1 = vector.load %arg3[%c0_1, %c0_2] : memref<128x128xbf16, #tpu.memory_space<vmem>>, vector<128x128xbf16>
    %cst = arith.constant dense<0.000000e+00> : vector<64x128xf32>
    %2 = tpu.matmul %0, %1, %cst {dimension_numbers = #tpu.dot_dimension_numbers<[1], [0], [0], [1], [0, 0, 1, 1], [], []>} : vector<64x128xbf16>, vector<128x128xbf16>, vector<64x128xf32> -> vector<64x128xf32>
    %c0_3 = arith.constant 0 : index
    %c0_4 = arith.constant 0 : index
    %3 = vector.load %arg2[%c0_3, %c0_4] : memref<64x128xbf16, #tpu.memory_space<vmem>>, vector<64x128xbf16>
    %c0_5 = arith.constant 0 : index
    %c0_6 = arith.constant 0 : index
    %4 = vector.load %arg4[%c0_5, %c0_6] : memref<128x128xbf16, #tpu.memory_space<vmem>>, vector<128x128xbf16>
    %cst_7 = arith.constant dense<0.000000e+00> : vector<64x128xf32>
    %5 = tpu.matmul %3, %4, %cst_7 {dimension_numbers = #tpu.dot_dimension_numbers<[1], [0], [0], [1], [0, 0, 1, 1], [], []>} : vector<64x128xbf16>, vector<128x128xbf16>, vector<64x128xf32> -> vector<64x128xf32>
    %6 = arith.addf %2, %5 : vector<64x128xf32>
    %c0_8 = arith.constant 0 : index
    %c0_9 = arith.constant 0 : index
    %7 = vector.load %arg5[%c0_8, %c0_9] : memref<1x128xf32, #tpu.memory_space<vmem>>, vector<1x128xf32>
    %8 = vector.broadcast %7 : vector<1x128xf32> to vector<64x128xf32>
    %9 = arith.addf %6, %8 : vector<64x128xf32>
    %c0_10 = arith.constant 0 : index
    %c0_11 = arith.constant 0 : index
    %10 = vector.load %arg6[%c0_10, %c0_11] : memref<1x128xf32, #tpu.memory_space<vmem>>, vector<1x128xf32>
    %11 = vector.broadcast %10 : vector<1x128xf32> to vector<64x128xf32>
    %12 = arith.mulf %9, %11 : vector<64x128xf32>
    %c0_12 = arith.constant 0 : index
    %c0_13 = arith.constant 0 : index
    %13 = vector.load %arg7[%c0_12, %c0_13] : memref<1x128xf32, #tpu.memory_space<vmem>>, vector<1x128xf32>
    %14 = vector.broadcast %13 : vector<1x128xf32> to vector<64x128xf32>
    %15 = arith.addf %12, %14 : vector<64x128xf32>
    %c0_14 = arith.constant 0 : index
    %c0_15 = arith.constant 0 : index
    %16 = vector.load %arg8[%c0_14, %c0_15] : memref<64x128xf32, #tpu.memory_space<vmem>>, vector<64x128xf32>
    tpu.vector_store %arg8[%c0_14, %c0_15], %15 {strides = array<i32>} : memref<64x128xf32, #tpu.memory_space<vmem>>, vector<64x128xf32>,
    return
  }
  func.func @transform_0(%arg0: i32) -> (i32, i32) {
    %c0_i32 = arith.constant 0 : i32
    %c0_i32_0 = arith.constant 0 : i32
    return %arg0, %c0_i32 : i32, i32
  }
  func.func @transform_1(%arg0: i32) -> (i32, i32) {
    %c0_i32 = arith.constant 0 : i32
    %c0_i32_0 = arith.constant 0 : i32
    return %arg0, %c0_i32 : i32, i32
  }
  func.func @transform_2(%arg0: i32) -> (i32, i32) {
    %c0_i32 = arith.constant 0 : i32
    %c0_i32_0 = arith.constant 0 : i32
    %c0_i32_1 = arith.constant 0 : i32
    return %c0_i32, %c0_i32_0 : i32, i32
  }
  func.func @transform_3(%arg0: i32) -> (i32, i32) {
    %c0_i32 = arith.constant 0 : i32
    %c0_i32_0 = arith.constant 0 : i32
    %c0_i32_1 = arith.constant 0 : i32
    return %c0_i32, %c0_i32_0 : i32, i32
  }
  func.func @transform_4(%arg0: i32) -> (i32, i32) {
    %c0_i32 = arith.constant 0 : i32
    %c0_i32_0 = arith.constant 0 : i32
    %c0_i32_1 = arith.constant 0 : i32
    return %c0_i32, %c0_i32_0 : i32, i32
  }
  func.func @transform_5(%arg0: i32) -> (i32, i32) {
    %c0_i32 = arith.constant 0 : i32
    %c0_i32_0 = arith.constant 0 : i32
    %c0_i32_1 = arith.constant 0 : i32
    return %c0_i32, %c0_i32_0 : i32, i32
  }
  func.func @transform_6(%arg0: i32) -> (i32, i32) {
    %c0_i32 = arith.constant 0 : i32
    %c0_i32_0 = arith.constant 0 : i32
    %c0_i32_1 = arith.constant 0 : i32
    return %c0_i32, %c0_i32_0 : i32, i32
  }
  func.func @transform_7(%arg0: i32) -> (i32, i32) {
    %c0_i32 = arith.constant 0 : i32
    %c0_i32_0 = arith.constant 0 : i32
    return %arg0, %c0_i32 : i32, i32
  }
}

module attributes {stable_mosaic.version = 11 : i64} {
  func.func @kernel(%arg0: i32, %arg1: memref<64x128xbf16, #tpu.memory_space<vmem>>, %arg2: memref<64x128xbf16, #tpu.memory_space<vmem>>, %arg3: memref<64x128xbf16, #tpu.memory_space<vmem>>, %arg4: memref<64x128xbf16, #tpu.memory_space<vmem>>, %arg5: memref<128x384xbf16, #tpu.memory_space<vmem>>, %arg6: memref<128x384xbf16, #tpu.memory_space<vmem>>, %arg7: memref<128x384xbf16, #tpu.memory_space<vmem>>, %arg8: memref<128x384xbf16, #tpu.memory_space<vmem>>, %arg9: memref<2x1x384xf32, #tpu.memory_space<vmem>>, %arg10: memref<2x128x384xbf16, #tpu.memory_space<vmem>>, %arg11: memref<2x1x128xf32, #tpu.memory_space<vmem>>, %arg12: memref<64x128xbf16, #tpu.memory_space<vmem>>, %arg13: memref<64x128xbf16, #tpu.memory_space<vmem>>, %arg14: memref<8x128xf32, #tpu.memory_space<vmem>>, %arg15: memref<8x128xf32, #tpu.memory_space<vmem>>, %arg16: memref<64x384xf32, #tpu.memory_space<vmem>>, %arg17: memref<64x384xf32, #tpu.memory_space<vmem>>) attributes {dimension_semantics = [#tpu.dimension_semantics<arbitrary>], iteration_bounds = array<i64: 1>, scalar_prefetch = 0 : i64, scratch_operands = 4 : i64, tpu.core_type = #tpu.core_type<tc>, window_params = [{transform_indices = @transform_0, window_bounds = array<i64: 64, 128>}, {transform_indices = @transform_1, window_bounds = array<i64: 64, 128>}, {transform_indices = @transform_2, window_bounds = array<i64: 64, 128>}, {transform_indices = @transform_3, window_bounds = array<i64: 64, 128>}, {pipeline_mode = #tpu.pipeline_mode<synchronous>, transform_indices = @transform_4, window_bounds = array<i64: 128, 384>}, {pipeline_mode = #tpu.pipeline_mode<synchronous>, transform_indices = @transform_5, window_bounds = array<i64: 128, 384>}, {pipeline_mode = #tpu.pipeline_mode<synchronous>, transform_indices = @transform_6, window_bounds = array<i64: 128, 384>}, {pipeline_mode = #tpu.pipeline_mode<synchronous>, transform_indices = @transform_7, window_bounds = array<i64: 128, 384>}, {pipeline_mode = #tpu.pipeline_mode<synchronous>, transform_indices = @transform_8, window_bounds = array<i64: 2, 1, 384>}, {pipeline_mode = #tpu.pipeline_mode<synchronous>, transform_indices = @transform_9, window_bounds = array<i64: 2, 128, 384>}, {pipeline_mode = #tpu.pipeline_mode<synchronous>, transform_indices = @transform_10, window_bounds = array<i64: 2, 1, 128>}, {transform_indices = @transform_11, window_bounds = array<i64: 64, 128>}, {transform_indices = @transform_12, window_bounds = array<i64: 64, 128>}]} {
    %c0_i32 = arith.constant 0 : i32
    %0 = arith.cmpi eq, %arg0, %c0_i32 : i32
    %1 = arith.extui %0 : i1 to i32
    %c0_i32_0 = arith.constant 0 : i32
    %2 = arith.cmpi ne, %1, %c0_i32_0 : i32
    scf.if %2 {
      %cst_137 = arith.constant 0.000000e+00 : f32
      %439 = vector.broadcast %cst_137 : f32 to vector<8x128xf32>
      %c0_138 = arith.constant 0 : index
      %c0_139 = arith.constant 0 : index
      %440 = vector.load %arg14[%c0_138, %c0_139] : memref<8x128xf32, #tpu.memory_space<vmem>>, vector<8x128xf32>
      tpu.vector_store %arg14[%c0_138, %c0_139], %439 {strides = array<i32>} : memref<8x128xf32, #tpu.memory_space<vmem>>, vector<8x128xf32>,
      %cst_140 = arith.constant 0.000000e+00 : f32
      %441 = vector.broadcast %cst_140 : f32 to vector<8x128xf32>
      %c0_141 = arith.constant 0 : index
      %c0_142 = arith.constant 0 : index
      %442 = vector.load %arg15[%c0_141, %c0_142] : memref<8x128xf32, #tpu.memory_space<vmem>>, vector<8x128xf32>
      tpu.vector_store %arg15[%c0_141, %c0_142], %441 {strides = array<i32>} : memref<8x128xf32, #tpu.memory_space<vmem>>, vector<8x128xf32>,
    } else {
    }
    %c0 = arith.constant 0 : index
    %c0_1 = arith.constant 0 : index
    %c0_2 = arith.constant 0 : index
    %3 = vector.load %arg9[%c0, %c0_1, %c0_2] : memref<2x1x384xf32, #tpu.memory_space<vmem>>, vector<1x1x384xf32>
    %4 = vector.shape_cast %3 : vector<1x1x384xf32> to vector<1x384xf32>
    %c0_3 = arith.constant 0 : index
    %c0_4 = arith.constant 0 : index
    %5 = vector.load %arg1[%c0_3, %c0_4] : memref<64x128xbf16, #tpu.memory_space<vmem>>, vector<64x128xbf16>
    %c0_5 = arith.constant 0 : index
    %c0_6 = arith.constant 0 : index
    %6 = vector.load %arg5[%c0_5, %c0_6] : memref<128x384xbf16, #tpu.memory_space<vmem>>, vector<128x384xbf16>
    %cst = arith.constant dense<0.000000e+00> : vector<64x384xf32>
    %7 = tpu.matmul %5, %6, %cst {dimension_numbers = #tpu.dot_dimension_numbers<[1], [0], [0], [1], [0, 0, 1, 1], [], []>} : vector<64x128xbf16>, vector<128x384xbf16>, vector<64x384xf32> -> vector<64x384xf32>
    %c0_7 = arith.constant 0 : index
    %c0_8 = arith.constant 0 : index
    %8 = vector.load %arg2[%c0_7, %c0_8] : memref<64x128xbf16, #tpu.memory_space<vmem>>, vector<64x128xbf16>
    %c0_9 = arith.constant 0 : index
    %c0_10 = arith.constant 0 : index
    %9 = vector.load %arg6[%c0_9, %c0_10] : memref<128x384xbf16, #tpu.memory_space<vmem>>, vector<128x384xbf16>
    %cst_11 = arith.constant dense<0.000000e+00> : vector<64x384xf32>
    %10 = tpu.matmul %8, %9, %cst_11 {dimension_numbers = #tpu.dot_dimension_numbers<[1], [0], [0], [1], [0, 0, 1, 1], [], []>} : vector<64x128xbf16>, vector<128x384xbf16>, vector<64x384xf32> -> vector<64x384xf32>
    %11 = arith.addf %7, %10 : vector<64x384xf32>
    %12 = vector.broadcast %4 : vector<1x384xf32> to vector<64x384xf32>
    %13 = arith.addf %11, %12 : vector<64x384xf32>
    %c0_12 = arith.constant 0 : index
    %c0_13 = arith.constant 0 : index
    %14 = vector.load %arg16[%c0_12, %c0_13] : memref<64x384xf32, #tpu.memory_space<vmem>>, vector<64x384xf32>
    tpu.vector_store %arg16[%c0_12, %c0_13], %13 {strides = array<i32>} : memref<64x384xf32, #tpu.memory_space<vmem>>, vector<64x384xf32>,
    %c1 = arith.constant 1 : index
    %c0_14 = arith.constant 0 : index
    %c0_15 = arith.constant 0 : index
    %15 = vector.load %arg9[%c1, %c0_14, %c0_15] : memref<2x1x384xf32, #tpu.memory_space<vmem>>, vector<1x1x384xf32>
    %16 = vector.shape_cast %15 : vector<1x1x384xf32> to vector<1x384xf32>
    %c0_16 = arith.constant 0 : index
    %c0_17 = arith.constant 0 : index
    %17 = vector.load %arg3[%c0_16, %c0_17] : memref<64x128xbf16, #tpu.memory_space<vmem>>, vector<64x128xbf16>
    %c0_18 = arith.constant 0 : index
    %c0_19 = arith.constant 0 : index
    %18 = vector.load %arg7[%c0_18, %c0_19] : memref<128x384xbf16, #tpu.memory_space<vmem>>, vector<128x384xbf16>
    %cst_20 = arith.constant dense<0.000000e+00> : vector<64x384xf32>
    %19 = tpu.matmul %17, %18, %cst_20 {dimension_numbers = #tpu.dot_dimension_numbers<[1], [0], [0], [1], [0, 0, 1, 1], [], []>} : vector<64x128xbf16>, vector<128x384xbf16>, vector<64x384xf32> -> vector<64x384xf32>
    %c0_21 = arith.constant 0 : index
    %c0_22 = arith.constant 0 : index
    %20 = vector.load %arg4[%c0_21, %c0_22] : memref<64x128xbf16, #tpu.memory_space<vmem>>, vector<64x128xbf16>
    %c0_23 = arith.constant 0 : index
    %c0_24 = arith.constant 0 : index
    %21 = vector.load %arg8[%c0_23, %c0_24] : memref<128x384xbf16, #tpu.memory_space<vmem>>, vector<128x384xbf16>
    %cst_25 = arith.constant dense<0.000000e+00> : vector<64x384xf32>
    %22 = tpu.matmul %20, %21, %cst_25 {dimension_numbers = #tpu.dot_dimension_numbers<[1], [0], [0], [1], [0, 0, 1, 1], [], []>} : vector<64x128xbf16>, vector<128x384xbf16>, vector<64x384xf32> -> vector<64x384xf32>
    %23 = arith.addf %19, %22 : vector<64x384xf32>
    %24 = vector.broadcast %16 : vector<1x384xf32> to vector<64x384xf32>
    %25 = arith.addf %23, %24 : vector<64x384xf32>
    %c0_26 = arith.constant 0 : index
    %c0_27 = arith.constant 0 : index
    %26 = vector.load %arg17[%c0_26, %c0_27] : memref<64x384xf32, #tpu.memory_space<vmem>>, vector<64x384xf32>
    tpu.vector_store %arg17[%c0_26, %c0_27], %25 {strides = array<i32>} : memref<64x384xf32, #tpu.memory_space<vmem>>, vector<64x384xf32>,
    %c0_28 = arith.constant 0 : index
    %c0_29 = arith.constant 0 : index
    %c0_30 = arith.constant 0 : index
    %27 = vector.load %arg10[%c0_28, %c0_29, %c0_30] : memref<2x128x384xbf16, #tpu.memory_space<vmem>>, vector<1x128x384xbf16>
    %28 = vector.shape_cast %27 : vector<1x128x384xbf16> to vector<128x384xbf16>
    %c1_31 = arith.constant 1 : index
    %c0_32 = arith.constant 0 : index
    %c0_33 = arith.constant 0 : index
    %29 = vector.load %arg10[%c1_31, %c0_32, %c0_33] : memref<2x128x384xbf16, #tpu.memory_space<vmem>>, vector<1x128x384xbf16>
    %30 = vector.shape_cast %29 : vector<1x128x384xbf16> to vector<128x384xbf16>
    %c0_34 = arith.constant 0 : index
    %c0_35 = arith.constant 0 : index
    %c0_36 = arith.constant 0 : index
    %31 = vector.load %arg11[%c0_34, %c0_35, %c0_36] : memref<2x1x128xf32, #tpu.memory_space<vmem>>, vector<1x1x128xf32>
    %32 = vector.shape_cast %31 : vector<1x1x128xf32> to vector<1x128xf32>
    %c1_37 = arith.constant 1 : index
    %c0_38 = arith.constant 0 : index
    %c0_39 = arith.constant 0 : index
    %33 = vector.load %arg11[%c1_37, %c0_38, %c0_39] : memref<2x1x128xf32, #tpu.memory_space<vmem>>, vector<1x1x128xf32>
    %34 = vector.shape_cast %33 : vector<1x1x128xf32> to vector<1x128xf32>
    %c0_40 = arith.constant 0 : index
    %c0_41 = arith.constant 0 : index
    %35 = vector.load %arg14[%c0_40, %c0_41] : memref<8x128xf32, #tpu.memory_space<vmem>>, vector<8x128xf32>
    %c0_42 = arith.constant 0 : index
    %c0_43 = arith.constant 0 : index
    %36 = vector.load %arg15[%c0_42, %c0_43] : memref<8x128xf32, #tpu.memory_space<vmem>>, vector<8x128xf32>
    %c0_44 = arith.constant 0 : index
    %c0_45 = arith.constant 0 : index
    %37 = vector.load %arg16[%c0_44, %c0_45] : memref<64x384xf32, #tpu.memory_space<vmem>>, vector<8x384xf32>
    %38 = arith.truncf %35 : vector<8x128xf32> to vector<8x128xbf16>
    %cst_46 = arith.constant dense<0.000000e+00> : vector<8x384xf32>
    %39 = tpu.matmul %38, %28, %cst_46 {dimension_numbers = #tpu.dot_dimension_numbers<[1], [0], [0], [1], [0, 0, 1, 1], [], []>} : vector<8x128xbf16>, vector<128x384xbf16>, vector<8x384xf32> -> vector<8x384xf32>
    %40 = vector.extract_strided_slice %37 {offsets = [0, 0], sizes = [8, 256], strides = [1, 1]} : vector<8x384xf32> to vector<8x256xf32>
    %41 = vector.extract_strided_slice %39 {offsets = [0, 0], sizes = [8, 256], strides = [1, 1]} : vector<8x384xf32> to vector<8x256xf32>
    %42 = arith.addf %40, %41 : vector<8x256xf32>
    %43 = arith.negf %42 : vector<8x256xf32>
    %44 = math.exp %43 : vector<8x256xf32>
    %cst_47 = arith.constant 1.000000e+00 : f32
    %45 = vector.broadcast %cst_47 : f32 to vector<8x256xf32>
    %46 = arith.addf %45, %44 : vector<8x256xf32>
    %47 = arith.divf %45, %46 : vector<8x256xf32>
    %48 = vector.extract_strided_slice %47 {offsets = [0, 0], sizes = [8, 128], strides = [1, 1]} : vector<8x256xf32> to vector<8x128xf32>
    %49 = vector.extract_strided_slice %47 {offsets = [0, 128], sizes = [8, 128], strides = [1, 1]} : vector<8x256xf32> to vector<8x128xf32>
    %50 = vector.extract_strided_slice %37 {offsets = [0, 256], sizes = [8, 128], strides = [1, 1]} : vector<8x384xf32> to vector<8x128xf32>
    %51 = vector.extract_strided_slice %39 {offsets = [0, 256], sizes = [8, 128], strides = [1, 1]} : vector<8x384xf32> to vector<8x128xf32>
    %52 = vector.broadcast %32 : vector<1x128xf32> to vector<8x128xf32>
    %53 = arith.addf %51, %52 : vector<8x128xf32>
    %54 = arith.mulf %48, %53 : vector<8x128xf32>
    %55 = arith.addf %50, %54 : vector<8x128xf32>
    %56 = math.tanh %55 : vector<8x128xf32>
    %57 = arith.subf %35, %56 : vector<8x128xf32>
    %58 = arith.mulf %49, %57 : vector<8x128xf32>
    %59 = arith.addf %56, %58 : vector<8x128xf32>
    %60 = arith.truncf %59 : vector<8x128xf32> to vector<8x128xbf16>
    %c0_48 = arith.constant 0 : index
    %c0_49 = arith.constant 0 : index
    %61 = vector.load %arg12[%c0_48, %c0_49] : memref<64x128xbf16, #tpu.memory_space<vmem>>, vector<8x128xbf16>
    tpu.vector_store %arg12[%c0_48, %c0_49], %60 {strides = array<i32>} : memref<64x128xbf16, #tpu.memory_space<vmem>>, vector<8x128xbf16>,
    %c56 = arith.constant 56 : index
    %c0_50 = arith.constant 0 : index
    %62 = vector.load %arg17[%c56, %c0_50] : memref<64x384xf32, #tpu.memory_space<vmem>>, vector<8x384xf32>
    %63 = arith.truncf %36 : vector<8x128xf32> to vector<8x128xbf16>
    %cst_51 = arith.constant dense<0.000000e+00> : vector<8x384xf32>
    %64 = tpu.matmul %63, %30, %cst_51 {dimension_numbers = #tpu.dot_dimension_numbers<[1], [0], [0], [1], [0, 0, 1, 1], [], []>} : vector<8x128xbf16>, vector<128x384xbf16>, vector<8x384xf32> -> vector<8x384xf32>
    %65 = vector.extract_strided_slice %62 {offsets = [0, 0], sizes = [8, 256], strides = [1, 1]} : vector<8x384xf32> to vector<8x256xf32>
    %66 = vector.extract_strided_slice %64 {offsets = [0, 0], sizes = [8, 256], strides = [1, 1]} : vector<8x384xf32> to vector<8x256xf32>
    %67 = arith.addf %65, %66 : vector<8x256xf32>
    %68 = arith.negf %67 : vector<8x256xf32>
    %69 = math.exp %68 : vector<8x256xf32>
    %cst_52 = arith.constant 1.000000e+00 : f32
    %70 = vector.broadcast %cst_52 : f32 to vector<8x256xf32>
    %71 = arith.addf %70, %69 : vector<8x256xf32>
    %72 = arith.divf %70, %71 : vector<8x256xf32>
    %73 = vector.extract_strided_slice %72 {offsets = [0, 0], sizes = [8, 128], strides = [1, 1]} : vector<8x256xf32> to vector<8x128xf32>
    %74 = vector.extract_strided_slice %72 {offsets = [0, 128], sizes = [8, 128], strides = [1, 1]} : vector<8x256xf32> to vector<8x128xf32>
    %75 = vector.extract_strided_slice %62 {offsets = [0, 256], sizes = [8, 128], strides = [1, 1]} : vector<8x384xf32> to vector<8x128xf32>
    %76 = vector.extract_strided_slice %64 {offsets = [0, 256], sizes = [8, 128], strides = [1, 1]} : vector<8x384xf32> to vector<8x128xf32>
    %77 = vector.broadcast %34 : vector<1x128xf32> to vector<8x128xf32>
    %78 = arith.addf %76, %77 : vector<8x128xf32>
    %79 = arith.mulf %73, %78 : vector<8x128xf32>
    %80 = arith.addf %75, %79 : vector<8x128xf32>
    %81 = math.tanh %80 : vector<8x128xf32>
    %82 = arith.subf %36, %81 : vector<8x128xf32>
    %83 = arith.mulf %74, %82 : vector<8x128xf32>
    %84 = arith.addf %81, %83 : vector<8x128xf32>
    %85 = arith.truncf %84 : vector<8x128xf32> to vector<8x128xbf16>
    %c56_53 = arith.constant 56 : index
    %c0_54 = arith.constant 0 : index
    %86 = vector.load %arg13[%c56_53, %c0_54] : memref<64x128xbf16, #tpu.memory_space<vmem>>, vector<8x128xbf16>
    tpu.vector_store %arg13[%c56_53, %c0_54], %85 {strides = array<i32>} : memref<64x128xbf16, #tpu.memory_space<vmem>>, vector<8x128xbf16>,
    %c8 = arith.constant 8 : index
    %c0_55 = arith.constant 0 : index
    %87 = vector.load %arg16[%c8, %c0_55] : memref<64x384xf32, #tpu.memory_space<vmem>>, vector<8x384xf32>
    %88 = arith.truncf %59 : vector<8x128xf32> to vector<8x128xbf16>
    %cst_56 = arith.constant dense<0.000000e+00> : vector<8x384xf32>
    %89 = tpu.matmul %88, %28, %cst_56 {dimension_numbers = #tpu.dot_dimension_numbers<[1], [0], [0], [1], [0, 0, 1, 1], [], []>} : vector<8x128xbf16>, vector<128x384xbf16>, vector<8x384xf32> -> vector<8x384xf32>
    %90 = vector.extract_strided_slice %87 {offsets = [0, 0], sizes = [8, 256], strides = [1, 1]} : vector<8x384xf32> to vector<8x256xf32>
    %91 = vector.extract_strided_slice %89 {offsets = [0, 0], sizes = [8, 256], strides = [1, 1]} : vector<8x384xf32> to vector<8x256xf32>
    %92 = arith.addf %90, %91 : vector<8x256xf32>
    %93 = arith.negf %92 : vector<8x256xf32>
    %94 = math.exp %93 : vector<8x256xf32>
    %cst_57 = arith.constant 1.000000e+00 : f32
    %95 = vector.broadcast %cst_57 : f32 to vector<8x256xf32>
    %96 = arith.addf %95, %94 : vector<8x256xf32>
    %97 = arith.divf %95, %96 : vector<8x256xf32>
    %98 = vector.extract_strided_slice %97 {offsets = [0, 0], sizes = [8, 128], strides = [1, 1]} : vector<8x256xf32> to vector<8x128xf32>
    %99 = vector.extract_strided_slice %97 {offsets = [0, 128], sizes = [8, 128], strides = [1, 1]} : vector<8x256xf32> to vector<8x128xf32>
    %100 = vector.extract_strided_slice %87 {offsets = [0, 256], sizes = [8, 128], strides = [1, 1]} : vector<8x384xf32> to vector<8x128xf32>
    %101 = vector.extract_strided_slice %89 {offsets = [0, 256], sizes = [8, 128], strides = [1, 1]} : vector<8x384xf32> to vector<8x128xf32>
    %102 = vector.broadcast %32 : vector<1x128xf32> to vector<8x128xf32>
    %103 = arith.addf %101, %102 : vector<8x128xf32>
    %104 = arith.mulf %98, %103 : vector<8x128xf32>
    %105 = arith.addf %100, %104 : vector<8x128xf32>
    %106 = math.tanh %105 : vector<8x128xf32>
    %107 = arith.subf %59, %106 : vector<8x128xf32>
    %108 = arith.mulf %99, %107 : vector<8x128xf32>
    %109 = arith.addf %106, %108 : vector<8x128xf32>
    %110 = arith.truncf %109 : vector<8x128xf32> to vector<8x128xbf16>
    %c8_58 = arith.constant 8 : index
    %c0_59 = arith.constant 0 : index
    %111 = vector.load %arg12[%c8_58, %c0_59] : memref<64x128xbf16, #tpu.memory_space<vmem>>, vector<8x128xbf16>
    tpu.vector_store %arg12[%c8_58, %c0_59], %110 {strides = array<i32>} : memref<64x128xbf16, #tpu.memory_space<vmem>>, vector<8x128xbf16>,
    %c48 = arith.constant 48 : index
    %c0_60 = arith.constant 0 : index
    %112 = vector.load %arg17[%c48, %c0_60] : memref<64x384xf32, #tpu.memory_space<vmem>>, vector<8x384xf32>
    %113 = arith.truncf %84 : vector<8x128xf32> to vector<8x128xbf16>
    %cst_61 = arith.constant dense<0.000000e+00> : vector<8x384xf32>
    %114 = tpu.matmul %113, %30, %cst_61 {dimension_numbers = #tpu.dot_dimension_numbers<[1], [0], [0], [1], [0, 0, 1, 1], [], []>} : vector<8x128xbf16>, vector<128x384xbf16>, vector<8x384xf32> -> vector<8x384xf32>
    %115 = vector.extract_strided_slice %112 {offsets = [0, 0], sizes = [8, 256], strides = [1, 1]} : vector<8x384xf32> to vector<8x256xf32>
    %116 = vector.extract_strided_slice %114 {offsets = [0, 0], sizes = [8, 256], strides = [1, 1]} : vector<8x384xf32> to vector<8x256xf32>
    %117 = arith.addf %115, %116 : vector<8x256xf32>
    %118 = arith.negf %117 : vector<8x256xf32>
    %119 = math.exp %118 : vector<8x256xf32>
    %cst_62 = arith.constant 1.000000e+00 : f32
    %120 = vector.broadcast %cst_62 : f32 to vector<8x256xf32>
    %121 = arith.addf %120, %119 : vector<8x256xf32>
    %122 = arith.divf %120, %121 : vector<8x256xf32>
    %123 = vector.extract_strided_slice %122 {offsets = [0, 0], sizes = [8, 128], strides = [1, 1]} : vector<8x256xf32> to vector<8x128xf32>
    %124 = vector.extract_strided_slice %122 {offsets = [0, 128], sizes = [8, 128], strides = [1, 1]} : vector<8x256xf32> to vector<8x128xf32>
    %125 = vector.extract_strided_slice %112 {offsets = [0, 256], sizes = [8, 128], strides = [1, 1]} : vector<8x384xf32> to vector<8x128xf32>
    %126 = vector.extract_strided_slice %114 {offsets = [0, 256], sizes = [8, 128], strides = [1, 1]} : vector<8x384xf32> to vector<8x128xf32>
    %127 = vector.broadcast %34 : vector<1x128xf32> to vector<8x128xf32>
    %128 = arith.addf %126, %127 : vector<8x128xf32>
    %129 = arith.mulf %123, %128 : vector<8x128xf32>
    %130 = arith.addf %125, %129 : vector<8x128xf32>
    %131 = math.tanh %130 : vector<8x128xf32>
    %132 = arith.subf %84, %131 : vector<8x128xf32>
    %133 = arith.mulf %124, %132 : vector<8x128xf32>
    %134 = arith.addf %131, %133 : vector<8x128xf32>
    %135 = arith.truncf %134 : vector<8x128xf32> to vector<8x128xbf16>
    %c48_63 = arith.constant 48 : index
    %c0_64 = arith.constant 0 : index
    %136 = vector.load %arg13[%c48_63, %c0_64] : memref<64x128xbf16, #tpu.memory_space<vmem>>, vector<8x128xbf16>
    tpu.vector_store %arg13[%c48_63, %c0_64], %135 {strides = array<i32>} : memref<64x128xbf16, #tpu.memory_space<vmem>>, vector<8x128xbf16>,
    %c16 = arith.constant 16 : index
    %c0_65 = arith.constant 0 : index
    %137 = vector.load %arg16[%c16, %c0_65] : memref<64x384xf32, #tpu.memory_space<vmem>>, vector<8x384xf32>
    %138 = arith.truncf %109 : vector<8x128xf32> to vector<8x128xbf16>
    %cst_66 = arith.constant dense<0.000000e+00> : vector<8x384xf32>
    %139 = tpu.matmul %138, %28, %cst_66 {dimension_numbers = #tpu.dot_dimension_numbers<[1], [0], [0], [1], [0, 0, 1, 1], [], []>} : vector<8x128xbf16>, vector<128x384xbf16>, vector<8x384xf32> -> vector<8x384xf32>
    %140 = vector.extract_strided_slice %137 {offsets = [0, 0], sizes = [8, 256], strides = [1, 1]} : vector<8x384xf32> to vector<8x256xf32>
    %141 = vector.extract_strided_slice %139 {offsets = [0, 0], sizes = [8, 256], strides = [1, 1]} : vector<8x384xf32> to vector<8x256xf32>
    %142 = arith.addf %140, %141 : vector<8x256xf32>
    %143 = arith.negf %142 : vector<8x256xf32>
    %144 = math.exp %143 : vector<8x256xf32>
    %cst_67 = arith.constant 1.000000e+00 : f32
    %145 = vector.broadcast %cst_67 : f32 to vector<8x256xf32>
    %146 = arith.addf %145, %144 : vector<8x256xf32>
    %147 = arith.divf %145, %146 : vector<8x256xf32>
    %148 = vector.extract_strided_slice %147 {offsets = [0, 0], sizes = [8, 128], strides = [1, 1]} : vector<8x256xf32> to vector<8x128xf32>
    %149 = vector.extract_strided_slice %147 {offsets = [0, 128], sizes = [8, 128], strides = [1, 1]} : vector<8x256xf32> to vector<8x128xf32>
    %150 = vector.extract_strided_slice %137 {offsets = [0, 256], sizes = [8, 128], strides = [1, 1]} : vector<8x384xf32> to vector<8x128xf32>
    %151 = vector.extract_strided_slice %139 {offsets = [0, 256], sizes = [8, 128], strides = [1, 1]} : vector<8x384xf32> to vector<8x128xf32>
    %152 = vector.broadcast %32 : vector<1x128xf32> to vector<8x128xf32>
    %153 = arith.addf %151, %152 : vector<8x128xf32>
    %154 = arith.mulf %148, %153 : vector<8x128xf32>
    %155 = arith.addf %150, %154 : vector<8x128xf32>
    %156 = math.tanh %155 : vector<8x128xf32>
    %157 = arith.subf %109, %156 : vector<8x128xf32>
    %158 = arith.mulf %149, %157 : vector<8x128xf32>
    %159 = arith.addf %156, %158 : vector<8x128xf32>
    %160 = arith.truncf %159 : vector<8x128xf32> to vector<8x128xbf16>
    %c16_68 = arith.constant 16 : index
    %c0_69 = arith.constant 0 : index
    %161 = vector.load %arg12[%c16_68, %c0_69] : memref<64x128xbf16, #tpu.memory_space<vmem>>, vector<8x128xbf16>
    tpu.vector_store %arg12[%c16_68, %c0_69], %160 {strides = array<i32>} : memref<64x128xbf16, #tpu.memory_space<vmem>>, vector<8x128xbf16>,
    %c40 = arith.constant 40 : index
    %c0_70 = arith.constant 0 : index
    %162 = vector.load %arg17[%c40, %c0_70] : memref<64x384xf32, #tpu.memory_space<vmem>>, vector<8x384xf32>
    %163 = arith.truncf %134 : vector<8x128xf32> to vector<8x128xbf16>
    %cst_71 = arith.constant dense<0.000000e+00> : vector<8x384xf32>
    %164 = tpu.matmul %163, %30, %cst_71 {dimension_numbers = #tpu.dot_dimension_numbers<[1], [0], [0], [1], [0, 0, 1, 1], [], []>} : vector<8x128xbf16>, vector<128x384xbf16>, vector<8x384xf32> -> vector<8x384xf32>
    %165 = vector.extract_strided_slice %162 {offsets = [0, 0], sizes = [8, 256], strides = [1, 1]} : vector<8x384xf32> to vector<8x256xf32>
    %166 = vector.extract_strided_slice %164 {offsets = [0, 0], sizes = [8, 256], strides = [1, 1]} : vector<8x384xf32> to vector<8x256xf32>
    %167 = arith.addf %165, %166 : vector<8x256xf32>
    %168 = arith.negf %167 : vector<8x256xf32>
    %169 = math.exp %168 : vector<8x256xf32>
    %cst_72 = arith.constant 1.000000e+00 : f32
    %170 = vector.broadcast %cst_72 : f32 to vector<8x256xf32>
    %171 = arith.addf %170, %169 : vector<8x256xf32>
    %172 = arith.divf %170, %171 : vector<8x256xf32>
    %173 = vector.extract_strided_slice %172 {offsets = [0, 0], sizes = [8, 128], strides = [1, 1]} : vector<8x256xf32> to vector<8x128xf32>
    %174 = vector.extract_strided_slice %172 {offsets = [0, 128], sizes = [8, 128], strides = [1, 1]} : vector<8x256xf32> to vector<8x128xf32>
    %175 = vector.extract_strided_slice %162 {offsets = [0, 256], sizes = [8, 128], strides = [1, 1]} : vector<8x384xf32> to vector<8x128xf32>
    %176 = vector.extract_strided_slice %164 {offsets = [0, 256], sizes = [8, 128], strides = [1, 1]} : vector<8x384xf32> to vector<8x128xf32>
    %177 = vector.broadcast %34 : vector<1x128xf32> to vector<8x128xf32>
    %178 = arith.addf %176, %177 : vector<8x128xf32>
    %179 = arith.mulf %173, %178 : vector<8x128xf32>
    %180 = arith.addf %175, %179 : vector<8x128xf32>
    %181 = math.tanh %180 : vector<8x128xf32>
    %182 = arith.subf %134, %181 : vector<8x128xf32>
    %183 = arith.mulf %174, %182 : vector<8x128xf32>
    %184 = arith.addf %181, %183 : vector<8x128xf32>
    %185 = arith.truncf %184 : vector<8x128xf32> to vector<8x128xbf16>
    %c40_73 = arith.constant 40 : index
    %c0_74 = arith.constant 0 : index
    %186 = vector.load %arg13[%c40_73, %c0_74] : memref<64x128xbf16, #tpu.memory_space<vmem>>, vector<8x128xbf16>
    tpu.vector_store %arg13[%c40_73, %c0_74], %185 {strides = array<i32>} : memref<64x128xbf16, #tpu.memory_space<vmem>>, vector<8x128xbf16>,
    %c24 = arith.constant 24 : index
    %c0_75 = arith.constant 0 : index
    %187 = vector.load %arg16[%c24, %c0_75] : memref<64x384xf32, #tpu.memory_space<vmem>>, vector<8x384xf32>
    %188 = arith.truncf %159 : vector<8x128xf32> to vector<8x128xbf16>
    %cst_76 = arith.constant dense<0.000000e+00> : vector<8x384xf32>
    %189 = tpu.matmul %188, %28, %cst_76 {dimension_numbers = #tpu.dot_dimension_numbers<[1], [0], [0], [1], [0, 0, 1, 1], [], []>} : vector<8x128xbf16>, vector<128x384xbf16>, vector<8x384xf32> -> vector<8x384xf32>
    %190 = vector.extract_strided_slice %187 {offsets = [0, 0], sizes = [8, 256], strides = [1, 1]} : vector<8x384xf32> to vector<8x256xf32>
    %191 = vector.extract_strided_slice %189 {offsets = [0, 0], sizes = [8, 256], strides = [1, 1]} : vector<8x384xf32> to vector<8x256xf32>
    %192 = arith.addf %190, %191 : vector<8x256xf32>
    %193 = arith.negf %192 : vector<8x256xf32>
    %194 = math.exp %193 : vector<8x256xf32>
    %cst_77 = arith.constant 1.000000e+00 : f32
    %195 = vector.broadcast %cst_77 : f32 to vector<8x256xf32>
    %196 = arith.addf %195, %194 : vector<8x256xf32>
    %197 = arith.divf %195, %196 : vector<8x256xf32>
    %198 = vector.extract_strided_slice %197 {offsets = [0, 0], sizes = [8, 128], strides = [1, 1]} : vector<8x256xf32> to vector<8x128xf32>
    %199 = vector.extract_strided_slice %197 {offsets = [0, 128], sizes = [8, 128], strides = [1, 1]} : vector<8x256xf32> to vector<8x128xf32>
    %200 = vector.extract_strided_slice %187 {offsets = [0, 256], sizes = [8, 128], strides = [1, 1]} : vector<8x384xf32> to vector<8x128xf32>
    %201 = vector.extract_strided_slice %189 {offsets = [0, 256], sizes = [8, 128], strides = [1, 1]} : vector<8x384xf32> to vector<8x128xf32>
    %202 = vector.broadcast %32 : vector<1x128xf32> to vector<8x128xf32>
    %203 = arith.addf %201, %202 : vector<8x128xf32>
    %204 = arith.mulf %198, %203 : vector<8x128xf32>
    %205 = arith.addf %200, %204 : vector<8x128xf32>
    %206 = math.tanh %205 : vector<8x128xf32>
    %207 = arith.subf %159, %206 : vector<8x128xf32>
    %208 = arith.mulf %199, %207 : vector<8x128xf32>
    %209 = arith.addf %206, %208 : vector<8x128xf32>
    %210 = arith.truncf %209 : vector<8x128xf32> to vector<8x128xbf16>
    %c24_78 = arith.constant 24 : index
    %c0_79 = arith.constant 0 : index
    %211 = vector.load %arg12[%c24_78, %c0_79] : memref<64x128xbf16, #tpu.memory_space<vmem>>, vector<8x128xbf16>
    tpu.vector_store %arg12[%c24_78, %c0_79], %210 {strides = array<i32>} : memref<64x128xbf16, #tpu.memory_space<vmem>>, vector<8x128xbf16>,
    %c32 = arith.constant 32 : index
    %c0_80 = arith.constant 0 : index
    %212 = vector.load %arg17[%c32, %c0_80] : memref<64x384xf32, #tpu.memory_space<vmem>>, vector<8x384xf32>
    %213 = arith.truncf %184 : vector<8x128xf32> to vector<8x128xbf16>
    %cst_81 = arith.constant dense<0.000000e+00> : vector<8x384xf32>
    %214 = tpu.matmul %213, %30, %cst_81 {dimension_numbers = #tpu.dot_dimension_numbers<[1], [0], [0], [1], [0, 0, 1, 1], [], []>} : vector<8x128xbf16>, vector<128x384xbf16>, vector<8x384xf32> -> vector<8x384xf32>
    %215 = vector.extract_strided_slice %212 {offsets = [0, 0], sizes = [8, 256], strides = [1, 1]} : vector<8x384xf32> to vector<8x256xf32>
    %216 = vector.extract_strided_slice %214 {offsets = [0, 0], sizes = [8, 256], strides = [1, 1]} : vector<8x384xf32> to vector<8x256xf32>
    %217 = arith.addf %215, %216 : vector<8x256xf32>
    %218 = arith.negf %217 : vector<8x256xf32>
    %219 = math.exp %218 : vector<8x256xf32>
    %cst_82 = arith.constant 1.000000e+00 : f32
    %220 = vector.broadcast %cst_82 : f32 to vector<8x256xf32>
    %221 = arith.addf %220, %219 : vector<8x256xf32>
    %222 = arith.divf %220, %221 : vector<8x256xf32>
    %223 = vector.extract_strided_slice %222 {offsets = [0, 0], sizes = [8, 128], strides = [1, 1]} : vector<8x256xf32> to vector<8x128xf32>
    %224 = vector.extract_strided_slice %222 {offsets = [0, 128], sizes = [8, 128], strides = [1, 1]} : vector<8x256xf32> to vector<8x128xf32>
    %225 = vector.extract_strided_slice %212 {offsets = [0, 256], sizes = [8, 128], strides = [1, 1]} : vector<8x384xf32> to vector<8x128xf32>
    %226 = vector.extract_strided_slice %214 {offsets = [0, 256], sizes = [8, 128], strides = [1, 1]} : vector<8x384xf32> to vector<8x128xf32>
    %227 = vector.broadcast %34 : vector<1x128xf32> to vector<8x128xf32>
    %228 = arith.addf %226, %227 : vector<8x128xf32>
    %229 = arith.mulf %223, %228 : vector<8x128xf32>
    %230 = arith.addf %225, %229 : vector<8x128xf32>
    %231 = math.tanh %230 : vector<8x128xf32>
    %232 = arith.subf %184, %231 : vector<8x128xf32>
    %233 = arith.mulf %224, %232 : vector<8x128xf32>
    %234 = arith.addf %231, %233 : vector<8x128xf32>
    %235 = arith.truncf %234 : vector<8x128xf32> to vector<8x128xbf16>
    %c32_83 = arith.constant 32 : index
    %c0_84 = arith.constant 0 : index
    %236 = vector.load %arg13[%c32_83, %c0_84] : memref<64x128xbf16, #tpu.memory_space<vmem>>, vector<8x128xbf16>
    tpu.vector_store %arg13[%c32_83, %c0_84], %235 {strides = array<i32>} : memref<64x128xbf16, #tpu.memory_space<vmem>>, vector<8x128xbf16>,
    %c32_85 = arith.constant 32 : index
    %c0_86 = arith.constant 0 : index
    %237 = vector.load %arg16[%c32_85, %c0_86] : memref<64x384xf32, #tpu.memory_space<vmem>>, vector<8x384xf32>
    %238 = arith.truncf %209 : vector<8x128xf32> to vector<8x128xbf16>
    %cst_87 = arith.constant dense<0.000000e+00> : vector<8x384xf32>
    %239 = tpu.matmul %238, %28, %cst_87 {dimension_numbers = #tpu.dot_dimension_numbers<[1], [0], [0], [1], [0, 0, 1, 1], [], []>} : vector<8x128xbf16>, vector<128x384xbf16>, vector<8x384xf32> -> vector<8x384xf32>
    %240 = vector.extract_strided_slice %237 {offsets = [0, 0], sizes = [8, 256], strides = [1, 1]} : vector<8x384xf32> to vector<8x256xf32>
    %241 = vector.extract_strided_slice %239 {offsets = [0, 0], sizes = [8, 256], strides = [1, 1]} : vector<8x384xf32> to vector<8x256xf32>
    %242 = arith.addf %240, %241 : vector<8x256xf32>
    %243 = arith.negf %242 : vector<8x256xf32>
    %244 = math.exp %243 : vector<8x256xf32>
    %cst_88 = arith.constant 1.000000e+00 : f32
    %245 = vector.broadcast %cst_88 : f32 to vector<8x256xf32>
    %246 = arith.addf %245, %244 : vector<8x256xf32>
    %247 = arith.divf %245, %246 : vector<8x256xf32>
    %248 = vector.extract_strided_slice %247 {offsets = [0, 0], sizes = [8, 128], strides = [1, 1]} : vector<8x256xf32> to vector<8x128xf32>
    %249 = vector.extract_strided_slice %247 {offsets = [0, 128], sizes = [8, 128], strides = [1, 1]} : vector<8x256xf32> to vector<8x128xf32>
    %250 = vector.extract_strided_slice %237 {offsets = [0, 256], sizes = [8, 128], strides = [1, 1]} : vector<8x384xf32> to vector<8x128xf32>
    %251 = vector.extract_strided_slice %239 {offsets = [0, 256], sizes = [8, 128], strides = [1, 1]} : vector<8x384xf32> to vector<8x128xf32>
    %252 = vector.broadcast %32 : vector<1x128xf32> to vector<8x128xf32>
    %253 = arith.addf %251, %252 : vector<8x128xf32>
    %254 = arith.mulf %248, %253 : vector<8x128xf32>
    %255 = arith.addf %250, %254 : vector<8x128xf32>
    %256 = math.tanh %255 : vector<8x128xf32>
    %257 = arith.subf %209, %256 : vector<8x128xf32>
    %258 = arith.mulf %249, %257 : vector<8x128xf32>
    %259 = arith.addf %256, %258 : vector<8x128xf32>
    %260 = arith.truncf %259 : vector<8x128xf32> to vector<8x128xbf16>
    %c32_89 = arith.constant 32 : index
    %c0_90 = arith.constant 0 : index
    %261 = vector.load %arg12[%c32_89, %c0_90] : memref<64x128xbf16, #tpu.memory_space<vmem>>, vector<8x128xbf16>
    tpu.vector_store %arg12[%c32_89, %c0_90], %260 {strides = array<i32>} : memref<64x128xbf16, #tpu.memory_space<vmem>>, vector<8x128xbf16>,
    %c24_91 = arith.constant 24 : index
    %c0_92 = arith.constant 0 : index
    %262 = vector.load %arg17[%c24_91, %c0_92] : memref<64x384xf32, #tpu.memory_space<vmem>>, vector<8x384xf32>
    %263 = arith.truncf %234 : vector<8x128xf32> to vector<8x128xbf16>
    %cst_93 = arith.constant dense<0.000000e+00> : vector<8x384xf32>
    %264 = tpu.matmul %263, %30, %cst_93 {dimension_numbers = #tpu.dot_dimension_numbers<[1], [0], [0], [1], [0, 0, 1, 1], [], []>} : vector<8x128xbf16>, vector<128x384xbf16>, vector<8x384xf32> -> vector<8x384xf32>
    %265 = vector.extract_strided_slice %262 {offsets = [0, 0], sizes = [8, 256], strides = [1, 1]} : vector<8x384xf32> to vector<8x256xf32>
    %266 = vector.extract_strided_slice %264 {offsets = [0, 0], sizes = [8, 256], strides = [1, 1]} : vector<8x384xf32> to vector<8x256xf32>
    %267 = arith.addf %265, %266 : vector<8x256xf32>
    %268 = arith.negf %267 : vector<8x256xf32>
    %269 = math.exp %268 : vector<8x256xf32>
    %cst_94 = arith.constant 1.000000e+00 : f32
    %270 = vector.broadcast %cst_94 : f32 to vector<8x256xf32>
    %271 = arith.addf %270, %269 : vector<8x256xf32>
    %272 = arith.divf %270, %271 : vector<8x256xf32>
    %273 = vector.extract_strided_slice %272 {offsets = [0, 0], sizes = [8, 128], strides = [1, 1]} : vector<8x256xf32> to vector<8x128xf32>
    %274 = vector.extract_strided_slice %272 {offsets = [0, 128], sizes = [8, 128], strides = [1, 1]} : vector<8x256xf32> to vector<8x128xf32>
    %275 = vector.extract_strided_slice %262 {offsets = [0, 256], sizes = [8, 128], strides = [1, 1]} : vector<8x384xf32> to vector<8x128xf32>
    %276 = vector.extract_strided_slice %264 {offsets = [0, 256], sizes = [8, 128], strides = [1, 1]} : vector<8x384xf32> to vector<8x128xf32>
    %277 = vector.broadcast %34 : vector<1x128xf32> to vector<8x128xf32>
    %278 = arith.addf %276, %277 : vector<8x128xf32>
    %279 = arith.mulf %273, %278 : vector<8x128xf32>
    %280 = arith.addf %275, %279 : vector<8x128xf32>
    %281 = math.tanh %280 : vector<8x128xf32>
    %282 = arith.subf %234, %281 : vector<8x128xf32>
    %283 = arith.mulf %274, %282 : vector<8x128xf32>
    %284 = arith.addf %281, %283 : vector<8x128xf32>
    %285 = arith.truncf %284 : vector<8x128xf32> to vector<8x128xbf16>
    %c24_95 = arith.constant 24 : index
    %c0_96 = arith.constant 0 : index
    %286 = vector.load %arg13[%c24_95, %c0_96] : memref<64x128xbf16, #tpu.memory_space<vmem>>, vector<8x128xbf16>
    tpu.vector_store %arg13[%c24_95, %c0_96], %285 {strides = array<i32>} : memref<64x128xbf16, #tpu.memory_space<vmem>>, vector<8x128xbf16>,
    %c40_97 = arith.constant 40 : index
    %c0_98 = arith.constant 0 : index
    %287 = vector.load %arg16[%c40_97, %c0_98] : memref<64x384xf32, #tpu.memory_space<vmem>>, vector<8x384xf32>
    %288 = arith.truncf %259 : vector<8x128xf32> to vector<8x128xbf16>
    %cst_99 = arith.constant dense<0.000000e+00> : vector<8x384xf32>
    %289 = tpu.matmul %288, %28, %cst_99 {dimension_numbers = #tpu.dot_dimension_numbers<[1], [0], [0], [1], [0, 0, 1, 1], [], []>} : vector<8x128xbf16>, vector<128x384xbf16>, vector<8x384xf32> -> vector<8x384xf32>
    %290 = vector.extract_strided_slice %287 {offsets = [0, 0], sizes = [8, 256], strides = [1, 1]} : vector<8x384xf32> to vector<8x256xf32>
    %291 = vector.extract_strided_slice %289 {offsets = [0, 0], sizes = [8, 256], strides = [1, 1]} : vector<8x384xf32> to vector<8x256xf32>
    %292 = arith.addf %290, %291 : vector<8x256xf32>
    %293 = arith.negf %292 : vector<8x256xf32>
    %294 = math.exp %293 : vector<8x256xf32>
    %cst_100 = arith.constant 1.000000e+00 : f32
    %295 = vector.broadcast %cst_100 : f32 to vector<8x256xf32>
    %296 = arith.addf %295, %294 : vector<8x256xf32>
    %297 = arith.divf %295, %296 : vector<8x256xf32>
    %298 = vector.extract_strided_slice %297 {offsets = [0, 0], sizes = [8, 128], strides = [1, 1]} : vector<8x256xf32> to vector<8x128xf32>
    %299 = vector.extract_strided_slice %297 {offsets = [0, 128], sizes = [8, 128], strides = [1, 1]} : vector<8x256xf32> to vector<8x128xf32>
    %300 = vector.extract_strided_slice %287 {offsets = [0, 256], sizes = [8, 128], strides = [1, 1]} : vector<8x384xf32> to vector<8x128xf32>
    %301 = vector.extract_strided_slice %289 {offsets = [0, 256], sizes = [8, 128], strides = [1, 1]} : vector<8x384xf32> to vector<8x128xf32>
    %302 = vector.broadcast %32 : vector<1x128xf32> to vector<8x128xf32>
    %303 = arith.addf %301, %302 : vector<8x128xf32>
    %304 = arith.mulf %298, %303 : vector<8x128xf32>
    %305 = arith.addf %300, %304 : vector<8x128xf32>
    %306 = math.tanh %305 : vector<8x128xf32>
    %307 = arith.subf %259, %306 : vector<8x128xf32>
    %308 = arith.mulf %299, %307 : vector<8x128xf32>
    %309 = arith.addf %306, %308 : vector<8x128xf32>
    %310 = arith.truncf %309 : vector<8x128xf32> to vector<8x128xbf16>
    %c40_101 = arith.constant 40 : index
    %c0_102 = arith.constant 0 : index
    %311 = vector.load %arg12[%c40_101, %c0_102] : memref<64x128xbf16, #tpu.memory_space<vmem>>, vector<8x128xbf16>
    tpu.vector_store %arg12[%c40_101, %c0_102], %310 {strides = array<i32>} : memref<64x128xbf16, #tpu.memory_space<vmem>>, vector<8x128xbf16>,
    %c16_103 = arith.constant 16 : index
    %c0_104 = arith.constant 0 : index
    %312 = vector.load %arg17[%c16_103, %c0_104] : memref<64x384xf32, #tpu.memory_space<vmem>>, vector<8x384xf32>
    %313 = arith.truncf %284 : vector<8x128xf32> to vector<8x128xbf16>
    %cst_105 = arith.constant dense<0.000000e+00> : vector<8x384xf32>
    %314 = tpu.matmul %313, %30, %cst_105 {dimension_numbers = #tpu.dot_dimension_numbers<[1], [0], [0], [1], [0, 0, 1, 1], [], []>} : vector<8x128xbf16>, vector<128x384xbf16>, vector<8x384xf32> -> vector<8x384xf32>
    %315 = vector.extract_strided_slice %312 {offsets = [0, 0], sizes = [8, 256], strides = [1, 1]} : vector<8x384xf32> to vector<8x256xf32>
    %316 = vector.extract_strided_slice %314 {offsets = [0, 0], sizes = [8, 256], strides = [1, 1]} : vector<8x384xf32> to vector<8x256xf32>
    %317 = arith.addf %315, %316 : vector<8x256xf32>
    %318 = arith.negf %317 : vector<8x256xf32>
    %319 = math.exp %318 : vector<8x256xf32>
    %cst_106 = arith.constant 1.000000e+00 : f32
    %320 = vector.broadcast %cst_106 : f32 to vector<8x256xf32>
    %321 = arith.addf %320, %319 : vector<8x256xf32>
    %322 = arith.divf %320, %321 : vector<8x256xf32>
    %323 = vector.extract_strided_slice %322 {offsets = [0, 0], sizes = [8, 128], strides = [1, 1]} : vector<8x256xf32> to vector<8x128xf32>
    %324 = vector.extract_strided_slice %322 {offsets = [0, 128], sizes = [8, 128], strides = [1, 1]} : vector<8x256xf32> to vector<8x128xf32>
    %325 = vector.extract_strided_slice %312 {offsets = [0, 256], sizes = [8, 128], strides = [1, 1]} : vector<8x384xf32> to vector<8x128xf32>
    %326 = vector.extract_strided_slice %314 {offsets = [0, 256], sizes = [8, 128], strides = [1, 1]} : vector<8x384xf32> to vector<8x128xf32>
    %327 = vector.broadcast %34 : vector<1x128xf32> to vector<8x128xf32>
    %328 = arith.addf %326, %327 : vector<8x128xf32>
    %329 = arith.mulf %323, %328 : vector<8x128xf32>
    %330 = arith.addf %325, %329 : vector<8x128xf32>
    %331 = math.tanh %330 : vector<8x128xf32>
    %332 = arith.subf %284, %331 : vector<8x128xf32>
    %333 = arith.mulf %324, %332 : vector<8x128xf32>
    %334 = arith.addf %331, %333 : vector<8x128xf32>
    %335 = arith.truncf %334 : vector<8x128xf32> to vector<8x128xbf16>
    %c16_107 = arith.constant 16 : index
    %c0_108 = arith.constant 0 : index
    %336 = vector.load %arg13[%c16_107, %c0_108] : memref<64x128xbf16, #tpu.memory_space<vmem>>, vector<8x128xbf16>
    tpu.vector_store %arg13[%c16_107, %c0_108], %335 {strides = array<i32>} : memref<64x128xbf16, #tpu.memory_space<vmem>>, vector<8x128xbf16>,
    %c48_109 = arith.constant 48 : index
    %c0_110 = arith.constant 0 : index
    %337 = vector.load %arg16[%c48_109, %c0_110] : memref<64x384xf32, #tpu.memory_space<vmem>>, vector<8x384xf32>
    %338 = arith.truncf %309 : vector<8x128xf32> to vector<8x128xbf16>
    %cst_111 = arith.constant dense<0.000000e+00> : vector<8x384xf32>
    %339 = tpu.matmul %338, %28, %cst_111 {dimension_numbers = #tpu.dot_dimension_numbers<[1], [0], [0], [1], [0, 0, 1, 1], [], []>} : vector<8x128xbf16>, vector<128x384xbf16>, vector<8x384xf32> -> vector<8x384xf32>
    %340 = vector.extract_strided_slice %337 {offsets = [0, 0], sizes = [8, 256], strides = [1, 1]} : vector<8x384xf32> to vector<8x256xf32>
    %341 = vector.extract_strided_slice %339 {offsets = [0, 0], sizes = [8, 256], strides = [1, 1]} : vector<8x384xf32> to vector<8x256xf32>
    %342 = arith.addf %340, %341 : vector<8x256xf32>
    %343 = arith.negf %342 : vector<8x256xf32>
    %344 = math.exp %343 : vector<8x256xf32>
    %cst_112 = arith.constant 1.000000e+00 : f32
    %345 = vector.broadcast %cst_112 : f32 to vector<8x256xf32>
    %346 = arith.addf %345, %344 : vector<8x256xf32>
    %347 = arith.divf %345, %346 : vector<8x256xf32>
    %348 = vector.extract_strided_slice %347 {offsets = [0, 0], sizes = [8, 128], strides = [1, 1]} : vector<8x256xf32> to vector<8x128xf32>
    %349 = vector.extract_strided_slice %347 {offsets = [0, 128], sizes = [8, 128], strides = [1, 1]} : vector<8x256xf32> to vector<8x128xf32>
    %350 = vector.extract_strided_slice %337 {offsets = [0, 256], sizes = [8, 128], strides = [1, 1]} : vector<8x384xf32> to vector<8x128xf32>
    %351 = vector.extract_strided_slice %339 {offsets = [0, 256], sizes = [8, 128], strides = [1, 1]} : vector<8x384xf32> to vector<8x128xf32>
    %352 = vector.broadcast %32 : vector<1x128xf32> to vector<8x128xf32>
    %353 = arith.addf %351, %352 : vector<8x128xf32>
    %354 = arith.mulf %348, %353 : vector<8x128xf32>
    %355 = arith.addf %350, %354 : vector<8x128xf32>
    %356 = math.tanh %355 : vector<8x128xf32>
    %357 = arith.subf %309, %356 : vector<8x128xf32>
    %358 = arith.mulf %349, %357 : vector<8x128xf32>
    %359 = arith.addf %356, %358 : vector<8x128xf32>
    %360 = arith.truncf %359 : vector<8x128xf32> to vector<8x128xbf16>
    %c48_113 = arith.constant 48 : index
    %c0_114 = arith.constant 0 : index
    %361 = vector.load %arg12[%c48_113, %c0_114] : memref<64x128xbf16, #tpu.memory_space<vmem>>, vector<8x128xbf16>
    tpu.vector_store %arg12[%c48_113, %c0_114], %360 {strides = array<i32>} : memref<64x128xbf16, #tpu.memory_space<vmem>>, vector<8x128xbf16>,
    %c8_115 = arith.constant 8 : index
    %c0_116 = arith.constant 0 : index
    %362 = vector.load %arg17[%c8_115, %c0_116] : memref<64x384xf32, #tpu.memory_space<vmem>>, vector<8x384xf32>
    %363 = arith.truncf %334 : vector<8x128xf32> to vector<8x128xbf16>
    %cst_117 = arith.constant dense<0.000000e+00> : vector<8x384xf32>
    %364 = tpu.matmul %363, %30, %cst_117 {dimension_numbers = #tpu.dot_dimension_numbers<[1], [0], [0], [1], [0, 0, 1, 1], [], []>} : vector<8x128xbf16>, vector<128x384xbf16>, vector<8x384xf32> -> vector<8x384xf32>
    %365 = vector.extract_strided_slice %362 {offsets = [0, 0], sizes = [8, 256], strides = [1, 1]} : vector<8x384xf32> to vector<8x256xf32>
    %366 = vector.extract_strided_slice %364 {offsets = [0, 0], sizes = [8, 256], strides = [1, 1]} : vector<8x384xf32> to vector<8x256xf32>
    %367 = arith.addf %365, %366 : vector<8x256xf32>
    %368 = arith.negf %367 : vector<8x256xf32>
    %369 = math.exp %368 : vector<8x256xf32>
    %cst_118 = arith.constant 1.000000e+00 : f32
    %370 = vector.broadcast %cst_118 : f32 to vector<8x256xf32>
    %371 = arith.addf %370, %369 : vector<8x256xf32>
    %372 = arith.divf %370, %371 : vector<8x256xf32>
    %373 = vector.extract_strided_slice %372 {offsets = [0, 0], sizes = [8, 128], strides = [1, 1]} : vector<8x256xf32> to vector<8x128xf32>
    %374 = vector.extract_strided_slice %372 {offsets = [0, 128], sizes = [8, 128], strides = [1, 1]} : vector<8x256xf32> to vector<8x128xf32>
    %375 = vector.extract_strided_slice %362 {offsets = [0, 256], sizes = [8, 128], strides = [1, 1]} : vector<8x384xf32> to vector<8x128xf32>
    %376 = vector.extract_strided_slice %364 {offsets = [0, 256], sizes = [8, 128], strides = [1, 1]} : vector<8x384xf32> to vector<8x128xf32>
    %377 = vector.broadcast %34 : vector<1x128xf32> to vector<8x128xf32>
    %378 = arith.addf %376, %377 : vector<8x128xf32>
    %379 = arith.mulf %373, %378 : vector<8x128xf32>
    %380 = arith.addf %375, %379 : vector<8x128xf32>
    %381 = math.tanh %380 : vector<8x128xf32>
    %382 = arith.subf %334, %381 : vector<8x128xf32>
    %383 = arith.mulf %374, %382 : vector<8x128xf32>
    %384 = arith.addf %381, %383 : vector<8x128xf32>
    %385 = arith.truncf %384 : vector<8x128xf32> to vector<8x128xbf16>
    %c8_119 = arith.constant 8 : index
    %c0_120 = arith.constant 0 : index
    %386 = vector.load %arg13[%c8_119, %c0_120] : memref<64x128xbf16, #tpu.memory_space<vmem>>, vector<8x128xbf16>
    tpu.vector_store %arg13[%c8_119, %c0_120], %385 {strides = array<i32>} : memref<64x128xbf16, #tpu.memory_space<vmem>>, vector<8x128xbf16>,
    %c56_121 = arith.constant 56 : index
    %c0_122 = arith.constant 0 : index
    %387 = vector.load %arg16[%c56_121, %c0_122] : memref<64x384xf32, #tpu.memory_space<vmem>>, vector<8x384xf32>
    %388 = arith.truncf %359 : vector<8x128xf32> to vector<8x128xbf16>
    %cst_123 = arith.constant dense<0.000000e+00> : vector<8x384xf32>
    %389 = tpu.matmul %388, %28, %cst_123 {dimension_numbers = #tpu.dot_dimension_numbers<[1], [0], [0], [1], [0, 0, 1, 1], [], []>} : vector<8x128xbf16>, vector<128x384xbf16>, vector<8x384xf32> -> vector<8x384xf32>
    %390 = vector.extract_strided_slice %387 {offsets = [0, 0], sizes = [8, 256], strides = [1, 1]} : vector<8x384xf32> to vector<8x256xf32>
    %391 = vector.extract_strided_slice %389 {offsets = [0, 0], sizes = [8, 256], strides = [1, 1]} : vector<8x384xf32> to vector<8x256xf32>
    %392 = arith.addf %390, %391 : vector<8x256xf32>
    %393 = arith.negf %392 : vector<8x256xf32>
    %394 = math.exp %393 : vector<8x256xf32>
    %cst_124 = arith.constant 1.000000e+00 : f32
    %395 = vector.broadcast %cst_124 : f32 to vector<8x256xf32>
    %396 = arith.addf %395, %394 : vector<8x256xf32>
    %397 = arith.divf %395, %396 : vector<8x256xf32>
    %398 = vector.extract_strided_slice %397 {offsets = [0, 0], sizes = [8, 128], strides = [1, 1]} : vector<8x256xf32> to vector<8x128xf32>
    %399 = vector.extract_strided_slice %397 {offsets = [0, 128], sizes = [8, 128], strides = [1, 1]} : vector<8x256xf32> to vector<8x128xf32>
    %400 = vector.extract_strided_slice %387 {offsets = [0, 256], sizes = [8, 128], strides = [1, 1]} : vector<8x384xf32> to vector<8x128xf32>
    %401 = vector.extract_strided_slice %389 {offsets = [0, 256], sizes = [8, 128], strides = [1, 1]} : vector<8x384xf32> to vector<8x128xf32>
    %402 = vector.broadcast %32 : vector<1x128xf32> to vector<8x128xf32>
    %403 = arith.addf %401, %402 : vector<8x128xf32>
    %404 = arith.mulf %398, %403 : vector<8x128xf32>
    %405 = arith.addf %400, %404 : vector<8x128xf32>
    %406 = math.tanh %405 : vector<8x128xf32>
    %407 = arith.subf %359, %406 : vector<8x128xf32>
    %408 = arith.mulf %399, %407 : vector<8x128xf32>
    %409 = arith.addf %406, %408 : vector<8x128xf32>
    %410 = arith.truncf %409 : vector<8x128xf32> to vector<8x128xbf16>
    %c56_125 = arith.constant 56 : index
    %c0_126 = arith.constant 0 : index
    %411 = vector.load %arg12[%c56_125, %c0_126] : memref<64x128xbf16, #tpu.memory_space<vmem>>, vector<8x128xbf16>
    tpu.vector_store %arg12[%c56_125, %c0_126], %410 {strides = array<i32>} : memref<64x128xbf16, #tpu.memory_space<vmem>>, vector<8x128xbf16>,
    %c0_127 = arith.constant 0 : index
    %c0_128 = arith.constant 0 : index
    %412 = vector.load %arg17[%c0_127, %c0_128] : memref<64x384xf32, #tpu.memory_space<vmem>>, vector<8x384xf32>
    %413 = arith.truncf %384 : vector<8x128xf32> to vector<8x128xbf16>
    %cst_129 = arith.constant dense<0.000000e+00> : vector<8x384xf32>
    %414 = tpu.matmul %413, %30, %cst_129 {dimension_numbers = #tpu.dot_dimension_numbers<[1], [0], [0], [1], [0, 0, 1, 1], [], []>} : vector<8x128xbf16>, vector<128x384xbf16>, vector<8x384xf32> -> vector<8x384xf32>
    %415 = vector.extract_strided_slice %412 {offsets = [0, 0], sizes = [8, 256], strides = [1, 1]} : vector<8x384xf32> to vector<8x256xf32>
    %416 = vector.extract_strided_slice %414 {offsets = [0, 0], sizes = [8, 256], strides = [1, 1]} : vector<8x384xf32> to vector<8x256xf32>
    %417 = arith.addf %415, %416 : vector<8x256xf32>
    %418 = arith.negf %417 : vector<8x256xf32>
    %419 = math.exp %418 : vector<8x256xf32>
    %cst_130 = arith.constant 1.000000e+00 : f32
    %420 = vector.broadcast %cst_130 : f32 to vector<8x256xf32>
    %421 = arith.addf %420, %419 : vector<8x256xf32>
    %422 = arith.divf %420, %421 : vector<8x256xf32>
    %423 = vector.extract_strided_slice %422 {offsets = [0, 0], sizes = [8, 128], strides = [1, 1]} : vector<8x256xf32> to vector<8x128xf32>
    %424 = vector.extract_strided_slice %422 {offsets = [0, 128], sizes = [8, 128], strides = [1, 1]} : vector<8x256xf32> to vector<8x128xf32>
    %425 = vector.extract_strided_slice %412 {offsets = [0, 256], sizes = [8, 128], strides = [1, 1]} : vector<8x384xf32> to vector<8x128xf32>
    %426 = vector.extract_strided_slice %414 {offsets = [0, 256], sizes = [8, 128], strides = [1, 1]} : vector<8x384xf32> to vector<8x128xf32>
    %427 = vector.broadcast %34 : vector<1x128xf32> to vector<8x128xf32>
    %428 = arith.addf %426, %427 : vector<8x128xf32>
    %429 = arith.mulf %423, %428 : vector<8x128xf32>
    %430 = arith.addf %425, %429 : vector<8x128xf32>
    %431 = math.tanh %430 : vector<8x128xf32>
    %432 = arith.subf %384, %431 : vector<8x128xf32>
    %433 = arith.mulf %424, %432 : vector<8x128xf32>
    %434 = arith.addf %431, %433 : vector<8x128xf32>
    %435 = arith.truncf %434 : vector<8x128xf32> to vector<8x128xbf16>
    %c0_131 = arith.constant 0 : index
    %c0_132 = arith.constant 0 : index
    %436 = vector.load %arg13[%c0_131, %c0_132] : memref<64x128xbf16, #tpu.memory_space<vmem>>, vector<8x128xbf16>
    tpu.vector_store %arg13[%c0_131, %c0_132], %435 {strides = array<i32>} : memref<64x128xbf16, #tpu.memory_space<vmem>>, vector<8x128xbf16>,
    %c0_133 = arith.constant 0 : index
    %c0_134 = arith.constant 0 : index
    %437 = vector.load %arg14[%c0_133, %c0_134] : memref<8x128xf32, #tpu.memory_space<vmem>>, vector<8x128xf32>
    tpu.vector_store %arg14[%c0_133, %c0_134], %409 {strides = array<i32>} : memref<8x128xf32, #tpu.memory_space<vmem>>, vector<8x128xf32>,
    %c0_135 = arith.constant 0 : index
    %c0_136 = arith.constant 0 : index
    %438 = vector.load %arg15[%c0_135, %c0_136] : memref<8x128xf32, #tpu.memory_space<vmem>>, vector<8x128xf32>
    tpu.vector_store %arg15[%c0_135, %c0_136], %434 {strides = array<i32>} : memref<8x128xf32, #tpu.memory_space<vmem>>, vector<8x128xf32>,
    return
  }
  func.func @transform_0(%arg0: i32) -> (i32, i32) {
    %c0_i32 = arith.constant 0 : i32
    %c0_i32_0 = arith.constant 0 : i32
    return %arg0, %c0_i32 : i32, i32
  }
  func.func @transform_1(%arg0: i32) -> (i32, i32) {
    %c0_i32 = arith.constant 0 : i32
    %c0_i32_0 = arith.constant 0 : i32
    return %arg0, %c0_i32 : i32, i32
  }
  func.func @transform_2(%arg0: i32) -> (i32, i32) {
    %c0_i32 = arith.constant 0 : i32
    %0 = arith.subi %c0_i32, %arg0 : i32
    %c0_i32_0 = arith.constant 0 : i32
    %c0_i32_1 = arith.constant 0 : i32
    return %0, %c0_i32_0 : i32, i32
  }
  func.func @transform_3(%arg0: i32) -> (i32, i32) {
    %c0_i32 = arith.constant 0 : i32
    %0 = arith.subi %c0_i32, %arg0 : i32
    %c0_i32_0 = arith.constant 0 : i32
    %c0_i32_1 = arith.constant 0 : i32
    return %0, %c0_i32_0 : i32, i32
  }
  func.func @transform_4(%arg0: i32) -> (i32, i32) {
    %c0_i32 = arith.constant 0 : i32
    %c0_i32_0 = arith.constant 0 : i32
    %c0_i32_1 = arith.constant 0 : i32
    return %c0_i32, %c0_i32_0 : i32, i32
  }
  func.func @transform_5(%arg0: i32) -> (i32, i32) {
    %c0_i32 = arith.constant 0 : i32
    %c0_i32_0 = arith.constant 0 : i32
    %c0_i32_1 = arith.constant 0 : i32
    return %c0_i32, %c0_i32_0 : i32, i32
  }
  func.func @transform_6(%arg0: i32) -> (i32, i32) {
    %c0_i32 = arith.constant 0 : i32
    %c0_i32_0 = arith.constant 0 : i32
    %c0_i32_1 = arith.constant 0 : i32
    return %c0_i32, %c0_i32_0 : i32, i32
  }
  func.func @transform_7(%arg0: i32) -> (i32, i32) {
    %c0_i32 = arith.constant 0 : i32
    %c0_i32_0 = arith.constant 0 : i32
    %c0_i32_1 = arith.constant 0 : i32
    return %c0_i32, %c0_i32_0 : i32, i32
  }
  func.func @transform_8(%arg0: i32) -> (i32, i32, i32) {
    %c0_i32 = arith.constant 0 : i32
    %c0_i32_0 = arith.constant 0 : i32
    %c0_i32_1 = arith.constant 0 : i32
    %c0_i32_2 = arith.constant 0 : i32
    return %c0_i32, %c0_i32_0, %c0_i32_1 : i32, i32, i32
  }
  func.func @transform_9(%arg0: i32) -> (i32, i32, i32) {
    %c0_i32 = arith.constant 0 : i32
    %c0_i32_0 = arith.constant 0 : i32
    %c0_i32_1 = arith.constant 0 : i32
    %c0_i32_2 = arith.constant 0 : i32
    return %c0_i32, %c0_i32_0, %c0_i32_1 : i32, i32, i32
  }
  func.func @transform_10(%arg0: i32) -> (i32, i32, i32) {
    %c0_i32 = arith.constant 0 : i32
    %c0_i32_0 = arith.constant 0 : i32
    %c0_i32_1 = arith.constant 0 : i32
    %c0_i32_2 = arith.constant 0 : i32
    return %c0_i32, %c0_i32_0, %c0_i32_1 : i32, i32, i32
  }
  func.func @transform_11(%arg0: i32) -> (i32, i32) {
    %c0_i32 = arith.constant 0 : i32
    %c0_i32_0 = arith.constant 0 : i32
    return %arg0, %c0_i32 : i32, i32
  }
  func.func @transform_12(%arg0: i32) -> (i32, i32) {
    %c0_i32 = arith.constant 0 : i32
    %0 = arith.subi %c0_i32, %arg0 : i32
    %c0_i32_0 = arith.constant 0 : i32
    %c0_i32_1 = arith.constant 0 : i32
    return %0, %c0_i32_0 : i32, i32
  }
}

</mosaic_0001>

<bundles_post_ra>
// kernel: count_rnn_forward.5
= control target key start
LH: loop header
LB: loop body
LE: loop exit
PB: predicated region body
PF: predicated region fallthrough
CT: control target
= control target key end

     0   :  { %s682_s3 = inlined_call_operand.vmem [shape: bf16[128,128], index: 3, kind: input, shape index: {}]   ;;  %s683_s2 = inlined_call_operand.vmem [shape: bf16[128,128], index: 2, kind: input, shape index: {}]   ;;  %s684_s1 = inlined_call_operand.vmem [shape: bf16[64,128], index: 1, kind: input, shape index: {}]   ;;  %s685_s0 = inlined_call_operand.vmem [shape: bf16[64,128], index: 0, kind: input, shape index: {}]   ;;  %s686_s4 = inlined_call_operand.vmem [shape: f32[1,128], index: 4, kind: input, shape index: {}]   ;;  %s687_s5 = inlined_call_operand.vmem [shape: f32[1,128], index: 5, kind: input, shape index: {}]   ;;  %s688_s6 = inlined_call_operand.vmem [shape: f32[1,128], index: 6, kind: input, shape index: {}]   ;;  %s689_s7 = inlined_call_operand.vmem [shape: f32[64,128], index: 7, kind: output, shape index: {}]  }
   0x1   :  { %v513_v0 = vld [vmem:[%s682_s3] sm:$0xff]   ;;  %v515_v2 = vld [vmem:[%s682_s3 + $0x8] sm:$0xff]   ;;  %v517_v4 = vld [vmem:[%s682_s3 + $0x10] sm:$0xff]  }
   0x2   :  { %v514_v1 = vld [vmem:[%s683_s2] sm:$0xff]   ;;  %457 = vmatprep.subr.bf16.mxu1 %v513_v0  ;;  %v516_v3 = vld [vmem:[%s683_s2 + $0x8] sm:$0xff]   ;;  %v518_v5 = vld [vmem:[%s683_s2 + $0x10] sm:$0xff]  }
   0x3   :  { %481 = vmatprep.subr.bf16.mxu0 %v514_v1  ;;  %458 = vmatpush3.bf16.msra.mxu1 %v513_v0  ;;  %v519_v6 = vld [vmem:[%s682_s3 + $0x18] sm:$0xff]   ;;  %v521_v8 = vld [vmem:[%s682_s3 + $0x20] sm:$0xff]   ;;  %v523_v10 = vld [vmem:[%s682_s3 + $0x28] sm:$0xff]  }
   0x4   :  { %482 = vmatpush3.bf16.msra.mxu0 %v514_v1  ;;  %459 = vmatprep.subr.bf16.mxu1 %v515_v2  ;;  %v520_v7 = vld [vmem:[%s683_s2 + $0x18] sm:$0xff]   ;;  %v522_v9 = vld [vmem:[%s683_s2 + $0x20] sm:$0xff]   ;;  %v524_v11 = vld [vmem:[%s683_s2 + $0x28] sm:$0xff]  }
   0x5   :  { %483 = vmatprep.subr.bf16.mxu0 %v516_v3  ;;  %v529_v12 = vld [vmem:[%s684_s1] sm:$0xff]   ;;  %v525_v14 = vld [vmem:[%s682_s3 + $0x30] sm:$0xff]   ;;  %v527_v16 = vld [vmem:[%s682_s3 + $0x38] sm:$0xff]  }
   0x6   :  { %v530_v13 = vld [vmem:[%s685_s0] sm:$0xff]   ;;  %473 = vmatprep.mubr.bf16.mxu1 %v529_v12  ;;  %v526_v15 = vld [vmem:[%s683_s2 + $0x30] sm:$0xff]   ;;  %v528_v17 = vld [vmem:[%s683_s2 + $0x38] sm:$0xff]  }
   0x7   :  { %460 = vmatpush3.bf16.msra.mxu1 %v515_v2  ;;  %497 = vmatprep.mubr.bf16.mxu0 %v530_v13  ;;  %v531_v18 = vld [vmem:[%s684_s1 + $0x8] sm:$0xff]   ;;  %v533_v20 = vld [vmem:[%s684_s1 + $0x10] sm:$0xff]   ;;  %v535_v22 = vld [vmem:[%s684_s1 + $0x18] sm:$0xff]  }
   0x8   :  { %484 = vmatpush3.bf16.msra.mxu0 %v516_v3  ;;  %461 = vmatprep.subr.bf16.mxu1 %v517_v4  ;;  %v532_v19 = vld [vmem:[%s685_s0 + $0x8] sm:$0xff]   ;;  %v534_v21 = vld [vmem:[%s685_s0 + $0x10] sm:$0xff]   ;;  %v536_v23 = vld [vmem:[%s685_s0 + $0x18] sm:$0xff]  }
   0x9   :  { %485 = vmatprep.subr.bf16.mxu0 %v518_v5  ;;  %v430_v26 = vld [vmem:[%s686_s4] ss:$0 sm:$0xff] }
   0xa   :  { %v431_v31 = vld [vmem:[%s687_s5] ss:$0 sm:$0xff] }
   0xb   :  { %462 = vmatpush3.bf16.msra.mxu1 %v517_v4  ;;  %v432_v38 = vld [vmem:[%s688_s6] ss:$0 sm:$0xff] }
   0xc   :  { %486 = vmatpush3.bf16.msra.mxu0 %v518_v5  ;;  %463 = vmatprep.subr.bf16.mxu1 %v519_v6 }
   0xd   :  { %487 = vmatprep.subr.bf16.mxu0 %v520_v7 }
   0xf   :  { %464 = vmatpush3.bf16.msra.mxu1 %v519_v6 }
  0x10   :  { %488 = vmatpush3.bf16.msra.mxu0 %v520_v7  ;;  %465 = vmatprep.subr.bf16.mxu1 %v521_v8 }
  0x11   :  { %489 = vmatprep.subr.bf16.mxu0 %v522_v9 }
  0x13   :  { %466 = vmatpush3.bf16.msra.mxu1 %v521_v8 }
  0x14   :  { %490 = vmatpush3.bf16.msra.mxu0 %v522_v9  ;;  %467 = vmatprep.subr.bf16.mxu1 %v523_v10 }
  0x15   :  { %491 = vmatprep.subr.bf16.mxu0 %v524_v11 }
  0x17   :  { %468 = vmatpush3.bf16.msra.mxu1 %v523_v10 }
  0x18   :  { %492 = vmatpush3.bf16.msra.mxu0 %v524_v11  ;;  %469 = vmatprep.subr.bf16.mxu1 %v525_v14 }
  0x19   :  { %493 = vmatprep.subr.bf16.mxu0 %v526_v15 }
  0x1b   :  { %470 = vmatpush3.bf16.msra.mxu1 %v525_v14 }
  0x1c   :  { %494 = vmatpush3.bf16.msra.mxu0 %v526_v15  ;;  %471 = vmatprep.subr.bf16.mxu1 %v527_v16 }
  0x1d   :  { %495 = vmatprep.subr.bf16.mxu0 %v528_v17 }
  0x1f   :  { %472 = vmatpush3.bf16.msra.mxu1 %v527_v16 }
  0x20   :  { %496 = vmatpush3.bf16.msra.mxu0 %v528_v17 }
  0x22   :  { %474 = vmatmul.mubr.bf16.vlgmr.msra.gmra.mrb[0].mxu1 %v531_v18 }
  0x23   :  { %498 = vmatmul.mubr.bf16.vlgmr.msra.gmra.mrb[0].mxu0 %v532_v19  ;;  %477 = vmatprep.mubr.bf16.mxu1 %v533_v20 }
  0x24   :  { %501 = vmatprep.mubr.bf16.mxu0 %v534_v21 }
  0x2a   :  { %478 = vmatmul.mubr.bf16.gmra.mrb[4].mxu1 %v535_v22 }
  0x2b   :  { %502 = vmatmul.mubr.bf16.gmra.mrb[4].mxu0 %v536_v23 }
  0xf5   :  { %v475_v24 = vpop.f32.mrb[0].mxu1 }
  0xf6   :  { %v499_v25 = vpop.f32.mrb[0].mxu0  ;;  %v181_v27 = vpop.f32.mrb[1].mxu1 }
  0xf7   :  { %v327_v28 = vadd.f32 %v499_v25, %v475_v24  ;;  %v318_v29 = vpop.f32.mrb[1].mxu0  ;;  %v476_v30 = vpop.f32.mrb[2].mxu1 }
  0xf8   :  { %v319_v32 = vadd.f32 %v318_v29, %v181_v27  ;;  %v500_v33 = vpop.f32.mrb[2].mxu0  ;;  %v184_v34 = vpop.f32.mrb[3].mxu1 }
  0xf9   :  { %v358_v35 = vadd.f32 %v430_v26, %v327_v28  ;;  %v330_v36 = vadd.f32 %v500_v33, %v476_v30  ;;  %v321_v37 = vpop.f32.mrb[3].mxu0 }
  0xfa   :  { %v356_v39 = vadd.f32 %v430_v26, %v319_v32  ;;  %v322_v40 = vadd.f32 %v321_v37, %v184_v34 }
  0xfb   :  { %v373_v41 = vmul.f32 %v431_v31, %v358_v35  ;;  %v359_v42 = vadd.f32 %v430_v26, %v330_v36 }
  0xfc   :  { %v371_v43 = vmul.f32 %v431_v31, %v356_v39  ;;  %v357_v44 = vadd.f32 %v430_v26, %v322_v40 }
  0xfd   :  { %v388_v45 = vadd.f32 %v432_v38, %v373_v41  ;;  %v374_v46 = vmul.f32 %v431_v31, %v359_v42  ;;  %v479_v47 = vpop.f32.mrb[4].mxu1 }
  0xfe   :  { %v386_v48 = vadd.f32 %v432_v38, %v371_v43  ;;  %v372_v49 = vmul.f32 %v431_v31, %v357_v44  ;;  %v503_v50 = vpop.f32.mrb[4].mxu0  ;;  %v197_v51 = vpop.f32.mrb[5].mxu1 }
  0xff   :  { %396 = vst [vmem:[%s689_s7 + $0x10] sm:$0xff] %v388_v45  ;;  %v389_v52 = vadd.f32 %v432_v38, %v374_v46  ;;  %v343_v53 = vadd.f32 %v503_v50, %v479_v47  ;;  %v334_v54 = vpop.f32.mrb[5].mxu0  ;;  %v480_v55 = vpop.f32.mrb[6].mxu1 }
 0x100   :  { %394 = vst [vmem:[%s689_s7] sm:$0xff] %v386_v48  ;;  %v387_v56 = vadd.f32 %v432_v38, %v372_v49  ;;  %v335_v57 = vadd.f32 %v334_v54, %v197_v51  ;;  %v504_v58 = vpop.f32.mrb[6].mxu0  ;;  %v200_v59 = vpop.f32.mrb[7].mxu1 }
 0x101   :  { %397 = vst [vmem:[%s689_s7 + $0x18] sm:$0xff] %v389_v52  ;;  %v362_v60 = vadd.f32 %v430_v26, %v343_v53  ;;  %v346_v61 = vadd.f32 %v504_v58, %v480_v55  ;;  %v337_v62 = vpop.f32.mrb[7].mxu0 }
 0x102   :  { %395 = vst [vmem:[%s689_s7 + $0x8] sm:$0xff] %v387_v56  ;;  %v360_v63 = vadd.f32 %v430_v26, %v335_v57  ;;  %v338_v0 = vadd.f32 %v337_v62, %v200_v59 }
 0x103   :  { %v377_v1 = vmul.f32 %v431_v31, %v362_v60  ;;  %v363_v2 = vadd.f32 %v430_v26, %v346_v61 }
 0x104   :  { %v375_v3 = vmul.f32 %v431_v31, %v360_v63  ;;  %v361_v4 = vadd.f32 %v430_v26, %v338_v0 }
 0x105   :  { %v392_v5 = vadd.f32 %v432_v38, %v377_v1  ;;  %v378_v6 = vmul.f32 %v431_v31, %v363_v2 }
 0x106   :  { %v390_v7 = vadd.f32 %v432_v38, %v375_v3  ;;  %v376_v8 = vmul.f32 %v431_v31, %v361_v4 }
 0x107   :  { %400 = vst [vmem:[%s689_s7 + $0x30] sm:$0xff] %v392_v5  ;;  %v393_v9 = vadd.f32 %v432_v38, %v378_v6 }
 0x108   :  { %398 = vst [vmem:[%s689_s7 + $0x20] sm:$0xff] %v390_v7  ;;  %v391_v10 = vadd.f32 %v432_v38, %v376_v8 }
 0x109   :  { %401 = vst [vmem:[%s689_s7 + $0x38] sm:$0xff] %v393_v9 }
 0x10a   :  { %399 = vst [vmem:[%s689_s7 + $0x28] sm:$0xff] %v391_v10 }

// kernel: count_rnn_forward.3
= control target key start
LH: loop header
LB: loop body
LE: loop exit
PB: predicated region body
PF: predicated region fallthrough
CT: control target
= control target key end

     0   :  { %v5711_v1 = vmov 0   ;;  %vm4000_vm0 = vmmov 0   ;;  %s5702_s2 = inlined_call_operand.vmem [shape: bf16[128,384], index: 2, kind: input, shape index: {}]   ;;  %s5703_s0 = inlined_call_operand.vmem [shape: bf16[64,128], index: 0, kind: input, shape index: {}, may-alias: {0,1}]   ;;  %s5704_s3 = inlined_call_operand.vmem [shape: bf16[128,384], index: 3, kind: input, shape index: {}]   ;;  %s5705_s1 = inlined_call_operand.vmem [shape: bf16[64,128], index: 1, kind: input, shape index: {}, may-alias: {0,1}]   ;;  %s5706_s5 = inlined_call_operand.vmem [shape: bf16[2,128,384], index: 5, kind: input, shape index: {}]   ;;  %s5707_s4 = inlined_call_operand.vmem [shape: f32[2,1,384], index: 4, kind: input, shape index: {}]   ;;  %s5708_s6 = inlined_call_operand.vmem [shape: f32[2,1,128], index: 6, kind: input, shape index: {}]   ;;  %s5709_s7 = inlined_call_operand.vmem [shape: bf16[64,128], index: 7, kind: output, shape index: {0}]   ;;  %s5710_s8 = inlined_call_operand.vmem [shape: bf16[64,128], index: 8, kind: output, shape index: {1}]  }
   0x1   :  { %v3616_v0 = vld [vmem:[%s5702_s2 + $0x4] ss:$12 sps:$4 sm:$0xff]   ;;  %312 = vmatprep.mubr.bf16.mxu0 %v5711_v1  ;;  %v3618_v2 = vld [vmem:[%s5702_s2] ss:$12 sps:$4 sm:$0xff]   ;;  %v3619_v3 = vld [vmem:[%s5702_s2 + $0x1c] ss:$12 sps:$4 sm:$0xff]  }
   0x2   :  { %280 = vmatprep.subr.bf16.mxu0 %v3616_v0  ;;  %v3621_v4 = vld [vmem:[%s5702_s2 + $0x18] ss:$12 sps:$4 sm:$0xff]   ;;  %v3622_v5 = vld [vmem:[%s5702_s2 + $0x34] ss:$12 sps:$4 sm:$0xff]   ;;  %v3624_v6 = vld [vmem:[%s5702_s2 + $0x30] ss:$12 sps:$4 sm:$0xff]  }
   0x3   :  { %281 = vmatpush1.bf16.msra.mxu0 %v3618_v2  ;;  %v3625_v7 = vld [vmem:[%s5702_s2 + $0x4c] ss:$12 sps:$4 sm:$0xff]   ;;  %v3634_v8 = vld [vmem:[%s5702_s2 + $0x8] ss:$12 sps:$4 sm:$0xff]   ;;  %v3628_v11 = vld [vmem:[%s5702_s2 + $0x64] ss:$12 sps:$4 sm:$0xff]  }
   0x4   :  { %282 = vmatprep.subr.bf16.mxu0 %v3619_v3  ;;  %v3627_v9 = vld [vmem:[%s5702_s2 + $0x48] ss:$12 sps:$4 sm:$0xff]   ;;  %3244 = vmatprep.subr.bf16.mxu1 %v3634_v8  ;;  %v3638_v10 = vld [vmem:[%s5702_s2 + $0x20] ss:$12 sps:$4 sm:$0xff]   ;;  %v3642_v12 = vld [vmem:[%s5702_s2 + $0x38] ss:$12 sps:$4 sm:$0xff]  }
   0x5   :  { %3245 = vmatpush3.bf16.msra.mxu1 %v3634_v8  ;;  %v3630_v13 = vld [vmem:[%s5702_s2 + $0x60] ss:$12 sps:$4 sm:$0xff]   ;;  %v3631_v14 = vld [vmem:[%s5702_s2 + $0x7c] ss:$12 sps:$4 sm:$0xff]   ;;  %v3633_v17 = vld [vmem:[%s5702_s2 + $0x78] ss:$12 sps:$4 sm:$0xff]  }
   0x6   :  { %3246 = vmatprep.subr.bf16.mxu1 %v3638_v10  ;;  %v3643_v15 = vld [vmem:[%s5703_s0] sm:$0xff]   ;;  %v3647_v16 = vld [vmem:[%s5702_s2 + $0x50] ss:$12 sps:$4 sm:$0xff]   ;;  %v3651_v19 = vld [vmem:[%s5702_s2 + $0x68] ss:$12 sps:$4 sm:$0xff]   ;;  %v5713_v0 = vmov 0.0  }
   0x7   :  { %283 = vmatpush1.bf16.msra.mxu0 %v3621_v4  ;;  %3260 = vmatprep.mubr.bf16.mxu1 %v3643_v15  ;;  %v3635_v18 = vld [vmem:[%s5702_s2 + $0x94] ss:$12 sps:$4 sm:$0xff]   ;;  %v3637_v20 = vld [vmem:[%s5702_s2 + $0x90] ss:$12 sps:$4 sm:$0xff]   ;;  %v3639_v21 = vld [vmem:[%s5702_s2 + $0xac] ss:$12 sps:$4 sm:$0xff]  }
   0x8   :  { %284 = vmatprep.subr.bf16.mxu0 %v3622_v5  ;;  %v3656_v22 = vld [vmem:[%s5702_s2 + $0x80] ss:$12 sps:$4 sm:$0xff]   ;;  %v3641_v23 = vld [vmem:[%s5702_s2 + $0xa8] ss:$12 sps:$4 sm:$0xff]   ;;  %v3646_v24 = vld [vmem:[%s5704_s3 + $0x4] ss:$12 sps:$4 sm:$0xff]  }
   0x9   :  { %3247 = vmatpush3.bf16.msra.mxu1 %v3638_v10  ;;  %v3660_v25 = vld [vmem:[%s5702_s2 + $0x98] ss:$12 sps:$4 sm:$0xff]   ;;  %v3644_v26 = vld [vmem:[%s5704_s3] ss:$12 sps:$4 sm:$0xff]   ;;  %v3650_v27 = vld [vmem:[%s5704_s3 + $0x1c] ss:$12 sps:$4 sm:$0xff]  }
   0xa   :  { %3248 = vmatprep.subr.bf16.mxu1 %v3642_v12  ;;  %v3665_v28 = vld [vmem:[%s5702_s2 + $0xb0] ss:$12 sps:$4 sm:$0xff]   ;;  %v3648_v29 = vld [vmem:[%s5704_s3 + $0x18] ss:$12 sps:$4 sm:$0xff]   ;;  %v3655_v30 = vld [vmem:[%s5704_s3 + $0x34] ss:$12 sps:$4 sm:$0xff]  }
   0xb   :  { %285 = vmatpush1.bf16.msra.mxu0 %v3624_v6  ;;  %v3669_v31 = vld [vmem:[%s5704_s3 + $0x8] ss:$12 sps:$4 sm:$0xff]   ;;  %v3653_v33 = vld [vmem:[%s5704_s3 + $0x30] ss:$12 sps:$4 sm:$0xff]   ;;  %v3659_v34 = vld [vmem:[%s5704_s3 + $0x4c] ss:$12 sps:$4 sm:$0xff]  }
   0xc   :  { %286 = vmatprep.subr.bf16.mxu0 %v3625_v7  ;;  %v3652_v32 = vld [vmem:[%s5703_s0 + $0x8] sm:$0xff]   ;;  %v3661_v37 = vld [vmem:[%s5703_s0 + $0x10] sm:$0xff]   ;;  %v3678_v39 = vld [vmem:[%s5704_s3 + $0x38] ss:$12 sps:$4 sm:$0xff]  }
   0xd   :  { %3249 = vmatpush3.bf16.msra.mxu1 %v3642_v12  ;;  %v3657_v35 = vld [vmem:[%s5704_s3 + $0x48] ss:$12 sps:$4 sm:$0xff]   ;;  %v3674_v36 = vld [vmem:[%s5704_s3 + $0x20] ss:$12 sps:$4 sm:$0xff]   ;;  %v3664_v38 = vld [vmem:[%s5704_s3 + $0x64] ss:$12 sps:$4 sm:$0xff]  }
   0xe   :  { %3250 = vmatprep.subr.bf16.mxu1 %v3647_v16  ;;  %v3662_v40 = vld [vmem:[%s5704_s3 + $0x60] ss:$12 sps:$4 sm:$0xff]   ;;  %v3668_v41 = vld [vmem:[%s5704_s3 + $0x7c] ss:$12 sps:$4 sm:$0xff]   ;;  %v3666_v42 = vld [vmem:[%s5704_s3 + $0x78] ss:$12 sps:$4 sm:$0xff]  }
   0xf   :  { %287 = vmatpush1.bf16.msra.mxu0 %v3627_v9  ;;  %v3670_v43 = vld [vmem:[%s5703_s0 + $0x18] sm:$0xff]   ;;  %v3679_v45 = vld [vmem:[%s5705_s1] sm:$0xff]   ;;  %v3687_v47 = vld [vmem:[%s5704_s3 + $0x68] ss:$12 sps:$4 sm:$0xff]  }
  0x10   :  { %288 = vmatprep.subr.bf16.mxu0 %v3628_v11  ;;  %v3683_v44 = vld [vmem:[%s5704_s3 + $0x50] ss:$12 sps:$4 sm:$0xff]   ;;  %v3673_v46 = vld [vmem:[%s5704_s3 + $0x94] ss:$12 sps:$4 sm:$0xff]   ;;  %v3677_v49 = vld [vmem:[%s5704_s3 + $0xac] ss:$12 sps:$4 sm:$0xff]  }
  0x11   :  { %3251 = vmatpush3.bf16.msra.mxu1 %v3647_v16  ;;  %v3671_v48 = vld [vmem:[%s5704_s3 + $0x90] ss:$12 sps:$4 sm:$0xff]   ;;  %v3692_v50 = vld [vmem:[%s5704_s3 + $0x80] ss:$12 sps:$4 sm:$0xff]   ;;  %v3675_v51 = vld [vmem:[%s5704_s3 + $0xa8] ss:$12 sps:$4 sm:$0xff]  }
  0x12   :  { %3252 = vmatprep.subr.bf16.mxu1 %v3651_v19  ;;  %v4208_v52 = vld [vmem:[%s5706_s5 + $0x4] ss:$12 sps:$4 sm:$0xff]   ;;  %v4216_v54 = vld [vmem:[%s5706_s5] ss:$12 sps:$4 sm:$0xff]   ;;  %v4222_v55 = vld [vmem:[%s5706_s5 + $0x1c] ss:$12 sps:$4 sm:$0xff]  }
  0x13   :  { %289 = vmatpush1.bf16.msra.mxu0 %v3630_v13  ;;  %v3696_v53 = vld [vmem:[%s5704_s3 + $0x98] ss:$12 sps:$4 sm:$0xff]   ;;  %v3701_v56 = vld [vmem:[%s5704_s3 + $0xb0] ss:$12 sps:$4 sm:$0xff]   ;;  %v4238_v58 = vld [vmem:[%s5706_s5 + $0x34] ss:$12 sps:$4 sm:$0xff]  }
  0x14   :  { %290 = vmatprep.subr.bf16.mxu0 %v3631_v14  ;;  %v4231_v57 = vld [vmem:[%s5706_s5 + $0x18] ss:$12 sps:$4 sm:$0xff]   ;;  %v3688_v59 = vld [vmem:[%s5705_s1 + $0x8] sm:$0xff]   ;;  %v4247_v60 = vld [vmem:[%s5706_s5 + $0x30] ss:$12 sps:$4 sm:$0xff]  }
  0x15   :  { %3253 = vmatpush3.bf16.msra.mxu1 %v3651_v19  ;;  %v4253_v61 = vld [vmem:[%s5706_s5 + $0x4c] ss:$12 sps:$4 sm:$0xff]   ;;  %v4258_v62 = vld [vmem:[%s5706_s5 + $0x8] ss:$12 sps:$4 sm:$0xff]   ;;  %v4275_v3 = vld [vmem:[%s5706_s5 + $0x64] ss:$12 sps:$4 sm:$0xff]  }
  0x16   :  { %3254 = vmatprep.subr.bf16.mxu1 %v3656_v22  ;;  %v4263_v63 = vld [vmem:[%s5706_s5 + $0x48] ss:$12 sps:$4 sm:$0xff]   ;;  %v4281_v4 = vld [vmem:[%s5706_s5 + $0x20] ss:$12 sps:$4 sm:$0xff]   ;;  %v4300_v7 = vld [vmem:[%s5706_s5 + $0x38] ss:$12 sps:$4 sm:$0xff]  }
  0x17   :  { %291 = vmatpush1.bf16.msra.mxu0 %v3633_v17  ;;  %v3697_v2 = vld [vmem:[%s5705_s1 + $0x10] sm:$0xff]   ;;  %v4288_v5 = vld [vmem:[%s5706_s5 + $0x60] ss:$12 sps:$4 sm:$0xff]   ;;  %v4294_v6 = vld [vmem:[%s5706_s5 + $0x7c] ss:$12 sps:$4 sm:$0xff]  }
  0x18   :  { %292 = vmatprep.subr.bf16.mxu0 %v3635_v18  ;;  %5759 = vst [vmem:[#allocation6_spill] sm:$0xff] %v4288_v5  ;;  %5760 = vst [vmem:[#allocation7_spill] sm:$0xff] %v4294_v6  ;;  %v3705_v8 = vld [vmem:[%s5705_s1 + $0x18] sm:$0xff]   ;;  %v4317_v10 = vld [vmem:[%s5706_s5 + $0x94] ss:$12 sps:$4 sm:$0xff]  }
  0x19   :  { %3255 = vmatpush3.bf16.msra.mxu1 %v3656_v22  ;;  %v4310_v9 = vld [vmem:[%s5706_s5 + $0x78] ss:$12 sps:$4 sm:$0xff]   ;;  %5762 = vst [vmem:[#allocation9_spill] sm:$0xff] %v4317_v10  ;;  %v4323_v11 = vld [vmem:[%s5706_s5 + $0x50] ss:$12 sps:$4 sm:$0xff]  }
  0x1a   :  { %3256 = vmatprep.subr.bf16.mxu1 %v3660_v25  ;;  %5761 = vst [vmem:[#allocation8_spill] sm:$0xff] %v4310_v9  ;;  %v4332_v12 = vld [vmem:[%s5706_s5 + $0x90] ss:$12 sps:$4 sm:$0xff]   ;;  %v4338_v13 = vld [vmem:[%s5706_s5 + $0xac] ss:$12 sps:$4 sm:$0xff]  }
  0x1b   :  { %293 = vmatpush1.bf16.msra.mxu0 %v3637_v20  ;;  %5763 = vst [vmem:[#allocation10_spill] sm:$0xff] %v4332_v12  ;;  %5764 = vst [vmem:[#allocation11_spill] sm:$0xff] %v4338_v13  ;;  %v4344_v14 = vld [vmem:[%s5706_s5 + $0x68] ss:$12 sps:$4 sm:$0xff]   ;;  %v4358_v16 = vld [vmem:[%s5706_s5 + $0xc4] ss:$12 sps:$4 sm:$0xff]  }
  0x1c   :  { %294 = vmatprep.subr.bf16.mxu0 %v3639_v21  ;;  %5765 = vst [vmem:[#allocation12_spill] sm:$0xff] %v4344_v14  ;;  %5767 = vst [vmem:[#allocation14_spill] sm:$0xff] %v4358_v16  ;;  %v4364_v17 = vld [vmem:[%s5706_s5 + $0x80] ss:$12 sps:$4 sm:$0xff]   ;;  %v4377_v19 = vld [vmem:[%s5706_s5 + $0xdc] ss:$12 sps:$4 sm:$0xff]  }
  0x1d   :  { %3257 = vmatpush3.bf16.msra.mxu1 %v3660_v25  ;;  %5768 = vst [vmem:[#allocation15_spill] sm:$0xff] %v4364_v17  ;;  %v4371_v18 = vld [vmem:[%s5706_s5 + $0xc0] ss:$12 sps:$4 sm:$0xff]   ;;  %v4383_v20 = vld [vmem:[%s5706_s5 + $0x98] ss:$12 sps:$4 sm:$0xff]   ;;  %v4001_v21 = vmov 0.0|0.0  }
  0x1e   :  { %3258 = vmatprep.subr.bf16.mxu1 %v3665_v28  ;;  %5769 = vst [vmem:[#allocation16_spill] sm:$0xff] %v4383_v20  ;;  %v4391_v22 = vld [vmem:[%s5706_s5 + $0xd8] ss:$12 sps:$4 sm:$0xff]   ;;  %v4411_v25 = vld [vmem:[%s5706_s5 + $0xf0] ss:$12 sps:$4 sm:$0xff]  }
  0x1f   :  { %295 = vmatpush1.bf16.msra.mxu0 %v3641_v23  ;;  %v4398_v23 = vld [vmem:[%s5706_s5 + $0xf4] ss:$12 sps:$4 sm:$0xff]  }
  0x20   :  { %652 = vmatprep.subr.bf16.mxu0 %v3646_v24  ;;  %v4404_v24 = vld [vmem:[%s5706_s5 + $0xb0] ss:$12 sps:$4 sm:$0xff]  }
  0x21   :  { %3259 = vmatpush3.bf16.msra.mxu1 %v3665_v28  ;;  %5770 = vst [vmem:[#allocation17_spill] sm:$0xff] %v4404_v24  ;;  %v4430_v28 = vld [vmem:[%s5706_s5 + $0x108] ss:$12 sps:$4 sm:$0xff]  }
  0x22   :  { %313 = vmatmul.mubr.bf16.vlgmr.msra.gmra.mrb[0].mxu0 %v3643_v15  ;;  %3268 = vmatprep.subr.bf16.mxu1 %v3669_v31  ;;  %v4351_v15 = vld [vmem:[%s5706_s5 + $0xa8] ss:$12 sps:$4 sm:$0xff]  }
  0x23   :  { %653 = vmatpush1.bf16.msra.mxu0 %v3644_v26  ;;  %322 = vmatprep.mubr.bf16.mxu0 %v5711_v1  ;;  %5766 = vst [vmem:[#allocation13_spill] sm:$0xff] %v4351_v15  ;;  %v4417_v26 = vld [vmem:[%s5706_s5 + $0x10c] ss:$12 sps:$4 sm:$0xff]  }
  0x24   :  { %654 = vmatprep.subr.bf16.mxu0 %v3650_v27  ;;  %3261 = vmatmul.mubr.bf16.vlgmr.msra.gmra.mrb[0].mxu1 %v3652_v32  ;;  %v4423_v27 = vld [vmem:[%s5706_s5 + $0xc8] ss:$12 sps:$4 sm:$0xff]  }
  0x25   :  { %3269 = vmatpush3.bf16.msra.mxu1 %v3669_v31  ;;  %3264 = vmatprep.mubr.bf16.mxu1 %v3661_v37  ;;  %v4452_v31 = vld [vmem:[%s5706_s5 + $0x120] ss:$12 sps:$4 sm:$0xff]  }
  0x26   :  { %3270 = vmatprep.subr.bf16.mxu1 %v3674_v36 }
  0x27   :  { %655 = vmatpush1.bf16.msra.mxu0 %v3648_v29  ;;  %v4436_v29 = vld [vmem:[%s5706_s5 + $0x124] ss:$12 sps:$4 sm:$0xff]  }
  0x28   :  { %656 = vmatprep.subr.bf16.mxu0 %v3655_v30  ;;  %v4443_v30 = vld [vmem:[%s5706_s5 + $0xe0] ss:$12 sps:$4 sm:$0xff]  }
  0x29   :  { %3271 = vmatpush3.bf16.msra.mxu1 %v3674_v36  ;;  %v4483_v36 = vld [vmem:[%s5706_s5 + $0x110] ss:$12 sps:$4 sm:$0xff]  }
  0x2a   :  { %323 = vmatmul.mubr.bf16.gmra.mrb[4].mxu0 %v3652_v32  ;;  %3272 = vmatprep.subr.bf16.mxu1 %v3678_v39  ;;  %v4458_v32 = vld [vmem:[%s5706_s5 + $0x13c] ss:$12 sps:$4 sm:$0xff]  }
  0x2b   :  { %657 = vmatpush1.bf16.msra.mxu0 %v3653_v33  ;;  %332 = vmatprep.mubr.bf16.mxu0 %v5711_v1  ;;  %v4464_v33 = vld [vmem:[%s5706_s5 + $0xf8] ss:$12 sps:$4 sm:$0xff]  }
  0x2c   :  { %658 = vmatprep.subr.bf16.mxu0 %v3659_v34  ;;  %3265 = vmatmul.mubr.bf16.gmra.mrb[4].mxu1 %v3670_v43  ;;  %v4471_v34 = vld [vmem:[%s5706_s5 + $0x138] ss:$12 sps:$4 sm:$0xff]  }
  0x2d   :  { %3273 = vmatpush3.bf16.msra.mxu1 %v3678_v39  ;;  %3284 = vmatprep.mubr.bf16.mxu1 %v3679_v45  ;;  %v4502_v39 = vld [vmem:[%s5706_s5 + $0x128] ss:$12 sps:$4 sm:$0xff]  }
  0x2e   :  { %3274 = vmatprep.subr.bf16.mxu1 %v3683_v44 }
  0x2f   :  { %659 = vmatpush1.bf16.msra.mxu0 %v3657_v35  ;;  %v4477_v35 = vld [vmem:[%s5706_s5 + $0x154] ss:$12 sps:$4 sm:$0xff]  }
  0x30   :  { %660 = vmatprep.subr.bf16.mxu0 %v3664_v38  ;;  %v4496_v38 = vld [vmem:[%s5706_s5 + $0x16c] ss:$12 sps:$4 sm:$0xff]  }
  0x31   :  { %3275 = vmatpush3.bf16.msra.mxu1 %v3683_v44  ;;  %v113_v44 = vlaneseq }
  0x32   :  { %333 = vmatmul.mubr.bf16.gmra.mrb[8].mxu0 %v3661_v37  ;;  %3276 = vmatprep.subr.bf16.mxu1 %v3687_v47  ;;  %v4490_v37 = vld [vmem:[%s5706_s5 + $0x150] ss:$12 sps:$4 sm:$0xff]  }
  0x33   :  { %661 = vmatpush1.bf16.msra.mxu0 %v3662_v40  ;;  %342 = vmatprep.mubr.bf16.mxu0 %v5711_v1  ;;  %v4509_v40 = vld [vmem:[%s5706_s5 + $0x168] ss:$12 sps:$4 sm:$0xff]  }
  0x34   :  { %662 = vmatprep.subr.bf16.mxu0 %v3668_v41  ;;  %v4516_v41 = vld [vmem:[%s5706_s5 + $0x140] ss:$12 sps:$4 sm:$0xff]  }
  0x35   :  { %3277 = vmatpush3.bf16.msra.mxu1 %v3687_v47  ;;  %v71_v47 = vld [vmem:[%s5707_s4] sm:$0x7] }
  0x36   :  { %3278 = vmatprep.subr.bf16.mxu1 %v3692_v50 }
  0x37   :  { %663 = vmatpush1.bf16.msra.mxu0 %v3666_v42  ;;  %v4525_v42 = vld [vmem:[%s5706_s5 + $0x158] ss:$12 sps:$4 sm:$0xff]  }
  0x38   :  { %664 = vmatprep.subr.bf16.mxu0 %v3673_v46 }
  0x39   :  { %3279 = vmatpush3.bf16.msra.mxu1 %v3692_v50 }
  0x3a   :  { %343 = vmatmul.mubr.bf16.gmra.mrb[12].mxu0 %v3670_v43  ;;  %3280 = vmatprep.subr.bf16.mxu1 %v3696_v53  ;;  %v4536_v43 = vld [vmem:[%s5706_s5 + $0x170] ss:$12 sps:$4 sm:$0xff]  }
  0x3b   :  { %665 = vmatpush1.bf16.msra.mxu0 %v3671_v48  ;;  %684 = vmatprep.mubr.bf16.mxu0 %v5711_v1 }
  0x3c   :  { %666 = vmatprep.subr.bf16.mxu0 %v3677_v49 }
  0x3d   :  { %3281 = vmatpush3.bf16.msra.mxu1 %v3696_v53 }
  0x3e   :  { %3282 = vmatprep.subr.bf16.mxu1 %v3701_v56 }
  0x3f   :  { %667 = vmatpush1.bf16.msra.mxu0 %v3675_v51 }
  0x40   :  { %1016 = vmatprep.subr.bf16.mxu0 %v4208_v52 }
  0x41   :  { %3283 = vmatpush3.bf16.msra.mxu1 %v3701_v56 }
  0x42   :  { %685 = vmatmul.mubr.bf16.vlgmr.msra.gmra.mrb[16].mxu0 %v3679_v45  ;;  %3292 = vmatprep.subr.bf16.mxu1 %v5713_v0  ;;  %v4574_v45 = vshrl.u32 %v113_v44, 7 }
  0x43   :  { %1017 = vmatpush1.bf16.msra.mxu0 %v4216_v54  ;;  %694 = vmatprep.mubr.bf16.mxu0 %v5711_v1 }
  0x44   :  { %1018 = vmatprep.subr.bf16.mxu0 %v4222_v55  ;;  %3285 = vmatmul.mubr.bf16.vlgmr.msra.gmra.mrb[8].mxu1 %v3688_v59  ;;  %v115_v46 = vsub.s32 0, %v4574_v45  ;;  %v119_v48 = vsub.s32 1, %v4574_v45 }
  0x45   :  { %3293 = vmatpush3.bf16.msra.mxu1 %v4258_v62  ;;  %3288 = vmatprep.mubr.bf16.mxu1 %v3697_v2 }
  0x46   :  { %3294 = vmatprep.subr.bf16.mxu1 %v5713_v0  ;;  %v4581_v49 = vrot.slane %v71_v47, %v115_v46  ;;  %v4587_v53 = vrot.slane %v71_v47, %v119_v48 }
  0x47   :  { %1019 = vmatpush1.bf16.msra.mxu0 %v4231_v57 }
  0x48   :  { %1020 = vmatprep.subr.bf16.mxu0 %v4238_v58 }
  0x49   :  { %3295 = vmatpush3.bf16.msra.mxu1 %v4281_v4 }
  0x4a   :  { %695 = vmatmul.mubr.bf16.gmra.mrb[20].mxu0 %v3688_v59  ;;  %3296 = vmatprep.subr.bf16.mxu1 %v5713_v0 }
  0x4b   :  { %1021 = vmatpush1.bf16.msra.mxu0 %v4247_v60  ;;  %704 = vmatprep.mubr.bf16.mxu0 %v5711_v1 }
  0x4c   :  { %1022 = vmatprep.subr.bf16.mxu0 %v4253_v61  ;;  %3289 = vmatmul.mubr.bf16.gmra.mrb[12].mxu1 %v3705_v8 }
  0x4d   :  { %3297 = vmatpush3.bf16.msra.mxu1 %v4300_v7  ;;  %3308 = vmatprep.mubr.msk.bf16.mxu1 %vm4000_vm0, %v5713_v0 }
  0x4e   :  { %3298 = vmatprep.subr.bf16.mxu1 %v5713_v0 }
  0x4f   :  { %1023 = vmatpush1.bf16.msra.mxu0 %v4263_v63 }
  0x50   :  { %1024 = vmatprep.subr.bf16.mxu0 %v4275_v3 }
  0x51   :  { %3299 = vmatpush3.bf16.msra.mxu1 %v4323_v11 }
  0x52   :  { %705 = vmatmul.mubr.bf16.gmra.mrb[24].mxu0 %v3697_v2  ;;  %3300 = vmatprep.subr.bf16.mxu1 %v5713_v0 }
  0x53   :  { %1025 = vmatpush1.bf16.msra.mxu0 %v4288_v5  ;;  %714 = vmatprep.mubr.bf16.mxu0 %v5711_v1 }
  0x54   :  { %1026 = vmatprep.subr.bf16.mxu0 %v4294_v6 }
  0x55   :  { %3301 = vmatpush3.bf16.msra.mxu1 %v4344_v14 }
  0x56   :  { %3302 = vmatprep.subr.bf16.mxu1 %v5713_v0 }
  0x57   :  { %1027 = vmatpush1.bf16.msra.mxu0 %v4310_v9 }
  0x58   :  { %1028 = vmatprep.subr.bf16.mxu0 %v4317_v10 }
  0x59   :  { %3303 = vmatpush3.bf16.msra.mxu1 %v4364_v17 }
  0x5a   :  { %715 = vmatmul.mubr.bf16.gmra.mrb[28].mxu0 %v3705_v8  ;;  %3304 = vmatprep.subr.bf16.mxu1 %v5713_v0  ;;  %v123_v8 = vsub.s32 2, %v4574_v45 }
  0x5b   :  { %1029 = vmatpush1.bf16.msra.mxu0 %v4332_v12  ;;  %1048 = vmatprep.mubr.bf16.mxu0 %v5711_v1 }
  0x5c   :  { %1030 = vmatprep.subr.bf16.mxu0 %v4338_v13  ;;  %v4596_v44 = vrot.slane %v71_v47, %v123_v8 }
  0x5d   :  { %3305 = vmatpush3.bf16.msra.mxu1 %v4383_v20 }
  0x5e   :  { %3306 = vmatprep.subr.bf16.mxu1 %v5713_v0 }
  0x5f   :  { %1031 = vmatpush1.bf16.msra.mxu0 %v4351_v15 }
  0x60   :  { %1258 = vmatprep.subr.bf16.mxu0 %v4358_v16 }
  0x61   :  { %3307 = vmatpush3.bf16.msra.mxu1 %v4404_v24 }
  0x62   :  { %1049 = vmatmul.mubr.bf16.vlgmr.msra.gmra.mrb[32].mxu0 %v4001_v21  ;;  %3312 = vmatprep.subr.bf16.mxu1 %v5713_v0 }
  0x63   :  { %1259 = vmatpush1.bf16.msra.mxu0 %v4371_v18  ;;  %1290 = vmatprep.mubr.bf16.mxu0 %v5711_v1 }
  0x64   :  { %1260 = vmatprep.subr.bf16.mxu0 %v4377_v19  ;;  %3309 = vmatmul.mubr.bf16.vlgmr.msra.gmra.mrb[16].mxu1 %v4001_v21 }
  0x65   :  { %3313 = vmatpush3.bf16.msra.mxu1 %v4423_v27  ;;  %3328 = vmatprep.mubr.msk.bf16.mxu1 %vm4000_vm0, %v5713_v0 }
  0x66   :  { %3314 = vmatprep.subr.bf16.mxu1 %v5713_v0 }
  0x67   :  { %1261 = vmatpush1.bf16.msra.mxu0 %v4391_v22 }
  0x68   :  { %1262 = vmatprep.subr.bf16.mxu0 %v4398_v23 }
  0x69   :  { %3315 = vmatpush3.bf16.msra.mxu1 %v4443_v30 }
  0x6a   :  { %3316 = vmatprep.subr.bf16.mxu1 %v5713_v0 }
  0x6b   :  { %1263 = vmatpush1.bf16.msra.mxu0 %v4411_v25 }
  0x6c   :  { %1264 = vmatprep.subr.bf16.mxu0 %v4417_v26 }
  0x6d   :  { %3317 = vmatpush3.bf16.msra.mxu1 %v4464_v33 }
  0x6e   :  { %3318 = vmatprep.subr.bf16.mxu1 %v5713_v0 }
  0x6f   :  { %1265 = vmatpush1.bf16.msra.mxu0 %v4430_v28 }
  0x70   :  { %1266 = vmatprep.subr.bf16.mxu0 %v4436_v29 }
  0x71   :  { %3319 = vmatpush3.bf16.msra.mxu1 %v4483_v36 }
  0x72   :  { %3320 = vmatprep.subr.bf16.mxu1 %v5713_v0 }
  0x73   :  { %1267 = vmatpush1.bf16.msra.mxu0 %v4452_v31 }
  0x74   :  { %1268 = vmatprep.subr.bf16.mxu0 %v4458_v32 }
  0x75   :  { %3321 = vmatpush3.bf16.msra.mxu1 %v4502_v39 }
  0x76   :  { %3322 = vmatprep.subr.bf16.mxu1 %v5713_v0 }
  0x77   :  { %1269 = vmatpush1.bf16.msra.mxu0 %v4471_v34 }
  0x78   :  { %1270 = vmatprep.subr.bf16.mxu0 %v4477_v35 }
  0x79   :  { %3323 = vmatpush3.bf16.msra.mxu1 %v4516_v41 }
  0x7a   :  { %3324 = vmatprep.subr.bf16.mxu1 %v5713_v0 }
  0x7b   :  { %1271 = vmatpush1.bf16.msra.mxu0 %v4490_v37 }
  0x7c   :  { %1272 = vmatprep.subr.bf16.mxu0 %v4496_v38 }
  0x7d   :  { %3325 = vmatpush3.bf16.msra.mxu1 %v4525_v42 }
  0x7e   :  { %3326 = vmatprep.subr.bf16.mxu1 %v5713_v0 }
  0x7f   :  { %1273 = vmatpush1.bf16.msra.mxu0 %v4509_v40 }
  0x80   :  { %1371 = vmatprep.subr.bf16.mxu0 %v4208_v52 }
  0x81   :  { %3327 = vmatpush3.bf16.msra.mxu1 %v4536_v43 }
  0x82   :  { %1291 = vmatmul.mubr.bf16.vlgmr.msra.gmra.mrb[36].mxu0 %v4001_v21  ;;  %3332 = vmatprep.subr.bf16.mxu1 %v5713_v0 }
  0x83   :  { %1372 = vmatpush1.bf16.msra.mxu0 %v4216_v54  ;;  %1403 = vmatprep.mubr.bf16.mxu0 %v5711_v1 }
  0x84   :  { %1373 = vmatprep.subr.bf16.mxu0 %v4222_v55  ;;  %3329 = vmatmul.mubr.bf16.vlgmr.msra.gmra.mrb[20].mxu1 %v4001_v21 }
  0x85   :  { %3333 = vmatpush3.bf16.msra.mxu1 %v4258_v62  ;;  %3348 = vmatprep.mubr.msk.bf16.mxu1 %vm4000_vm0, %v5713_v0 }
  0x86   :  { %3334 = vmatprep.subr.bf16.mxu1 %v5713_v0 }
  0x87   :  { %1374 = vmatpush1.bf16.msra.mxu0 %v4231_v57 }
  0x88   :  { %1375 = vmatprep.subr.bf16.mxu0 %v4238_v58 }
  0x89   :  { %3335 = vmatpush3.bf16.msra.mxu1 %v4281_v4 }
  0x8a   :  { %3336 = vmatprep.subr.bf16.mxu1 %v5713_v0 }
  0x8b   :  { %1376 = vmatpush1.bf16.msra.mxu0 %v4247_v60 }
  0x8c   :  { %1377 = vmatprep.subr.bf16.mxu0 %v4253_v61 }
  0x8d   :  { %3337 = vmatpush3.bf16.msra.mxu1 %v4300_v7 }
  0x8e   :  { %3338 = vmatprep.subr.bf16.mxu1 %v5713_v0 }
  0x8f   :  { %1378 = vmatpush1.bf16.msra.mxu0 %v4263_v63 }
  0x90   :  { %1379 = vmatprep.subr.bf16.mxu0 %v4275_v3 }
  0x91   :  { %3339 = vmatpush3.bf16.msra.mxu1 %v4323_v11 }
  0x92   :  { %3340 = vmatprep.subr.bf16.mxu1 %v5713_v0 }
  0x93   :  { %1380 = vmatpush1.bf16.msra.mxu0 %v4288_v5 }
  0x94   :  { %1381 = vmatprep.subr.bf16.mxu0 %v4294_v6 }
  0x95   :  { %3341 = vmatpush3.bf16.msra.mxu1 %v4344_v14 }
  0x96   :  { %3342 = vmatprep.subr.bf16.mxu1 %v5713_v0 }
  0x97   :  { %1382 = vmatpush1.bf16.msra.mxu0 %v4310_v9 }
  0x98   :  { %1383 = vmatprep.subr.bf16.mxu0 %v4317_v10 }
  0x99   :  { %3343 = vmatpush3.bf16.msra.mxu1 %v4364_v17 }
  0x9a   :  { %3344 = vmatprep.subr.bf16.mxu1 %v5713_v0 }
  0x9b   :  { %1384 = vmatpush1.bf16.msra.mxu0 %v4332_v12 }
  0x9c   :  { %1385 = vmatprep.subr.bf16.mxu0 %v4338_v13 }
  0x9d   :  { %3345 = vmatpush3.bf16.msra.mxu1 %v4383_v20 }
  0x9e   :  { %3346 = vmatprep.subr.bf16.mxu1 %v5713_v0 }
  0x9f   :  { %1386 = vmatpush1.bf16.msra.mxu0 %v4351_v15 }
  0xa0   :  { %1478 = vmatprep.subr.bf16.mxu0 %v4358_v16 }
  0xa1   :  { %3347 = vmatpush3.bf16.msra.mxu1 %v4404_v24 }
  0xa2   :  { %3352 = vmatprep.subr.bf16.mxu1 %v5713_v0 }
  0xf5   :  { %v4583_v50 = vpop.f32.mrb[0].mxu0 }
  0xf6   :  { %v4585_v51 = vpop.f32.mrb[1].mxu0 }
  0xf7   :  { %v318_v56 = vpop.f32.mrb[2].mxu0  ;;  %v3262_v13 = vpop.f32.mrb[0].mxu1 }
  0xf8   :  { %v4590_v59 = vadd.f32 %v318_v56, %v4581_v49  ;;  %v320_v2 = vpop.f32.mrb[3].mxu0  ;;  %v4608_v45 = vadd.f32 %v3262_v13, %v4596_v44 }
  0xf9   :  { %v4594_v21 = vadd.f32 %v320_v2, %v4587_v53  ;;  %v4610_v2 = vpop.f32.mrb[1].mxu1 }
  0xfa   :  { %5771 = vst [vmem:[#allocation18_spill] sm:$0xff] %v4590_v59  ;;  %5776 = vst [vmem:[#allocation23_spill] sm:$0xff] %v4608_v45 }
  0xfb   :  { %5772 = vst [vmem:[#allocation19_spill] sm:$0xff] %v4594_v21 }
  0xfd   :  { %v324_v1 = vpop.f32.mrb[4].mxu0 }
  0xfe   :  { %v4599_v0 = vadd.f32 %v324_v1, %v4581_v49  ;;  %v326_v16 = vpop.f32.mrb[5].mxu0  ;;  %v3263_v1 = vpop.f32.mrb[2].mxu1 }
  0xff   :  { %v4602_v24 = vadd.f32 %v326_v16, %v4587_v53  ;;  %v328_v15 = vpop.f32.mrb[6].mxu0  ;;  %v390_v16 = vpop.f32.mrb[3].mxu1 }
 0x100   :  { %5773 = vst [vmem:[#allocation20_spill] sm:$0xff] %v4599_v0  ;;  %v4605_v56 = vadd.f32 %v328_v15, %v4581_v49  ;;  %v330_v59 = vpop.f32.mrb[7].mxu0  ;;  %v4616_v0 = vadd.f32 %v3263_v1, %v4596_v44  ;;  %v3266_v20 = vpop.f32.mrb[4].mxu1 }
 0x101   :  { %5774 = vst [vmem:[#allocation21_spill] sm:$0xff] %v4602_v24  ;;  %v4613_v47 = vadd.f32 %v330_v59, %v4587_v53  ;;  %v4619_v24 = vadd.f32 %v390_v16, %v4596_v44  ;;  %v4631_v1 = vadd.f32 %v3266_v20, %v4596_v44 }
 0x102   :  { %5775 = vst [vmem:[#allocation22_spill] sm:$0xff] %v4605_v56  ;;  %5778 = vst [vmem:[#allocation25_spill] sm:$0xff] %v4616_v0  ;;  %v403_v0 = vpop.f32.mrb[5].mxu1 }
 0x103   :  { %5777 = vst [vmem:[#allocation24_spill] sm:$0xff] %v4613_v47  ;;  %5779 = vst [vmem:[#allocation26_spill] sm:$0xff] %v4619_v24 }
 0x104   :  { %5783 = vst [vmem:[#allocation30_spill] sm:$0xff] %v4631_v1 }
 0x105   :  { %v334_v21 = vpop.f32.mrb[8].mxu0 }
 0x106   :  { %v4622_v15 = vadd.f32 %v334_v21, %v4581_v49  ;;  %v336_v56 = vpop.f32.mrb[9].mxu0  ;;  %v4637_v21 = vadd.f32 %v403_v0, %v4596_v44  ;;  %v2932_v0 = vld [vmem:[%s5707_s4 + $0x3] sm:$0x7] }
 0x107   :  { %v4625_v13 = vadd.f32 %v336_v56, %v4587_v53  ;;  %v338_v45 = vpop.f32.mrb[10].mxu0 }
 0x108   :  { %5780 = vst [vmem:[#allocation27_spill] sm:$0xff] %v4622_v15  ;;  %v4628_v59 = vadd.f32 %v338_v45, %v4581_v49  ;;  %v340_v47 = vpop.f32.mrb[11].mxu0  ;;  %5785 = vst [vmem:[#allocation32_spill] sm:$0xff] %v4637_v21  ;;  %v3267_v15 = vpop.f32.mrb[6].mxu1 }
 0x109   :  { %5781 = vst [vmem:[#allocation28_spill] sm:$0xff] %v4625_v13  ;;  %v4634_v16 = vadd.f32 %v340_v47, %v4587_v53  ;;  %v4640_v56 = vadd.f32 %v3267_v15, %v4596_v44  ;;  %v406_v13 = vpop.f32.mrb[7].mxu1 }
 0x10a   :  { %5782 = vst [vmem:[#allocation29_spill] sm:$0xff] %v4628_v59  ;;  %v4643_v24 = vadd.f32 %v406_v13, %v4596_v44 }
 0x10b   :  { %5784 = vst [vmem:[#allocation31_spill] sm:$0xff] %v4634_v16  ;;  %5786 = vst [vmem:[#allocation33_spill] sm:$0xff] %v4640_v56 }
 0x10c   :  { %5787 = vst [vmem:[#allocation34_spill] sm:$0xff] %v4643_v24  ;;  %v4660_v24 = vrot.slane %v2932_v0, %v115_v46  ;;  %v4676_v46 = vrot.slane %v2932_v0, %v123_v8 }
 0x10d   :  { %v344_v45 = vpop.f32.mrb[12].mxu0 }
 0x10e   :  { %v4646_v59 = vadd.f32 %v344_v45, %v4581_v49  ;;  %v346_v20 = vpop.f32.mrb[13].mxu0  ;;  %v4662_v45 = vrot.slane %v2932_v0, %v119_v48 }
 0x10f   :  { %v4649_v1 = vadd.f32 %v346_v20, %v4587_v53  ;;  %v348_v47 = vpop.f32.mrb[14].mxu0 }
 0x110   :  { %5788 = vst [vmem:[#allocation35_spill] sm:$0xff] %v4646_v59  ;;  %v4655_v15 = vadd.f32 %v348_v47, %v4581_v49  ;;  %v350_v56 = vpop.f32.mrb[15].mxu0 }
 0x111   :  { %5789 = vst [vmem:[#allocation36_spill] sm:$0xff] %v4649_v1  ;;  %v4658_v13 = vadd.f32 %v350_v56, %v4587_v53 }
 0x112   :  { %5790 = vst [vmem:[#allocation37_spill] sm:$0xff] %v4655_v15 }
 0x113   :  { %5791 = vst [vmem:[#allocation38_spill] sm:$0xff] %v4658_v13 }
 0x115   :  { %v686_v59 = vpop.f32.mrb[16].mxu0 }
 0x116   :  { %v4665_v20 = vadd.f32 %v686_v59, %v4660_v24  ;;  %v688_v1 = vpop.f32.mrb[17].mxu0 }
 0x117   :  { %v4668_v16 = vadd.f32 %v688_v1, %v4662_v45  ;;  %v690_v21 = vpop.f32.mrb[18].mxu0 }
 0x118   :  { %5792 = vst [vmem:[#allocation39_spill] sm:$0xff] %v4665_v20  ;;  %v4671_v47 = vadd.f32 %v690_v21, %v4660_v24  ;;  %v692_v15 = vpop.f32.mrb[19].mxu0 }
 0x119   :  { %5793 = vst [vmem:[#allocation40_spill] sm:$0xff] %v4668_v16  ;;  %v4674_v56 = vadd.f32 %v692_v15, %v4662_v45  ;;  %v3286_v16 = vpop.f32.mrb[8].mxu1 }
 0x11a   :  { %5794 = vst [vmem:[#allocation41_spill] sm:$0xff] %v4671_v47  ;;  %v4688_v47 = vadd.f32 %v3286_v16, %v4676_v46  ;;  %v759_v15 = vpop.f32.mrb[9].mxu1 }
 0x11b   :  { %5795 = vst [vmem:[#allocation42_spill] sm:$0xff] %v4674_v56  ;;  %v4694_v0 = vadd.f32 %v759_v15, %v4676_v46 }
 0x11c   :  { %5799 = vst [vmem:[#allocation46_spill] sm:$0xff] %v4688_v47 }
 0x11d   :  { %v696_v48 = vpop.f32.mrb[20].mxu0  ;;  %5801 = vst [vmem:[#allocation48_spill] sm:$0xff] %v4694_v0 }
 0x11e   :  { %v4679_v13 = vadd.f32 %v696_v48, %v4660_v24  ;;  %v698_v59 = vpop.f32.mrb[21].mxu0  ;;  %v3287_v48 = vpop.f32.mrb[10].mxu1 }
 0x11f   :  { %v4682_v20 = vadd.f32 %v698_v59, %v4662_v45  ;;  %v700_v1 = vpop.f32.mrb[22].mxu0  ;;  %v4697_v59 = vadd.f32 %v3287_v48, %v4676_v46  ;;  %v762_v56 = vpop.f32.mrb[11].mxu1 }
 0x120   :  { %5796 = vst [vmem:[#allocation43_spill] sm:$0xff] %v4679_v13  ;;  %v4685_v12 = vadd.f32 %v700_v1, %v4660_v24  ;;  %v702_v21 = vpop.f32.mrb[23].mxu0 }
 0x121   :  { %5797 = vst [vmem:[#allocation44_spill] sm:$0xff] %v4682_v20  ;;  %v4691_v8 = vadd.f32 %v702_v21, %v4662_v45  ;;  %5802 = vst [vmem:[#allocation49_spill] sm:$0xff] %v4697_v59  ;;  %v4700_v20 = vadd.f32 %v762_v56, %v4676_v46 }
 0x122   :  { %5798 = vst [vmem:[#allocation45_spill] sm:$0xff] %v4685_v12 }
 0x123   :  { %5800 = vst [vmem:[#allocation47_spill] sm:$0xff] %v4691_v8  ;;  %5803 = vst [vmem:[#allocation50_spill] sm:$0xff] %v4700_v20  ;;  %v3290_v8 = vpop.f32.mrb[12].mxu1 }
 0x124   :  { %v4712_v48 = vadd.f32 %v3290_v8, %v4676_v46  ;;  %v775_v59 = vpop.f32.mrb[13].mxu1 }
 0x125   :  { %v706_v1 = vpop.f32.mrb[24].mxu0  ;;  %v4720_v20 = vpop.f32.mrb[14].mxu1 }
 0x126   :  { %v4703_v13 = vadd.f32 %v706_v1, %v4660_v24  ;;  %v708_v16 = vpop.f32.mrb[25].mxu0  ;;  %5807 = vst [vmem:[#allocation54_spill] sm:$0xff] %v4712_v48  ;;  %v4718_v1 = vadd.f32 %v775_v59, %v4676_v46  ;;  %v315_v59 = vadd.f32 %v4583_v50, %v4581_v49  ;;  %v4738_v49 = vld [vmem:[%s5708_s6] ss:$0 sm:$0xff] }
 0x127   :  { %v4706_v47 = vadd.f32 %v708_v16, %v4662_v45  ;;  %v710_v21 = vpop.f32.mrb[26].mxu0  ;;  %v778_v16 = vpop.f32.mrb[15].mxu1 }
 0x128   :  { %5804 = vst [vmem:[#allocation51_spill] sm:$0xff] %v4703_v13  ;;  %v4709_v15 = vadd.f32 %v710_v21, %v4660_v24  ;;  %v712_v0 = vpop.f32.mrb[27].mxu0  ;;  %5809 = vst [vmem:[#allocation56_spill] sm:$0xff] %v4718_v1  ;;  %v4723_v12 = vadd.f32 %v778_v16, %v4676_v46  ;;  %v317_v1 = vadd.f32 %v4585_v51, %v4587_v53 }
 0x129   :  { %5805 = vst [vmem:[#allocation52_spill] sm:$0xff] %v4706_v47  ;;  %v4715_v56 = vadd.f32 %v712_v0, %v4662_v45 }
 0x12a   :  { %5806 = vst [vmem:[#allocation53_spill] sm:$0xff] %v4709_v15  ;;  %5810 = vst [vmem:[#allocation57_spill] sm:$0xff] %v4723_v12 }
 0x12b   :  { %5808 = vst [vmem:[#allocation55_spill] sm:$0xff] %v4715_v56 }
 0x12d   :  { %v716_v47 = vpop.f32.mrb[28].mxu0 }
 0x12e   :  { %v4726_v21 = vadd.f32 %v716_v47, %v4660_v24  ;;  %v718_v13 = vpop.f32.mrb[29].mxu0 }
 0x12f   :  { %v4729_v8 = vadd.f32 %v718_v13, %v4662_v45  ;;  %v720_v15 = vpop.f32.mrb[30].mxu0 }
 0x130   :  { %5811 = vst [vmem:[#allocation58_spill] sm:$0xff] %v4726_v21  ;;  %v722_v0 = vpop.f32.mrb[31].mxu0 }
 0x131   :  { %5812 = vst [vmem:[#allocation59_spill] sm:$0xff] %v4729_v8 }
 0x135   :  { %v1050_v56 = vpop.f32.mrb[32].mxu0 }
 0x136   :  { %v1097_v48 = vadd.f32 %v1050_v56, %v315_v59  ;;  %v1052_v16 = vpop.f32.mrb[33].mxu0 }
 0x137   :  { %v1098_v12 = vadd.f32 %v1052_v16, %v317_v1  ;;  %v1054_v10 = vpop.f32.mrb[34].mxu0  ;;  %v1091_v21 = vpop.f32.mrb[16].mxu1 }
 0x138   :  { %v3018_v17 = vmul.f32 -1.442695, %v1097_v48  ;;  %v1055_v47 = vpop.f32.mrb[35].mxu0  ;;  %v3310_v9 = vpop.f32.mrb[17].mxu1  ;;  %v1117_v50 = vadd.f32 %v4738_v49, %v1091_v21 }
 0x139   :  { %v1094_v13 = vpop.f32.mrb[18].mxu1  ;;  %v3019_v8 = vmul.f32 -1.442695, %v1098_v12  ;;  %v721_v12 = vadd.f32 %v720_v15, %v4660_v24 }
 0x13a   :  { %3752 = vpow2.f32 %v3018_v17  ;;  %v3311_v6 = vpop.f32.mrb[19].mxu1  ;;  %v388_v17 = vadd.f32 %v4610_v2, %v4596_v44 }
 0x13b   :  { %3754 = vpow2.f32 %v3019_v8 }
 0x144   :  { %v3753_v14 = vpop.eup %3752 }
 0x145   :  { %v1105_v5 = vadd.f32 1.0, %v3753_v14  ;;  %v3755_v10 = vpop.eup %3754  ;;  %v723_v14 = vadd.f32 %v722_v0, %v4662_v45 }
 0x146   :  { %v1106_v6 = vadd.f32 1.0, %v3755_v10 }
 0x147   :  { %3756 = vrcp.f32 %v1105_v5 }
 0x151   :  { %v3757_v51 = vpop.eup %3756 }
 0x152   :  { %v1118_v9 = vmul.f32 %v3757_v51, %v1117_v50 }
 0x154   :  { %v1119_v53 = vadd.f32 %v1118_v9, %v388_v17  ;;  %v4757_v9 = vld [vmem:[%s5708_s6 + $0x1] ss:$0 sm:$0xff] }
 0x155   :  { %v1292_v5 = vpop.f32.mrb[36].mxu0 }
 0x156   :  { %3758 = vtanh.f32 %v1119_v53  ;;  %v1339_v48 = vadd.f32 %v1292_v5, %v721_v12  ;;  %v1294_v56 = vpop.f32.mrb[37].mxu0  ;;  %v5813_v12 = vmov 0.0  }
 0x157   :  { %v1340_v1 = vadd.f32 %v1294_v56, %v723_v14  ;;  %v1296_v8 = vpop.f32.mrb[38].mxu0  ;;  %3760 = vrcp.f32 %v1106_v6  ;;  %v1333_v16 = vpop.f32.mrb[20].mxu1  ;;  %v5814_v6 = vmov 0  }
 0x158   :  { %v3045_v21 = vmul.f32 -1.442695, %v1339_v48  ;;  %v1297_v59 = vpop.f32.mrb[39].mxu0  ;;  %v3330_v44 = vpop.f32.mrb[21].mxu1  ;;  %v1359_v53 = vadd.f32 %v4757_v9, %v1333_v16  ;;  %v787_v48 = vadd.f32 %v4720_v20, %v4676_v46 }
 0x159   :  { %v1336_v13 = vpop.f32.mrb[22].mxu1  ;;  %v3046_v15 = vmul.f32 -1.442695, %v1340_v1  ;;  %v5826_v44 = vld [vmem:[#allocation14_spill] sm:$0xff] }
 0x15a   :  { %3762 = vpow2.f32 %v3045_v21  ;;  %v3331_v50 = vpop.f32.mrb[23].mxu1 }
 0x15b   :  { %3764 = vpow2.f32 %v3046_v15 }
 0x160   :  { %v3759_v47 = vpop.eup %3758 }
 0x161   :  { %v1121_v2 = vsub.f32 0.0, %v3759_v47  ;;  %v3761_v24 = vpop.eup %3760 }
 0x163   :  { %v1122_v10 = vmul.f32 %v3761_v24, %v1121_v2  ;;  %v5827_v24 = vld [vmem:[#allocation18_spill] sm:$0xff] }
 0x164   :  { %v3763_v45 = vpop.eup %3762 }
 0x165   :  { %v1347_v0 = vadd.f32 1.0, %v3763_v45  ;;  %v4745_v51 = vadd.f32 %v3759_v47, %v1122_v10  ;;  %v3765_v14 = vpop.eup %3764  ;;  %v5828_v45 = vld [vmem:[#allocation19_spill] sm:$0xff] }
 0x166   :  { %v1348_v1 = vadd.f32 1.0, %v3765_v14 }
 0x167   :  { %3766 = vrcp.f32 %v1347_v0  ;;  %v1124_v17 = vpack.c.bf16 %v4745_v51, %v4745_v51 }
 0x169   :  { %1125 = vst [vmem:[%s5709_s7] sm:$0xf] %v1124_v17  ;;  %1404 = vmatmul.mubr.bf16.vlgmr.msra.gmra.mrb[40].mxu0 %v1124_v17  ;;  %3349 = vmatmul.mubr.bf16.vlgmr.msra.gmra.mrb[24].mxu1 %v1124_v17 }
 0x16a   :  { %1479 = vmatpush1.bf16.msra.mxu0 %v4371_v18  ;;  %3353 = vmatpush3.bf16.msra.mxu1 %v4423_v27 }
 0x16b   :  { %1480 = vmatprep.subr.bf16.mxu0 %v4377_v19  ;;  %3354 = vmatprep.subr.bf16.mxu1 %v5813_v12 }
 0x16c   :  { %1510 = vmatprep.mubr.bf16.mxu0 %v5814_v6  ;;  %3368 = vmatprep.mubr.msk.bf16.mxu1 %vm4000_vm0, %v5813_v12 }
 0x16e   :  { %1481 = vmatpush1.bf16.msra.mxu0 %v4391_v22  ;;  %3355 = vmatpush3.bf16.msra.mxu1 %v4443_v30 }
 0x16f   :  { %1482 = vmatprep.subr.bf16.mxu0 %v4398_v23  ;;  %3356 = vmatprep.subr.bf16.mxu1 %v5813_v12 }
 0x171   :  { %v3767_v5 = vpop.eup %3766 }
 0x172   :  { %v1360_v56 = vmul.f32 %v3767_v5, %v1359_v53  ;;  %1483 = vmatpush1.bf16.msra.mxu0 %v4411_v25  ;;  %3357 = vmatpush3.bf16.msra.mxu1 %v4464_v33 }
 0x173   :  { %1484 = vmatprep.subr.bf16.mxu0 %v4417_v26  ;;  %3358 = vmatprep.subr.bf16.mxu1 %v5813_v12 }
 0x174   :  { %v1361_v8 = vadd.f32 %v1360_v56, %v787_v48 }
 0x176   :  { %3768 = vtanh.f32 %v1361_v8  ;;  %1485 = vmatpush1.bf16.msra.mxu0 %v4430_v28  ;;  %3359 = vmatpush3.bf16.msra.mxu1 %v4483_v36 }
 0x177   :  { %1486 = vmatprep.subr.bf16.mxu0 %v4436_v29  ;;  %3360 = vmatprep.subr.bf16.mxu1 %v5813_v12  ;;  %3770 = vrcp.f32 %v1348_v1 }
 0x17a   :  { %1487 = vmatpush1.bf16.msra.mxu0 %v4452_v31  ;;  %3361 = vmatpush3.bf16.msra.mxu1 %v4502_v39 }
 0x17b   :  { %1488 = vmatprep.subr.bf16.mxu0 %v4458_v32  ;;  %3362 = vmatprep.subr.bf16.mxu1 %v5813_v12 }
 0x17e   :  { %1489 = vmatpush1.bf16.msra.mxu0 %v4471_v34  ;;  %3363 = vmatpush3.bf16.msra.mxu1 %v4516_v41 }
 0x17f   :  { %1490 = vmatprep.subr.bf16.mxu0 %v4477_v35  ;;  %3364 = vmatprep.subr.bf16.mxu1 %v5813_v12 }
 0x180   :  { %v3769_v20 = vpop.eup %3768 }
 0x181   :  { %v1363_v46 = vsub.f32 0.0, %v3769_v20  ;;  %v3771_v21 = vpop.eup %3770 }
 0x182   :  { %1491 = vmatpush1.bf16.msra.mxu0 %v4490_v37  ;;  %3365 = vmatpush3.bf16.msra.mxu1 %v4525_v42 }
 0x183   :  { %1492 = vmatprep.subr.bf16.mxu0 %v4496_v38  ;;  %3366 = vmatprep.subr.bf16.mxu1 %v5813_v12  ;;  %v1364_v59 = vmul.f32 %v3771_v21, %v1363_v46 }
 0x185   :  { %v4791_v16 = vadd.f32 %v3769_v20, %v1364_v59 }
 0x186   :  { %1493 = vmatpush1.bf16.msra.mxu0 %v4509_v40  ;;  %3367 = vmatpush3.bf16.msra.mxu1 %v4536_v43 }
 0x187   :  { %v1366_v47 = vpack.c.bf16 %v4791_v16, %v4791_v16  ;;  %1585 = vmatprep.subr.bf16.mxu0 %v4208_v52  ;;  %3372 = vmatprep.subr.bf16.mxu1 %v5813_v12  ;;  %v5815_v52 = vld [vmem:[#allocation6_spill] sm:$0xff] }
 0x189   :  { %1367 = vst [vmem:[%s5710_s8 + $0x1c] sm:$0xf] %v1366_v47  ;;  %1511 = vmatmul.mubr.bf16.vlgmr.msra.gmra.mrb[44].mxu0 %v1366_v47  ;;  %3369 = vmatmul.mubr.bf16.vlgmr.msra.gmra.mrb[28].mxu1 %v1366_v47  ;;  %v5829_v47 = vld [vmem:[#allocation26_spill] sm:$0xff] }
 0x18a   :  { %1586 = vmatpush1.bf16.msra.mxu0 %v4216_v54  ;;  %3373 = vmatpush3.bf16.msra.mxu1 %v4258_v62  ;;  %v5816_v54 = vld [vmem:[#allocation12_spill] sm:$0xff] }
 0x18b   :  { %1587 = vmatprep.subr.bf16.mxu0 %v4222_v55  ;;  %3374 = vmatprep.subr.bf16.mxu1 %v5813_v12  ;;  %v5817_v55 = vld [vmem:[#allocation7_spill] sm:$0xff]  ;;  %v5822_v62 = vld [vmem:[#allocation16_spill] sm:$0xff] }
 0x18c   :  { %1617 = vmatprep.mubr.bf16.mxu0 %v5814_v6  ;;  %3388 = vmatprep.mubr.msk.bf16.mxu1 %vm4000_vm0, %v5813_v12 }
 0x18e   :  { %1588 = vmatpush1.bf16.msra.mxu0 %v4231_v57  ;;  %3375 = vmatpush3.bf16.msra.mxu1 %v4281_v4  ;;  %v5818_v57 = vld [vmem:[#allocation8_spill] sm:$0xff]  ;;  %v5825_v4 = vld [vmem:[#allocation17_spill] sm:$0xff] }
 0x18f   :  { %1589 = vmatprep.subr.bf16.mxu0 %v4238_v58  ;;  %3376 = vmatprep.subr.bf16.mxu1 %v5813_v12  ;;  %v5819_v58 = vld [vmem:[#allocation15_spill] sm:$0xff] }
 0x192   :  { %1590 = vmatpush1.bf16.msra.mxu0 %v4247_v60  ;;  %3377 = vmatpush3.bf16.msra.mxu1 %v4300_v7  ;;  %v5820_v60 = vld [vmem:[#allocation9_spill] sm:$0xff] }
 0x193   :  { %1591 = vmatprep.subr.bf16.mxu0 %v4253_v61  ;;  %3378 = vmatprep.subr.bf16.mxu1 %v5813_v12  ;;  %v5821_v61 = vld [vmem:[#allocation10_spill] sm:$0xff] }
 0x196   :  { %1592 = vmatpush1.bf16.msra.mxu0 %v4263_v63  ;;  %3379 = vmatpush3.bf16.msra.mxu1 %v4323_v11  ;;  %v5823_v63 = vld [vmem:[#allocation11_spill] sm:$0xff] }
 0x197   :  { %1593 = vmatprep.subr.bf16.mxu0 %v4275_v3  ;;  %3380 = vmatprep.subr.bf16.mxu1 %v5813_v12  ;;  %v5824_v3 = vld [vmem:[#allocation13_spill] sm:$0xff] }
 0x19a   :  { %1594 = vmatpush1.bf16.msra.mxu0 %v5815_v52  ;;  %3381 = vmatpush3.bf16.msra.mxu1 %v5816_v54 }
 0x19b   :  { %1595 = vmatprep.subr.bf16.mxu0 %v5817_v55  ;;  %3382 = vmatprep.subr.bf16.mxu1 %v5813_v12 }
 0x19e   :  { %1596 = vmatpush1.bf16.msra.mxu0 %v5818_v57  ;;  %3383 = vmatpush3.bf16.msra.mxu1 %v5819_v58 }
 0x19f   :  { %1597 = vmatprep.subr.bf16.mxu0 %v5820_v60  ;;  %3384 = vmatprep.subr.bf16.mxu1 %v5813_v12 }
 0x1a2   :  { %1598 = vmatpush1.bf16.msra.mxu0 %v5821_v61  ;;  %3385 = vmatpush3.bf16.msra.mxu1 %v5822_v62 }
 0x1a3   :  { %1599 = vmatprep.subr.bf16.mxu0 %v5823_v63  ;;  %3386 = vmatprep.subr.bf16.mxu1 %v5813_v12 }
 0x1a6   :  { %1600 = vmatpush1.bf16.msra.mxu0 %v5824_v3  ;;  %3387 = vmatpush3.bf16.msra.mxu1 %v5825_v4 }
 0x1a7   :  { %1692 = vmatprep.subr.bf16.mxu0 %v5826_v44  ;;  %3392 = vmatprep.subr.bf16.mxu1 %v5813_v12 }
 0x23c   :  { %v1405_v2 = vpop.f32.mrb[40].mxu0  ;;  %v1446_v13 = vpop.f32.mrb[24].mxu1 }
 0x23d   :  { %v1452_v15 = vadd.f32 %v1405_v2, %v5827_v24  ;;  %v1407_v50 = vpop.f32.mrb[41].mxu0  ;;  %v3350_v10 = vpop.f32.mrb[25].mxu1  ;;  %v1466_v46 = vadd.f32 %v4738_v49, %v1446_v13 }
 0x23e   :  { %v1453_v0 = vadd.f32 %v1407_v50, %v5828_v45  ;;  %v1409_v17 = vpop.f32.mrb[42].mxu0  ;;  %v1449_v53 = vpop.f32.mrb[26].mxu1 }
 0x23f   :  { %v3048_v14 = vmul.f32 -1.442695, %v1452_v15  ;;  %v1410_v5 = vpop.f32.mrb[43].mxu0  ;;  %v3351_v48 = vpop.f32.mrb[27].mxu1  ;;  %v5830_v15 = vld [vmem:[#allocation58_spill] sm:$0xff] }
 0x240   :  { %v3049_v56 = vmul.f32 -1.442695, %v1453_v0  ;;  %v5831_v0 = vld [vmem:[#allocation59_spill] sm:$0xff] }
 0x241   :  { %3772 = vpow2.f32 %v3048_v14 }
 0x242   :  { %3774 = vpow2.f32 %v3049_v56 }
 0x24b   :  { %v3773_v1 = vpop.eup %3772 }
 0x24c   :  { %v1460_v8 = vadd.f32 1.0, %v3773_v1  ;;  %v3775_v20 = vpop.eup %3774 }
 0x24d   :  { %v1461_v55 = vadd.f32 1.0, %v3775_v20 }
 0x24e   :  { %3776 = vrcp.f32 %v1460_v8 }
 0x258   :  { %v3777_v21 = vpop.eup %3776 }
 0x259   :  { %v1467_v59 = vmul.f32 %v3777_v21, %v1466_v46 }
 0x25b   :  { %v1468_v52 = vadd.f32 %v1467_v59, %v5829_v47 }
 0x25c   :  { %v1512_v2 = vpop.f32.mrb[44].mxu0  ;;  %v1553_v24 = vpop.f32.mrb[28].mxu1 }
 0x25d   :  { %3778 = vtanh.f32 %v1468_v52  ;;  %v1559_v50 = vadd.f32 %v1512_v2, %v5830_v15  ;;  %v1514_v10 = vpop.f32.mrb[45].mxu0  ;;  %v3370_v45 = vpop.f32.mrb[29].mxu1 }
 0x25e   :  { %v1560_v17 = vadd.f32 %v1514_v10, %v5831_v0  ;;  %v1516_v53 = vpop.f32.mrb[46].mxu0  ;;  %v1556_v14 = vpop.f32.mrb[30].mxu1  ;;  %3780 = vrcp.f32 %v1461_v55 }
 0x25f   :  { %v3050_v5 = vmul.f32 -1.442695, %v1559_v50  ;;  %v1517_v48 = vpop.f32.mrb[47].mxu0  ;;  %v3371_v13 = vpop.f32.mrb[31].mxu1  ;;  %v5836_v53 = vld [vmem:[#allocation23_spill] sm:$0xff] }
 0x260   :  { %v3051_v20 = vmul.f32 -1.442695, %v1560_v17 }
 0x261   :  { %3782 = vpow2.f32 %v3050_v5 }
 0x262   :  { %3784 = vpow2.f32 %v3051_v20 }
 0x267   :  { %v3779_v56 = vpop.eup %3778 }
 0x268   :  { %v1470_v1 = vsub.f32 %v4745_v51, %v3779_v56  ;;  %v3781_v8 = vpop.eup %3780 }
 0x26a   :  { %v1471_v46 = vmul.f32 %v3781_v8, %v1470_v1 }
 0x26b   :  { %v3783_v21 = vpop.eup %3782 }
 0x26c   :  { %v1567_v59 = vadd.f32 1.0, %v3783_v21  ;;  %v4844_v47 = vadd.f32 %v3779_v56, %v1471_v46  ;;  %v5837_v56 = vld [vmem:[#allocation53_spill] sm:$0xff]  ;;  %v5838_v46 = vld [vmem:[#allocation55_spill] sm:$0xff] }
 0x26e   :  { %3786 = vrcp.f32 %v1567_v59  ;;  %v1473_v52 = vpack.c.bf16 %v4844_v47, %v4844_v47 }
 0x270   :  { %1474 = vst [vmem:[%s5709_s7 + $0x4] sm:$0xf] %v1473_v52  ;;  %1618 = vmatmul.mubr.bf16.vlgmr.msra.gmra.mrb[48].mxu0 %v1473_v52  ;;  %3389 = vmatmul.mubr.bf16.vlgmr.msra.gmra.mrb[32].mxu1 %v1473_v52 }
 0x271   :  { %1693 = vmatpush1.bf16.msra.mxu0 %v4371_v18  ;;  %3393 = vmatpush3.bf16.msra.mxu1 %v4423_v27  ;;  %v3785_v18 = vpop.eup %3784  ;;  %v1573_v27 = vadd.f32 %v4757_v9, %v1553_v24 }
 0x272   :  { %1694 = vmatprep.subr.bf16.mxu0 %v4377_v19  ;;  %3394 = vmatprep.subr.bf16.mxu1 %v5813_v12 }
 0x273   :  { %1724 = vmatprep.mubr.bf16.mxu0 %v5814_v6  ;;  %3408 = vmatprep.mubr.msk.bf16.mxu1 %vm4000_vm0, %v5813_v12 }
 0x275   :  { %1695 = vmatpush1.bf16.msra.mxu0 %v4391_v22  ;;  %3395 = vmatpush3.bf16.msra.mxu1 %v4443_v30  ;;  %v5832_v22 = vld [vmem:[#allocation54_spill] sm:$0xff]  ;;  %v1568_v30 = vadd.f32 1.0, %v3785_v18 }
 0x276   :  { %1696 = vmatprep.subr.bf16.mxu0 %v4398_v23  ;;  %3396 = vmatprep.subr.bf16.mxu1 %v5813_v12 }
 0x278   :  { %v3787_v51 = vpop.eup %3786 }
 0x279   :  { %v1574_v19 = vmul.f32 %v3787_v51, %v1573_v27  ;;  %1697 = vmatpush1.bf16.msra.mxu0 %v4411_v25  ;;  %3397 = vmatpush3.bf16.msra.mxu1 %v4464_v33  ;;  %v4904_v33 = vld [vmem:[%s5706_s5] ss:$12 sps:$4 sm:$0xff]  }
 0x27a   :  { %1698 = vmatprep.subr.bf16.mxu0 %v4417_v26  ;;  %3398 = vmatprep.subr.bf16.mxu1 %v5813_v12 }
 0x27b   :  { %v1575_v55 = vadd.f32 %v1574_v19, %v5832_v22 }
 0x27d   :  { %3788 = vtanh.f32 %v1575_v55  ;;  %1699 = vmatpush1.bf16.msra.mxu0 %v4430_v28  ;;  %3399 = vmatpush3.bf16.msra.mxu1 %v4483_v36  ;;  %v4926_v36 = vld [vmem:[%s5706_s5 + $0x18] ss:$12 sps:$4 sm:$0xff]  }
 0x27e   :  { %1700 = vmatprep.subr.bf16.mxu0 %v4436_v29  ;;  %3400 = vmatprep.subr.bf16.mxu1 %v5813_v12  ;;  %3790 = vrcp.f32 %v1568_v30 }
 0x281   :  { %1701 = vmatpush1.bf16.msra.mxu0 %v4452_v31  ;;  %3401 = vmatpush3.bf16.msra.mxu1 %v4502_v39  ;;  %v4945_v39 = vld [vmem:[%s5706_s5 + $0x30] ss:$12 sps:$4 sm:$0xff]  }
 0x282   :  { %1702 = vmatprep.subr.bf16.mxu0 %v4458_v32  ;;  %3402 = vmatprep.subr.bf16.mxu1 %v5813_v12  ;;  %v4894_v32 = vld [vmem:[%s5706_s5 + $0x4] ss:$12 sps:$4 sm:$0xff]  }
 0x285   :  { %1703 = vmatpush1.bf16.msra.mxu0 %v4471_v34  ;;  %3403 = vmatpush3.bf16.msra.mxu1 %v4516_v41  ;;  %v4910_v34 = vld [vmem:[%s5706_s5 + $0x8] ss:$12 sps:$4 sm:$0xff]  }
 0x286   :  { %1704 = vmatprep.subr.bf16.mxu0 %v4477_v35  ;;  %3404 = vmatprep.subr.bf16.mxu1 %v5813_v12  ;;  %v4916_v35 = vld [vmem:[%s5706_s5 + $0x1c] ss:$12 sps:$4 sm:$0xff]  }
 0x287   :  { %v3789_v23 = vpop.eup %3788  ;;  %v4959_v41 = vld [vmem:[%s5706_s5 + $0x48] ss:$12 sps:$4 sm:$0xff]  }
 0x288   :  { %v1577_v25 = vsub.f32 %v4791_v16, %v3789_v23  ;;  %v3791_v26 = vpop.eup %3790 }
 0x289   :  { %1705 = vmatpush1.bf16.msra.mxu0 %v4490_v37  ;;  %3405 = vmatpush3.bf16.msra.mxu1 %v4525_v42  ;;  %v4932_v37 = vld [vmem:[%s5706_s5 + $0x20] ss:$12 sps:$4 sm:$0xff]  }
 0x28a   :  { %1706 = vmatprep.subr.bf16.mxu0 %v4496_v38  ;;  %3406 = vmatprep.subr.bf16.mxu1 %v5813_v12  ;;  %v1578_v28 = vmul.f32 %v3791_v26, %v1577_v25  ;;  %v4938_v38 = vld [vmem:[%s5706_s5 + $0x34] ss:$12 sps:$4 sm:$0xff]  }
 0x28b   :  { %v4973_v42 = vld [vmem:[%s5706_s5 + $0x60] ss:$12 sps:$4 sm:$0xff]  }
 0x28c   :  { %v4885_v29 = vadd.f32 %v3789_v23, %v1578_v28 }
 0x28d   :  { %1707 = vmatpush1.bf16.msra.mxu0 %v4509_v40  ;;  %3407 = vmatpush3.bf16.msra.mxu1 %v4536_v43  ;;  %v4952_v40 = vld [vmem:[%s5706_s5 + $0x4c] ss:$12 sps:$4 sm:$0xff]  }
 0x28e   :  { %v1580_v31 = vpack.c.bf16 %v4885_v29, %v4885_v29  ;;  %1799 = vmatprep.subr.bf16.mxu0 %v4894_v32  ;;  %3412 = vmatprep.subr.bf16.mxu1 %v5813_v12 }
 0x290   :  { %1581 = vst [vmem:[%s5710_s8 + $0x18] sm:$0xf] %v1580_v31  ;;  %1725 = vmatmul.mubr.bf16.vlgmr.msra.gmra.mrb[52].mxu0 %v1580_v31  ;;  %3409 = vmatmul.mubr.bf16.vlgmr.msra.gmra.mrb[36].mxu1 %v1580_v31 }
 0x291   :  { %1800 = vmatpush1.bf16.msra.mxu0 %v4904_v33  ;;  %3413 = vmatpush3.bf16.msra.mxu1 %v4910_v34 }
 0x292   :  { %1801 = vmatprep.subr.bf16.mxu0 %v4916_v35  ;;  %3414 = vmatprep.subr.bf16.mxu1 %v5813_v12 }
 0x293   :  { %1831 = vmatprep.mubr.bf16.mxu0 %v5814_v6  ;;  %3428 = vmatprep.mubr.msk.bf16.mxu1 %vm4000_vm0, %v5813_v12 }
 0x295   :  { %1802 = vmatpush1.bf16.msra.mxu0 %v4926_v36  ;;  %3415 = vmatpush3.bf16.msra.mxu1 %v4932_v37 }
 0x296   :  { %1803 = vmatprep.subr.bf16.mxu0 %v4938_v38  ;;  %3416 = vmatprep.subr.bf16.mxu1 %v5813_v12 }
 0x299   :  { %1804 = vmatpush1.bf16.msra.mxu0 %v4945_v39  ;;  %3417 = vmatpush3.bf16.msra.mxu1 %v4300_v7  ;;  %v4966_v7 = vld [vmem:[%s5706_s5 + $0x64] ss:$12 sps:$4 sm:$0xff]  }
 0x29a   :  { %1805 = vmatprep.subr.bf16.mxu0 %v4952_v40  ;;  %3418 = vmatprep.subr.bf16.mxu1 %v5813_v12 }
 0x29d   :  { %1806 = vmatpush1.bf16.msra.mxu0 %v4959_v41  ;;  %3419 = vmatpush3.bf16.msra.mxu1 %v4323_v11  ;;  %v4980_v11 = vld [vmem:[%s5706_s5 + $0x7c] ss:$12 sps:$4 sm:$0xff]  }
 0x29e   :  { %1807 = vmatprep.subr.bf16.mxu0 %v4966_v7  ;;  %3420 = vmatprep.subr.bf16.mxu1 %v5813_v12  ;;  %5833 = vst [vmem:[#allocation6_spill] sm:$0xff] %v4980_v11 }
 0x2a1   :  { %1808 = vmatpush1.bf16.msra.mxu0 %v4973_v42  ;;  %3421 = vmatpush3.bf16.msra.mxu1 %v5816_v54  ;;  %v5834_v54 = vld [vmem:[#allocation20_spill] sm:$0xff] }
 0x2a2   :  { %1809 = vmatprep.subr.bf16.mxu0 %v4980_v11  ;;  %3422 = vmatprep.subr.bf16.mxu1 %v5813_v12 }
 0x2a5   :  { %1810 = vmatpush1.bf16.msra.mxu0 %v5818_v57  ;;  %3423 = vmatpush3.bf16.msra.mxu1 %v5819_v58 }
 0x2a6   :  { %1811 = vmatprep.subr.bf16.mxu0 %v5820_v60  ;;  %3424 = vmatprep.subr.bf16.mxu1 %v5813_v12 }
 0x2a9   :  { %1812 = vmatpush1.bf16.msra.mxu0 %v5821_v61  ;;  %3425 = vmatpush3.bf16.msra.mxu1 %v5822_v62  ;;  %v5835_v61 = vld [vmem:[#allocation21_spill] sm:$0xff] }
 0x2aa   :  { %1813 = vmatprep.subr.bf16.mxu0 %v5823_v63  ;;  %3426 = vmatprep.subr.bf16.mxu1 %v5813_v12 }
 0x2ad   :  { %1814 = vmatpush1.bf16.msra.mxu0 %v5824_v3  ;;  %3427 = vmatpush3.bf16.msra.mxu1 %v5825_v4 }
 0x2ae   :  { %1906 = vmatprep.subr.bf16.mxu0 %v5826_v44  ;;  %3432 = vmatprep.subr.bf16.mxu1 %v5813_v12 }
 0x343   :  { %v1619_v43 = vpop.f32.mrb[48].mxu0  ;;  %v1660_v16 = vpop.f32.mrb[32].mxu1 }
 0x344   :  { %v1666_v57 = vadd.f32 %v1619_v43, %v5834_v54  ;;  %v1621_v58 = vpop.f32.mrb[49].mxu0  ;;  %v3390_v60 = vpop.f32.mrb[33].mxu1  ;;  %v1680_v45 = vadd.f32 %v4738_v49, %v1660_v16  ;;  %v5019_v43 = vld [vmem:[%s5706_s5 + $0xc8] ss:$12 sps:$4 sm:$0xff]   ;;  %v5035_v54 = vld [vmem:[%s5706_s5 + $0xd8] ss:$12 sps:$4 sm:$0xff]  }
 0x345   :  { %v1667_v62 = vadd.f32 %v1621_v58, %v5835_v61  ;;  %v1623_v2 = vpop.f32.mrb[50].mxu0  ;;  %v1663_v63 = vpop.f32.mrb[34].mxu1  ;;  %v5025_v16 = vld [vmem:[%s5706_s5 + $0xdc] ss:$12 sps:$4 sm:$0xff]   ;;  %v5047_v58 = vld [vmem:[%s5706_s5 + $0xf4] ss:$12 sps:$4 sm:$0xff]  }
 0x346   :  { %v3052_v24 = vmul.f32 -1.442695, %v1666_v57  ;;  %v1624_v15 = vpop.f32.mrb[51].mxu0  ;;  %v3391_v50 = vpop.f32.mrb[35].mxu1  ;;  %v5041_v57 = vld [vmem:[%s5706_s5 + $0xe0] ss:$12 sps:$4 sm:$0xff]  }
 0x347   :  { %v3053_v3 = vmul.f32 -1.442695, %v1667_v62  ;;  %v5055_v63 = vld [vmem:[%s5706_s5 + $0xf0] ss:$12 sps:$4 sm:$0xff]   ;;  %v5067_v15 = vld [vmem:[%s5706_s5 + $0x10c] ss:$12 sps:$4 sm:$0xff]  }
 0x348   :  { %3792 = vpow2.f32 %v3052_v24  ;;  %v5061_v24 = vld [vmem:[%s5706_s5 + $0xf8] ss:$12 sps:$4 sm:$0xff]  }
 0x349   :  { %3794 = vpow2.f32 %v3053_v3  ;;  %v5839_v50 = vld [vmem:[#allocation57_spill] sm:$0xff] }
 0x352   :  { %v3793_v4 = vpop.eup %3792 }
 0x353   :  { %v1674_v10 = vadd.f32 1.0, %v3793_v4  ;;  %v3795_v44 = vpop.eup %3794 }
 0x354   :  { %v1675_v5 = vadd.f32 1.0, %v3795_v44  ;;  %v5081_v44 = vld [vmem:[%s5706_s5 + $0x110] ss:$12 sps:$4 sm:$0xff]  }
 0x355   :  { %3796 = vrcp.f32 %v1674_v10  ;;  %v5075_v10 = vld [vmem:[%s5706_s5 + $0x108] ss:$12 sps:$4 sm:$0xff]  }
 0x35f   :  { %v3797_v0 = vpop.eup %3796 }
 0x360   :  { %v1681_v17 = vmul.f32 %v3797_v0, %v1680_v45  ;;  %v5087_v45 = vld [vmem:[%s5706_s5 + $0x124] ss:$12 sps:$4 sm:$0xff]   ;;  %v5094_v0 = vld [vmem:[%s5706_s5 + $0x120] ss:$12 sps:$4 sm:$0xff]  }
 0x362   :  { %v1682_v14 = vadd.f32 %v1681_v17, %v5836_v53  ;;  %v5100_v17 = vld [vmem:[%s5706_s5 + $0x128] ss:$12 sps:$4 sm:$0xff]  }
 0x363   :  { %v1726_v48 = vpop.f32.mrb[52].mxu0  ;;  %v1767_v13 = vpop.f32.mrb[36].mxu1  ;;  %v5106_v53 = vld [vmem:[%s5706_s5 + $0x13c] ss:$12 sps:$4 sm:$0xff]  }
 0x364   :  { %3798 = vtanh.f32 %v1682_v14  ;;  %v1773_v1 = vadd.f32 %v1726_v48, %v5837_v56  ;;  %v1728_v8 = vpop.f32.mrb[53].mxu0  ;;  %v3410_v20 = vpop.f32.mrb[37].mxu1  ;;  %v1787_v61 = vadd.f32 %v4757_v9, %v1767_v13  ;;  %v5113_v14 = vld [vmem:[%s5706_s5 + $0x138] ss:$12 sps:$4 sm:$0xff]   ;;  %v5125_v48 = vld [vmem:[%s5706_s5 + $0x154] ss:$12 sps:$4 sm:$0xff]  }
 0x365   :  { %v1774_v21 = vadd.f32 %v1728_v8, %v5838_v46  ;;  %v1730_v59 = vpop.f32.mrb[54].mxu0  ;;  %v1770_v52 = vpop.f32.mrb[38].mxu1  ;;  %3800 = vrcp.f32 %v1675_v5  ;;  %v5119_v5 = vld [vmem:[%s5706_s5 + $0x140] ss:$12 sps:$4 sm:$0xff]   ;;  %v5133_v8 = vld [vmem:[%s5706_s5 + $0x150] ss:$12 sps:$4 sm:$0xff]  }
 0x366   :  { %v3054_v18 = vmul.f32 -1.442695, %v1773_v1  ;;  %v1731_v27 = vpop.f32.mrb[55].mxu0  ;;  %v3411_v51 = vpop.f32.mrb[39].mxu1  ;;  %v5139_v20 = vld [vmem:[%s5706_s5 + $0x158] ss:$12 sps:$4 sm:$0xff]  }
 0x367   :  { %v3055_v30 = vmul.f32 -1.442695, %v1774_v21  ;;  %v5145_v46 = vld [vmem:[%s5706_s5 + $0x16c] ss:$12 sps:$4 sm:$0xff]   ;;  %v5154_v59 = vld [vmem:[%s5706_s5 + $0x168] ss:$12 sps:$4 sm:$0xff]  }
 0x368   :  { %3802 = vpow2.f32 %v3054_v18  ;;  %v5160_v52 = vld [vmem:[%s5706_s5 + $0x170] ss:$12 sps:$4 sm:$0xff]   ;;  %v5185_v27 = vld [vmem:[%s5706_s5 + $0x38] ss:$12 sps:$4 sm:$0xff]  }
 0x369   :  { %3804 = vpow2.f32 %v3055_v30  ;;  %v5194_v51 = vld [vmem:[%s5706_s5 + $0x50] ss:$12 sps:$4 sm:$0xff]   ;;  %v5223_v30 = vld [vmem:[%s5706_s5 + $0x94] ss:$12 sps:$4 sm:$0xff]  }
 0x36a   :  { %5842 = vst [vmem:[#allocation8_spill] sm:$0xff] %v5223_v30 }
 0x36e   :  { %v3799_v19 = vpop.eup %3798 }
 0x36f   :  { %v1684_v22 = vsub.f32 %v4844_v47, %v3799_v19  ;;  %v3801_v55 = vpop.eup %3800  ;;  %v5013_v47 = vld [vmem:[%s5706_s5 + $0xc0] ss:$12 sps:$4 sm:$0xff]  }
 0x371   :  { %v1685_v23 = vmul.f32 %v3801_v55, %v1684_v22  ;;  %v5211_v22 = vld [vmem:[%s5706_s5 + $0x78] ss:$12 sps:$4 sm:$0xff]   ;;  %v5217_v55 = vld [vmem:[%s5706_s5 + $0x80] ss:$12 sps:$4 sm:$0xff]  }
 0x372   :  { %v3803_v25 = vpop.eup %3802  ;;  %5840 = vst [vmem:[#allocation12_spill] sm:$0xff] %v5211_v22  ;;  %5841 = vst [vmem:[#allocation7_spill] sm:$0xff] %v5217_v55 }
 0x373   :  { %v1781_v26 = vadd.f32 1.0, %v3803_v25  ;;  %v5003_v28 = vadd.f32 %v3799_v19, %v1685_v23  ;;  %v3805_v60 = vpop.eup %3804  ;;  %v5203_v19 = vld [vmem:[%s5706_s5 + $0x68] ss:$12 sps:$4 sm:$0xff]   ;;  %v5230_v23 = vld [vmem:[%s5706_s5 + $0x90] ss:$12 sps:$4 sm:$0xff]  }
 0x374   :  { %v1782_v4 = vadd.f32 1.0, %v3805_v60  ;;  %5843 = vst [vmem:[#allocation15_spill] sm:$0xff] %v5230_v23  ;;  %v5236_v25 = vld [vmem:[%s5706_s5 + $0x98] ss:$12 sps:$4 sm:$0xff]   ;;  %v5255_v60 = vld [vmem:[%s5706_s5 + $0xb0] ss:$12 sps:$4 sm:$0xff]  }
 0x375   :  { %3806 = vrcp.f32 %v1781_v26  ;;  %v1687_v31 = vpack.c.bf16 %v5003_v28, %v5003_v28  ;;  %5844 = vst [vmem:[#allocation9_spill] sm:$0xff] %v5236_v25  ;;  %v5242_v26 = vld [vmem:[%s5706_s5 + $0xac] ss:$12 sps:$4 sm:$0xff]   ;;  %5847 = vst [vmem:[#allocation11_spill] sm:$0xff] %v5255_v60 }
 0x376   :  { %5845 = vst [vmem:[#allocation10_spill] sm:$0xff] %v5242_v26 }
 0x377   :  { %1688 = vst [vmem:[%s5709_s7 + $0x8] sm:$0xf] %v1687_v31  ;;  %1832 = vmatmul.mubr.bf16.vlgmr.msra.gmra.mrb[56].mxu0 %v1687_v31  ;;  %3429 = vmatmul.mubr.bf16.vlgmr.msra.gmra.mrb[40].mxu1 %v1687_v31  ;;  %v5249_v31 = vld [vmem:[%s5706_s5 + $0xa8] ss:$12 sps:$4 sm:$0xff]  }
 0x378   :  { %1907 = vmatpush1.bf16.msra.mxu0 %v5013_v47  ;;  %3433 = vmatpush3.bf16.msra.mxu1 %v5019_v43  ;;  %5846 = vst [vmem:[#allocation16_spill] sm:$0xff] %v5249_v31 }
 0x379   :  { %1908 = vmatprep.subr.bf16.mxu0 %v5025_v16  ;;  %3434 = vmatprep.subr.bf16.mxu1 %v5813_v12 }
 0x37a   :  { %1938 = vmatprep.mubr.bf16.mxu0 %v5814_v6  ;;  %3448 = vmatprep.mubr.msk.bf16.mxu1 %vm4000_vm0, %v5813_v12 }
 0x37c   :  { %1909 = vmatpush1.bf16.msra.mxu0 %v5035_v54  ;;  %3435 = vmatpush3.bf16.msra.mxu1 %v5041_v57 }
 0x37d   :  { %1910 = vmatprep.subr.bf16.mxu0 %v5047_v58  ;;  %3436 = vmatprep.subr.bf16.mxu1 %v5813_v12 }
 0x37f   :  { %v3807_v62 = vpop.eup %3806 }
 0x380   :  { %v1788_v2 = vmul.f32 %v3807_v62, %v1787_v61  ;;  %1911 = vmatpush1.bf16.msra.mxu0 %v5055_v63  ;;  %3437 = vmatpush3.bf16.msra.mxu1 %v5061_v24  ;;  %v5261_v61 = vld [vmem:[%s5706_s5 + $0xc4] ss:$12 sps:$4 sm:$0xff]  }
 0x381   :  { %1912 = vmatprep.subr.bf16.mxu0 %v5067_v15  ;;  %3438 = vmatprep.subr.bf16.mxu1 %v5813_v12  ;;  %5848 = vst [vmem:[#allocation13_spill] sm:$0xff] %v5261_v61 }
 0x382   :  { %v1789_v3 = vadd.f32 %v1788_v2, %v5839_v50  ;;  %v5849_v50 = vld [vmem:[#allocation22_spill] sm:$0xff] }
 0x384   :  { %3808 = vtanh.f32 %v1789_v3  ;;  %1913 = vmatpush1.bf16.msra.mxu0 %v5075_v10  ;;  %3439 = vmatpush3.bf16.msra.mxu1 %v5081_v44 }
 0x385   :  { %1914 = vmatprep.subr.bf16.mxu0 %v5087_v45  ;;  %3440 = vmatprep.subr.bf16.mxu1 %v5813_v12  ;;  %3810 = vrcp.f32 %v1782_v4 }
 0x388   :  { %1915 = vmatpush1.bf16.msra.mxu0 %v5094_v0  ;;  %3441 = vmatpush3.bf16.msra.mxu1 %v5100_v17 }
 0x389   :  { %1916 = vmatprep.subr.bf16.mxu0 %v5106_v53  ;;  %3442 = vmatprep.subr.bf16.mxu1 %v5813_v12 }
 0x38c   :  { %1917 = vmatpush1.bf16.msra.mxu0 %v5113_v14  ;;  %3443 = vmatpush3.bf16.msra.mxu1 %v5119_v5 }
 0x38d   :  { %1918 = vmatprep.subr.bf16.mxu0 %v5125_v48  ;;  %3444 = vmatprep.subr.bf16.mxu1 %v5813_v12 }
 0x38e   :  { %v3809_v13 = vpop.eup %3808 }
 0x38f   :  { %v1791_v56 = vsub.f32 %v4885_v29, %v3809_v13  ;;  %v3811_v1 = vpop.eup %3810 }
 0x390   :  { %1919 = vmatpush1.bf16.msra.mxu0 %v5133_v8  ;;  %3445 = vmatpush3.bf16.msra.mxu1 %v5139_v20 }
 0x391   :  { %1920 = vmatprep.subr.bf16.mxu0 %v5145_v46  ;;  %3446 = vmatprep.subr.bf16.mxu1 %v5813_v12  ;;  %v1792_v29 = vmul.f32 %v3811_v1, %v1791_v56  ;;  %v5850_v56 = vld [vmem:[#allocation24_spill] sm:$0xff] }
 0x393   :  { %v5149_v21 = vadd.f32 %v3809_v13, %v1792_v29 }
 0x394   :  { %1921 = vmatpush1.bf16.msra.mxu0 %v5154_v59  ;;  %3447 = vmatpush3.bf16.msra.mxu1 %v5160_v52 }
 0x395   :  { %v1794_v18 = vpack.c.bf16 %v5149_v21, %v5149_v21  ;;  %2013 = vmatprep.subr.bf16.mxu0 %v4894_v32  ;;  %3452 = vmatprep.subr.bf16.mxu1 %v5813_v12 }
 0x397   :  { %1795 = vst [vmem:[%s5710_s8 + $0x14] sm:$0xf] %v1794_v18  ;;  %1939 = vmatmul.mubr.bf16.vlgmr.msra.gmra.mrb[60].mxu0 %v1794_v18  ;;  %3449 = vmatmul.mubr.bf16.vlgmr.msra.gmra.mrb[44].mxu1 %v1794_v18 }
 0x398   :  { %2014 = vmatpush1.bf16.msra.mxu0 %v4904_v33  ;;  %3453 = vmatpush3.bf16.msra.mxu1 %v4910_v34 }
 0x399   :  { %2015 = vmatprep.subr.bf16.mxu0 %v4916_v35  ;;  %3454 = vmatprep.subr.bf16.mxu1 %v5813_v12 }
 0x39a   :  { %2045 = vmatprep.mubr.bf16.mxu0 %v5814_v6  ;;  %3468 = vmatprep.mubr.msk.bf16.mxu1 %vm4000_vm0, %v5813_v12 }
 0x39c   :  { %2016 = vmatpush1.bf16.msra.mxu0 %v4926_v36  ;;  %3455 = vmatpush3.bf16.msra.mxu1 %v4932_v37 }
 0x39d   :  { %2017 = vmatprep.subr.bf16.mxu0 %v4938_v38  ;;  %3456 = vmatprep.subr.bf16.mxu1 %v5813_v12 }
 0x3a0   :  { %2018 = vmatpush1.bf16.msra.mxu0 %v4945_v39  ;;  %3457 = vmatpush3.bf16.msra.mxu1 %v5185_v27 }
 0x3a1   :  { %2019 = vmatprep.subr.bf16.mxu0 %v4952_v40  ;;  %3458 = vmatprep.subr.bf16.mxu1 %v5813_v12 }
 0x3a4   :  { %2020 = vmatpush1.bf16.msra.mxu0 %v4959_v41  ;;  %3459 = vmatpush3.bf16.msra.mxu1 %v5194_v51 }
 0x3a5   :  { %2021 = vmatprep.subr.bf16.mxu0 %v4966_v7  ;;  %3460 = vmatprep.subr.bf16.mxu1 %v5813_v12 }
 0x3a8   :  { %2022 = vmatpush1.bf16.msra.mxu0 %v4973_v42  ;;  %3461 = vmatpush3.bf16.msra.mxu1 %v5203_v19 }
 0x3a9   :  { %2023 = vmatprep.subr.bf16.mxu0 %v4980_v11  ;;  %3462 = vmatprep.subr.bf16.mxu1 %v5813_v12 }
 0x3ac   :  { %2024 = vmatpush1.bf16.msra.mxu0 %v5211_v22  ;;  %3463 = vmatpush3.bf16.msra.mxu1 %v5217_v55 }
 0x3ad   :  { %2025 = vmatprep.subr.bf16.mxu0 %v5223_v30  ;;  %3464 = vmatprep.subr.bf16.mxu1 %v5813_v12 }
 0x3b0   :  { %2026 = vmatpush1.bf16.msra.mxu0 %v5230_v23  ;;  %3465 = vmatpush3.bf16.msra.mxu1 %v5236_v25 }
 0x3b1   :  { %2027 = vmatprep.subr.bf16.mxu0 %v5242_v26  ;;  %3466 = vmatprep.subr.bf16.mxu1 %v5813_v12 }
 0x3b4   :  { %2028 = vmatpush1.bf16.msra.mxu0 %v5249_v31  ;;  %3467 = vmatpush3.bf16.msra.mxu1 %v5255_v60 }
 0x3b5   :  { %2120 = vmatprep.subr.bf16.mxu0 %v5261_v61  ;;  %3472 = vmatprep.subr.bf16.mxu1 %v5813_v12 }
 0x44a   :  { %v1833_v62 = vpop.f32.mrb[56].mxu0  ;;  %v1874_v2 = vpop.f32.mrb[40].mxu1 }
 0x44b   :  { %v1880_v3 = vadd.f32 %v1833_v62, %v5849_v50  ;;  %v1835_v4 = vpop.f32.mrb[57].mxu0  ;;  %v3430_v13 = vpop.f32.mrb[41].mxu1  ;;  %v1894_v55 = vadd.f32 %v4738_v49, %v1874_v2  ;;  %v5851_v50 = vld [vmem:[#allocation25_spill] sm:$0xff] }
 0x44c   :  { %v1881_v1 = vadd.f32 %v1835_v4, %v5850_v56  ;;  %v1837_v29 = vpop.f32.mrb[58].mxu0  ;;  %v1877_v18 = vpop.f32.mrb[42].mxu1 }
 0x44d   :  { %v3056_v60 = vmul.f32 -1.442695, %v1880_v3  ;;  %v1838_v31 = vpop.f32.mrb[59].mxu0  ;;  %v3431_v26 = vpop.f32.mrb[43].mxu1  ;;  %v5852_v3 = vld [vmem:[#allocation51_spill] sm:$0xff] }
 0x44e   :  { %v3057_v25 = vmul.f32 -1.442695, %v1881_v1  ;;  %v5853_v1 = vld [vmem:[#allocation52_spill] sm:$0xff] }
 0x44f   :  { %3812 = vpow2.f32 %v3056_v60 }
 0x450   :  { %3814 = vpow2.f32 %v3057_v25 }
 0x459   :  { %v3813_v23 = vpop.eup %3812 }
 0x45a   :  { %v1888_v30 = vadd.f32 1.0, %v3813_v23  ;;  %v3815_v61 = vpop.eup %3814 }
 0x45b   :  { %v1889_v11 = vadd.f32 1.0, %v3815_v61 }
 0x45c   :  { %3816 = vrcp.f32 %v1888_v30 }
 0x466   :  { %v3817_v22 = vpop.eup %3816 }
 0x467   :  { %v1895_v62 = vmul.f32 %v3817_v22, %v1894_v55 }
 0x469   :  { %v1896_v13 = vadd.f32 %v1895_v62, %v5851_v50 }
 0x46a   :  { %v1940_v4 = vpop.f32.mrb[60].mxu0  ;;  %v1981_v56 = vpop.f32.mrb[44].mxu1 }
 0x46b   :  { %3818 = vtanh.f32 %v1896_v13  ;;  %v1987_v31 = vadd.f32 %v1940_v4, %v5852_v3  ;;  %v1942_v26 = vpop.f32.mrb[61].mxu0  ;;  %v3450_v60 = vpop.f32.mrb[45].mxu1 }
 0x46c   :  { %v1988_v29 = vadd.f32 %v1942_v26, %v5853_v1  ;;  %v1944_v23 = vpop.f32.mrb[62].mxu0  ;;  %v1984_v25 = vpop.f32.mrb[46].mxu1  ;;  %3820 = vrcp.f32 %v1889_v11  ;;  %v5854_v60 = vld [vmem:[#allocation56_spill] sm:$0xff] }
 0x46d   :  { %v3058_v30 = vmul.f32 -1.442695, %v1987_v31  ;;  %v1945_v18 = vpop.f32.mrb[63].mxu0  ;;  %v3451_v49 = vpop.f32.mrb[47].mxu1 }
 0x46e   :  { %v3059_v2 = vmul.f32 -1.442695, %v1988_v29  ;;  %v5856_v49 = vld [vmem:[#allocation12_spill] sm:$0xff] }
 0x46f   :  { %3822 = vpow2.f32 %v3058_v30 }
 0x470   :  { %3824 = vpow2.f32 %v3059_v2  ;;  %v5860_v2 = vld [vmem:[#allocation9_spill] sm:$0xff] }
 0x475   :  { %v3819_v22 = vpop.eup %3818 }
 0x476   :  { %v1898_v55 = vsub.f32 %v5003_v28, %v3819_v22  ;;  %v3821_v61 = vpop.eup %3820  ;;  %v2001_v28 = vadd.f32 %v4757_v9, %v1981_v56 }
 0x478   :  { %v1899_v62 = vmul.f32 %v3821_v61, %v1898_v55  ;;  %v5858_v55 = vld [vmem:[#allocation8_spill] sm:$0xff]  ;;  %v5859_v61 = vld [vmem:[#allocation15_spill] sm:$0xff] }
 0x479   :  { %v3823_v50 = vpop.eup %3822 }
 0x47a   :  { %v1995_v13 = vadd.f32 1.0, %v3823_v50  ;;  %v5272_v4 = vadd.f32 %v3819_v22, %v1899_v62  ;;  %v3825_v11 = vpop.eup %3824  ;;  %v5857_v22 = vld [vmem:[#allocation7_spill] sm:$0xff]  ;;  %v5861_v62 = vld [vmem:[#allocation10_spill] sm:$0xff]  ;;  %v5862_v50 = vld [vmem:[#allocation16_spill] sm:$0xff] }
 0x47b   :  { %v1996_v29 = vadd.f32 1.0, %v3825_v11 }
 0x47c   :  { %3826 = vrcp.f32 %v1995_v13  ;;  %v1901_v3 = vpack.c.bf16 %v5272_v4, %v5272_v4  ;;  %v5863_v13 = vld [vmem:[#allocation11_spill] sm:$0xff] }
 0x47e   :  { %1902 = vst [vmem:[%s5709_s7 + $0xc] sm:$0xf] %v1901_v3  ;;  %2046 = vmatmul.mubr.bf16.vlgmr.msra.gmra.mrb[64].mxu0 %v1901_v3  ;;  %3469 = vmatmul.mubr.bf16.vlgmr.msra.gmra.mrb[48].mxu1 %v1901_v3  ;;  %v5864_v3 = vld [vmem:[#allocation13_spill] sm:$0xff] }
 0x47f   :  { %2121 = vmatpush1.bf16.msra.mxu0 %v5013_v47  ;;  %3473 = vmatpush3.bf16.msra.mxu1 %v5019_v43 }
 0x480   :  { %2122 = vmatprep.subr.bf16.mxu0 %v5025_v16  ;;  %3474 = vmatprep.subr.bf16.mxu1 %v5813_v12 }
 0x481   :  { %2152 = vmatprep.mubr.bf16.mxu0 %v5814_v6  ;;  %3488 = vmatprep.mubr.msk.bf16.mxu1 %vm4000_vm0, %v5813_v12 }
 0x483   :  { %2123 = vmatpush1.bf16.msra.mxu0 %v5035_v54  ;;  %3475 = vmatpush3.bf16.msra.mxu1 %v5041_v57 }
 0x484   :  { %2124 = vmatprep.subr.bf16.mxu0 %v5047_v58  ;;  %3476 = vmatprep.subr.bf16.mxu1 %v5813_v12 }
 0x486   :  { %v3827_v31 = vpop.eup %3826 }
 0x487   :  { %v2002_v26 = vmul.f32 %v3827_v31, %v2001_v28  ;;  %2125 = vmatpush1.bf16.msra.mxu0 %v5055_v63  ;;  %3477 = vmatpush3.bf16.msra.mxu1 %v5061_v24  ;;  %v5865_v31 = vld [vmem:[#allocation27_spill] sm:$0xff] }
 0x488   :  { %2126 = vmatprep.subr.bf16.mxu0 %v5067_v15  ;;  %3478 = vmatprep.subr.bf16.mxu1 %v5813_v12 }
 0x489   :  { %v2003_v1 = vadd.f32 %v2002_v26, %v5854_v60 }
 0x48b   :  { %3828 = vtanh.f32 %v2003_v1  ;;  %2127 = vmatpush1.bf16.msra.mxu0 %v5075_v10  ;;  %3479 = vmatpush3.bf16.msra.mxu1 %v5081_v44 }
 0x48c   :  { %2128 = vmatprep.subr.bf16.mxu0 %v5087_v45  ;;  %3480 = vmatprep.subr.bf16.mxu1 %v5813_v12  ;;  %3830 = vrcp.f32 %v1996_v29  ;;  %v5866_v29 = vld [vmem:[#allocation28_spill] sm:$0xff] }
 0x48f   :  { %2129 = vmatpush1.bf16.msra.mxu0 %v5094_v0  ;;  %3481 = vmatpush3.bf16.msra.mxu1 %v5100_v17 }
 0x490   :  { %2130 = vmatprep.subr.bf16.mxu0 %v5106_v53  ;;  %3482 = vmatprep.subr.bf16.mxu1 %v5813_v12 }
 0x493   :  { %2131 = vmatpush1.bf16.msra.mxu0 %v5113_v14  ;;  %3483 = vmatpush3.bf16.msra.mxu1 %v5119_v5 }
 0x494   :  { %2132 = vmatprep.subr.bf16.mxu0 %v5125_v48  ;;  %3484 = vmatprep.subr.bf16.mxu1 %v5813_v12 }
 0x495   :  { %v3829_v9 = vpop.eup %3828 }
 0x496   :  { %v2005_v56 = vsub.f32 %v5149_v21, %v3829_v9  ;;  %v3831_v23 = vpop.eup %3830  ;;  %v5855_v21 = vld [vmem:[#allocation6_spill] sm:$0xff] }
 0x497   :  { %2133 = vmatpush1.bf16.msra.mxu0 %v5133_v8  ;;  %3485 = vmatpush3.bf16.msra.mxu1 %v5139_v20 }
 0x498   :  { %2134 = vmatprep.subr.bf16.mxu0 %v5145_v46  ;;  %3486 = vmatprep.subr.bf16.mxu1 %v5813_v12  ;;  %v2006_v25 = vmul.f32 %v3831_v23, %v2005_v56 }
 0x49a   :  { %v5313_v30 = vadd.f32 %v3829_v9, %v2006_v25 }
 0x49b   :  { %2135 = vmatpush1.bf16.msra.mxu0 %v5154_v59  ;;  %3487 = vmatpush3.bf16.msra.mxu1 %v5160_v52 }
 0x49c   :  { %v2008_v18 = vpack.c.bf16 %v5313_v30, %v5313_v30  ;;  %2227 = vmatprep.subr.bf16.mxu0 %v4894_v32  ;;  %3492 = vmatprep.subr.bf16.mxu1 %v5813_v12 }
 0x49e   :  { %2009 = vst [vmem:[%s5710_s8 + $0x10] sm:$0xf] %v2008_v18  ;;  %2153 = vmatmul.mubr.bf16.vlgmr.msra.gmra.mrb[68].mxu0 %v2008_v18  ;;  %3489 = vmatmul.mubr.bf16.vlgmr.msra.gmra.mrb[52].mxu1 %v2008_v18 }
 0x49f   :  { %2228 = vmatpush1.bf16.msra.mxu0 %v4904_v33  ;;  %3493 = vmatpush3.bf16.msra.mxu1 %v4910_v34 }
 0x4a0   :  { %2229 = vmatprep.subr.bf16.mxu0 %v4916_v35  ;;  %3494 = vmatprep.subr.bf16.mxu1 %v5813_v12 }
 0x4a1   :  { %2259 = vmatprep.mubr.bf16.mxu0 %v5814_v6  ;;  %3508 = vmatprep.mubr.msk.bf16.mxu1 %vm4000_vm0, %v5813_v12 }
 0x4a3   :  { %2230 = vmatpush1.bf16.msra.mxu0 %v4926_v36  ;;  %3495 = vmatpush3.bf16.msra.mxu1 %v4932_v37 }
 0x4a4   :  { %2231 = vmatprep.subr.bf16.mxu0 %v4938_v38  ;;  %3496 = vmatprep.subr.bf16.mxu1 %v5813_v12 }
 0x4a7   :  { %2232 = vmatpush1.bf16.msra.mxu0 %v4945_v39  ;;  %3497 = vmatpush3.bf16.msra.mxu1 %v5185_v27 }
 0x4a8   :  { %2233 = vmatprep.subr.bf16.mxu0 %v4952_v40  ;;  %3498 = vmatprep.subr.bf16.mxu1 %v5813_v12 }
 0x4ab   :  { %2234 = vmatpush1.bf16.msra.mxu0 %v4959_v41  ;;  %3499 = vmatpush3.bf16.msra.mxu1 %v5194_v51 }
 0x4ac   :  { %2235 = vmatprep.subr.bf16.mxu0 %v4966_v7  ;;  %3500 = vmatprep.subr.bf16.mxu1 %v5813_v12 }
 0x4af   :  { %2236 = vmatpush1.bf16.msra.mxu0 %v4973_v42  ;;  %3501 = vmatpush3.bf16.msra.mxu1 %v5203_v19 }
 0x4b0   :  { %2237 = vmatprep.subr.bf16.mxu0 %v5855_v21  ;;  %3502 = vmatprep.subr.bf16.mxu1 %v5813_v12 }
 0x4b3   :  { %2238 = vmatpush1.bf16.msra.mxu0 %v5856_v49  ;;  %3503 = vmatpush3.bf16.msra.mxu1 %v5857_v22 }
 0x4b4   :  { %2239 = vmatprep.subr.bf16.mxu0 %v5858_v55  ;;  %3504 = vmatprep.subr.bf16.mxu1 %v5813_v12 }
 0x4b7   :  { %2240 = vmatpush1.bf16.msra.mxu0 %v5859_v61  ;;  %3505 = vmatpush3.bf16.msra.mxu1 %v5860_v2 }
 0x4b8   :  { %2241 = vmatprep.subr.bf16.mxu0 %v5861_v62  ;;  %3506 = vmatprep.subr.bf16.mxu1 %v5813_v12 }
 0x4bb   :  { %2242 = vmatpush1.bf16.msra.mxu0 %v5862_v50  ;;  %3507 = vmatpush3.bf16.msra.mxu1 %v5863_v13 }
 0x4bc   :  { %2334 = vmatprep.subr.bf16.mxu0 %v5864_v3  ;;  %3512 = vmatprep.subr.bf16.mxu1 %v5813_v12 }
 0x551   :  { %v2047_v11 = vpop.f32.mrb[64].mxu0  ;;  %v2088_v28 = vpop.f32.mrb[48].mxu1 }
 0x552   :  { %v2094_v26 = vadd.f32 %v2047_v11, %v5865_v31  ;;  %v2049_v60 = vpop.f32.mrb[65].mxu0  ;;  %v3470_v1 = vpop.f32.mrb[49].mxu1  ;;  %v5364_v11 = vld [vmem:[%s5708_s6] ss:$0 sm:$0xff] }
 0x553   :  { %v2095_v9 = vadd.f32 %v2049_v60, %v5866_v29  ;;  %v2051_v56 = vpop.f32.mrb[66].mxu0  ;;  %v2091_v23 = vpop.f32.mrb[50].mxu1  ;;  %5867 = vst [vmem:[#allocation17_spill] sm:$0xff] %v5364_v11  ;;  %v2108_v31 = vadd.f32 %v5364_v11, %v2088_v28  ;;  %v5868_v29 = vld [vmem:[#allocation32_spill] sm:$0xff] }
 0x554   :  { %v3060_v25 = vmul.f32 -1.442695, %v2094_v26  ;;  %v2052_v18 = vpop.f32.mrb[67].mxu0  ;;  %v3471_v62 = vpop.f32.mrb[51].mxu1 }
 0x555   :  { %v3061_v50 = vmul.f32 -1.442695, %v2095_v9  ;;  %v5869_v9 = vld [vmem:[#allocation45_spill] sm:$0xff] }
 0x556   :  { %3832 = vpow2.f32 %v3060_v25  ;;  %v5870_v25 = vld [vmem:[#allocation47_spill] sm:$0xff] }
 0x557   :  { %3834 = vpow2.f32 %v3061_v50 }
 0x560   :  { %v3833_v13 = vpop.eup %3832 }
 0x561   :  { %v2102_v2 = vadd.f32 1.0, %v3833_v13  ;;  %v3835_v3 = vpop.eup %3834 }
 0x562   :  { %v2103_v56 = vadd.f32 1.0, %v3835_v3 }
 0x563   :  { %3836 = vrcp.f32 %v2102_v2 }
 0x56d   :  { %v3837_v60 = vpop.eup %3836 }
 0x56e   :  { %v2109_v1 = vmul.f32 %v3837_v60, %v2108_v31 }
 0x570   :  { %v2110_v26 = vadd.f32 %v2109_v1, %v5868_v29 }
 0x571   :  { %v2154_v62 = vpop.f32.mrb[68].mxu0  ;;  %v2195_v23 = vpop.f32.mrb[52].mxu1 }
 0x572   :  { %3838 = vtanh.f32 %v2110_v26  ;;  %v2201_v13 = vadd.f32 %v2154_v62, %v5869_v9  ;;  %v2156_v50 = vpop.f32.mrb[69].mxu0  ;;  %v3490_v2 = vpop.f32.mrb[53].mxu1 }
 0x573   :  { %v2202_v18 = vadd.f32 %v2156_v50, %v5870_v25  ;;  %v2158_v61 = vpop.f32.mrb[70].mxu0  ;;  %v2198_v55 = vpop.f32.mrb[54].mxu1  ;;  %3840 = vrcp.f32 %v2103_v56  ;;  %v5871_v56 = vld [vmem:[#allocation49_spill] sm:$0xff] }
 0x574   :  { %v3062_v22 = vmul.f32 -1.442695, %v2201_v13  ;;  %v2159_v49 = vpop.f32.mrb[71].mxu0  ;;  %v3491_v28 = vpop.f32.mrb[55].mxu1 }
 0x575   :  { %v3063_v1 = vmul.f32 -1.442695, %v2202_v18  ;;  %v5392_v49 = vld [vmem:[%s5708_s6 + $0x1] ss:$0 sm:$0xff] }
 0x576   :  { %3842 = vpow2.f32 %v3062_v22  ;;  %v2215_v22 = vadd.f32 %v5392_v49, %v2195_v23 }
 0x577   :  { %3844 = vpow2.f32 %v3063_v1 }
 0x57c   :  { %v3839_v31 = vpop.eup %3838 }
 0x57d   :  { %v2112_v60 = vsub.f32 %v5272_v4, %v3839_v31  ;;  %v3841_v3 = vpop.eup %3840 }
 0x57f   :  { %v2113_v29 = vmul.f32 %v3841_v3, %v2112_v60  ;;  %v5882_v60 = vld [vmem:[#allocation31_spill] sm:$0xff] }
 0x580   :  { %v3843_v26 = vpop.eup %3842 }
 0x581   :  { %v2209_v11 = vadd.f32 1.0, %v3843_v26  ;;  %v5371_v62 = vadd.f32 %v3839_v31, %v2113_v29  ;;  %v3845_v4 = vpop.eup %3844 }
 0x582   :  { %v2210_v13 = vadd.f32 1.0, %v3845_v4 }
 0x583   :  { %3846 = vrcp.f32 %v2209_v11  ;;  %v2115_v55 = vpack.c.bf16 %v5371_v62, %v5371_v62 }
 0x585   :  { %2116 = vst [vmem:[%s5709_s7 + $0x10] sm:$0xf] %v2115_v55  ;;  %2260 = vmatmul.mubr.bf16.vlgmr.msra.gmra.mrb[72].mxu0 %v2115_v55  ;;  %3509 = vmatmul.mubr.bf16.vlgmr.msra.gmra.mrb[56].mxu1 %v2115_v55 }
 0x586   :  { %2335 = vmatpush1.bf16.msra.mxu0 %v5013_v47  ;;  %3513 = vmatpush3.bf16.msra.mxu1 %v5019_v43 }
 0x587   :  { %2336 = vmatprep.subr.bf16.mxu0 %v5025_v16  ;;  %3514 = vmatprep.subr.bf16.mxu1 %v5813_v12 }
 0x588   :  { %2366 = vmatprep.mubr.bf16.mxu0 %v5814_v6  ;;  %3528 = vmatprep.mubr.msk.bf16.mxu1 %vm4000_vm0, %v5813_v12 }
 0x58a   :  { %2337 = vmatpush1.bf16.msra.mxu0 %v5035_v54  ;;  %3515 = vmatpush3.bf16.msra.mxu1 %v5041_v57 }
 0x58b   :  { %2338 = vmatprep.subr.bf16.mxu0 %v5047_v58  ;;  %3516 = vmatprep.subr.bf16.mxu1 %v5813_v12 }
 0x58d   :  { %v3847_v61 = vpop.eup %3846 }
 0x58e   :  { %v2216_v11 = vmul.f32 %v3847_v61, %v2215_v22  ;;  %2339 = vmatpush1.bf16.msra.mxu0 %v5055_v63  ;;  %3517 = vmatpush3.bf16.msra.mxu1 %v5061_v24 }
 0x58f   :  { %2340 = vmatprep.subr.bf16.mxu0 %v5067_v15  ;;  %3518 = vmatprep.subr.bf16.mxu1 %v5813_v12 }
 0x590   :  { %v2217_v9 = vadd.f32 %v2216_v11, %v5871_v56 }
 0x592   :  { %3848 = vtanh.f32 %v2217_v9  ;;  %2341 = vmatpush1.bf16.msra.mxu0 %v5075_v10  ;;  %3519 = vmatpush3.bf16.msra.mxu1 %v5081_v44  ;;  %v5883_v9 = vld [vmem:[#allocation17_spill] sm:$0xff] }
 0x593   :  { %2342 = vmatprep.subr.bf16.mxu0 %v5087_v45  ;;  %3520 = vmatprep.subr.bf16.mxu1 %v5813_v12  ;;  %3850 = vrcp.f32 %v2210_v13 }
 0x596   :  { %2343 = vmatpush1.bf16.msra.mxu0 %v5094_v0  ;;  %3521 = vmatpush3.bf16.msra.mxu1 %v5100_v17 }
 0x597   :  { %2344 = vmatprep.subr.bf16.mxu0 %v5106_v53  ;;  %3522 = vmatprep.subr.bf16.mxu1 %v5813_v12 }
 0x59a   :  { %2345 = vmatpush1.bf16.msra.mxu0 %v5113_v14  ;;  %3523 = vmatpush3.bf16.msra.mxu1 %v5119_v5 }
 0x59b   :  { %2346 = vmatprep.subr.bf16.mxu0 %v5125_v48  ;;  %3524 = vmatprep.subr.bf16.mxu1 %v5813_v12 }
 0x59c   :  { %v3849_v23 = vpop.eup %3848 }
 0x59d   :  { %v2219_v50 = vsub.f32 %v5313_v30, %v3849_v23  ;;  %v3851_v2 = vpop.eup %3850 }
 0x59e   :  { %2347 = vmatpush1.bf16.msra.mxu0 %v5133_v8  ;;  %3525 = vmatpush3.bf16.msra.mxu1 %v5139_v20 }
 0x59f   :  { %2348 = vmatprep.subr.bf16.mxu0 %v5145_v46  ;;  %3526 = vmatprep.subr.bf16.mxu1 %v5813_v12  ;;  %v2220_v25 = vmul.f32 %v3851_v2, %v2219_v50  ;;  %v5884_v2 = vld [vmem:[#allocation34_spill] sm:$0xff] }
 0x5a1   :  { %v5417_v18 = vadd.f32 %v3849_v23, %v2220_v25 }
 0x5a2   :  { %2349 = vmatpush1.bf16.msra.mxu0 %v5154_v59  ;;  %3527 = vmatpush3.bf16.msra.mxu1 %v5160_v52 }
 0x5a3   :  { %v2222_v28 = vpack.c.bf16 %v5417_v18, %v5417_v18  ;;  %2441 = vmatprep.subr.bf16.mxu0 %v4894_v32  ;;  %3532 = vmatprep.subr.bf16.mxu1 %v5813_v12  ;;  %v5872_v32 = vld [vmem:[#allocation12_spill] sm:$0xff] }
 0x5a5   :  { %2223 = vst [vmem:[%s5710_s8 + $0xc] sm:$0xf] %v2222_v28  ;;  %2367 = vmatmul.mubr.bf16.vlgmr.msra.gmra.mrb[76].mxu0 %v2222_v28  ;;  %3529 = vmatmul.mubr.bf16.vlgmr.msra.gmra.mrb[60].mxu1 %v2222_v28 }
 0x5a6   :  { %2442 = vmatpush1.bf16.msra.mxu0 %v4904_v33  ;;  %3533 = vmatpush3.bf16.msra.mxu1 %v4910_v34  ;;  %v5873_v33 = vld [vmem:[#allocation7_spill] sm:$0xff]  ;;  %v5874_v34 = vld [vmem:[#allocation8_spill] sm:$0xff] }
 0x5a7   :  { %2443 = vmatprep.subr.bf16.mxu0 %v4916_v35  ;;  %3534 = vmatprep.subr.bf16.mxu1 %v5813_v12  ;;  %v5875_v35 = vld [vmem:[#allocation15_spill] sm:$0xff] }
 0x5a8   :  { %2473 = vmatprep.mubr.bf16.mxu0 %v5814_v6  ;;  %3548 = vmatprep.mubr.msk.bf16.mxu1 %vm4000_vm0, %v5813_v12 }
 0x5aa   :  { %2444 = vmatpush1.bf16.msra.mxu0 %v4926_v36  ;;  %3535 = vmatpush3.bf16.msra.mxu1 %v4932_v37  ;;  %v5876_v36 = vld [vmem:[#allocation9_spill] sm:$0xff]  ;;  %v5877_v37 = vld [vmem:[#allocation10_spill] sm:$0xff] }
 0x5ab   :  { %2445 = vmatprep.subr.bf16.mxu0 %v4938_v38  ;;  %3536 = vmatprep.subr.bf16.mxu1 %v5813_v12  ;;  %v5878_v38 = vld [vmem:[#allocation16_spill] sm:$0xff] }
 0x5ae   :  { %2446 = vmatpush1.bf16.msra.mxu0 %v4945_v39  ;;  %3537 = vmatpush3.bf16.msra.mxu1 %v5185_v27  ;;  %v5879_v39 = vld [vmem:[#allocation11_spill] sm:$0xff] }
 0x5af   :  { %2447 = vmatprep.subr.bf16.mxu0 %v4952_v40  ;;  %3538 = vmatprep.subr.bf16.mxu1 %v5813_v12  ;;  %v5880_v40 = vld [vmem:[#allocation13_spill] sm:$0xff] }
 0x5b2   :  { %2448 = vmatpush1.bf16.msra.mxu0 %v4959_v41  ;;  %3539 = vmatpush3.bf16.msra.mxu1 %v5194_v51 }
 0x5b3   :  { %2449 = vmatprep.subr.bf16.mxu0 %v4966_v7  ;;  %3540 = vmatprep.subr.bf16.mxu1 %v5813_v12 }
 0x5b6   :  { %2450 = vmatpush1.bf16.msra.mxu0 %v4973_v42  ;;  %3541 = vmatpush3.bf16.msra.mxu1 %v5203_v19  ;;  %v5881_v42 = vld [vmem:[#allocation29_spill] sm:$0xff] }
 0x5b7   :  { %2451 = vmatprep.subr.bf16.mxu0 %v5855_v21  ;;  %3542 = vmatprep.subr.bf16.mxu1 %v5813_v12 }
 0x5ba   :  { %2452 = vmatpush1.bf16.msra.mxu0 %v5872_v32  ;;  %3543 = vmatpush3.bf16.msra.mxu1 %v5873_v33 }
 0x5bb   :  { %2453 = vmatprep.subr.bf16.mxu0 %v5874_v34  ;;  %3544 = vmatprep.subr.bf16.mxu1 %v5813_v12 }
 0x5be   :  { %2454 = vmatpush1.bf16.msra.mxu0 %v5875_v35  ;;  %3545 = vmatpush3.bf16.msra.mxu1 %v5876_v36 }
 0x5bf   :  { %2455 = vmatprep.subr.bf16.mxu0 %v5877_v37  ;;  %3546 = vmatprep.subr.bf16.mxu1 %v5813_v12 }
 0x5c2   :  { %2456 = vmatpush1.bf16.msra.mxu0 %v5878_v38  ;;  %3547 = vmatpush3.bf16.msra.mxu1 %v5879_v39 }
 0x5c3   :  { %2548 = vmatprep.subr.bf16.mxu0 %v5880_v40  ;;  %3552 = vmatprep.subr.bf16.mxu1 %v5813_v12 }
 0x658   :  { %v2261_v41 = vpop.f32.mrb[72].mxu0  ;;  %v2302_v7 = vpop.f32.mrb[56].mxu1 }
 0x659   :  { %v2308_v30 = vadd.f32 %v2261_v41, %v5881_v42  ;;  %v2263_v21 = vpop.f32.mrb[73].mxu0  ;;  %v3510_v31 = vpop.f32.mrb[57].mxu1  ;;  %v2322_v13 = vadd.f32 %v5883_v9, %v2302_v7 }
 0x65a   :  { %v2309_v3 = vadd.f32 %v2263_v21, %v5882_v60  ;;  %v2265_v1 = vpop.f32.mrb[74].mxu0  ;;  %v2305_v29 = vpop.f32.mrb[58].mxu1 }
 0x65b   :  { %v3064_v26 = vmul.f32 -1.442695, %v2308_v30  ;;  %v2266_v55 = vpop.f32.mrb[75].mxu0  ;;  %v3511_v4 = vpop.f32.mrb[59].mxu1  ;;  %v5885_v30 = vld [vmem:[#allocation43_spill] sm:$0xff] }
 0x65c   :  { %v3065_v22 = vmul.f32 -1.442695, %v2309_v3  ;;  %v5886_v3 = vld [vmem:[#allocation44_spill] sm:$0xff] }
 0x65d   :  { %3852 = vpow2.f32 %v3064_v26 }
 0x65e   :  { %3854 = vpow2.f32 %v3065_v22 }
 0x667   :  { %v3853_v61 = vpop.eup %3852 }
 0x668   :  { %v2316_v11 = vadd.f32 1.0, %v3853_v61  ;;  %v3855_v56 = vpop.eup %3854 }
 0x669   :  { %v2317_v28 = vadd.f32 1.0, %v3855_v56 }
 0x66a   :  { %3856 = vrcp.f32 %v2316_v11 }
 0x674   :  { %v3857_v23 = vpop.eup %3856 }
 0x675   :  { %v2323_v50 = vmul.f32 %v3857_v23, %v2322_v13 }
 0x677   :  { %v2324_v25 = vadd.f32 %v2323_v50, %v5884_v2 }
 0x678   :  { %v2368_v41 = vpop.f32.mrb[76].mxu0  ;;  %v2409_v42 = vpop.f32.mrb[60].mxu1 }
 0x679   :  { %3858 = vtanh.f32 %v2324_v25  ;;  %v2415_v21 = vadd.f32 %v2368_v41, %v5885_v30  ;;  %v2370_v31 = vpop.f32.mrb[77].mxu0  ;;  %v3530_v60 = vpop.f32.mrb[61].mxu1 }
 0x67a   :  { %v2416_v1 = vadd.f32 %v2370_v31, %v5886_v3  ;;  %v2372_v29 = vpop.f32.mrb[78].mxu0  ;;  %v2412_v26 = vpop.f32.mrb[62].mxu1  ;;  %3860 = vrcp.f32 %v2317_v28 }
 0x67b   :  { %v3066_v55 = vmul.f32 -1.442695, %v2415_v21  ;;  %v2373_v4 = vpop.f32.mrb[79].mxu0  ;;  %v3531_v7 = vpop.f32.mrb[63].mxu1  ;;  %v5890_v29 = vld [vmem:[#allocation30_spill] sm:$0xff] }
 0x67c   :  { %v3067_v56 = vmul.f32 -1.442695, %v2416_v1 }
 0x67d   :  { %3862 = vpow2.f32 %v3066_v55 }
 0x67e   :  { %3864 = vpow2.f32 %v3067_v56 }
 0x683   :  { %v3859_v22 = vpop.eup %3858 }
 0x684   :  { %v2326_v61 = vsub.f32 %v5371_v62, %v3859_v22  ;;  %v3861_v11 = vpop.eup %3860 }
 0x686   :  { %v2327_v13 = vmul.f32 %v3861_v11, %v2326_v61 }
 0x687   :  { %v3863_v23 = vpop.eup %3862 }
 0x688   :  { %v2423_v50 = vadd.f32 1.0, %v3863_v23  ;;  %v5470_v2 = vadd.f32 %v3859_v22, %v2327_v13  ;;  %v5891_v22 = vld [vmem:[#allocation41_spill] sm:$0xff]  ;;  %v5892_v13 = vld [vmem:[#allocation42_spill] sm:$0xff] }
 0x68a   :  { %3866 = vrcp.f32 %v2423_v50  ;;  %v2329_v25 = vpack.c.bf16 %v5470_v2, %v5470_v2 }
 0x68c   :  { %2330 = vst [vmem:[%s5709_s7 + $0x14] sm:$0xf] %v2329_v25  ;;  %2474 = vmatmul.mubr.bf16.vlgmr.msra.gmra.mrb[80].mxu0 %v2329_v25  ;;  %3549 = vmatmul.mubr.bf16.vlgmr.msra.gmra.mrb[64].mxu1 %v2329_v25 }
 0x68d   :  { %2549 = vmatpush1.bf16.msra.mxu0 %v5013_v47  ;;  %3553 = vmatpush3.bf16.msra.mxu1 %v5019_v43  ;;  %v3865_v47 = vpop.eup %3864  ;;  %v2429_v43 = vadd.f32 %v5392_v49, %v2409_v42 }
 0x68e   :  { %2550 = vmatprep.subr.bf16.mxu0 %v5025_v16  ;;  %3554 = vmatprep.subr.bf16.mxu1 %v5813_v12 }
 0x68f   :  { %2580 = vmatprep.mubr.bf16.mxu0 %v5814_v6  ;;  %3568 = vmatprep.mubr.msk.bf16.mxu1 %vm4000_vm0, %v5813_v12 }
 0x691   :  { %2551 = vmatpush1.bf16.msra.mxu0 %v5035_v54  ;;  %3555 = vmatpush3.bf16.msra.mxu1 %v5041_v57  ;;  %v5887_v54 = vld [vmem:[#allocation46_spill] sm:$0xff]  ;;  %v2424_v57 = vadd.f32 1.0, %v3865_v47 }
 0x692   :  { %2552 = vmatprep.subr.bf16.mxu0 %v5047_v58  ;;  %3556 = vmatprep.subr.bf16.mxu1 %v5813_v12 }
 0x694   :  { %v3867_v62 = vpop.eup %3866 }
 0x695   :  { %v2430_v16 = vmul.f32 %v3867_v62, %v2429_v43  ;;  %2553 = vmatpush1.bf16.msra.mxu0 %v5055_v63  ;;  %3557 = vmatpush3.bf16.msra.mxu1 %v5061_v24 }
 0x696   :  { %2554 = vmatprep.subr.bf16.mxu0 %v5067_v15  ;;  %3558 = vmatprep.subr.bf16.mxu1 %v5813_v12 }
 0x697   :  { %v2431_v28 = vadd.f32 %v2430_v16, %v5887_v54 }
 0x699   :  { %3868 = vtanh.f32 %v2431_v28  ;;  %2555 = vmatpush1.bf16.msra.mxu0 %v5075_v10  ;;  %3559 = vmatpush3.bf16.msra.mxu1 %v5081_v44 }
 0x69a   :  { %2556 = vmatprep.subr.bf16.mxu0 %v5087_v45  ;;  %3560 = vmatprep.subr.bf16.mxu1 %v5813_v12  ;;  %3870 = vrcp.f32 %v2424_v57  ;;  %v3962_v45 = vld [vmem:[%s5706_s5 + $0x4] ss:$12 sps:$4 sm:$0xff]  }
 0x69d   :  { %2557 = vmatpush1.bf16.msra.mxu0 %v5094_v0  ;;  %3561 = vmatpush3.bf16.msra.mxu1 %v5100_v17  ;;  %v3963_v0 = vld [vmem:[%s5706_s5] ss:$12 sps:$4 sm:$0xff]   ;;  %v3964_v17 = vld [vmem:[%s5706_s5 + $0x8] ss:$12 sps:$4 sm:$0xff]  }
 0x69e   :  { %2558 = vmatprep.subr.bf16.mxu0 %v5106_v53  ;;  %3562 = vmatprep.subr.bf16.mxu1 %v5813_v12  ;;  %v3965_v53 = vld [vmem:[%s5706_s5 + $0x1c] ss:$12 sps:$4 sm:$0xff]  }
 0x6a1   :  { %2559 = vmatpush1.bf16.msra.mxu0 %v5113_v14  ;;  %3563 = vmatpush3.bf16.msra.mxu1 %v5119_v5  ;;  %v3966_v14 = vld [vmem:[%s5706_s5 + $0x18] ss:$12 sps:$4 sm:$0xff]   ;;  %v3967_v5 = vld [vmem:[%s5706_s5 + $0x20] ss:$12 sps:$4 sm:$0xff]  }
 0x6a2   :  { %2560 = vmatprep.subr.bf16.mxu0 %v5125_v48  ;;  %3564 = vmatprep.subr.bf16.mxu1 %v5813_v12  ;;  %v3968_v48 = vld [vmem:[%s5706_s5 + $0x34] ss:$12 sps:$4 sm:$0xff]  }
 0x6a3   :  { %v3869_v58 = vpop.eup %3868 }
 0x6a4   :  { %v2433_v63 = vsub.f32 %v5417_v18, %v3869_v58  ;;  %v3871_v24 = vpop.eup %3870  ;;  %v5888_v18 = vld [vmem:[#allocation35_spill] sm:$0xff] }
 0x6a5   :  { %2561 = vmatpush1.bf16.msra.mxu0 %v5133_v8  ;;  %3565 = vmatpush3.bf16.msra.mxu1 %v5139_v20  ;;  %v3969_v8 = vld [vmem:[%s5706_s5 + $0x30] ss:$12 sps:$4 sm:$0xff]   ;;  %v3970_v20 = vld [vmem:[%s5706_s5 + $0x4c] ss:$12 sps:$4 sm:$0xff]  }
 0x6a6   :  { %2562 = vmatprep.subr.bf16.mxu0 %v5145_v46  ;;  %3566 = vmatprep.subr.bf16.mxu1 %v5813_v12  ;;  %v2434_v15 = vmul.f32 %v3871_v24, %v2433_v63  ;;  %v3971_v46 = vld [vmem:[%s5706_s5 + $0x48] ss:$12 sps:$4 sm:$0xff]  }
 0x6a8   :  { %v5511_v10 = vadd.f32 %v3869_v58, %v2434_v15 }
 0x6a9   :  { %2563 = vmatpush1.bf16.msra.mxu0 %v5154_v59  ;;  %3567 = vmatpush3.bf16.msra.mxu1 %v5160_v52  ;;  %v3972_v59 = vld [vmem:[%s5706_s5 + $0x64] ss:$12 sps:$4 sm:$0xff]   ;;  %v3973_v52 = vld [vmem:[%s5706_s5 + $0x60] ss:$12 sps:$4 sm:$0xff]  }
 0x6aa   :  { %v2436_v44 = vpack.c.bf16 %v5511_v10, %v5511_v10  ;;  %2655 = vmatprep.subr.bf16.mxu0 %v3962_v45  ;;  %3572 = vmatprep.subr.bf16.mxu1 %v5813_v12  ;;  %v3976_v45 = vld [vmem:[%s5706_s5 + $0xc8] ss:$12 sps:$4 sm:$0xff]  }
 0x6ac   :  { %2437 = vst [vmem:[%s5710_s8 + $0x8] sm:$0xf] %v2436_v44  ;;  %2581 = vmatmul.mubr.bf16.vlgmr.msra.gmra.mrb[84].mxu0 %v2436_v44  ;;  %3569 = vmatmul.mubr.bf16.vlgmr.msra.gmra.mrb[68].mxu1 %v2436_v44 }
 0x6ad   :  { %2656 = vmatpush1.bf16.msra.mxu0 %v3963_v0  ;;  %3573 = vmatpush3.bf16.msra.mxu1 %v3964_v17  ;;  %v3977_v0 = vld [vmem:[%s5706_s5 + $0xdc] ss:$12 sps:$4 sm:$0xff]   ;;  %v3978_v17 = vld [vmem:[%s5706_s5 + $0xd8] ss:$12 sps:$4 sm:$0xff]  }
 0x6ae   :  { %2657 = vmatprep.subr.bf16.mxu0 %v3965_v53  ;;  %3574 = vmatprep.subr.bf16.mxu1 %v5813_v12  ;;  %v3979_v53 = vld [vmem:[%s5706_s5 + $0xe0] ss:$12 sps:$4 sm:$0xff]  }
 0x6af   :  { %2687 = vmatprep.mubr.bf16.mxu0 %v5814_v6  ;;  %3588 = vmatprep.mubr.msk.bf16.mxu1 %vm4000_vm0, %v5813_v12 }
 0x6b1   :  { %2658 = vmatpush1.bf16.msra.mxu0 %v3966_v14  ;;  %3575 = vmatpush3.bf16.msra.mxu1 %v3967_v5  ;;  %v3980_v14 = vld [vmem:[%s5706_s5 + $0xf4] ss:$12 sps:$4 sm:$0xff]  }
 0x6b2   :  { %2659 = vmatprep.subr.bf16.mxu0 %v3968_v48  ;;  %3576 = vmatprep.subr.bf16.mxu1 %v5813_v12 }
 0x6b5   :  { %2660 = vmatpush1.bf16.msra.mxu0 %v3969_v8  ;;  %3577 = vmatpush3.bf16.msra.mxu1 %v5185_v27  ;;  %v3974_v27 = vld [vmem:[%s5706_s5 + $0x7c] ss:$12 sps:$4 sm:$0xff]  }
 0x6b6   :  { %2661 = vmatprep.subr.bf16.mxu0 %v3970_v20  ;;  %3578 = vmatprep.subr.bf16.mxu1 %v5813_v12  ;;  %v3981_v20 = vld [vmem:[%s5706_s5 + $0xf0] ss:$12 sps:$4 sm:$0xff]  }
 0x6b9   :  { %2662 = vmatpush1.bf16.msra.mxu0 %v3971_v46  ;;  %3579 = vmatpush3.bf16.msra.mxu1 %v5194_v51  ;;  %v3982_v46 = vld [vmem:[%s5706_s5 + $0xf8] ss:$12 sps:$4 sm:$0xff]  }
 0x6ba   :  { %2663 = vmatprep.subr.bf16.mxu0 %v3972_v59  ;;  %3580 = vmatprep.subr.bf16.mxu1 %v5813_v12  ;;  %v3983_v59 = vld [vmem:[%s5706_s5 + $0x10c] ss:$12 sps:$4 sm:$0xff]  }
 0x6bd   :  { %2664 = vmatpush1.bf16.msra.mxu0 %v3973_v52  ;;  %3581 = vmatpush3.bf16.msra.mxu1 %v5203_v19  ;;  %v5893_v52 = vld [vmem:[#allocation50_spill] sm:$0xff] }
 0x6be   :  { %2665 = vmatprep.subr.bf16.mxu0 %v3974_v27  ;;  %3582 = vmatprep.subr.bf16.mxu1 %v5813_v12 }
 0x6c1   :  { %2666 = vmatpush1.bf16.msra.mxu0 %v5872_v32  ;;  %3583 = vmatpush3.bf16.msra.mxu1 %v5873_v33 }
 0x6c2   :  { %2667 = vmatprep.subr.bf16.mxu0 %v5874_v34  ;;  %3584 = vmatprep.subr.bf16.mxu1 %v5813_v12 }
 0x6c5   :  { %2668 = vmatpush1.bf16.msra.mxu0 %v5875_v35  ;;  %3585 = vmatpush3.bf16.msra.mxu1 %v5876_v36  ;;  %v5889_v35 = vld [vmem:[#allocation36_spill] sm:$0xff] }
 0x6c6   :  { %2669 = vmatprep.subr.bf16.mxu0 %v5877_v37  ;;  %3586 = vmatprep.subr.bf16.mxu1 %v5813_v12 }
 0x6c9   :  { %2670 = vmatpush1.bf16.msra.mxu0 %v5878_v38  ;;  %3587 = vmatpush3.bf16.msra.mxu1 %v5879_v39 }
 0x6ca   :  { %2762 = vmatprep.subr.bf16.mxu0 %v5880_v40  ;;  %3592 = vmatprep.subr.bf16.mxu1 %v5813_v12 }
 0x75f   :  { %v2475_v51 = vpop.f32.mrb[80].mxu0  ;;  %v2516_v19 = vpop.f32.mrb[64].mxu1 }
 0x760   :  { %v2522_v32 = vadd.f32 %v2475_v51, %v5888_v18  ;;  %v2477_v33 = vpop.f32.mrb[81].mxu0  ;;  %v3550_v34 = vpop.f32.mrb[65].mxu1  ;;  %v2536_v60 = vadd.f32 %v5883_v9, %v2516_v19  ;;  %v3984_v19 = vld [vmem:[%s5706_s5 + $0x108] ss:$12 sps:$4 sm:$0xff]   ;;  %v3985_v18 = vld [vmem:[%s5706_s5 + $0x110] ss:$12 sps:$4 sm:$0xff]  }
 0x761   :  { %v2523_v36 = vadd.f32 %v2477_v33, %v5889_v35  ;;  %v2479_v41 = vpop.f32.mrb[82].mxu0  ;;  %v2519_v37 = vpop.f32.mrb[66].mxu1  ;;  %v3987_v33 = vld [vmem:[%s5706_s5 + $0x120] ss:$12 sps:$4 sm:$0xff]   ;;  %v3988_v34 = vld [vmem:[%s5706_s5 + $0x128] ss:$12 sps:$4 sm:$0xff]  }
 0x762   :  { %v3068_v42 = vmul.f32 -1.442695, %v2522_v32  ;;  %v2480_v30 = vpop.f32.mrb[83].mxu0  ;;  %v3551_v21 = vpop.f32.mrb[67].mxu1  ;;  %v3986_v32 = vld [vmem:[%s5706_s5 + $0x124] ss:$12 sps:$4 sm:$0xff]  }
 0x763   :  { %v3069_v38 = vmul.f32 -1.442695, %v2523_v36  ;;  %v3989_v35 = vld [vmem:[%s5706_s5 + $0x13c] ss:$12 sps:$4 sm:$0xff]   ;;  %v3990_v36 = vld [vmem:[%s5706_s5 + $0x138] ss:$12 sps:$4 sm:$0xff]  }
 0x764   :  { %3872 = vpow2.f32 %v3068_v42  ;;  %v3991_v41 = vld [vmem:[%s5706_s5 + $0x140] ss:$12 sps:$4 sm:$0xff]  }
 0x765   :  { %3874 = vpow2.f32 %v3069_v38  ;;  %v3992_v37 = vld [vmem:[%s5706_s5 + $0x154] ss:$12 sps:$4 sm:$0xff]   ;;  %v3993_v38 = vld [vmem:[%s5706_s5 + $0x150] ss:$12 sps:$4 sm:$0xff]  }
 0x76e   :  { %v3873_v39 = vpop.eup %3872 }
 0x76f   :  { %v2530_v31 = vadd.f32 1.0, %v3873_v39  ;;  %v3875_v40 = vpop.eup %3874  ;;  %v3994_v39 = vld [vmem:[%s5706_s5 + $0x158] ss:$12 sps:$4 sm:$0xff]  }
 0x770   :  { %v2531_v55 = vadd.f32 1.0, %v3875_v40 }
 0x771   :  { %3876 = vrcp.f32 %v2530_v31  ;;  %v3995_v31 = vld [vmem:[%s5706_s5 + $0x16c] ss:$12 sps:$4 sm:$0xff]  }
 0x77b   :  { %v3877_v3 = vpop.eup %3876 }
 0x77c   :  { %v2537_v1 = vmul.f32 %v3877_v3, %v2536_v60  ;;  %v3996_v60 = vld [vmem:[%s5706_s5 + $0x168] ss:$12 sps:$4 sm:$0xff]   ;;  %v3997_v3 = vld [vmem:[%s5706_s5 + $0x170] ss:$12 sps:$4 sm:$0xff]  }
 0x77e   :  { %v2538_v26 = vadd.f32 %v2537_v1, %v5890_v29 }
 0x77f   :  { %v2582_v4 = vpop.f32.mrb[84].mxu0  ;;  %v2623_v7 = vpop.f32.mrb[68].mxu1 }
 0x780   :  { %3878 = vtanh.f32 %v2538_v26  ;;  %v2629_v61 = vadd.f32 %v2582_v4, %v5891_v22  ;;  %v2584_v11 = vpop.f32.mrb[85].mxu0  ;;  %v3570_v56 = vpop.f32.mrb[69].mxu1  ;;  %v2643_v5 = vadd.f32 %v5392_v49, %v2623_v7  ;;  %v5894_v26 = vld [vmem:[#allocation37_spill] sm:$0xff]  ;;  %v5895_v22 = vld [vmem:[#allocation38_spill] sm:$0xff] }
 0x781   :  { %v2630_v23 = vadd.f32 %v2584_v11, %v5892_v13  ;;  %v2586_v50 = vpop.f32.mrb[86].mxu0  ;;  %v2626_v25 = vpop.f32.mrb[70].mxu1  ;;  %3880 = vrcp.f32 %v2531_v55 }
 0x782   :  { %v3070_v47 = vmul.f32 -1.442695, %v2629_v61  ;;  %v2587_v43 = vpop.f32.mrb[87].mxu0  ;;  %v3571_v62 = vpop.f32.mrb[71].mxu1 }
 0x783   :  { %v3071_v57 = vmul.f32 -1.442695, %v2630_v23 }
 0x784   :  { %3882 = vpow2.f32 %v3070_v47 }
 0x785   :  { %3884 = vpow2.f32 %v3071_v57  ;;  %v5896_v57 = vld [vmem:[#allocation33_spill] sm:$0xff] }
 0x78a   :  { %v3879_v16 = vpop.eup %3878 }
 0x78b   :  { %v2540_v54 = vsub.f32 %v5470_v2, %v3879_v16  ;;  %v3881_v28 = vpop.eup %3880  ;;  %v3975_v2 = vld [vmem:[%s5706_s5 + $0xc0] ss:$12 sps:$4 sm:$0xff]  }
 0x78d   :  { %v2541_v58 = vmul.f32 %v3881_v28, %v2540_v54 }
 0x78e   :  { %v3883_v63 = vpop.eup %3882 }
 0x78f   :  { %v2637_v24 = vadd.f32 1.0, %v3883_v63  ;;  %v5590_v15 = vadd.f32 %v3879_v16, %v2541_v58 }
 0x791   :  { %3886 = vrcp.f32 %v2637_v24  ;;  %v2543_v44 = vpack.c.bf16 %v5590_v15, %v5590_v15 }
 0x793   :  { %2544 = vst [vmem:[%s5709_s7 + $0x18] sm:$0xf] %v2543_v44  ;;  %2688 = vmatmul.mubr.bf16.vlgmr.msra.gmra.mrb[88].mxu0 %v2543_v44  ;;  %3589 = vmatmul.mubr.bf16.vlgmr.msra.gmra.mrb[72].mxu1 %v2543_v44 }
 0x794   :  { %2763 = vmatpush1.bf16.msra.mxu0 %v3975_v2  ;;  %3593 = vmatpush3.bf16.msra.mxu1 %v3976_v45  ;;  %v5897_v2 = vld [vmem:[#allocation39_spill] sm:$0xff] }
 0x795   :  { %2764 = vmatprep.subr.bf16.mxu0 %v3977_v0  ;;  %3594 = vmatprep.subr.bf16.mxu1 %v5813_v12 }
 0x796   :  { %2794 = vmatprep.mubr.bf16.mxu0 %v5814_v6  ;;  %3608 = vmatprep.mubr.msk.bf16.mxu1 %vm4000_vm0, %v5813_v12  ;;  %v3885_v6 = vpop.eup %3884 }
 0x797   :  { %v2638_v51 = vadd.f32 1.0, %v3885_v6 }
 0x798   :  { %2765 = vmatpush1.bf16.msra.mxu0 %v3978_v17  ;;  %3595 = vmatpush3.bf16.msra.mxu1 %v3979_v53  ;;  %v5898_v53 = vld [vmem:[#allocation40_spill] sm:$0xff] }
 0x799   :  { %2766 = vmatprep.subr.bf16.mxu0 %v3980_v14  ;;  %3596 = vmatprep.subr.bf16.mxu1 %v5813_v12 }
 0x79b   :  { %v3887_v48 = vpop.eup %3886 }
 0x79c   :  { %v2644_v8 = vmul.f32 %v3887_v48, %v2643_v5  ;;  %2767 = vmatpush1.bf16.msra.mxu0 %v3981_v20  ;;  %3597 = vmatpush3.bf16.msra.mxu1 %v3982_v46 }
 0x79d   :  { %2768 = vmatprep.subr.bf16.mxu0 %v3983_v59  ;;  %3598 = vmatprep.subr.bf16.mxu1 %v5813_v12 }
 0x79e   :  { %v2645_v27 = vadd.f32 %v2644_v8, %v5893_v52 }
 0x7a0   :  { %3888 = vtanh.f32 %v2645_v27  ;;  %2769 = vmatpush1.bf16.msra.mxu0 %v3984_v19  ;;  %3599 = vmatpush3.bf16.msra.mxu1 %v3985_v18 }
 0x7a1   :  { %2770 = vmatprep.subr.bf16.mxu0 %v3986_v32  ;;  %3600 = vmatprep.subr.bf16.mxu1 %v5813_v12  ;;  %3890 = vrcp.f32 %v2638_v51 }
 0x7a4   :  { %2771 = vmatpush1.bf16.msra.mxu0 %v3987_v33  ;;  %3601 = vmatpush3.bf16.msra.mxu1 %v3988_v34 }
 0x7a5   :  { %2772 = vmatprep.subr.bf16.mxu0 %v3989_v35  ;;  %3602 = vmatprep.subr.bf16.mxu1 %v5813_v12 }
 0x7a8   :  { %2773 = vmatpush1.bf16.msra.mxu0 %v3990_v36  ;;  %3603 = vmatpush3.bf16.msra.mxu1 %v3991_v41  ;;  %v5899_v41 = vld [vmem:[#allocation48_spill] sm:$0xff] }
 0x7a9   :  { %2774 = vmatprep.subr.bf16.mxu0 %v3992_v37  ;;  %3604 = vmatprep.subr.bf16.mxu1 %v5813_v12 }
 0x7aa   :  { %v3889_v42 = vpop.eup %3888 }
 0x7ab   :  { %v2647_v30 = vsub.f32 %v5511_v10, %v3889_v42  ;;  %v3891_v21 = vpop.eup %3890 }
 0x7ac   :  { %2775 = vmatpush1.bf16.msra.mxu0 %v3993_v38  ;;  %3605 = vmatpush3.bf16.msra.mxu1 %v3994_v39 }
 0x7ad   :  { %2776 = vmatprep.subr.bf16.mxu0 %v3995_v31  ;;  %3606 = vmatprep.subr.bf16.mxu1 %v5813_v12  ;;  %v2648_v40 = vmul.f32 %v3891_v21, %v2647_v30 }
 0x7af   :  { %v5673_v10 = vadd.f32 %v3889_v42, %v2648_v40 }
 0x7b0   :  { %2777 = vmatpush1.bf16.msra.mxu0 %v3996_v60  ;;  %3607 = vmatpush3.bf16.msra.mxu1 %v3997_v3 }
 0x7b1   :  { %v2650_v1 = vpack.c.bf16 %v5673_v10, %v5673_v10 }
 0x7b3   :  { %2651 = vst [vmem:[%s5710_s8 + $0x4] sm:$0xf] %v2650_v1  ;;  %2795 = vmatmul.mubr.bf16.vlgmr.msra.gmra.mrb[92].mxu0 %v2650_v1  ;;  %3609 = vmatmul.mubr.bf16.vlgmr.msra.gmra.mrb[76].mxu1 %v2650_v1 }
 0x866   :  { %v2689_v12 = vpop.f32.mrb[88].mxu0  ;;  %v2730_v29 = vpop.f32.mrb[72].mxu1 }
 0x867   :  { %v2736_v55 = vadd.f32 %v2689_v12, %v5894_v26  ;;  %v2691_v4 = vpop.f32.mrb[89].mxu0  ;;  %v3590_v7 = vpop.f32.mrb[73].mxu1  ;;  %v2750_v16 = vadd.f32 %v5883_v9, %v2730_v29 }
 0x868   :  { %v2737_v61 = vadd.f32 %v2691_v4, %v5895_v22  ;;  %v2693_v11 = vpop.f32.mrb[90].mxu0  ;;  %v2733_v56 = vpop.f32.mrb[74].mxu1 }
 0x869   :  { %v3072_v13 = vmul.f32 -1.442695, %v2736_v55  ;;  %v2694_v23 = vpop.f32.mrb[91].mxu0  ;;  %v3591_v50 = vpop.f32.mrb[75].mxu1 }
 0x86a   :  { %v3073_v25 = vmul.f32 -1.442695, %v2737_v61 }
 0x86b   :  { %3892 = vpow2.f32 %v3072_v13 }
 0x86c   :  { %3894 = vpow2.f32 %v3073_v25 }
 0x875   :  { %v3893_v47 = vpop.eup %3892 }
 0x876   :  { %v2744_v43 = vadd.f32 1.0, %v3893_v47  ;;  %v3895_v62 = vpop.eup %3894 }
 0x877   :  { %v2745_v63 = vadd.f32 1.0, %v3895_v62 }
 0x878   :  { %3896 = vrcp.f32 %v2744_v43 }
 0x882   :  { %v3897_v54 = vpop.eup %3896 }
 0x883   :  { %v2751_v28 = vmul.f32 %v3897_v54, %v2750_v16 }
 0x885   :  { %v2752_v58 = vadd.f32 %v2751_v28, %v5896_v57 }
 0x886   :  { %v2796_v24 = vpop.f32.mrb[92].mxu0  ;;  %v2837_v44 = vpop.f32.mrb[76].mxu1 }
 0x887   :  { %3898 = vtanh.f32 %v2752_v58  ;;  %v2843_v45 = vadd.f32 %v2796_v24, %v5897_v2  ;;  %v2798_v0 = vpop.f32.mrb[93].mxu0  ;;  %v3610_v17 = vpop.f32.mrb[77].mxu1  ;;  %v2857_v34 = vadd.f32 %v5392_v49, %v2837_v44 }
 0x888   :  { %v2844_v14 = vadd.f32 %v2798_v0, %v5898_v53  ;;  %v2800_v6 = vpop.f32.mrb[94].mxu0  ;;  %v2840_v5 = vpop.f32.mrb[78].mxu1  ;;  %3900 = vrcp.f32 %v2745_v63 }
 0x889   :  { %v3074_v48 = vmul.f32 -1.442695, %v2843_v45  ;;  %v2801_v8 = vpop.f32.mrb[95].mxu0  ;;  %v3611_v9 = vpop.f32.mrb[79].mxu1 }
 0x88a   :  { %v3075_v52 = vmul.f32 -1.442695, %v2844_v14 }
 0x88b   :  { %3902 = vpow2.f32 %v3074_v48 }
 0x88c   :  { %3904 = vpow2.f32 %v3075_v52 }
 0x891   :  { %v3899_v20 = vpop.eup %3898 }
 0x892   :  { %v2754_v46 = vsub.f32 %v5590_v15, %v3899_v20  ;;  %v3901_v59 = vpop.eup %3900 }
 0x894   :  { %v2755_v27 = vmul.f32 %v3901_v59, %v2754_v46 }
 0x895   :  { %v3903_v51 = vpop.eup %3902 }
 0x896   :  { %v2756_v19 = vadd.f32 %v3899_v20, %v2755_v27  ;;  %v2851_v18 = vadd.f32 1.0, %v3903_v51  ;;  %v3905_v33 = vpop.eup %3904 }
 0x897   :  { %v2852_v37 = vadd.f32 1.0, %v3905_v33 }
 0x898   :  { %v2757_v32 = vpack.c.bf16 %v2756_v19, %v2756_v19  ;;  %3906 = vrcp.f32 %v2851_v18 }
 0x89a   :  { %2758 = vst [vmem:[%s5709_s7 + $0x1c] sm:$0xf] %v2757_v32 }
 0x8a2   :  { %v3907_v35 = vpop.eup %3906 }
 0x8a3   :  { %v2858_v36 = vmul.f32 %v3907_v35, %v2857_v34 }
 0x8a5   :  { %v2859_v15 = vadd.f32 %v2858_v36, %v5899_v41 }
 0x8a7   :  { %3908 = vtanh.f32 %v2859_v15 }
 0x8a8   :  { %3910 = vrcp.f32 %v2852_v37 }
 0x8b1   :  { %v3909_v42 = vpop.eup %3908 }
 0x8b2   :  { %v2861_v30 = vsub.f32 %v5673_v10, %v3909_v42  ;;  %v3911_v21 = vpop.eup %3910 }
 0x8b4   :  { %v2862_v38 = vmul.f32 %v3911_v21, %v2861_v30 }
 0x8b6   :  { %v2863_v39 = vadd.f32 %v3909_v42, %v2862_v38 }
 0x8b8   :  { %v2864_v31 = vpack.c.bf16 %v2863_v39, %v2863_v39 }
 0x8ba   :  { %2865 = vst [vmem:[%s5710_s8] sm:$0xf] %v2864_v31 }

// kernel: count_rnn_forward.4
= control target key start
LH: loop header
LB: loop body
LE: loop exit
PB: predicated region body
PF: predicated region fallthrough
CT: control target
= control target key end

     0   :  { %v6886_v1 = vmov 0   ;;  %vm4992_vm0 = vmmov 0   ;;  %s6873_s5 = inlined_call_operand.vmem [shape: bf16[128,384], index: 5, kind: input, shape index: {}]   ;;  %s6874_s1 = inlined_call_operand.vmem [shape: bf16[64,128], index: 1, kind: input, shape index: {}, may-alias: {1,3}]   ;;  %s6875_s4 = inlined_call_operand.vmem [shape: bf16[128,384], index: 4, kind: input, shape index: {}]   ;;  %s6876_s0 = inlined_call_operand.vmem [shape: bf16[64,128], index: 0, kind: input, shape index: {}, may-alias: {0,2}]   ;;  %s6877_s7 = inlined_call_operand.vmem [shape: bf16[128,384], index: 7, kind: input, shape index: {}]   ;;  %s6878_s3 = inlined_call_operand.vmem [shape: bf16[64,128], index: 3, kind: input, shape index: {}, may-alias: {1,3}]   ;;  %s6879_s6 = inlined_call_operand.vmem [shape: bf16[128,384], index: 6, kind: input, shape index: {}]   ;;  %s6880_s2 = inlined_call_operand.vmem [shape: bf16[64,128], index: 2, kind: input, shape index: {}, may-alias: {0,2}]   ;;  %s6881_s9 = inlined_call_operand.vmem [shape: bf16[2,128,384], index: 9, kind: input, shape index: {}]   ;;  %s6882_s8 = inlined_call_operand.vmem [shape: f32[2,1,384], index: 8, kind: input, shape index: {}]   ;;  %s6883_s10 = inlined_call_operand.vmem [shape: f32[2,1,128], index: 10, kind: input, shape index: {}]   ;;  %s6884_s11 = inlined_call_operand.vmem [shape: bf16[64,128], index: 11, kind: output, shape index: {0}]   ;;  %s6885_s12 = inlined_call_operand.vmem [shape: bf16[64,128], index: 12, kind: output, shape index: {1}]  }
   0x1   :  { %v4540_v0 = vld [vmem:[%s6873_s5 + $0x4] ss:$12 sps:$4 sm:$0xff]   ;;  %370 = vmatprep.mubr.bf16.mxu0 %v6886_v1  ;;  %v4542_v2 = vld [vmem:[%s6873_s5 + $0x8] ss:$12 sps:$4 sm:$0xff]   ;;  %v4543_v3 = vld [vmem:[%s6873_s5] ss:$12 sps:$4 sm:$0xff]  }
   0x2   :  { %338 = vmatprep.subr.bf16.mxu0 %v4540_v0  ;;  %4072 = vmatprep.subr.bf16.mxu1 %v4542_v2  ;;  %v4544_v4 = vld [vmem:[%s6873_s5 + $0x1c] ss:$12 sps:$4 sm:$0xff]   ;;  %v4546_v5 = vld [vmem:[%s6873_s5 + $0x20] ss:$12 sps:$4 sm:$0xff]   ;;  %v4547_v6 = vld [vmem:[%s6873_s5 + $0x18] ss:$12 sps:$4 sm:$0xff]  }
   0x3   :  { %339 = vmatpush1.bf16.msra.mxu0 %v4543_v3  ;;  %4073 = vmatpush3.bf16.msra.mxu1 %v4542_v2  ;;  %v4548_v7 = vld [vmem:[%s6873_s5 + $0x34] ss:$12 sps:$4 sm:$0xff]   ;;  %v4550_v8 = vld [vmem:[%s6873_s5 + $0x38] ss:$12 sps:$4 sm:$0xff]   ;;  %v4551_v9 = vld [vmem:[%s6873_s5 + $0x30] ss:$12 sps:$4 sm:$0xff]  }
   0x4   :  { %340 = vmatprep.subr.bf16.mxu0 %v4544_v4  ;;  %4074 = vmatprep.subr.bf16.mxu1 %v4546_v5  ;;  %v4552_v10 = vld [vmem:[%s6873_s5 + $0x4c] ss:$12 sps:$4 sm:$0xff]   ;;  %v4554_v11 = vld [vmem:[%s6873_s5 + $0x50] ss:$12 sps:$4 sm:$0xff]   ;;  %v4555_v12 = vld [vmem:[%s6873_s5 + $0x48] ss:$12 sps:$4 sm:$0xff]  }
   0x5   :  { %v4556_v13 = vld [vmem:[%s6873_s5 + $0x64] ss:$12 sps:$4 sm:$0xff]   ;;  %v4558_v14 = vld [vmem:[%s6873_s5 + $0x68] ss:$12 sps:$4 sm:$0xff]   ;;  %v4559_v15 = vld [vmem:[%s6873_s5 + $0x60] ss:$12 sps:$4 sm:$0xff]  }
   0x6   :  { %v4560_v16 = vld [vmem:[%s6873_s5 + $0x7c] ss:$12 sps:$4 sm:$0xff]   ;;  %v4562_v17 = vld [vmem:[%s6873_s5 + $0x80] ss:$12 sps:$4 sm:$0xff]   ;;  %v4563_v19 = vld [vmem:[%s6873_s5 + $0x78] ss:$12 sps:$4 sm:$0xff]  }
   0x7   :  { %341 = vmatpush1.bf16.msra.mxu0 %v4547_v6  ;;  %4075 = vmatpush3.bf16.msra.mxu1 %v4546_v5  ;;  %v4572_v18 = vld [vmem:[%s6874_s1] sm:$0xff]   ;;  %v4567_v22 = vld [vmem:[%s6873_s5 + $0x90] ss:$12 sps:$4 sm:$0xff]   ;;  %v4568_v23 = vld [vmem:[%s6873_s5 + $0xac] ss:$12 sps:$4 sm:$0xff]  }
   0x8   :  { %342 = vmatprep.subr.bf16.mxu0 %v4548_v7  ;;  %4076 = vmatprep.subr.bf16.mxu1 %v4550_v8  ;;  %v4564_v20 = vld [vmem:[%s6873_s5 + $0x94] ss:$12 sps:$4 sm:$0xff]   ;;  %v4566_v21 = vld [vmem:[%s6873_s5 + $0x98] ss:$12 sps:$4 sm:$0xff]   ;;  %v4570_v24 = vld [vmem:[%s6873_s5 + $0xb0] ss:$12 sps:$4 sm:$0xff]  }
   0x9   :  { %4088 = vmatprep.mubr.bf16.mxu1 %v4572_v18  ;;  %v4571_v25 = vld [vmem:[%s6873_s5 + $0xa8] ss:$12 sps:$4 sm:$0xff]   ;;  %v4575_v26 = vld [vmem:[%s6875_s4 + $0x4] ss:$12 sps:$4 sm:$0xff]   ;;  %v4573_v28 = vld [vmem:[%s6875_s4] ss:$12 sps:$4 sm:$0xff]  }
   0xa   :  { %v4576_v27 = vld [vmem:[%s6875_s4 + $0x8] ss:$12 sps:$4 sm:$0xff]   ;;  %v4581_v31 = vld [vmem:[%s6875_s4 + $0x20] ss:$12 sps:$4 sm:$0xff]   ;;  %v4578_v32 = vld [vmem:[%s6875_s4 + $0x18] ss:$12 sps:$4 sm:$0xff]  }
   0xb   :  { %343 = vmatpush1.bf16.msra.mxu0 %v4551_v9  ;;  %4077 = vmatpush3.bf16.msra.mxu1 %v4550_v8  ;;  %v4577_v29 = vld [vmem:[%s6874_s1 + $0x8] sm:$0xff]   ;;  %v4590_v33 = vld [vmem:[%s6874_s1 + $0x10] sm:$0xff]   ;;  %v4585_v35 = vld [vmem:[%s6875_s4 + $0x38] ss:$12 sps:$4 sm:$0xff]  }
   0xc   :  { %344 = vmatprep.subr.bf16.mxu0 %v4552_v10  ;;  %4078 = vmatprep.subr.bf16.mxu1 %v4554_v11  ;;  %v4580_v30 = vld [vmem:[%s6875_s4 + $0x1c] ss:$12 sps:$4 sm:$0xff]   ;;  %v4584_v34 = vld [vmem:[%s6875_s4 + $0x34] ss:$12 sps:$4 sm:$0xff]   ;;  %v4588_v38 = vld [vmem:[%s6875_s4 + $0x4c] ss:$12 sps:$4 sm:$0xff]  }
   0xd   :  { %v4582_v36 = vld [vmem:[%s6875_s4 + $0x30] ss:$12 sps:$4 sm:$0xff]   ;;  %v4608_v40 = vld [vmem:[%s6876_s0] sm:$0xff]   ;;  %v4586_v41 = vld [vmem:[%s6875_s4 + $0x48] ss:$12 sps:$4 sm:$0xff]  }
   0xe   :  { %v4599_v37 = vld [vmem:[%s6874_s1 + $0x18] sm:$0xff]   ;;  %v4593_v42 = vld [vmem:[%s6875_s4 + $0x64] ss:$12 sps:$4 sm:$0xff]   ;;  %v4594_v43 = vld [vmem:[%s6875_s4 + $0x68] ss:$12 sps:$4 sm:$0xff]  }
   0xf   :  { %345 = vmatpush1.bf16.msra.mxu0 %v4555_v12  ;;  %4079 = vmatpush3.bf16.msra.mxu1 %v4554_v11  ;;  %v4589_v39 = vld [vmem:[%s6875_s4 + $0x50] ss:$12 sps:$4 sm:$0xff]   ;;  %v4591_v44 = vld [vmem:[%s6875_s4 + $0x60] ss:$12 sps:$4 sm:$0xff]   ;;  %v4595_v47 = vld [vmem:[%s6875_s4 + $0x78] ss:$12 sps:$4 sm:$0xff]  }
  0x10   :  { %346 = vmatprep.subr.bf16.mxu0 %v4556_v13  ;;  %4080 = vmatprep.subr.bf16.mxu1 %v4558_v14  ;;  %v4597_v45 = vld [vmem:[%s6875_s4 + $0x7c] ss:$12 sps:$4 sm:$0xff]   ;;  %v4598_v46 = vld [vmem:[%s6875_s4 + $0x80] ss:$12 sps:$4 sm:$0xff]   ;;  %v4603_v49 = vld [vmem:[%s6875_s4 + $0x98] ss:$12 sps:$4 sm:$0xff]  }
  0x11   :  { %v4602_v48 = vld [vmem:[%s6875_s4 + $0x94] ss:$12 sps:$4 sm:$0xff]   ;;  %v4600_v50 = vld [vmem:[%s6875_s4 + $0x90] ss:$12 sps:$4 sm:$0xff]   ;;  %v4606_v51 = vld [vmem:[%s6875_s4 + $0xac] ss:$12 sps:$4 sm:$0xff]  }
  0x12   :  { %v4607_v52 = vld [vmem:[%s6875_s4 + $0xb0] ss:$12 sps:$4 sm:$0xff]   ;;  %v4604_v53 = vld [vmem:[%s6875_s4 + $0xa8] ss:$12 sps:$4 sm:$0xff]   ;;  %v4610_v57 = vld [vmem:[%s6877_s7] ss:$12 sps:$4 sm:$0xff]  }
  0x13   :  { %347 = vmatpush1.bf16.msra.mxu0 %v4559_v15  ;;  %4081 = vmatpush3.bf16.msra.mxu1 %v4558_v14  ;;  %v4612_v54 = vld [vmem:[%s6877_s7 + $0x4] ss:$12 sps:$4 sm:$0xff]   ;;  %v4613_v55 = vld [vmem:[%s6877_s7 + $0x8] ss:$12 sps:$4 sm:$0xff]   ;;  %v4617_v59 = vld [vmem:[%s6877_s7 + $0x20] ss:$12 sps:$4 sm:$0xff]  }
  0x14   :  { %348 = vmatprep.subr.bf16.mxu0 %v4560_v16  ;;  %4082 = vmatprep.subr.bf16.mxu1 %v4562_v17  ;;  %v4609_v56 = vld [vmem:[%s6876_s0 + $0x8] sm:$0xff]   ;;  %v4626_v60 = vld [vmem:[%s6876_s0 + $0x10] sm:$0xff]   ;;  %v4614_v61 = vld [vmem:[%s6877_s7 + $0x18] ss:$12 sps:$4 sm:$0xff]  }
  0x15   :  { %v4616_v58 = vld [vmem:[%s6877_s7 + $0x1c] ss:$12 sps:$4 sm:$0xff]   ;;  %v4620_v62 = vld [vmem:[%s6877_s7 + $0x34] ss:$12 sps:$4 sm:$0xff]   ;;  %v4621_v63 = vld [vmem:[%s6877_s7 + $0x38] ss:$12 sps:$4 sm:$0xff]  }
  0x16   :  { %v4618_v0 = vld [vmem:[%s6877_s7 + $0x30] ss:$12 sps:$4 sm:$0xff]   ;;  %v4624_v3 = vld [vmem:[%s6877_s7 + $0x4c] ss:$12 sps:$4 sm:$0xff]   ;;  %v4644_v5 = vld [vmem:[%s6878_s3] sm:$0xff]  }
  0x17   :  { %349 = vmatpush1.bf16.msra.mxu0 %v4563_v19  ;;  %4083 = vmatpush3.bf16.msra.mxu1 %v4562_v17  ;;  %v4627_v2 = vld [vmem:[%s6876_s0 + $0x18] sm:$0xff]   ;;  %v4622_v6 = vld [vmem:[%s6877_s7 + $0x48] ss:$12 sps:$4 sm:$0xff]   ;;  %v4630_v7 = vld [vmem:[%s6877_s7 + $0x64] ss:$12 sps:$4 sm:$0xff]  }
  0x18   :  { %350 = vmatprep.subr.bf16.mxu0 %v4564_v20  ;;  %4084 = vmatprep.subr.bf16.mxu1 %v4566_v21  ;;  %v4625_v4 = vld [vmem:[%s6877_s7 + $0x50] ss:$12 sps:$4 sm:$0xff]   ;;  %v4631_v8 = vld [vmem:[%s6877_s7 + $0x68] ss:$12 sps:$4 sm:$0xff]   ;;  %v4628_v9 = vld [vmem:[%s6877_s7 + $0x60] ss:$12 sps:$4 sm:$0xff]  }
  0x19   :  { %v4634_v10 = vld [vmem:[%s6877_s7 + $0x7c] ss:$12 sps:$4 sm:$0xff]   ;;  %v4635_v11 = vld [vmem:[%s6877_s7 + $0x80] ss:$12 sps:$4 sm:$0xff]   ;;  %v4632_v12 = vld [vmem:[%s6877_s7 + $0x78] ss:$12 sps:$4 sm:$0xff]  }
  0x1a   :  { %v4638_v13 = vld [vmem:[%s6877_s7 + $0x94] ss:$12 sps:$4 sm:$0xff]   ;;  %v4639_v14 = vld [vmem:[%s6877_s7 + $0x98] ss:$12 sps:$4 sm:$0xff]   ;;  %v4636_v15 = vld [vmem:[%s6877_s7 + $0x90] ss:$12 sps:$4 sm:$0xff]  }
  0x1b   :  { %351 = vmatpush1.bf16.msra.mxu0 %v4567_v22  ;;  %4085 = vmatpush3.bf16.msra.mxu1 %v4566_v21  ;;  %v4642_v16 = vld [vmem:[%s6877_s7 + $0xac] ss:$12 sps:$4 sm:$0xff]   ;;  %v4643_v17 = vld [vmem:[%s6877_s7 + $0xb0] ss:$12 sps:$4 sm:$0xff]   ;;  %v4648_v20 = vld [vmem:[%s6879_s6 + $0x8] ss:$12 sps:$4 sm:$0xff]  }
  0x1c   :  { %352 = vmatprep.subr.bf16.mxu0 %v4568_v23  ;;  %4086 = vmatprep.subr.bf16.mxu1 %v4570_v24  ;;  %v4647_v19 = vld [vmem:[%s6879_s6 + $0x4] ss:$12 sps:$4 sm:$0xff]   ;;  %v4645_v21 = vld [vmem:[%s6879_s6] ss:$12 sps:$4 sm:$0xff]   ;;  %v4652_v23 = vld [vmem:[%s6879_s6 + $0x1c] ss:$12 sps:$4 sm:$0xff]  }
  0x1d   :  { %v4649_v22 = vld [vmem:[%s6878_s3 + $0x8] sm:$0xff]  }
  0x1f   :  { %353 = vmatpush1.bf16.msra.mxu0 %v4571_v25  ;;  %4087 = vmatpush3.bf16.msra.mxu1 %v4570_v24  ;;  %v4653_v24 = vld [vmem:[%s6879_s6 + $0x20] ss:$12 sps:$4 sm:$0xff]   ;;  %v4650_v25 = vld [vmem:[%s6879_s6 + $0x18] ss:$12 sps:$4 sm:$0xff]  }
  0x20   :  { %628 = vmatprep.subr.bf16.mxu0 %v4575_v26  ;;  %4096 = vmatprep.subr.bf16.mxu1 %v4576_v27  ;;  %v4656_v26 = vld [vmem:[%s6879_s6 + $0x34] ss:$12 sps:$4 sm:$0xff]  }
  0x22   :  { %371 = vmatmul.mubr.bf16.vlgmr.msra.gmra.mrb[0].mxu0 %v4572_v18  ;;  %4089 = vmatmul.mubr.bf16.vlgmr.msra.gmra.mrb[0].mxu1 %v4577_v29  ;;  %v4640_v18 = vld [vmem:[%s6877_s7 + $0xa8] ss:$12 sps:$4 sm:$0xff]  }
  0x23   :  { %629 = vmatpush1.bf16.msra.mxu0 %v4573_v28  ;;  %4097 = vmatpush3.bf16.msra.mxu1 %v4576_v27  ;;  %v4662_v27 = vld [vmem:[%s6878_s3 + $0x10] sm:$0xff]   ;;  %v4657_v28 = vld [vmem:[%s6879_s6 + $0x38] ss:$12 sps:$4 sm:$0xff]  }
  0x24   :  { %630 = vmatprep.subr.bf16.mxu0 %v4580_v30  ;;  %4098 = vmatprep.subr.bf16.mxu1 %v4581_v31  ;;  %v4654_v30 = vld [vmem:[%s6879_s6 + $0x30] ss:$12 sps:$4 sm:$0xff]  }
  0x25   :  { %380 = vmatprep.mubr.bf16.mxu0 %v6886_v1  ;;  %4092 = vmatprep.mubr.bf16.mxu1 %v4590_v33 }
  0x27   :  { %631 = vmatpush1.bf16.msra.mxu0 %v4578_v32  ;;  %4099 = vmatpush3.bf16.msra.mxu1 %v4581_v31  ;;  %v4660_v31 = vld [vmem:[%s6879_s6 + $0x4c] ss:$12 sps:$4 sm:$0xff]   ;;  %v4661_v32 = vld [vmem:[%s6879_s6 + $0x50] ss:$12 sps:$4 sm:$0xff]  }
  0x28   :  { %632 = vmatprep.subr.bf16.mxu0 %v4584_v34  ;;  %4100 = vmatprep.subr.bf16.mxu1 %v4585_v35  ;;  %v4658_v34 = vld [vmem:[%s6879_s6 + $0x48] ss:$12 sps:$4 sm:$0xff]  }
  0x2a   :  { %381 = vmatmul.mubr.bf16.gmra.mrb[4].mxu0 %v4577_v29  ;;  %4093 = vmatmul.mubr.bf16.gmra.mrb[4].mxu1 %v4599_v37  ;;  %v4671_v29 = vld [vmem:[%s6878_s3 + $0x18] sm:$0xff]  }
  0x2b   :  { %633 = vmatpush1.bf16.msra.mxu0 %v4582_v36  ;;  %4101 = vmatpush3.bf16.msra.mxu1 %v4585_v35  ;;  %v4665_v35 = vld [vmem:[%s6879_s6 + $0x64] ss:$12 sps:$4 sm:$0xff]   ;;  %v4666_v36 = vld [vmem:[%s6879_s6 + $0x68] ss:$12 sps:$4 sm:$0xff]  }
  0x2c   :  { %634 = vmatprep.subr.bf16.mxu0 %v4588_v38  ;;  %4102 = vmatprep.subr.bf16.mxu1 %v4589_v39  ;;  %v4669_v38 = vld [vmem:[%s6879_s6 + $0x7c] ss:$12 sps:$4 sm:$0xff]  }
  0x2d   :  { %390 = vmatprep.mubr.bf16.mxu0 %v6886_v1  ;;  %4112 = vmatprep.mubr.bf16.mxu1 %v4608_v40 }
  0x2f   :  { %635 = vmatpush1.bf16.msra.mxu0 %v4586_v41  ;;  %4103 = vmatpush3.bf16.msra.mxu1 %v4589_v39  ;;  %v4670_v39 = vld [vmem:[%s6879_s6 + $0x80] ss:$12 sps:$4 sm:$0xff]  }
  0x30   :  { %636 = vmatprep.subr.bf16.mxu0 %v4593_v42  ;;  %4104 = vmatprep.subr.bf16.mxu1 %v4594_v43  ;;  %v4674_v41 = vld [vmem:[%s6879_s6 + $0x94] ss:$12 sps:$4 sm:$0xff]   ;;  %v4675_v42 = vld [vmem:[%s6879_s6 + $0x98] ss:$12 sps:$4 sm:$0xff]  }
  0x32   :  { %391 = vmatmul.mubr.bf16.gmra.mrb[8].mxu0 %v4590_v33  ;;  %v4680_v33 = vld [vmem:[%s6880_s2] sm:$0xff]  }
  0x33   :  { %637 = vmatpush1.bf16.msra.mxu0 %v4591_v44  ;;  %4105 = vmatpush3.bf16.msra.mxu1 %v4594_v43  ;;  %v4672_v43 = vld [vmem:[%s6879_s6 + $0x90] ss:$12 sps:$4 sm:$0xff]   ;;  %v4678_v44 = vld [vmem:[%s6879_s6 + $0xac] ss:$12 sps:$4 sm:$0xff]  }
  0x34   :  { %638 = vmatprep.subr.bf16.mxu0 %v4597_v45  ;;  %4106 = vmatprep.subr.bf16.mxu1 %v4598_v46  ;;  %v4679_v45 = vld [vmem:[%s6879_s6 + $0xb0] ss:$12 sps:$4 sm:$0xff]  }
  0x35   :  { %400 = vmatprep.mubr.bf16.mxu0 %v6886_v1 }
  0x37   :  { %639 = vmatpush1.bf16.msra.mxu0 %v4595_v47  ;;  %4107 = vmatpush3.bf16.msra.mxu1 %v4598_v46  ;;  %v4676_v46 = vld [vmem:[%s6879_s6 + $0xa8] ss:$12 sps:$4 sm:$0xff]   ;;  %v5401_v47 = vld [vmem:[%s6881_s9 + $0x4] ss:$12 sps:$4 sm:$0xff]  }
  0x38   :  { %640 = vmatprep.subr.bf16.mxu0 %v4602_v48  ;;  %4108 = vmatprep.subr.bf16.mxu1 %v4603_v49  ;;  %v4681_v48 = vld [vmem:[%s6880_s2 + $0x8] sm:$0xff]  }
  0x3a   :  { %401 = vmatmul.mubr.bf16.gmra.mrb[12].mxu0 %v4599_v37  ;;  %v4663_v37 = vld [vmem:[%s6879_s6 + $0x60] ss:$12 sps:$4 sm:$0xff]  }
  0x3b   :  { %641 = vmatpush1.bf16.msra.mxu0 %v4600_v50  ;;  %4109 = vmatpush3.bf16.msra.mxu1 %v4603_v49  ;;  %v5410_v49 = vld [vmem:[%s6881_s9] ss:$12 sps:$4 sm:$0xff]   ;;  %v5416_v50 = vld [vmem:[%s6881_s9 + $0x1c] ss:$12 sps:$4 sm:$0xff]  }
  0x3c   :  { %642 = vmatprep.subr.bf16.mxu0 %v4606_v51  ;;  %4110 = vmatprep.subr.bf16.mxu1 %v4607_v52  ;;  %v4694_v51 = vld [vmem:[%s6880_s2 + $0x10] sm:$0xff]  }
  0x3d   :  { %660 = vmatprep.mubr.bf16.mxu0 %v6886_v1 }
  0x3f   :  { %643 = vmatpush1.bf16.msra.mxu0 %v4604_v53  ;;  %4111 = vmatpush3.bf16.msra.mxu1 %v4607_v52  ;;  %v6888_v52 = vmov 0.0   ;;  %v5425_v53 = vld [vmem:[%s6881_s9 + $0x8] ss:$12 sps:$4 sm:$0xff]  }
  0x40   :  { %1064 = vmatprep.subr.bf16.mxu0 %v4612_v54  ;;  %4120 = vmatprep.subr.bf16.mxu1 %v4613_v55  ;;  %v5431_v54 = vld [vmem:[%s6881_s9 + $0x18] ss:$12 sps:$4 sm:$0xff]  }
  0x42   :  { %661 = vmatmul.mubr.bf16.vlgmr.msra.gmra.mrb[0].mxu0 %v4608_v40  ;;  %4113 = vmatmul.mubr.bf16.vlgmr.msra.gmra.mrb[0].mxu1 %v4609_v56  ;;  %v4667_v40 = vld [vmem:[%s6879_s6 + $0x78] ss:$12 sps:$4 sm:$0xff]  }
  0x43   :  { %1065 = vmatpush1.bf16.msra.mxu0 %v4610_v57  ;;  %4121 = vmatpush3.bf16.msra.mxu1 %v4613_v55  ;;  %v5438_v55 = vld [vmem:[%s6881_s9 + $0x34] ss:$12 sps:$4 sm:$0xff]   ;;  %v4695_v57 = vld [vmem:[%s6880_s2 + $0x18] sm:$0xff]  }
  0x44   :  { %1066 = vmatprep.subr.bf16.mxu0 %v4616_v58  ;;  %4122 = vmatprep.subr.bf16.mxu1 %v4617_v59  ;;  %v5454_v58 = vld [vmem:[%s6881_s9 + $0x30] ss:$12 sps:$4 sm:$0xff]  }
  0x45   :  { %670 = vmatprep.mubr.bf16.mxu0 %v6886_v1  ;;  %4116 = vmatprep.mubr.bf16.mxu1 %v4626_v60 }
  0x47   :  { %1067 = vmatpush1.bf16.msra.mxu0 %v4614_v61  ;;  %4123 = vmatpush3.bf16.msra.mxu1 %v4617_v59  ;;  %v5460_v59 = vld [vmem:[%s6881_s9 + $0x4c] ss:$12 sps:$4 sm:$0xff]   ;;  %v5472_v61 = vld [vmem:[%s6881_s9 + $0x48] ss:$12 sps:$4 sm:$0xff]  }
  0x48   :  { %1068 = vmatprep.subr.bf16.mxu0 %v4620_v62  ;;  %4124 = vmatprep.subr.bf16.mxu1 %v4621_v63  ;;  %v5479_v62 = vld [vmem:[%s6881_s9 + $0x64] ss:$12 sps:$4 sm:$0xff]  }
  0x4a   :  { %671 = vmatmul.mubr.bf16.gmra.mrb[4].mxu0 %v4609_v56  ;;  %4117 = vmatmul.mubr.bf16.gmra.mrb[4].mxu1 %v4627_v2  ;;  %v5444_v56 = vld [vmem:[%s6881_s9 + $0x20] ss:$12 sps:$4 sm:$0xff]  }
  0x4b   :  { %1069 = vmatpush1.bf16.msra.mxu0 %v4618_v0  ;;  %4125 = vmatpush3.bf16.msra.mxu1 %v4621_v63  ;;  %v5486_v63 = vld [vmem:[%s6881_s9 + $0x50] ss:$12 sps:$4 sm:$0xff]   ;;  %v5495_v0 = vld [vmem:[%s6881_s9 + $0x60] ss:$12 sps:$4 sm:$0xff]  }
  0x4c   :  { %1070 = vmatprep.subr.bf16.mxu0 %v4624_v3  ;;  %4126 = vmatprep.subr.bf16.mxu1 %v4625_v4  ;;  %6938 = vst [vmem:[#allocation6_spill] sm:$0xff] %v5495_v0  ;;  %v5507_v3 = vld [vmem:[%s6881_s9 + $0x68] ss:$12 sps:$4 sm:$0xff]  }
  0x4d   :  { %680 = vmatprep.mubr.bf16.mxu0 %v6886_v1  ;;  %4136 = vmatprep.mubr.bf16.mxu1 %v4644_v5  ;;  %6940 = vst [vmem:[#allocation8_spill] sm:$0xff] %v5507_v3 }
  0x4f   :  { %1071 = vmatpush1.bf16.msra.mxu0 %v4622_v6  ;;  %4127 = vmatpush3.bf16.msra.mxu1 %v4625_v4  ;;  %v5514_v4 = vld [vmem:[%s6881_s9 + $0x78] ss:$12 sps:$4 sm:$0xff]   ;;  %v5527_v6 = vld [vmem:[%s6881_s9 + $0x80] ss:$12 sps:$4 sm:$0xff]  }
  0x50   :  { %1072 = vmatprep.subr.bf16.mxu0 %v4630_v7  ;;  %4128 = vmatprep.subr.bf16.mxu1 %v4631_v8  ;;  %6941 = vst [vmem:[#allocation9_spill] sm:$0xff] %v5514_v4  ;;  %6943 = vst [vmem:[#allocation11_spill] sm:$0xff] %v5527_v6  ;;  %v5534_v7 = vld [vmem:[%s6881_s9 + $0x90] ss:$12 sps:$4 sm:$0xff]  }
  0x51   :  { %6944 = vst [vmem:[#allocation12_spill] sm:$0xff] %v5534_v7 }
  0x52   :  { %681 = vmatmul.mubr.bf16.gmra.mrb[8].mxu0 %v4626_v60  ;;  %v5466_v60 = vld [vmem:[%s6881_s9 + $0x38] ss:$12 sps:$4 sm:$0xff]  }
  0x53   :  { %1073 = vmatpush1.bf16.msra.mxu0 %v4628_v9  ;;  %4129 = vmatpush3.bf16.msra.mxu1 %v4631_v8  ;;  %v5540_v8 = vld [vmem:[%s6881_s9 + $0xac] ss:$12 sps:$4 sm:$0xff]  }
  0x54   :  { %1074 = vmatprep.subr.bf16.mxu0 %v4634_v10  ;;  %4130 = vmatprep.subr.bf16.mxu1 %v4635_v11  ;;  %6945 = vst [vmem:[#allocation13_spill] sm:$0xff] %v5540_v8  ;;  %v5546_v9 = vld [vmem:[%s6881_s9 + $0x98] ss:$12 sps:$4 sm:$0xff]   ;;  %v5553_v10 = vld [vmem:[%s6881_s9 + $0xa8] ss:$12 sps:$4 sm:$0xff]  }
  0x55   :  { %690 = vmatprep.mubr.bf16.mxu0 %v6886_v1  ;;  %6946 = vst [vmem:[#allocation14_spill] sm:$0xff] %v5546_v9  ;;  %6947 = vst [vmem:[#allocation15_spill] sm:$0xff] %v5553_v10 }
  0x57   :  { %1075 = vmatpush1.bf16.msra.mxu0 %v4632_v12  ;;  %4131 = vmatpush3.bf16.msra.mxu1 %v4635_v11  ;;  %v5560_v11 = vld [vmem:[%s6881_s9 + $0xc4] ss:$12 sps:$4 sm:$0xff]  }
  0x58   :  { %1076 = vmatprep.subr.bf16.mxu0 %v4638_v13  ;;  %4132 = vmatprep.subr.bf16.mxu1 %v4639_v14  ;;  %6948 = vst [vmem:[#allocation16_spill] sm:$0xff] %v5560_v11  ;;  %v5566_v12 = vld [vmem:[%s6881_s9 + $0xb0] ss:$12 sps:$4 sm:$0xff]   ;;  %v5573_v13 = vld [vmem:[%s6881_s9 + $0xc0] ss:$12 sps:$4 sm:$0xff]  }
  0x59   :  { %6949 = vst [vmem:[#allocation17_spill] sm:$0xff] %v5566_v12 }
  0x5a   :  { %691 = vmatmul.mubr.bf16.gmra.mrb[12].mxu0 %v4627_v2  ;;  %v5501_v2 = vld [vmem:[%s6881_s9 + $0x7c] ss:$12 sps:$4 sm:$0xff]  }
  0x5b   :  { %1077 = vmatpush1.bf16.msra.mxu0 %v4636_v15  ;;  %4133 = vmatpush3.bf16.msra.mxu1 %v4639_v14  ;;  %6939 = vst [vmem:[#allocation7_spill] sm:$0xff] %v5501_v2  ;;  %v5579_v14 = vld [vmem:[%s6881_s9 + $0xdc] ss:$12 sps:$4 sm:$0xff]  }
  0x5c   :  { %1078 = vmatprep.subr.bf16.mxu0 %v4642_v16  ;;  %4134 = vmatprep.subr.bf16.mxu1 %v4643_v17  ;;  %v5585_v15 = vld [vmem:[%s6881_s9 + $0xc8] ss:$12 sps:$4 sm:$0xff]   ;;  %v4993_v16 = vmov 0.0|0.0  }
  0x5d   :  { %1096 = vmatprep.mubr.bf16.mxu0 %v6886_v1 }
  0x5f   :  { %1079 = vmatpush1.bf16.msra.mxu0 %v4640_v18  ;;  %4135 = vmatpush3.bf16.msra.mxu1 %v4643_v17  ;;  %v5592_v17 = vld [vmem:[%s6881_s9 + $0xd8] ss:$12 sps:$4 sm:$0xff]   ;;  %v5599_v18 = vld [vmem:[%s6881_s9 + $0xf4] ss:$12 sps:$4 sm:$0xff]  }
  0x60   :  { %1354 = vmatprep.subr.bf16.mxu0 %v4647_v19  ;;  %4144 = vmatprep.subr.bf16.mxu1 %v4648_v20  ;;  %v5605_v19 = vld [vmem:[%s6881_s9 + $0xe0] ss:$12 sps:$4 sm:$0xff]  }
  0x62   :  { %1097 = vmatmul.mubr.bf16.vlgmr.msra.gmra.mrb[16].mxu0 %v4644_v5  ;;  %4137 = vmatmul.mubr.bf16.vlgmr.msra.gmra.mrb[8].mxu1 %v4649_v22  ;;  %v5521_v5 = vld [vmem:[%s6881_s9 + $0x94] ss:$12 sps:$4 sm:$0xff]  }
  0x63   :  { %1355 = vmatpush1.bf16.msra.mxu0 %v4645_v21  ;;  %4145 = vmatpush3.bf16.msra.mxu1 %v4648_v20  ;;  %6942 = vst [vmem:[#allocation10_spill] sm:$0xff] %v5521_v5  ;;  %v5614_v20 = vld [vmem:[%s6881_s9 + $0xf0] ss:$12 sps:$4 sm:$0xff]   ;;  %v5620_v21 = vld [vmem:[%s6881_s9 + $0x10c] ss:$12 sps:$4 sm:$0xff]  }
  0x64   :  { %1356 = vmatprep.subr.bf16.mxu0 %v4652_v23  ;;  %4146 = vmatprep.subr.bf16.mxu1 %v4653_v24  ;;  %v5633_v23 = vld [vmem:[%s6881_s9 + $0x108] ss:$12 sps:$4 sm:$0xff]  }
  0x65   :  { %1106 = vmatprep.mubr.bf16.mxu0 %v6886_v1  ;;  %4140 = vmatprep.mubr.bf16.mxu1 %v4662_v27 }
  0x67   :  { %1357 = vmatpush1.bf16.msra.mxu0 %v4650_v25  ;;  %4147 = vmatpush3.bf16.msra.mxu1 %v4653_v24  ;;  %v5639_v24 = vld [vmem:[%s6881_s9 + $0x124] ss:$12 sps:$4 sm:$0xff]  }
  0x68   :  { %1358 = vmatprep.subr.bf16.mxu0 %v4656_v26  ;;  %4148 = vmatprep.subr.bf16.mxu1 %v4657_v28  ;;  %v5645_v25 = vld [vmem:[%s6881_s9 + $0x110] ss:$12 sps:$4 sm:$0xff]   ;;  %v5652_v26 = vld [vmem:[%s6881_s9 + $0x120] ss:$12 sps:$4 sm:$0xff]  }
  0x6a   :  { %1107 = vmatmul.mubr.bf16.gmra.mrb[20].mxu0 %v4649_v22  ;;  %4141 = vmatmul.mubr.bf16.gmra.mrb[12].mxu1 %v4671_v29  ;;  %v5626_v22 = vld [vmem:[%s6881_s9 + $0xf8] ss:$12 sps:$4 sm:$0xff]  }
  0x6b   :  { %1359 = vmatpush1.bf16.msra.mxu0 %v4654_v30  ;;  %4149 = vmatpush3.bf16.msra.mxu1 %v4657_v28  ;;  %v5664_v28 = vld [vmem:[%s6881_s9 + $0x128] ss:$12 sps:$4 sm:$0xff]  }
  0x6c   :  { %1360 = vmatprep.subr.bf16.mxu0 %v4660_v31  ;;  %4150 = vmatprep.subr.bf16.mxu1 %v4661_v32  ;;  %v5677_v30 = vld [vmem:[%s6881_s9 + $0x154] ss:$12 sps:$4 sm:$0xff]  }
  0x6d   :  { %1116 = vmatprep.mubr.bf16.mxu0 %v6886_v1  ;;  %4160 = vmatprep.mubr.bf16.mxu1 %v4680_v33  ;;  %v5683_v31 = vld [vmem:[%s6881_s9 + $0x140] ss:$12 sps:$4 sm:$0xff]  }
  0x6f   :  { %1361 = vmatpush1.bf16.msra.mxu0 %v4658_v34  ;;  %4151 = vmatpush3.bf16.msra.mxu1 %v4661_v32  ;;  %v5690_v32 = vld [vmem:[%s6881_s9 + $0x150] ss:$12 sps:$4 sm:$0xff]   ;;  %v5702_v34 = vld [vmem:[%s6881_s9 + $0x158] ss:$12 sps:$4 sm:$0xff]  }
  0x70   :  { %1362 = vmatprep.subr.bf16.mxu0 %v4665_v35  ;;  %4152 = vmatprep.subr.bf16.mxu1 %v4666_v36  ;;  %v5709_v35 = vld [vmem:[%s6881_s9 + $0x168] ss:$12 sps:$4 sm:$0xff]  }
  0x72   :  { %1117 = vmatmul.mubr.bf16.gmra.mrb[24].mxu0 %v4662_v27  ;;  %v5658_v27 = vld [vmem:[%s6881_s9 + $0x13c] ss:$12 sps:$4 sm:$0xff]  }
  0x73   :  { %1363 = vmatpush1.bf16.msra.mxu0 %v4663_v37  ;;  %4153 = vmatpush3.bf16.msra.mxu1 %v4666_v36  ;;  %v5716_v36 = vld [vmem:[%s6881_s9 + $0x170] ss:$12 sps:$4 sm:$0xff]   ;;  %v767_v37 = vlaneseq }
  0x74   :  { %1364 = vmatprep.subr.bf16.mxu0 %v4669_v38  ;;  %4154 = vmatprep.subr.bf16.mxu1 %v4670_v39 }
  0x75   :  { %1126 = vmatprep.mubr.bf16.mxu0 %v6886_v1  ;;  %v768_v38 = vshrl.u32 %v767_v37, 7 }
  0x77   :  { %1365 = vmatpush1.bf16.msra.mxu0 %v4667_v40  ;;  %4155 = vmatpush3.bf16.msra.mxu1 %v4670_v39  ;;  %v777_v39 = vsub.s32 2, %v768_v38  ;;  %v105_v40 = vld [vmem:[%s6882_s8] sm:$0x7] }
  0x78   :  { %1366 = vmatprep.subr.bf16.mxu0 %v4674_v41  ;;  %4156 = vmatprep.subr.bf16.mxu1 %v4675_v42  ;;  %v769_v41 = vsub.s32 0, %v768_v38 }
  0x7a   :  { %1127 = vmatmul.mubr.bf16.gmra.mrb[28].mxu0 %v4671_v29  ;;  %v5671_v29 = vld [vmem:[%s6881_s9 + $0x138] ss:$12 sps:$4 sm:$0xff]  }
  0x7b   :  { %1367 = vmatpush1.bf16.msra.mxu0 %v4672_v43  ;;  %4157 = vmatpush3.bf16.msra.mxu1 %v4675_v42  ;;  %v5761_v42 = vrot.slane %v105_v40, %v777_v39  ;;  %v773_v43 = vsub.s32 1, %v768_v38 }
  0x7c   :  { %1368 = vmatprep.subr.bf16.mxu0 %v4678_v44  ;;  %4158 = vmatprep.subr.bf16.mxu1 %v4679_v45 }
  0x7d   :  { %1386 = vmatprep.mubr.bf16.mxu0 %v6886_v1 }
  0x7f   :  { %1369 = vmatpush1.bf16.msra.mxu0 %v4676_v46  ;;  %4159 = vmatpush3.bf16.msra.mxu1 %v4679_v45  ;;  %v5765_v46 = vrot.slane %v105_v40, %v769_v41 }
  0x80   :  { %1758 = vmatprep.subr.bf16.mxu0 %v5401_v47  ;;  %4168 = vmatprep.subr.bf16.mxu1 %v6888_v52 }
  0x82   :  { %1387 = vmatmul.mubr.bf16.vlgmr.msra.gmra.mrb[16].mxu0 %v4680_v33  ;;  %4161 = vmatmul.mubr.bf16.vlgmr.msra.gmra.mrb[8].mxu1 %v4681_v48  ;;  %v5696_v33 = vld [vmem:[%s6881_s9 + $0x16c] ss:$12 sps:$4 sm:$0xff]  }
  0x83   :  { %1759 = vmatpush1.bf16.msra.mxu0 %v5410_v49  ;;  %1396 = vmatprep.mubr.bf16.mxu0 %v6886_v1 }
  0x84   :  { %1760 = vmatprep.subr.bf16.mxu0 %v5416_v50  ;;  %4164 = vmatprep.mubr.bf16.mxu1 %v4694_v51 }
  0x85   :  { %4169 = vmatpush3.bf16.msra.mxu1 %v5425_v53 }
  0x86   :  { %4170 = vmatprep.subr.bf16.mxu1 %v6888_v52 }
  0x87   :  { %1761 = vmatpush1.bf16.msra.mxu0 %v5431_v54 }
  0x88   :  { %1762 = vmatprep.subr.bf16.mxu0 %v5438_v55 }
  0x89   :  { %4171 = vmatpush3.bf16.msra.mxu1 %v5444_v56 }
  0x8a   :  { %1397 = vmatmul.mubr.bf16.gmra.mrb[20].mxu0 %v4681_v48  ;;  %4165 = vmatmul.mubr.bf16.gmra.mrb[12].mxu1 %v4695_v57 }
  0x8b   :  { %1763 = vmatpush1.bf16.msra.mxu0 %v5454_v58  ;;  %1406 = vmatprep.mubr.bf16.mxu0 %v6886_v1 }
  0x8c   :  { %1764 = vmatprep.subr.bf16.mxu0 %v5460_v59  ;;  %4172 = vmatprep.subr.bf16.mxu1 %v6888_v52 }
  0x8d   :  { %4173 = vmatpush3.bf16.msra.mxu1 %v5466_v60  ;;  %4184 = vmatprep.mubr.msk.bf16.mxu1 %vm4992_vm0, %v6888_v52 }
  0x8e   :  { %4174 = vmatprep.subr.bf16.mxu1 %v6888_v52 }
  0x8f   :  { %1765 = vmatpush1.bf16.msra.mxu0 %v5472_v61 }
  0x90   :  { %1766 = vmatprep.subr.bf16.mxu0 %v5479_v62 }
  0x91   :  { %4175 = vmatpush3.bf16.msra.mxu1 %v5486_v63 }
  0x92   :  { %1407 = vmatmul.mubr.bf16.gmra.mrb[24].mxu0 %v4694_v51  ;;  %4176 = vmatprep.subr.bf16.mxu1 %v6888_v52 }
  0x93   :  { %1767 = vmatpush1.bf16.msra.mxu0 %v5495_v0  ;;  %1416 = vmatprep.mubr.bf16.mxu0 %v6886_v1 }
  0x94   :  { %1768 = vmatprep.subr.bf16.mxu0 %v5501_v2 }
  0x95   :  { %4177 = vmatpush3.bf16.msra.mxu1 %v5507_v3 }
  0x96   :  { %4178 = vmatprep.subr.bf16.mxu1 %v6888_v52 }
  0x97   :  { %1769 = vmatpush1.bf16.msra.mxu0 %v5514_v4 }
  0x98   :  { %1770 = vmatprep.subr.bf16.mxu0 %v5521_v5 }
  0x99   :  { %4179 = vmatpush3.bf16.msra.mxu1 %v5527_v6 }
  0x9a   :  { %1417 = vmatmul.mubr.bf16.gmra.mrb[28].mxu0 %v4695_v57  ;;  %4180 = vmatprep.subr.bf16.mxu1 %v6888_v52 }
  0x9b   :  { %1771 = vmatpush1.bf16.msra.mxu0 %v5534_v7  ;;  %1790 = vmatprep.mubr.bf16.mxu0 %v6886_v1 }
  0x9c   :  { %1772 = vmatprep.subr.bf16.mxu0 %v5540_v8 }
  0x9d   :  { %4181 = vmatpush3.bf16.msra.mxu1 %v5546_v9 }
  0x9e   :  { %4182 = vmatprep.subr.bf16.mxu1 %v6888_v52 }
  0x9f   :  { %1773 = vmatpush1.bf16.msra.mxu0 %v5553_v10 }
  0xa0   :  { %2000 = vmatprep.subr.bf16.mxu0 %v5560_v11 }
  0xa1   :  { %4183 = vmatpush3.bf16.msra.mxu1 %v5566_v12 }
  0xa2   :  { %1791 = vmatmul.mubr.bf16.vlgmr.msra.gmra.mrb[32].mxu0 %v4993_v16  ;;  %4188 = vmatprep.subr.bf16.mxu1 %v6888_v52 }
  0xa3   :  { %2001 = vmatpush1.bf16.msra.mxu0 %v5573_v13  ;;  %2032 = vmatprep.mubr.bf16.mxu0 %v6886_v1 }
  0xa4   :  { %2002 = vmatprep.subr.bf16.mxu0 %v5579_v14  ;;  %4185 = vmatmul.mubr.bf16.vlgmr.msra.gmra.mrb[16].mxu1 %v4993_v16 }
  0xa5   :  { %4189 = vmatpush3.bf16.msra.mxu1 %v5585_v15  ;;  %4204 = vmatprep.mubr.msk.bf16.mxu1 %vm4992_vm0, %v6888_v52 }
  0xa6   :  { %4190 = vmatprep.subr.bf16.mxu1 %v6888_v52 }
  0xa7   :  { %2003 = vmatpush1.bf16.msra.mxu0 %v5592_v17 }
  0xa8   :  { %2004 = vmatprep.subr.bf16.mxu0 %v5599_v18 }
  0xa9   :  { %4191 = vmatpush3.bf16.msra.mxu1 %v5605_v19 }
  0xaa   :  { %4192 = vmatprep.subr.bf16.mxu1 %v6888_v52 }
  0xab   :  { %2005 = vmatpush1.bf16.msra.mxu0 %v5614_v20 }
  0xac   :  { %2006 = vmatprep.subr.bf16.mxu0 %v5620_v21 }
  0xad   :  { %4193 = vmatpush3.bf16.msra.mxu1 %v5626_v22 }
  0xae   :  { %4194 = vmatprep.subr.bf16.mxu1 %v6888_v52 }
  0xaf   :  { %2007 = vmatpush1.bf16.msra.mxu0 %v5633_v23 }
  0xb0   :  { %2008 = vmatprep.subr.bf16.mxu0 %v5639_v24 }
  0xb1   :  { %4195 = vmatpush3.bf16.msra.mxu1 %v5645_v25 }
  0xb2   :  { %4196 = vmatprep.subr.bf16.mxu1 %v6888_v52 }
  0xb3   :  { %2009 = vmatpush1.bf16.msra.mxu0 %v5652_v26 }
  0xb4   :  { %2010 = vmatprep.subr.bf16.mxu0 %v5658_v27 }
  0xb5   :  { %4197 = vmatpush3.bf16.msra.mxu1 %v5664_v28 }
  0xb6   :  { %4198 = vmatprep.subr.bf16.mxu1 %v6888_v52 }
  0xb7   :  { %2011 = vmatpush1.bf16.msra.mxu0 %v5671_v29 }
  0xb8   :  { %2012 = vmatprep.subr.bf16.mxu0 %v5677_v30 }
  0xb9   :  { %4199 = vmatpush3.bf16.msra.mxu1 %v5683_v31 }
  0xba   :  { %4200 = vmatprep.subr.bf16.mxu1 %v6888_v52 }
  0xbb   :  { %2013 = vmatpush1.bf16.msra.mxu0 %v5690_v32 }
  0xbc   :  { %2014 = vmatprep.subr.bf16.mxu0 %v5696_v33 }
  0xbd   :  { %4201 = vmatpush3.bf16.msra.mxu1 %v5702_v34 }
  0xbe   :  { %4202 = vmatprep.subr.bf16.mxu1 %v6888_v52 }
  0xbf   :  { %2015 = vmatpush1.bf16.msra.mxu0 %v5709_v35 }
  0xc0   :  { %2113 = vmatprep.subr.bf16.mxu0 %v5401_v47 }
  0xc1   :  { %4203 = vmatpush3.bf16.msra.mxu1 %v5716_v36 }
  0xc2   :  { %2033 = vmatmul.mubr.bf16.vlgmr.msra.gmra.mrb[36].mxu0 %v4993_v16  ;;  %4208 = vmatprep.subr.bf16.mxu1 %v6888_v52 }
  0xc3   :  { %2114 = vmatpush1.bf16.msra.mxu0 %v5410_v49  ;;  %2145 = vmatprep.mubr.bf16.mxu0 %v6886_v1 }
  0xc4   :  { %4205 = vmatmul.mubr.bf16.vlgmr.msra.gmra.mrb[20].mxu1 %v4993_v16  ;;  %2115 = vmatprep.subr.bf16.mxu0 %v5416_v50  ;;  %v5774_v16 = vrot.slane %v105_v40, %v773_v43 }
  0xc5   :  { %4209 = vmatpush3.bf16.msra.mxu1 %v5425_v53  ;;  %4224 = vmatprep.mubr.msk.bf16.mxu1 %vm4992_vm0, %v6888_v52 }
  0xc6   :  { %4210 = vmatprep.subr.bf16.mxu1 %v6888_v52 }
  0xc7   :  { %2116 = vmatpush1.bf16.msra.mxu0 %v5431_v54 }
  0xc8   :  { %2117 = vmatprep.subr.bf16.mxu0 %v5438_v55 }
  0xc9   :  { %4211 = vmatpush3.bf16.msra.mxu1 %v5444_v56 }
  0xca   :  { %4212 = vmatprep.subr.bf16.mxu1 %v6888_v52 }
  0xcb   :  { %2118 = vmatpush1.bf16.msra.mxu0 %v5454_v58 }
  0xcc   :  { %2119 = vmatprep.subr.bf16.mxu0 %v5460_v59 }
  0xcd   :  { %4213 = vmatpush3.bf16.msra.mxu1 %v5466_v60 }
  0xce   :  { %4214 = vmatprep.subr.bf16.mxu1 %v6888_v52 }
  0xcf   :  { %2120 = vmatpush1.bf16.msra.mxu0 %v5472_v61 }
  0xd0   :  { %2121 = vmatprep.subr.bf16.mxu0 %v5479_v62 }
  0xd1   :  { %4215 = vmatpush3.bf16.msra.mxu1 %v5486_v63 }
  0xd2   :  { %4216 = vmatprep.subr.bf16.mxu1 %v6888_v52 }
  0xd3   :  { %2122 = vmatpush1.bf16.msra.mxu0 %v5495_v0 }
  0xd4   :  { %2123 = vmatprep.subr.bf16.mxu0 %v5501_v2 }
  0xd5   :  { %4217 = vmatpush3.bf16.msra.mxu1 %v5507_v3 }
  0xd6   :  { %4218 = vmatprep.subr.bf16.mxu1 %v6888_v52 }
  0xd7   :  { %2124 = vmatpush1.bf16.msra.mxu0 %v5514_v4 }
  0xd8   :  { %2125 = vmatprep.subr.bf16.mxu0 %v5521_v5 }
  0xd9   :  { %4219 = vmatpush3.bf16.msra.mxu1 %v5527_v6 }
  0xda   :  { %4220 = vmatprep.subr.bf16.mxu1 %v6888_v52 }
  0xdb   :  { %2126 = vmatpush1.bf16.msra.mxu0 %v5534_v7 }
  0xdc   :  { %2127 = vmatprep.subr.bf16.mxu0 %v5540_v8 }
  0xdd   :  { %4221 = vmatpush3.bf16.msra.mxu1 %v5546_v9 }
  0xde   :  { %4222 = vmatprep.subr.bf16.mxu1 %v6888_v52 }
  0xdf   :  { %2128 = vmatpush1.bf16.msra.mxu0 %v5553_v10 }
  0xe0   :  { %2220 = vmatprep.subr.bf16.mxu0 %v5560_v11 }
  0xe1   :  { %4223 = vmatpush3.bf16.msra.mxu1 %v5566_v12 }
  0xe2   :  { %4228 = vmatprep.subr.bf16.mxu1 %v6888_v52 }
 0x115   :  { %v5763_v44 = vpop.f32.mrb[0].mxu0  ;;  %v4114_v45 = vpop.f32.mrb[0].mxu1 }
 0x116   :  { %v5768_v48 = vadd.f32 %v4114_v45, %v5761_v42  ;;  %v5770_v51 = vpop.f32.mrb[1].mxu0  ;;  %v5772_v57 = vpop.f32.mrb[1].mxu1 }
 0x117   :  { %v666_v37 = vpop.f32.mrb[2].mxu0  ;;  %v4115_v1 = vpop.f32.mrb[2].mxu1 }
 0x118   :  { %6950 = vst [vmem:[#allocation18_spill] sm:$0xff] %v5768_v48  ;;  %v5777_v52 = vadd.f32 %v5765_v46, %v666_v37  ;;  %v5780_v38 = vadd.f32 %v4115_v1, %v5761_v42  ;;  %v668_v11 = vpop.f32.mrb[3].mxu0  ;;  %v738_v12 = vpop.f32.mrb[3].mxu1 }
 0x119   :  { %v5783_v10 = vadd.f32 %v5774_v16, %v668_v11  ;;  %v5786_v45 = vadd.f32 %v5761_v42, %v738_v12 }
 0x11a   :  { %6951 = vst [vmem:[#allocation19_spill] sm:$0xff] %v5777_v52  ;;  %6952 = vst [vmem:[#allocation20_spill] sm:$0xff] %v5780_v38 }
 0x11b   :  { %6953 = vst [vmem:[#allocation21_spill] sm:$0xff] %v5783_v10  ;;  %6954 = vst [vmem:[#allocation22_spill] sm:$0xff] %v5786_v45 }
 0x11d   :  { %v672_v48 = vpop.f32.mrb[4].mxu0  ;;  %v4118_v8 = vpop.f32.mrb[4].mxu1 }
 0x11e   :  { %v5789_v40 = vadd.f32 %v5765_v46, %v672_v48  ;;  %v674_v9 = vpop.f32.mrb[5].mxu0  ;;  %v5792_v37 = vadd.f32 %v4118_v8, %v5761_v42  ;;  %v751_v52 = vpop.f32.mrb[5].mxu1 }
 0x11f   :  { %v5795_v1 = vadd.f32 %v5774_v16, %v674_v9  ;;  %v676_v38 = vpop.f32.mrb[6].mxu0  ;;  %v5798_v11 = vadd.f32 %v5761_v42, %v751_v52  ;;  %v4119_v10 = vpop.f32.mrb[6].mxu1 }
 0x120   :  { %6955 = vst [vmem:[#allocation23_spill] sm:$0xff] %v5789_v40  ;;  %6956 = vst [vmem:[#allocation24_spill] sm:$0xff] %v5792_v37  ;;  %v5801_v12 = vadd.f32 %v5765_v46, %v676_v38  ;;  %v678_v45 = vpop.f32.mrb[7].mxu0  ;;  %v5804_v48 = vadd.f32 %v4119_v10, %v5761_v42  ;;  %v754_v40 = vpop.f32.mrb[7].mxu1 }
 0x121   :  { %6957 = vst [vmem:[#allocation25_spill] sm:$0xff] %v5795_v1  ;;  %6958 = vst [vmem:[#allocation26_spill] sm:$0xff] %v5798_v11  ;;  %v5807_v8 = vadd.f32 %v5774_v16, %v678_v45  ;;  %v5810_v37 = vadd.f32 %v5761_v42, %v754_v40 }
 0x122   :  { %6959 = vst [vmem:[#allocation27_spill] sm:$0xff] %v5801_v12  ;;  %6960 = vst [vmem:[#allocation28_spill] sm:$0xff] %v5804_v48 }
 0x123   :  { %6961 = vst [vmem:[#allocation29_spill] sm:$0xff] %v5807_v8  ;;  %6962 = vst [vmem:[#allocation30_spill] sm:$0xff] %v5810_v37 }
 0x125   :  { %v682_v9 = vpop.f32.mrb[8].mxu0 }
 0x126   :  { %v5813_v1 = vadd.f32 %v5765_v46, %v682_v9  ;;  %v684_v52 = vpop.f32.mrb[9].mxu0 }
 0x127   :  { %v5816_v11 = vadd.f32 %v5774_v16, %v684_v52  ;;  %v686_v38 = vpop.f32.mrb[10].mxu0 }
 0x128   :  { %6963 = vst [vmem:[#allocation31_spill] sm:$0xff] %v5813_v1  ;;  %v5819_v12 = vadd.f32 %v5765_v46, %v686_v38  ;;  %v688_v10 = vpop.f32.mrb[11].mxu0 }
 0x129   :  { %6964 = vst [vmem:[#allocation32_spill] sm:$0xff] %v5816_v11  ;;  %v5822_v48 = vadd.f32 %v5774_v16, %v688_v10  ;;  %v3708_v10 = vld [vmem:[%s6882_s8 + $0x3] sm:$0x7] }
 0x12a   :  { %6965 = vst [vmem:[#allocation33_spill] sm:$0xff] %v5819_v12 }
 0x12b   :  { %6966 = vst [vmem:[#allocation34_spill] sm:$0xff] %v5822_v48  ;;  %v5839_v48 = vrot.slane %v3708_v10, %v769_v41 }
 0x12d   :  { %v692_v45 = vpop.f32.mrb[12].mxu0 }
 0x12e   :  { %v5825_v40 = vadd.f32 %v5765_v46, %v692_v45  ;;  %v694_v37 = vpop.f32.mrb[13].mxu0  ;;  %v5841_v45 = vrot.slane %v3708_v10, %v777_v39 }
 0x12f   :  { %v5828_v9 = vadd.f32 %v5774_v16, %v694_v37  ;;  %v696_v1 = vpop.f32.mrb[14].mxu0 }
 0x130   :  { %6967 = vst [vmem:[#allocation35_spill] sm:$0xff] %v5825_v40  ;;  %v5831_v52 = vadd.f32 %v5765_v46, %v696_v1  ;;  %v698_v11 = vpop.f32.mrb[15].mxu0  ;;  %v5843_v40 = vrot.slane %v3708_v10, %v773_v43 }
 0x131   :  { %6968 = vst [vmem:[#allocation36_spill] sm:$0xff] %v5828_v9  ;;  %v5834_v38 = vadd.f32 %v5774_v16, %v698_v11 }
 0x132   :  { %6969 = vst [vmem:[#allocation37_spill] sm:$0xff] %v5831_v52 }
 0x133   :  { %6970 = vst [vmem:[#allocation38_spill] sm:$0xff] %v5834_v38 }
 0x155   :  { %v1388_v37 = vpop.f32.mrb[16].mxu0  ;;  %v4162_v9 = vpop.f32.mrb[8].mxu1 }
 0x156   :  { %v5846_v12 = vadd.f32 %v5839_v48, %v1388_v37  ;;  %v5849_v1 = vadd.f32 %v4162_v9, %v5841_v45  ;;  %v1390_v11 = vpop.f32.mrb[17].mxu0  ;;  %v1461_v38 = vpop.f32.mrb[9].mxu1 }
 0x157   :  { %v5852_v52 = vadd.f32 %v5843_v40, %v1390_v11  ;;  %v5855_v41 = vadd.f32 %v5841_v45, %v1461_v38  ;;  %v1392_v39 = vpop.f32.mrb[18].mxu0  ;;  %v4163_v8 = vpop.f32.mrb[10].mxu1 }
 0x158   :  { %6971 = vst [vmem:[#allocation39_spill] sm:$0xff] %v5846_v12  ;;  %6972 = vst [vmem:[#allocation40_spill] sm:$0xff] %v5849_v1  ;;  %v5858_v43 = vadd.f32 %v5839_v48, %v1392_v39  ;;  %v5861_v10 = vadd.f32 %v4163_v8, %v5841_v45  ;;  %v1394_v37 = vpop.f32.mrb[19].mxu0  ;;  %v1464_v12 = vpop.f32.mrb[11].mxu1 }
 0x159   :  { %6973 = vst [vmem:[#allocation41_spill] sm:$0xff] %v5852_v52  ;;  %6974 = vst [vmem:[#allocation42_spill] sm:$0xff] %v5855_v41  ;;  %v5864_v9 = vadd.f32 %v5843_v40, %v1394_v37  ;;  %v5867_v1 = vadd.f32 %v5841_v45, %v1464_v12 }
 0x15a   :  { %6975 = vst [vmem:[#allocation43_spill] sm:$0xff] %v5858_v43  ;;  %6976 = vst [vmem:[#allocation44_spill] sm:$0xff] %v5861_v10 }
 0x15b   :  { %6977 = vst [vmem:[#allocation45_spill] sm:$0xff] %v5864_v9  ;;  %6978 = vst [vmem:[#allocation46_spill] sm:$0xff] %v5867_v1 }
 0x15d   :  { %v1398_v11 = vpop.f32.mrb[20].mxu0  ;;  %v4166_v52 = vpop.f32.mrb[12].mxu1 }
 0x15e   :  { %v5870_v38 = vadd.f32 %v5839_v48, %v1398_v11  ;;  %v1400_v41 = vpop.f32.mrb[21].mxu0  ;;  %v5873_v39 = vadd.f32 %v4166_v52, %v5841_v45  ;;  %v1477_v43 = vpop.f32.mrb[13].mxu1 }
 0x15f   :  { %v5876_v8 = vadd.f32 %v5843_v40, %v1400_v41  ;;  %v1402_v10 = vpop.f32.mrb[22].mxu0  ;;  %v5879_v37 = vadd.f32 %v5841_v45, %v1477_v43  ;;  %v5881_v9 = vpop.f32.mrb[14].mxu1 }
 0x160   :  { %6979 = vst [vmem:[#allocation47_spill] sm:$0xff] %v5870_v38  ;;  %6980 = vst [vmem:[#allocation48_spill] sm:$0xff] %v5873_v39  ;;  %v5884_v12 = vadd.f32 %v5839_v48, %v1402_v10  ;;  %v1404_v1 = vpop.f32.mrb[23].mxu0  ;;  %v1480_v11 = vpop.f32.mrb[15].mxu1 }
 0x161   :  { %6981 = vst [vmem:[#allocation49_spill] sm:$0xff] %v5876_v8  ;;  %6982 = vst [vmem:[#allocation50_spill] sm:$0xff] %v5879_v37  ;;  %v5887_v38 = vadd.f32 %v5843_v40, %v1404_v1  ;;  %v5890_v52 = vadd.f32 %v5841_v45, %v1480_v11 }
 0x162   :  { %6983 = vst [vmem:[#allocation51_spill] sm:$0xff] %v5884_v12 }
 0x163   :  { %6984 = vst [vmem:[#allocation52_spill] sm:$0xff] %v5887_v38  ;;  %6985 = vst [vmem:[#allocation53_spill] sm:$0xff] %v5890_v52 }
 0x165   :  { %v1408_v39 = vpop.f32.mrb[24].mxu0 }
 0x166   :  { %v5893_v41 = vadd.f32 %v5839_v48, %v1408_v39  ;;  %v1410_v8 = vpop.f32.mrb[25].mxu0 }
 0x167   :  { %v5896_v43 = vadd.f32 %v5843_v40, %v1410_v8  ;;  %v1412_v37 = vpop.f32.mrb[26].mxu0  ;;  %v782_v8 = vadd.f32 %v5765_v46, %v5763_v44  ;;  %v5917_v44 = vld [vmem:[%s6883_s10] ss:$0 sm:$0xff] }
 0x168   :  { %6986 = vst [vmem:[#allocation54_spill] sm:$0xff] %v5893_v41  ;;  %v5899_v10 = vadd.f32 %v5839_v48, %v1412_v37  ;;  %v1414_v12 = vpop.f32.mrb[27].mxu0  ;;  %v783_v37 = vadd.f32 %v5774_v16, %v5770_v51  ;;  %6992 = vst [vmem:[#allocation60_spill] sm:$0xff] %v5917_v44 }
 0x169   :  { %6987 = vst [vmem:[#allocation55_spill] sm:$0xff] %v5896_v43  ;;  %v5902_v7 = vadd.f32 %v5843_v40, %v1414_v12 }
 0x16a   :  { %6988 = vst [vmem:[#allocation56_spill] sm:$0xff] %v5899_v10 }
 0x16b   :  { %6989 = vst [vmem:[#allocation57_spill] sm:$0xff] %v5902_v7 }
 0x16d   :  { %v1418_v1 = vpop.f32.mrb[28].mxu0 }
 0x16e   :  { %v5905_v11 = vadd.f32 %v5839_v48, %v1418_v1  ;;  %v1420_v38 = vpop.f32.mrb[29].mxu0 }
 0x16f   :  { %v5908_v39 = vadd.f32 %v5843_v40, %v1420_v38  ;;  %v1422_v41 = vpop.f32.mrb[30].mxu0 }
 0x170   :  { %6990 = vst [vmem:[#allocation58_spill] sm:$0xff] %v5905_v11  ;;  %v1424_v52 = vpop.f32.mrb[31].mxu0  ;;  %v1529_v16 = vadd.f32 %v5839_v48, %v1422_v41 }
 0x171   :  { %6991 = vst [vmem:[#allocation59_spill] sm:$0xff] %v5908_v39 }
 0x175   :  { %v1792_v43 = vpop.f32.mrb[32].mxu0 }
 0x176   :  { %v1839_v10 = vadd.f32 %v1792_v43, %v782_v8  ;;  %v1794_v12 = vpop.f32.mrb[33].mxu0 }
 0x177   :  { %v1840_v7 = vadd.f32 %v1794_v12, %v783_v37  ;;  %v1796_v5 = vpop.f32.mrb[34].mxu0  ;;  %v1833_v6 = vpop.f32.mrb[16].mxu1 }
 0x178   :  { %v3822_v1 = vmul.f32 -1.442695, %v1839_v10  ;;  %v1797_v11 = vpop.f32.mrb[35].mxu0  ;;  %v4186_v4 = vpop.f32.mrb[17].mxu1  ;;  %v1859_v46 = vadd.f32 %v5917_v44, %v1833_v6 }
 0x179   :  { %v1836_v2 = vpop.f32.mrb[18].mxu1  ;;  %v3823_v39 = vmul.f32 -1.442695, %v1840_v7  ;;  %v784_v4 = vadd.f32 %v5761_v42, %v5772_v57 }
 0x17a   :  { %4748 = vpow2.f32 %v3822_v1  ;;  %v4187_v38 = vpop.f32.mrb[19].mxu1 }
 0x17b   :  { %4750 = vpow2.f32 %v3823_v39 }
 0x184   :  { %v4749_v3 = vpop.eup %4748 }
 0x185   :  { %v1847_v0 = vadd.f32 1.0, %v4749_v3  ;;  %v4751_v5 = vpop.eup %4750  ;;  %v1530_v3 = vadd.f32 %v5843_v40, %v1424_v52 }
 0x186   :  { %v1848_v7 = vadd.f32 1.0, %v4751_v5 }
 0x187   :  { %4752 = vrcp.f32 %v1847_v0 }
 0x191   :  { %v4753_v51 = vpop.eup %4752 }
 0x192   :  { %v1860_v2 = vmul.f32 %v4753_v51, %v1859_v46 }
 0x194   :  { %v1861_v43 = vadd.f32 %v1860_v2, %v784_v4  ;;  %v5936_v2 = vld [vmem:[%s6883_s10 + $0x1] ss:$0 sm:$0xff] }
 0x195   :  { %v2034_v0 = vpop.f32.mrb[36].mxu0 }
 0x196   :  { %4754 = vtanh.f32 %v1861_v43  ;;  %v2081_v10 = vadd.f32 %v2034_v0, %v1529_v16  ;;  %v2036_v11 = vpop.f32.mrb[37].mxu0  ;;  %v6993_v16 = vmov 0.0  }
 0x197   :  { %v2082_v39 = vadd.f32 %v2036_v11, %v1530_v3  ;;  %v2038_v8 = vpop.f32.mrb[38].mxu0  ;;  %v2075_v37 = vpop.f32.mrb[20].mxu1  ;;  %4756 = vrcp.f32 %v1848_v7  ;;  %v6994_v7 = vmov 0  }
 0x198   :  { %v3849_v6 = vmul.f32 -1.442695, %v2081_v10  ;;  %v2039_v12 = vpop.f32.mrb[39].mxu0  ;;  %v4206_v1 = vpop.f32.mrb[21].mxu1  ;;  %v2101_v43 = vadd.f32 %v5936_v2, %v2075_v37  ;;  %v1531_v10 = vadd.f32 %v5881_v9, %v5841_v45 }
 0x199   :  { %v2078_v38 = vpop.f32.mrb[22].mxu1  ;;  %v3850_v46 = vmul.f32 -1.442695, %v2082_v39 }
 0x19a   :  { %4758 = vpow2.f32 %v3849_v6  ;;  %v4207_v42 = vpop.f32.mrb[23].mxu1  ;;  %v7004_v38 = vld [vmem:[#allocation15_spill] sm:$0xff] }
 0x19b   :  { %4760 = vpow2.f32 %v3850_v46  ;;  %v7005_v42 = vld [vmem:[#allocation17_spill] sm:$0xff]  ;;  %v7007_v46 = vld [vmem:[#allocation19_spill] sm:$0xff] }
 0x1a0   :  { %v4755_v57 = vpop.eup %4754 }
 0x1a1   :  { %v1863_v48 = vsub.f32 0.0, %v4755_v57  ;;  %v4757_v41 = vpop.eup %4756 }
 0x1a3   :  { %v1864_v5 = vmul.f32 %v4757_v41, %v1863_v48 }
 0x1a4   :  { %v4759_v40 = vpop.eup %4758 }
 0x1a5   :  { %v2089_v52 = vadd.f32 1.0, %v4759_v40  ;;  %v5924_v51 = vadd.f32 %v4755_v57, %v1864_v5  ;;  %v4761_v3 = vpop.eup %4760  ;;  %v7006_v57 = vld [vmem:[#allocation16_spill] sm:$0xff] }
 0x1a6   :  { %v2090_v39 = vadd.f32 1.0, %v4761_v3 }
 0x1a7   :  { %4762 = vrcp.f32 %v2089_v52  ;;  %v1866_v4 = vpack.c.bf16 %v5924_v51, %v5924_v51 }
 0x1a9   :  { %1867 = vst [vmem:[%s6884_s11] sm:$0xf] %v1866_v4  ;;  %2146 = vmatmul.mubr.bf16.vlgmr.msra.gmra.mrb[40].mxu0 %v1866_v4  ;;  %4225 = vmatmul.mubr.bf16.vlgmr.msra.gmra.mrb[24].mxu1 %v1866_v4  ;;  %v7008_v4 = vld [vmem:[#allocation21_spill] sm:$0xff] }
 0x1aa   :  { %2221 = vmatpush1.bf16.msra.mxu0 %v5573_v13  ;;  %4229 = vmatpush3.bf16.msra.mxu1 %v5585_v15 }
 0x1ab   :  { %2222 = vmatprep.subr.bf16.mxu0 %v5579_v14  ;;  %4230 = vmatprep.subr.bf16.mxu1 %v6993_v16 }
 0x1ac   :  { %2252 = vmatprep.mubr.bf16.mxu0 %v6994_v7  ;;  %4244 = vmatprep.mubr.msk.bf16.mxu1 %vm4992_vm0, %v6993_v16 }
 0x1ae   :  { %2223 = vmatpush1.bf16.msra.mxu0 %v5592_v17  ;;  %4231 = vmatpush3.bf16.msra.mxu1 %v5605_v19 }
 0x1af   :  { %2224 = vmatprep.subr.bf16.mxu0 %v5599_v18  ;;  %4232 = vmatprep.subr.bf16.mxu1 %v6993_v16 }
 0x1b1   :  { %v4763_v0 = vpop.eup %4762 }
 0x1b2   :  { %v2102_v11 = vmul.f32 %v4763_v0, %v2101_v43  ;;  %2225 = vmatpush1.bf16.msra.mxu0 %v5614_v20  ;;  %4233 = vmatpush3.bf16.msra.mxu1 %v5626_v22 }
 0x1b3   :  { %2226 = vmatprep.subr.bf16.mxu0 %v5620_v21  ;;  %4234 = vmatprep.subr.bf16.mxu1 %v6993_v16 }
 0x1b4   :  { %v2103_v8 = vadd.f32 %v2102_v11, %v1531_v10 }
 0x1b6   :  { %4764 = vtanh.f32 %v2103_v8  ;;  %2227 = vmatpush1.bf16.msra.mxu0 %v5633_v23  ;;  %4235 = vmatpush3.bf16.msra.mxu1 %v5645_v25 }
 0x1b7   :  { %2228 = vmatprep.subr.bf16.mxu0 %v5639_v24  ;;  %4236 = vmatprep.subr.bf16.mxu1 %v6993_v16  ;;  %4766 = vrcp.f32 %v2090_v39 }
 0x1ba   :  { %2229 = vmatpush1.bf16.msra.mxu0 %v5652_v26  ;;  %4237 = vmatpush3.bf16.msra.mxu1 %v5664_v28 }
 0x1bb   :  { %2230 = vmatprep.subr.bf16.mxu0 %v5658_v27  ;;  %4238 = vmatprep.subr.bf16.mxu1 %v6993_v16 }
 0x1be   :  { %2231 = vmatpush1.bf16.msra.mxu0 %v5671_v29  ;;  %4239 = vmatpush3.bf16.msra.mxu1 %v5683_v31 }
 0x1bf   :  { %2232 = vmatprep.subr.bf16.mxu0 %v5677_v30  ;;  %4240 = vmatprep.subr.bf16.mxu1 %v6993_v16 }
 0x1c0   :  { %v4765_v45 = vpop.eup %4764 }
 0x1c1   :  { %v2105_v9 = vsub.f32 0.0, %v4765_v45  ;;  %v4767_v37 = vpop.eup %4766 }
 0x1c2   :  { %2233 = vmatpush1.bf16.msra.mxu0 %v5690_v32  ;;  %4241 = vmatpush3.bf16.msra.mxu1 %v5702_v34 }
 0x1c3   :  { %2234 = vmatprep.subr.bf16.mxu0 %v5696_v33  ;;  %4242 = vmatprep.subr.bf16.mxu1 %v6993_v16  ;;  %v2106_v6 = vmul.f32 %v4767_v37, %v2105_v9 }
 0x1c5   :  { %v5970_v12 = vadd.f32 %v4765_v45, %v2106_v6 }
 0x1c6   :  { %2235 = vmatpush1.bf16.msra.mxu0 %v5709_v35  ;;  %4243 = vmatpush3.bf16.msra.mxu1 %v5716_v36 }
 0x1c7   :  { %v2108_v1 = vpack.c.bf16 %v5970_v12, %v5970_v12  ;;  %2327 = vmatprep.subr.bf16.mxu0 %v5401_v47  ;;  %4248 = vmatprep.subr.bf16.mxu1 %v6993_v16  ;;  %v6995_v47 = vld [vmem:[#allocation6_spill] sm:$0xff] }
 0x1c9   :  { %2109 = vst [vmem:[%s6885_s12 + $0x1c] sm:$0xf] %v2108_v1  ;;  %2253 = vmatmul.mubr.bf16.vlgmr.msra.gmra.mrb[44].mxu0 %v2108_v1  ;;  %4245 = vmatmul.mubr.bf16.vlgmr.msra.gmra.mrb[28].mxu1 %v2108_v1 }
 0x1ca   :  { %2328 = vmatpush1.bf16.msra.mxu0 %v5410_v49  ;;  %4249 = vmatpush3.bf16.msra.mxu1 %v5425_v53  ;;  %v6996_v49 = vld [vmem:[#allocation8_spill] sm:$0xff]  ;;  %v6998_v53 = vld [vmem:[#allocation9_spill] sm:$0xff] }
 0x1cb   :  { %2329 = vmatprep.subr.bf16.mxu0 %v5416_v50  ;;  %4250 = vmatprep.subr.bf16.mxu1 %v6993_v16  ;;  %v6997_v50 = vld [vmem:[#allocation7_spill] sm:$0xff] }
 0x1cc   :  { %2359 = vmatprep.mubr.bf16.mxu0 %v6994_v7  ;;  %4264 = vmatprep.mubr.msk.bf16.mxu1 %vm4992_vm0, %v6993_v16 }
 0x1ce   :  { %2330 = vmatpush1.bf16.msra.mxu0 %v5431_v54  ;;  %4251 = vmatpush3.bf16.msra.mxu1 %v5444_v56  ;;  %v6999_v54 = vld [vmem:[#allocation11_spill] sm:$0xff]  ;;  %v7001_v56 = vld [vmem:[#allocation12_spill] sm:$0xff] }
 0x1cf   :  { %2331 = vmatprep.subr.bf16.mxu0 %v5438_v55  ;;  %4252 = vmatprep.subr.bf16.mxu1 %v6993_v16  ;;  %v7000_v55 = vld [vmem:[#allocation10_spill] sm:$0xff] }
 0x1d2   :  { %2332 = vmatpush1.bf16.msra.mxu0 %v5454_v58  ;;  %4253 = vmatpush3.bf16.msra.mxu1 %v5466_v60  ;;  %v7002_v58 = vld [vmem:[#allocation14_spill] sm:$0xff] }
 0x1d3   :  { %2333 = vmatprep.subr.bf16.mxu0 %v5460_v59  ;;  %4254 = vmatprep.subr.bf16.mxu1 %v6993_v16  ;;  %v7003_v59 = vld [vmem:[#allocation13_spill] sm:$0xff] }
 0x1d6   :  { %2334 = vmatpush1.bf16.msra.mxu0 %v5472_v61  ;;  %4255 = vmatpush3.bf16.msra.mxu1 %v5486_v63 }
 0x1d7   :  { %2335 = vmatprep.subr.bf16.mxu0 %v5479_v62  ;;  %4256 = vmatprep.subr.bf16.mxu1 %v6993_v16 }
 0x1da   :  { %2336 = vmatpush1.bf16.msra.mxu0 %v6995_v47  ;;  %4257 = vmatpush3.bf16.msra.mxu1 %v6996_v49 }
 0x1db   :  { %2337 = vmatprep.subr.bf16.mxu0 %v6997_v50  ;;  %4258 = vmatprep.subr.bf16.mxu1 %v6993_v16 }
 0x1de   :  { %2338 = vmatpush1.bf16.msra.mxu0 %v6998_v53  ;;  %4259 = vmatpush3.bf16.msra.mxu1 %v6999_v54 }
 0x1df   :  { %2339 = vmatprep.subr.bf16.mxu0 %v7000_v55  ;;  %4260 = vmatprep.subr.bf16.mxu1 %v6993_v16 }
 0x1e2   :  { %2340 = vmatpush1.bf16.msra.mxu0 %v7001_v56  ;;  %4261 = vmatpush3.bf16.msra.mxu1 %v7002_v58 }
 0x1e3   :  { %2341 = vmatprep.subr.bf16.mxu0 %v7003_v59  ;;  %4262 = vmatprep.subr.bf16.mxu1 %v6993_v16 }
 0x1e6   :  { %2342 = vmatpush1.bf16.msra.mxu0 %v7004_v38  ;;  %4263 = vmatpush3.bf16.msra.mxu1 %v7005_v42 }
 0x1e7   :  { %2434 = vmatprep.subr.bf16.mxu0 %v7006_v57  ;;  %4268 = vmatprep.subr.bf16.mxu1 %v6993_v16 }
 0x27c   :  { %v2147_v48 = vpop.f32.mrb[40].mxu0  ;;  %v2188_v41 = vpop.f32.mrb[24].mxu1 }
 0x27d   :  { %v2194_v5 = vadd.f32 %v2147_v48, %v7007_v46  ;;  %v2149_v40 = vpop.f32.mrb[41].mxu0  ;;  %v4226_v52 = vpop.f32.mrb[25].mxu1  ;;  %v2208_v6 = vadd.f32 %v5917_v44, %v2188_v41  ;;  %v7009_v46 = vld [vmem:[#allocation22_spill] sm:$0xff] }
 0x27e   :  { %v2195_v43 = vadd.f32 %v2149_v40, %v7008_v4  ;;  %v2151_v3 = vpop.f32.mrb[42].mxu0  ;;  %v2191_v0 = vpop.f32.mrb[26].mxu1 }
 0x27f   :  { %v3852_v10 = vmul.f32 -1.442695, %v2194_v5  ;;  %v2152_v11 = vpop.f32.mrb[43].mxu0  ;;  %v4227_v39 = vpop.f32.mrb[27].mxu1  ;;  %v7010_v5 = vld [vmem:[#allocation58_spill] sm:$0xff] }
 0x280   :  { %v3853_v8 = vmul.f32 -1.442695, %v2195_v43  ;;  %v7011_v43 = vld [vmem:[#allocation59_spill] sm:$0xff] }
 0x281   :  { %4768 = vpow2.f32 %v3852_v10 }
 0x282   :  { %4770 = vpow2.f32 %v3853_v8 }
 0x28b   :  { %v4769_v45 = vpop.eup %4768 }
 0x28c   :  { %v2202_v9 = vadd.f32 1.0, %v4769_v45  ;;  %v4771_v37 = vpop.eup %4770 }
 0x28d   :  { %v2203_v57 = vadd.f32 1.0, %v4771_v37 }
 0x28e   :  { %4772 = vrcp.f32 %v2202_v9 }
 0x298   :  { %v4773_v1 = vpop.eup %4772 }
 0x299   :  { %v2209_v48 = vmul.f32 %v4773_v1, %v2208_v6 }
 0x29b   :  { %v2210_v52 = vadd.f32 %v2209_v48, %v7009_v46 }
 0x29c   :  { %v2254_v40 = vpop.f32.mrb[44].mxu0  ;;  %v2295_v4 = vpop.f32.mrb[28].mxu1 }
 0x29d   :  { %4774 = vtanh.f32 %v2210_v52  ;;  %v2301_v3 = vadd.f32 %v2254_v40, %v7010_v5  ;;  %v2256_v0 = vpop.f32.mrb[45].mxu0  ;;  %v4246_v10 = vpop.f32.mrb[29].mxu1 }
 0x29e   :  { %v2302_v11 = vadd.f32 %v2256_v0, %v7011_v43  ;;  %v2258_v39 = vpop.f32.mrb[46].mxu0  ;;  %v2298_v8 = vpop.f32.mrb[30].mxu1  ;;  %4776 = vrcp.f32 %v2203_v57  ;;  %v7017_v0 = vld [vmem:[#allocation18_spill] sm:$0xff] }
 0x29f   :  { %v3854_v45 = vmul.f32 -1.442695, %v2301_v3  ;;  %v2259_v9 = vpop.f32.mrb[47].mxu0  ;;  %v4247_v41 = vpop.f32.mrb[31].mxu1  ;;  %v7018_v8 = vld [vmem:[#allocation56_spill] sm:$0xff] }
 0x2a0   :  { %v3855_v48 = vmul.f32 -1.442695, %v2302_v11 }
 0x2a1   :  { %4778 = vpow2.f32 %v3854_v45 }
 0x2a2   :  { %4780 = vpow2.f32 %v3855_v48 }
 0x2a7   :  { %v4775_v6 = vpop.eup %4774 }
 0x2a8   :  { %v2212_v1 = vsub.f32 %v5924_v51, %v4775_v6  ;;  %v4777_v37 = vpop.eup %4776 }
 0x2aa   :  { %v2213_v46 = vmul.f32 %v4777_v37, %v2212_v1 }
 0x2ab   :  { %v4779_v52 = vpop.eup %4778 }
 0x2ac   :  { %v2309_v44 = vadd.f32 1.0, %v4779_v52  ;;  %v6023_v40 = vadd.f32 %v4775_v6, %v2213_v46  ;;  %v7019_v6 = vld [vmem:[#allocation57_spill] sm:$0xff] }
 0x2ae   :  { %4782 = vrcp.f32 %v2309_v44  ;;  %v2215_v5 = vpack.c.bf16 %v6023_v40, %v6023_v40 }
 0x2b0   :  { %2216 = vst [vmem:[%s6884_s11 + $0x4] sm:$0xf] %v2215_v5  ;;  %2360 = vmatmul.mubr.bf16.vlgmr.msra.gmra.mrb[48].mxu0 %v2215_v5  ;;  %4265 = vmatmul.mubr.bf16.vlgmr.msra.gmra.mrb[32].mxu1 %v2215_v5 }
 0x2b1   :  { %2435 = vmatpush1.bf16.msra.mxu0 %v5573_v13  ;;  %4269 = vmatpush3.bf16.msra.mxu1 %v5585_v15  ;;  %v4781_v13 = vpop.eup %4780  ;;  %v2315_v15 = vadd.f32 %v5936_v2, %v2295_v4 }
 0x2b2   :  { %2436 = vmatprep.subr.bf16.mxu0 %v5579_v14  ;;  %4270 = vmatprep.subr.bf16.mxu1 %v6993_v16 }
 0x2b3   :  { %2466 = vmatprep.mubr.bf16.mxu0 %v6994_v7  ;;  %4284 = vmatprep.mubr.msk.bf16.mxu1 %vm4992_vm0, %v6993_v16 }
 0x2b5   :  { %2437 = vmatpush1.bf16.msra.mxu0 %v5592_v17  ;;  %4271 = vmatpush3.bf16.msra.mxu1 %v5605_v19  ;;  %v7012_v17 = vld [vmem:[#allocation48_spill] sm:$0xff]  ;;  %v2310_v19 = vadd.f32 1.0, %v4781_v13 }
 0x2b6   :  { %2438 = vmatprep.subr.bf16.mxu0 %v5599_v18  ;;  %4272 = vmatprep.subr.bf16.mxu1 %v6993_v16 }
 0x2b8   :  { %v4783_v44 = vpop.eup %4782 }
 0x2b9   :  { %v2316_v14 = vmul.f32 %v4783_v44, %v2315_v15  ;;  %2439 = vmatpush1.bf16.msra.mxu0 %v5614_v20  ;;  %4273 = vmatpush3.bf16.msra.mxu1 %v5626_v22 }
 0x2ba   :  { %2440 = vmatprep.subr.bf16.mxu0 %v5620_v21  ;;  %4274 = vmatprep.subr.bf16.mxu1 %v6993_v16 }
 0x2bb   :  { %v2317_v51 = vadd.f32 %v2316_v14, %v7012_v17 }
 0x2bd   :  { %4784 = vtanh.f32 %v2317_v51  ;;  %2441 = vmatpush1.bf16.msra.mxu0 %v5633_v23  ;;  %4275 = vmatpush3.bf16.msra.mxu1 %v5645_v25  ;;  %v6073_v25 = vld [vmem:[%s6881_s9 + $0x4] ss:$12 sps:$4 sm:$0xff]  }
 0x2be   :  { %2442 = vmatprep.subr.bf16.mxu0 %v5639_v24  ;;  %4276 = vmatprep.subr.bf16.mxu1 %v6993_v16  ;;  %4786 = vrcp.f32 %v2310_v19 }
 0x2c1   :  { %2443 = vmatpush1.bf16.msra.mxu0 %v5652_v26  ;;  %4277 = vmatpush3.bf16.msra.mxu1 %v5664_v28  ;;  %v6083_v26 = vld [vmem:[%s6881_s9] ss:$12 sps:$4 sm:$0xff]   ;;  %v6095_v28 = vld [vmem:[%s6881_s9 + $0x1c] ss:$12 sps:$4 sm:$0xff]  }
 0x2c2   :  { %2444 = vmatprep.subr.bf16.mxu0 %v5658_v27  ;;  %4278 = vmatprep.subr.bf16.mxu1 %v6993_v16  ;;  %v6089_v27 = vld [vmem:[%s6881_s9 + $0x8] ss:$12 sps:$4 sm:$0xff]  }
 0x2c5   :  { %2445 = vmatpush1.bf16.msra.mxu0 %v5671_v29  ;;  %4279 = vmatpush3.bf16.msra.mxu1 %v5683_v31  ;;  %v6105_v29 = vld [vmem:[%s6881_s9 + $0x18] ss:$12 sps:$4 sm:$0xff]   ;;  %v6117_v31 = vld [vmem:[%s6881_s9 + $0x34] ss:$12 sps:$4 sm:$0xff]  }
 0x2c6   :  { %2446 = vmatprep.subr.bf16.mxu0 %v5677_v30  ;;  %4280 = vmatprep.subr.bf16.mxu1 %v6993_v16  ;;  %v6111_v30 = vld [vmem:[%s6881_s9 + $0x20] ss:$12 sps:$4 sm:$0xff]  }
 0x2c7   :  { %v4785_v18 = vpop.eup %4784 }
 0x2c8   :  { %v2319_v20 = vsub.f32 %v5970_v12, %v4785_v18  ;;  %v4787_v21 = vpop.eup %4786  ;;  %v7015_v12 = vld [vmem:[#allocation25_spill] sm:$0xff] }
 0x2c9   :  { %2447 = vmatpush1.bf16.msra.mxu0 %v5690_v32  ;;  %4281 = vmatpush3.bf16.msra.mxu1 %v5702_v34  ;;  %v6124_v32 = vld [vmem:[%s6881_s9 + $0x30] ss:$12 sps:$4 sm:$0xff]  }
 0x2ca   :  { %2448 = vmatprep.subr.bf16.mxu0 %v5696_v33  ;;  %4282 = vmatprep.subr.bf16.mxu1 %v6993_v16  ;;  %v2320_v22 = vmul.f32 %v4787_v21, %v2319_v20  ;;  %v6131_v33 = vld [vmem:[%s6881_s9 + $0x4c] ss:$12 sps:$4 sm:$0xff]   ;;  %v6178_v21 = vld [vmem:[%s6881_s9 + $0xc8] ss:$12 sps:$4 sm:$0xff]  }
 0x2cc   :  { %v6064_v23 = vadd.f32 %v4785_v18, %v2320_v22  ;;  %v6184_v22 = vld [vmem:[%s6881_s9 + $0xdc] ss:$12 sps:$4 sm:$0xff]  }
 0x2cd   :  { %2449 = vmatpush1.bf16.msra.mxu0 %v5709_v35  ;;  %4283 = vmatpush3.bf16.msra.mxu1 %v5716_v36 }
 0x2ce   :  { %v2322_v24 = vpack.c.bf16 %v6064_v23, %v6064_v23  ;;  %2541 = vmatprep.subr.bf16.mxu0 %v6073_v25  ;;  %4288 = vmatprep.subr.bf16.mxu1 %v6993_v16 }
 0x2d0   :  { %2323 = vst [vmem:[%s6885_s12 + $0x18] sm:$0xf] %v2322_v24  ;;  %2467 = vmatmul.mubr.bf16.vlgmr.msra.gmra.mrb[52].mxu0 %v2322_v24  ;;  %4285 = vmatmul.mubr.bf16.vlgmr.msra.gmra.mrb[36].mxu1 %v2322_v24  ;;  %v6194_v24 = vld [vmem:[%s6881_s9 + $0xd8] ss:$12 sps:$4 sm:$0xff]  }
 0x2d1   :  { %2542 = vmatpush1.bf16.msra.mxu0 %v6083_v26  ;;  %4289 = vmatpush3.bf16.msra.mxu1 %v6089_v27 }
 0x2d2   :  { %2543 = vmatprep.subr.bf16.mxu0 %v6095_v28  ;;  %4290 = vmatprep.subr.bf16.mxu1 %v6993_v16 }
 0x2d3   :  { %2573 = vmatprep.mubr.bf16.mxu0 %v6994_v7  ;;  %4304 = vmatprep.mubr.msk.bf16.mxu1 %vm4992_vm0, %v6993_v16 }
 0x2d5   :  { %2544 = vmatpush1.bf16.msra.mxu0 %v6105_v29  ;;  %4291 = vmatpush3.bf16.msra.mxu1 %v6111_v30 }
 0x2d6   :  { %2545 = vmatprep.subr.bf16.mxu0 %v6117_v31  ;;  %4292 = vmatprep.subr.bf16.mxu1 %v6993_v16 }
 0x2d9   :  { %2546 = vmatpush1.bf16.msra.mxu0 %v6124_v32  ;;  %4293 = vmatpush3.bf16.msra.mxu1 %v5466_v60  ;;  %v7013_v60 = vld [vmem:[#allocation16_spill] sm:$0xff] }
 0x2da   :  { %2547 = vmatprep.subr.bf16.mxu0 %v6131_v33  ;;  %4294 = vmatprep.subr.bf16.mxu1 %v6993_v16 }
 0x2dd   :  { %2548 = vmatpush1.bf16.msra.mxu0 %v5472_v61  ;;  %4295 = vmatpush3.bf16.msra.mxu1 %v5486_v63  ;;  %v7014_v63 = vld [vmem:[#allocation23_spill] sm:$0xff] }
 0x2de   :  { %2549 = vmatprep.subr.bf16.mxu0 %v5479_v62  ;;  %4296 = vmatprep.subr.bf16.mxu1 %v6993_v16 }
 0x2e1   :  { %2550 = vmatpush1.bf16.msra.mxu0 %v6995_v47  ;;  %4297 = vmatpush3.bf16.msra.mxu1 %v6996_v49 }
 0x2e2   :  { %2551 = vmatprep.subr.bf16.mxu0 %v6997_v50  ;;  %4298 = vmatprep.subr.bf16.mxu1 %v6993_v16 }
 0x2e5   :  { %2552 = vmatpush1.bf16.msra.mxu0 %v6998_v53  ;;  %4299 = vmatpush3.bf16.msra.mxu1 %v6999_v54 }
 0x2e6   :  { %2553 = vmatprep.subr.bf16.mxu0 %v7000_v55  ;;  %4300 = vmatprep.subr.bf16.mxu1 %v6993_v16 }
 0x2e9   :  { %2554 = vmatpush1.bf16.msra.mxu0 %v7001_v56  ;;  %4301 = vmatpush3.bf16.msra.mxu1 %v7002_v58 }
 0x2ea   :  { %2555 = vmatprep.subr.bf16.mxu0 %v7003_v59  ;;  %4302 = vmatprep.subr.bf16.mxu1 %v6993_v16 }
 0x2ed   :  { %2556 = vmatpush1.bf16.msra.mxu0 %v7004_v38  ;;  %4303 = vmatpush3.bf16.msra.mxu1 %v7005_v42  ;;  %v7016_v42 = vld [vmem:[#allocation60_spill] sm:$0xff] }
 0x2ee   :  { %2648 = vmatprep.subr.bf16.mxu0 %v7013_v60  ;;  %4308 = vmatprep.subr.bf16.mxu1 %v6993_v16  ;;  %v6200_v60 = vld [vmem:[%s6881_s9 + $0xe0] ss:$12 sps:$4 sm:$0xff]  }
 0x383   :  { %v2361_v61 = vpop.f32.mrb[48].mxu0  ;;  %v2402_v62 = vpop.f32.mrb[32].mxu1 }
 0x384   :  { %v2408_v34 = vadd.f32 %v2361_v61, %v7014_v63  ;;  %v2363_v35 = vpop.f32.mrb[49].mxu0  ;;  %v4266_v36 = vpop.f32.mrb[33].mxu1  ;;  %v2422_v57 = vadd.f32 %v7016_v42, %v2402_v62  ;;  %v6206_v61 = vld [vmem:[%s6881_s9 + $0xf4] ss:$12 sps:$4 sm:$0xff]  }
 0x385   :  { %v2409_v47 = vadd.f32 %v2363_v35, %v7015_v12  ;;  %v2365_v49 = vpop.f32.mrb[50].mxu0  ;;  %v2405_v50 = vpop.f32.mrb[34].mxu1  ;;  %v6214_v36 = vld [vmem:[%s6881_s9 + $0xf0] ss:$12 sps:$4 sm:$0xff]   ;;  %v6220_v12 = vld [vmem:[%s6881_s9 + $0xf8] ss:$12 sps:$4 sm:$0xff]  }
 0x386   :  { %v3856_v53 = vmul.f32 -1.442695, %v2408_v34  ;;  %v2366_v54 = vpop.f32.mrb[51].mxu0  ;;  %v4267_v55 = vpop.f32.mrb[35].mxu1  ;;  %v7020_v49 = vld [vmem:[#allocation53_spill] sm:$0xff] }
 0x387   :  { %v3857_v56 = vmul.f32 -1.442695, %v2409_v47  ;;  %v6226_v47 = vld [vmem:[%s6881_s9 + $0x10c] ss:$12 sps:$4 sm:$0xff]   ;;  %v6234_v54 = vld [vmem:[%s6881_s9 + $0x108] ss:$12 sps:$4 sm:$0xff]  }
 0x388   :  { %4788 = vpow2.f32 %v3856_v53  ;;  %v6240_v55 = vld [vmem:[%s6881_s9 + $0x110] ss:$12 sps:$4 sm:$0xff]  }
 0x389   :  { %4790 = vpow2.f32 %v3857_v56  ;;  %v6246_v56 = vld [vmem:[%s6881_s9 + $0x124] ss:$12 sps:$4 sm:$0xff]  }
 0x392   :  { %v4789_v58 = vpop.eup %4788 }
 0x393   :  { %v2416_v59 = vadd.f32 1.0, %v4789_v58  ;;  %v4791_v38 = vpop.eup %4790  ;;  %v6253_v58 = vld [vmem:[%s6881_s9 + $0x120] ss:$12 sps:$4 sm:$0xff]  }
 0x394   :  { %v2417_v43 = vadd.f32 1.0, %v4791_v38  ;;  %v6265_v38 = vld [vmem:[%s6881_s9 + $0x13c] ss:$12 sps:$4 sm:$0xff]  }
 0x395   :  { %4792 = vrcp.f32 %v2416_v59  ;;  %v6259_v59 = vld [vmem:[%s6881_s9 + $0x128] ss:$12 sps:$4 sm:$0xff]  }
 0x39f   :  { %v4793_v4 = vpop.eup %4792 }
 0x3a0   :  { %v2423_v3 = vmul.f32 %v4793_v4, %v2422_v57  ;;  %v6272_v57 = vld [vmem:[%s6881_s9 + $0x138] ss:$12 sps:$4 sm:$0xff]   ;;  %v6278_v4 = vld [vmem:[%s6881_s9 + $0x140] ss:$12 sps:$4 sm:$0xff]  }
 0x3a2   :  { %v2424_v10 = vadd.f32 %v2423_v3, %v7017_v0  ;;  %v6284_v3 = vld [vmem:[%s6881_s9 + $0x154] ss:$12 sps:$4 sm:$0xff]  }
 0x3a3   :  { %v2468_v11 = vpop.f32.mrb[52].mxu0  ;;  %v2509_v39 = vpop.f32.mrb[36].mxu1 }
 0x3a4   :  { %4794 = vtanh.f32 %v2424_v10  ;;  %v2515_v45 = vadd.f32 %v2468_v11, %v7018_v8  ;;  %v2470_v9 = vpop.f32.mrb[53].mxu0  ;;  %v4286_v41 = vpop.f32.mrb[37].mxu1  ;;  %v2529_v63 = vadd.f32 %v5936_v2, %v2509_v39  ;;  %v6292_v11 = vld [vmem:[%s6881_s9 + $0x150] ss:$12 sps:$4 sm:$0xff]   ;;  %v6298_v39 = vld [vmem:[%s6881_s9 + $0x158] ss:$12 sps:$4 sm:$0xff]  }
 0x3a5   :  { %v2516_v1 = vadd.f32 %v2470_v9, %v7019_v6  ;;  %v2472_v37 = vpop.f32.mrb[54].mxu0  ;;  %v2512_v48 = vpop.f32.mrb[38].mxu1  ;;  %4796 = vrcp.f32 %v2417_v43  ;;  %v6304_v8 = vld [vmem:[%s6881_s9 + $0x16c] ss:$12 sps:$4 sm:$0xff]   ;;  %v6313_v9 = vld [vmem:[%s6881_s9 + $0x168] ss:$12 sps:$4 sm:$0xff]  }
 0x3a6   :  { %v3858_v46 = vmul.f32 -1.442695, %v2515_v45  ;;  %v2473_v52 = vpop.f32.mrb[55].mxu0  ;;  %v4287_v5 = vpop.f32.mrb[39].mxu1  ;;  %v6319_v41 = vld [vmem:[%s6881_s9 + $0x170] ss:$12 sps:$4 sm:$0xff]  }
 0x3a7   :  { %v3859_v14 = vmul.f32 -1.442695, %v2516_v1  ;;  %v6344_v1 = vld [vmem:[%s6881_s9 + $0x38] ss:$12 sps:$4 sm:$0xff]   ;;  %v6352_v37 = vld [vmem:[%s6881_s9 + $0x48] ss:$12 sps:$4 sm:$0xff]  }
 0x3a8   :  { %4798 = vpow2.f32 %v3858_v46  ;;  %v6358_v48 = vld [vmem:[%s6881_s9 + $0x50] ss:$12 sps:$4 sm:$0xff]   ;;  %v6371_v52 = vld [vmem:[%s6881_s9 + $0x60] ss:$12 sps:$4 sm:$0xff]   ;;  %v6377_v5 = vld [vmem:[%s6881_s9 + $0x68] ss:$12 sps:$4 sm:$0xff]  }
 0x3a9   :  { %4800 = vpow2.f32 %v3859_v14  ;;  %v6364_v46 = vld [vmem:[%s6881_s9 + $0x64] ss:$12 sps:$4 sm:$0xff]   ;;  %v6402_v14 = vld [vmem:[%s6881_s9 + $0x94] ss:$12 sps:$4 sm:$0xff]  }
 0x3aa   :  { %7024 = vst [vmem:[#allocation9_spill] sm:$0xff] %v6402_v14 }
 0x3ae   :  { %v4795_v13 = vpop.eup %4794 }
 0x3af   :  { %v2426_v15 = vsub.f32 %v6023_v40, %v4795_v13  ;;  %v4797_v44 = vpop.eup %4796  ;;  %v6172_v40 = vld [vmem:[%s6881_s9 + $0xc0] ss:$12 sps:$4 sm:$0xff]  }
 0x3b1   :  { %v2427_v17 = vmul.f32 %v4797_v44, %v2426_v15  ;;  %v6390_v15 = vld [vmem:[%s6881_s9 + $0x78] ss:$12 sps:$4 sm:$0xff]   ;;  %v6396_v44 = vld [vmem:[%s6881_s9 + $0x80] ss:$12 sps:$4 sm:$0xff]  }
 0x3b2   :  { %v4799_v51 = vpop.eup %4798  ;;  %7022 = vst [vmem:[#allocation8_spill] sm:$0xff] %v6390_v15  ;;  %7023 = vst [vmem:[#allocation7_spill] sm:$0xff] %v6396_v44 }
 0x3b3   :  { %v2523_v19 = vadd.f32 1.0, %v4799_v51  ;;  %v6162_v18 = vadd.f32 %v4795_v13, %v2427_v17  ;;  %v4801_v62 = vpop.eup %4800  ;;  %v6383_v13 = vld [vmem:[%s6881_s9 + $0x7c] ss:$12 sps:$4 sm:$0xff]   ;;  %v6415_v51 = vld [vmem:[%s6881_s9 + $0x98] ss:$12 sps:$4 sm:$0xff]  }
 0x3b4   :  { %v2524_v53 = vadd.f32 1.0, %v4801_v62  ;;  %7021 = vst [vmem:[#allocation6_spill] sm:$0xff] %v6383_v13  ;;  %v6409_v17 = vld [vmem:[%s6881_s9 + $0x90] ss:$12 sps:$4 sm:$0xff]   ;;  %7026 = vst [vmem:[#allocation10_spill] sm:$0xff] %v6415_v51 }
 0x3b5   :  { %4802 = vrcp.f32 %v2523_v19  ;;  %v2429_v20 = vpack.c.bf16 %v6162_v18, %v6162_v18  ;;  %7025 = vst [vmem:[#allocation11_spill] sm:$0xff] %v6409_v17  ;;  %v6421_v19 = vld [vmem:[%s6881_s9 + $0xac] ss:$12 sps:$4 sm:$0xff]   ;;  %v6434_v62 = vld [vmem:[%s6881_s9 + $0xb0] ss:$12 sps:$4 sm:$0xff]  }
 0x3b6   :  { %7027 = vst [vmem:[#allocation12_spill] sm:$0xff] %v6421_v19  ;;  %7029 = vst [vmem:[#allocation13_spill] sm:$0xff] %v6434_v62 }
 0x3b7   :  { %2430 = vst [vmem:[%s6884_s11 + $0x8] sm:$0xf] %v2429_v20  ;;  %2574 = vmatmul.mubr.bf16.vlgmr.msra.gmra.mrb[56].mxu0 %v2429_v20  ;;  %4305 = vmatmul.mubr.bf16.vlgmr.msra.gmra.mrb[40].mxu1 %v2429_v20  ;;  %v6428_v20 = vld [vmem:[%s6881_s9 + $0xa8] ss:$12 sps:$4 sm:$0xff]  }
 0x3b8   :  { %2649 = vmatpush1.bf16.msra.mxu0 %v6172_v40  ;;  %4309 = vmatpush3.bf16.msra.mxu1 %v6178_v21  ;;  %7028 = vst [vmem:[#allocation14_spill] sm:$0xff] %v6428_v20 }
 0x3b9   :  { %2650 = vmatprep.subr.bf16.mxu0 %v6184_v22  ;;  %4310 = vmatprep.subr.bf16.mxu1 %v6993_v16 }
 0x3ba   :  { %2680 = vmatprep.mubr.bf16.mxu0 %v6994_v7  ;;  %4324 = vmatprep.mubr.msk.bf16.mxu1 %vm4992_vm0, %v6993_v16 }
 0x3bc   :  { %2651 = vmatpush1.bf16.msra.mxu0 %v6194_v24  ;;  %4311 = vmatpush3.bf16.msra.mxu1 %v6200_v60 }
 0x3bd   :  { %2652 = vmatprep.subr.bf16.mxu0 %v6206_v61  ;;  %4312 = vmatprep.subr.bf16.mxu1 %v6993_v16 }
 0x3bf   :  { %v4803_v34 = vpop.eup %4802 }
 0x3c0   :  { %v2530_v35 = vmul.f32 %v4803_v34, %v2529_v63  ;;  %2653 = vmatpush1.bf16.msra.mxu0 %v6214_v36  ;;  %4313 = vmatpush3.bf16.msra.mxu1 %v6220_v12  ;;  %v6440_v63 = vld [vmem:[%s6881_s9 + $0xc4] ss:$12 sps:$4 sm:$0xff]  }
 0x3c1   :  { %2654 = vmatprep.subr.bf16.mxu0 %v6226_v47  ;;  %4314 = vmatprep.subr.bf16.mxu1 %v6993_v16  ;;  %7030 = vst [vmem:[#allocation15_spill] sm:$0xff] %v6440_v63 }
 0x3c2   :  { %v2531_v50 = vadd.f32 %v2530_v35, %v7020_v49  ;;  %v7031_v49 = vld [vmem:[#allocation27_spill] sm:$0xff] }
 0x3c4   :  { %4804 = vtanh.f32 %v2531_v50  ;;  %2655 = vmatpush1.bf16.msra.mxu0 %v6234_v54  ;;  %4315 = vmatpush3.bf16.msra.mxu1 %v6240_v55 }
 0x3c5   :  { %2656 = vmatprep.subr.bf16.mxu0 %v6246_v56  ;;  %4316 = vmatprep.subr.bf16.mxu1 %v6993_v16  ;;  %4806 = vrcp.f32 %v2524_v53 }
 0x3c8   :  { %2657 = vmatpush1.bf16.msra.mxu0 %v6253_v58  ;;  %4317 = vmatpush3.bf16.msra.mxu1 %v6259_v59 }
 0x3c9   :  { %2658 = vmatprep.subr.bf16.mxu0 %v6265_v38  ;;  %4318 = vmatprep.subr.bf16.mxu1 %v6993_v16 }
 0x3cc   :  { %2659 = vmatpush1.bf16.msra.mxu0 %v6272_v57  ;;  %4319 = vmatpush3.bf16.msra.mxu1 %v6278_v4 }
 0x3cd   :  { %2660 = vmatprep.subr.bf16.mxu0 %v6284_v3  ;;  %4320 = vmatprep.subr.bf16.mxu1 %v6993_v16 }
 0x3ce   :  { %v4805_v0 = vpop.eup %4804 }
 0x3cf   :  { %v2533_v10 = vsub.f32 %v6064_v23, %v4805_v0  ;;  %v4807_v43 = vpop.eup %4806 }
 0x3d0   :  { %2661 = vmatpush1.bf16.msra.mxu0 %v6292_v11  ;;  %4321 = vmatpush3.bf16.msra.mxu1 %v6298_v39 }
 0x3d1   :  { %2662 = vmatprep.subr.bf16.mxu0 %v6304_v8  ;;  %4322 = vmatprep.subr.bf16.mxu1 %v6993_v16  ;;  %v2534_v23 = vmul.f32 %v4807_v43, %v2533_v10  ;;  %v7032_v10 = vld [vmem:[#allocation29_spill] sm:$0xff] }
 0x3d3   :  { %v6308_v45 = vadd.f32 %v4805_v0, %v2534_v23 }
 0x3d4   :  { %2663 = vmatpush1.bf16.msra.mxu0 %v6313_v9  ;;  %4323 = vmatpush3.bf16.msra.mxu1 %v6319_v41 }
 0x3d5   :  { %v2536_v6 = vpack.c.bf16 %v6308_v45, %v6308_v45  ;;  %2755 = vmatprep.subr.bf16.mxu0 %v6073_v25  ;;  %4328 = vmatprep.subr.bf16.mxu1 %v6993_v16 }
 0x3d7   :  { %2537 = vst [vmem:[%s6885_s12 + $0x14] sm:$0xf] %v2536_v6  ;;  %2681 = vmatmul.mubr.bf16.vlgmr.msra.gmra.mrb[60].mxu0 %v2536_v6  ;;  %4325 = vmatmul.mubr.bf16.vlgmr.msra.gmra.mrb[44].mxu1 %v2536_v6 }
 0x3d8   :  { %2756 = vmatpush1.bf16.msra.mxu0 %v6083_v26  ;;  %4329 = vmatpush3.bf16.msra.mxu1 %v6089_v27 }
 0x3d9   :  { %2757 = vmatprep.subr.bf16.mxu0 %v6095_v28  ;;  %4330 = vmatprep.subr.bf16.mxu1 %v6993_v16 }
 0x3da   :  { %2787 = vmatprep.mubr.bf16.mxu0 %v6994_v7  ;;  %4344 = vmatprep.mubr.msk.bf16.mxu1 %vm4992_vm0, %v6993_v16 }
 0x3dc   :  { %2758 = vmatpush1.bf16.msra.mxu0 %v6105_v29  ;;  %4331 = vmatpush3.bf16.msra.mxu1 %v6111_v30 }
 0x3dd   :  { %2759 = vmatprep.subr.bf16.mxu0 %v6117_v31  ;;  %4332 = vmatprep.subr.bf16.mxu1 %v6993_v16 }
 0x3e0   :  { %2760 = vmatpush1.bf16.msra.mxu0 %v6124_v32  ;;  %4333 = vmatpush3.bf16.msra.mxu1 %v6344_v1 }
 0x3e1   :  { %2761 = vmatprep.subr.bf16.mxu0 %v6131_v33  ;;  %4334 = vmatprep.subr.bf16.mxu1 %v6993_v16 }
 0x3e4   :  { %2762 = vmatpush1.bf16.msra.mxu0 %v6352_v37  ;;  %4335 = vmatpush3.bf16.msra.mxu1 %v6358_v48 }
 0x3e5   :  { %2763 = vmatprep.subr.bf16.mxu0 %v6364_v46  ;;  %4336 = vmatprep.subr.bf16.mxu1 %v6993_v16 }
 0x3e8   :  { %2764 = vmatpush1.bf16.msra.mxu0 %v6371_v52  ;;  %4337 = vmatpush3.bf16.msra.mxu1 %v6377_v5 }
 0x3e9   :  { %2765 = vmatprep.subr.bf16.mxu0 %v6383_v13  ;;  %4338 = vmatprep.subr.bf16.mxu1 %v6993_v16 }
 0x3ec   :  { %2766 = vmatpush1.bf16.msra.mxu0 %v6390_v15  ;;  %4339 = vmatpush3.bf16.msra.mxu1 %v6396_v44 }
 0x3ed   :  { %2767 = vmatprep.subr.bf16.mxu0 %v6402_v14  ;;  %4340 = vmatprep.subr.bf16.mxu1 %v6993_v16 }
 0x3f0   :  { %2768 = vmatpush1.bf16.msra.mxu0 %v6409_v17  ;;  %4341 = vmatpush3.bf16.msra.mxu1 %v6415_v51 }
 0x3f1   :  { %2769 = vmatprep.subr.bf16.mxu0 %v6421_v19  ;;  %4342 = vmatprep.subr.bf16.mxu1 %v6993_v16 }
 0x3f4   :  { %2770 = vmatpush1.bf16.msra.mxu0 %v6428_v20  ;;  %4343 = vmatpush3.bf16.msra.mxu1 %v6434_v62 }
 0x3f5   :  { %2862 = vmatprep.subr.bf16.mxu0 %v6440_v63  ;;  %4348 = vmatprep.subr.bf16.mxu1 %v6993_v16 }
 0x48a   :  { %v2575_v34 = vpop.f32.mrb[56].mxu0  ;;  %v2616_v35 = vpop.f32.mrb[40].mxu1 }
 0x48b   :  { %v2622_v50 = vadd.f32 %v2575_v34, %v7031_v49  ;;  %v2577_v53 = vpop.f32.mrb[57].mxu0  ;;  %v4306_v0 = vpop.f32.mrb[41].mxu1  ;;  %v2636_v44 = vadd.f32 %v7016_v42, %v2616_v35  ;;  %v7033_v49 = vld [vmem:[#allocation20_spill] sm:$0xff] }
 0x48c   :  { %v2623_v43 = vadd.f32 %v2577_v53, %v7032_v10  ;;  %v2579_v23 = vpop.f32.mrb[58].mxu0  ;;  %v2619_v6 = vpop.f32.mrb[42].mxu1 }
 0x48d   :  { %v3860_v62 = vmul.f32 -1.442695, %v2622_v50  ;;  %v2580_v20 = vpop.f32.mrb[59].mxu0  ;;  %v4307_v19 = vpop.f32.mrb[43].mxu1  ;;  %v7034_v50 = vld [vmem:[#allocation54_spill] sm:$0xff] }
 0x48e   :  { %v3861_v51 = vmul.f32 -1.442695, %v2623_v43  ;;  %v7035_v43 = vld [vmem:[#allocation55_spill] sm:$0xff] }
 0x48f   :  { %4808 = vpow2.f32 %v3860_v62 }
 0x490   :  { %4810 = vpow2.f32 %v3861_v51 }
 0x499   :  { %v4809_v17 = vpop.eup %4808 }
 0x49a   :  { %v2630_v14 = vadd.f32 1.0, %v4809_v17  ;;  %v4811_v63 = vpop.eup %4810 }
 0x49b   :  { %v2631_v13 = vadd.f32 1.0, %v4811_v63 }
 0x49c   :  { %4812 = vrcp.f32 %v2630_v14 }
 0x4a6   :  { %v4813_v15 = vpop.eup %4812 }
 0x4a7   :  { %v2637_v34 = vmul.f32 %v4813_v15, %v2636_v44 }
 0x4a9   :  { %v2638_v0 = vadd.f32 %v2637_v34, %v7033_v49 }
 0x4aa   :  { %v2682_v53 = vpop.f32.mrb[60].mxu0  ;;  %v2723_v10 = vpop.f32.mrb[44].mxu1 }
 0x4ab   :  { %4814 = vtanh.f32 %v2638_v0  ;;  %v2729_v20 = vadd.f32 %v2682_v53, %v7034_v50  ;;  %v2684_v19 = vpop.f32.mrb[61].mxu0  ;;  %v4326_v62 = vpop.f32.mrb[45].mxu1 }
 0x4ac   :  { %v2730_v23 = vadd.f32 %v2684_v19, %v7035_v43  ;;  %v2686_v17 = vpop.f32.mrb[62].mxu0  ;;  %v2726_v51 = vpop.f32.mrb[46].mxu1  ;;  %4816 = vrcp.f32 %v2631_v13  ;;  %v2743_v13 = vadd.f32 %v5936_v2, %v2723_v10  ;;  %v7036_v62 = vld [vmem:[#allocation50_spill] sm:$0xff] }
 0x4ad   :  { %v3862_v14 = vmul.f32 -1.442695, %v2729_v20  ;;  %v2687_v6 = vpop.f32.mrb[63].mxu0  ;;  %v4327_v42 = vpop.f32.mrb[47].mxu1 }
 0x4ae   :  { %v3863_v35 = vmul.f32 -1.442695, %v2730_v23  ;;  %v7038_v42 = vld [vmem:[#allocation8_spill] sm:$0xff] }
 0x4af   :  { %4818 = vpow2.f32 %v3862_v14 }
 0x4b0   :  { %4820 = vpow2.f32 %v3863_v35  ;;  %v7042_v35 = vld [vmem:[#allocation10_spill] sm:$0xff] }
 0x4b5   :  { %v4815_v15 = vpop.eup %4814 }
 0x4b6   :  { %v2640_v44 = vsub.f32 %v6162_v18, %v4815_v15  ;;  %v4817_v63 = vpop.eup %4816 }
 0x4b8   :  { %v2641_v34 = vmul.f32 %v4817_v63, %v2640_v44  ;;  %v7040_v44 = vld [vmem:[#allocation9_spill] sm:$0xff]  ;;  %v7041_v63 = vld [vmem:[#allocation11_spill] sm:$0xff] }
 0x4b9   :  { %v4819_v49 = vpop.eup %4818 }
 0x4ba   :  { %v2737_v0 = vadd.f32 1.0, %v4819_v49  ;;  %v6451_v53 = vadd.f32 %v4815_v15, %v2641_v34  ;;  %v4821_v18 = vpop.eup %4820  ;;  %v7039_v15 = vld [vmem:[#allocation7_spill] sm:$0xff]  ;;  %v7043_v34 = vld [vmem:[#allocation12_spill] sm:$0xff]  ;;  %v7044_v49 = vld [vmem:[#allocation14_spill] sm:$0xff] }
 0x4bb   :  { %v2738_v23 = vadd.f32 1.0, %v4821_v18 }
 0x4bc   :  { %4822 = vrcp.f32 %v2737_v0  ;;  %v2643_v50 = vpack.c.bf16 %v6451_v53, %v6451_v53  ;;  %v7045_v0 = vld [vmem:[#allocation13_spill] sm:$0xff] }
 0x4be   :  { %2644 = vst [vmem:[%s6884_s11 + $0xc] sm:$0xf] %v2643_v50  ;;  %2788 = vmatmul.mubr.bf16.vlgmr.msra.gmra.mrb[64].mxu0 %v2643_v50  ;;  %4345 = vmatmul.mubr.bf16.vlgmr.msra.gmra.mrb[48].mxu1 %v2643_v50  ;;  %v7046_v50 = vld [vmem:[#allocation15_spill] sm:$0xff] }
 0x4bf   :  { %2863 = vmatpush1.bf16.msra.mxu0 %v6172_v40  ;;  %4349 = vmatpush3.bf16.msra.mxu1 %v6178_v21 }
 0x4c0   :  { %2864 = vmatprep.subr.bf16.mxu0 %v6184_v22  ;;  %4350 = vmatprep.subr.bf16.mxu1 %v6993_v16 }
 0x4c1   :  { %2894 = vmatprep.mubr.bf16.mxu0 %v6994_v7  ;;  %4364 = vmatprep.mubr.msk.bf16.mxu1 %vm4992_vm0, %v6993_v16 }
 0x4c3   :  { %2865 = vmatpush1.bf16.msra.mxu0 %v6194_v24  ;;  %4351 = vmatpush3.bf16.msra.mxu1 %v6200_v60 }
 0x4c4   :  { %2866 = vmatprep.subr.bf16.mxu0 %v6206_v61  ;;  %4352 = vmatprep.subr.bf16.mxu1 %v6993_v16 }
 0x4c6   :  { %v4823_v20 = vpop.eup %4822 }
 0x4c7   :  { %v2744_v19 = vmul.f32 %v4823_v20, %v2743_v13  ;;  %2867 = vmatpush1.bf16.msra.mxu0 %v6214_v36  ;;  %4353 = vmatpush3.bf16.msra.mxu1 %v6220_v12  ;;  %v7047_v20 = vld [vmem:[#allocation31_spill] sm:$0xff] }
 0x4c8   :  { %2868 = vmatprep.subr.bf16.mxu0 %v6226_v47  ;;  %4354 = vmatprep.subr.bf16.mxu1 %v6993_v16 }
 0x4c9   :  { %v2745_v43 = vadd.f32 %v2744_v19, %v7036_v62 }
 0x4cb   :  { %4824 = vtanh.f32 %v2745_v43  ;;  %2869 = vmatpush1.bf16.msra.mxu0 %v6234_v54  ;;  %4355 = vmatpush3.bf16.msra.mxu1 %v6240_v55 }
 0x4cc   :  { %2870 = vmatprep.subr.bf16.mxu0 %v6246_v56  ;;  %4356 = vmatprep.subr.bf16.mxu1 %v6993_v16  ;;  %4826 = vrcp.f32 %v2738_v23  ;;  %v7048_v23 = vld [vmem:[#allocation32_spill] sm:$0xff] }
 0x4cf   :  { %2871 = vmatpush1.bf16.msra.mxu0 %v6253_v58  ;;  %4357 = vmatpush3.bf16.msra.mxu1 %v6259_v59 }
 0x4d0   :  { %2872 = vmatprep.subr.bf16.mxu0 %v6265_v38  ;;  %4358 = vmatprep.subr.bf16.mxu1 %v6993_v16 }
 0x4d3   :  { %2873 = vmatpush1.bf16.msra.mxu0 %v6272_v57  ;;  %4359 = vmatpush3.bf16.msra.mxu1 %v6278_v4 }
 0x4d4   :  { %2874 = vmatprep.subr.bf16.mxu0 %v6284_v3  ;;  %4360 = vmatprep.subr.bf16.mxu1 %v6993_v16 }
 0x4d5   :  { %v4825_v2 = vpop.eup %4824 }
 0x4d6   :  { %v2747_v10 = vsub.f32 %v6308_v45, %v4825_v2  ;;  %v4827_v17 = vpop.eup %4826  ;;  %v7037_v45 = vld [vmem:[#allocation6_spill] sm:$0xff] }
 0x4d7   :  { %2875 = vmatpush1.bf16.msra.mxu0 %v6292_v11  ;;  %4361 = vmatpush3.bf16.msra.mxu1 %v6298_v39 }
 0x4d8   :  { %2876 = vmatprep.subr.bf16.mxu0 %v6304_v8  ;;  %4362 = vmatprep.subr.bf16.mxu1 %v6993_v16  ;;  %v2748_v51 = vmul.f32 %v4827_v17, %v2747_v10 }
 0x4da   :  { %v6492_v14 = vadd.f32 %v4825_v2, %v2748_v51 }
 0x4db   :  { %2877 = vmatpush1.bf16.msra.mxu0 %v6313_v9  ;;  %4363 = vmatpush3.bf16.msra.mxu1 %v6319_v41 }
 0x4dc   :  { %v2750_v6 = vpack.c.bf16 %v6492_v14, %v6492_v14  ;;  %2969 = vmatprep.subr.bf16.mxu0 %v6073_v25  ;;  %4368 = vmatprep.subr.bf16.mxu1 %v6993_v16 }
 0x4de   :  { %2751 = vst [vmem:[%s6885_s12 + $0x10] sm:$0xf] %v2750_v6  ;;  %2895 = vmatmul.mubr.bf16.vlgmr.msra.gmra.mrb[68].mxu0 %v2750_v6  ;;  %4365 = vmatmul.mubr.bf16.vlgmr.msra.gmra.mrb[52].mxu1 %v2750_v6 }
 0x4df   :  { %2970 = vmatpush1.bf16.msra.mxu0 %v6083_v26  ;;  %4369 = vmatpush3.bf16.msra.mxu1 %v6089_v27 }
 0x4e0   :  { %2971 = vmatprep.subr.bf16.mxu0 %v6095_v28  ;;  %4370 = vmatprep.subr.bf16.mxu1 %v6993_v16 }
 0x4e1   :  { %3001 = vmatprep.mubr.bf16.mxu0 %v6994_v7  ;;  %4384 = vmatprep.mubr.msk.bf16.mxu1 %vm4992_vm0, %v6993_v16 }
 0x4e3   :  { %2972 = vmatpush1.bf16.msra.mxu0 %v6105_v29  ;;  %4371 = vmatpush3.bf16.msra.mxu1 %v6111_v30 }
 0x4e4   :  { %2973 = vmatprep.subr.bf16.mxu0 %v6117_v31  ;;  %4372 = vmatprep.subr.bf16.mxu1 %v6993_v16 }
 0x4e7   :  { %2974 = vmatpush1.bf16.msra.mxu0 %v6124_v32  ;;  %4373 = vmatpush3.bf16.msra.mxu1 %v6344_v1 }
 0x4e8   :  { %2975 = vmatprep.subr.bf16.mxu0 %v6131_v33  ;;  %4374 = vmatprep.subr.bf16.mxu1 %v6993_v16 }
 0x4eb   :  { %2976 = vmatpush1.bf16.msra.mxu0 %v6352_v37  ;;  %4375 = vmatpush3.bf16.msra.mxu1 %v6358_v48 }
 0x4ec   :  { %2977 = vmatprep.subr.bf16.mxu0 %v6364_v46  ;;  %4376 = vmatprep.subr.bf16.mxu1 %v6993_v16 }
 0x4ef   :  { %2978 = vmatpush1.bf16.msra.mxu0 %v6371_v52  ;;  %4377 = vmatpush3.bf16.msra.mxu1 %v6377_v5 }
 0x4f0   :  { %2979 = vmatprep.subr.bf16.mxu0 %v7037_v45  ;;  %4378 = vmatprep.subr.bf16.mxu1 %v6993_v16 }
 0x4f3   :  { %2980 = vmatpush1.bf16.msra.mxu0 %v7038_v42  ;;  %4379 = vmatpush3.bf16.msra.mxu1 %v7039_v15 }
 0x4f4   :  { %2981 = vmatprep.subr.bf16.mxu0 %v7040_v44  ;;  %4380 = vmatprep.subr.bf16.mxu1 %v6993_v16 }
 0x4f7   :  { %2982 = vmatpush1.bf16.msra.mxu0 %v7041_v63  ;;  %4381 = vmatpush3.bf16.msra.mxu1 %v7042_v35 }
 0x4f8   :  { %2983 = vmatprep.subr.bf16.mxu0 %v7043_v34  ;;  %4382 = vmatprep.subr.bf16.mxu1 %v6993_v16 }
 0x4fb   :  { %2984 = vmatpush1.bf16.msra.mxu0 %v7044_v49  ;;  %4383 = vmatpush3.bf16.msra.mxu1 %v7045_v0 }
 0x4fc   :  { %3076 = vmatprep.subr.bf16.mxu0 %v7046_v50  ;;  %4388 = vmatprep.subr.bf16.mxu1 %v6993_v16 }
 0x591   :  { %v2789_v18 = vpop.f32.mrb[64].mxu0  ;;  %v2830_v13 = vpop.f32.mrb[48].mxu1 }
 0x592   :  { %v2836_v19 = vadd.f32 %v2789_v18, %v7047_v20  ;;  %v2791_v62 = vpop.f32.mrb[65].mxu0  ;;  %v4346_v43 = vpop.f32.mrb[49].mxu1  ;;  %v6543_v18 = vld [vmem:[%s6883_s10] ss:$0 sm:$0xff] }
 0x593   :  { %v2837_v2 = vadd.f32 %v2791_v62, %v7048_v23  ;;  %v2793_v10 = vpop.f32.mrb[66].mxu0  ;;  %v2833_v17 = vpop.f32.mrb[50].mxu1  ;;  %7049 = vst [vmem:[#allocation17_spill] sm:$0xff] %v6543_v18  ;;  %v2850_v20 = vadd.f32 %v6543_v18, %v2830_v13  ;;  %v7050_v23 = vld [vmem:[#allocation26_spill] sm:$0xff] }
 0x594   :  { %v3864_v51 = vmul.f32 -1.442695, %v2836_v19  ;;  %v2794_v6 = vpop.f32.mrb[67].mxu0  ;;  %v4347_v34 = vpop.f32.mrb[51].mxu1 }
 0x595   :  { %v3865_v49 = vmul.f32 -1.442695, %v2837_v2  ;;  %v7051_v2 = vld [vmem:[#allocation51_spill] sm:$0xff] }
 0x596   :  { %4828 = vpow2.f32 %v3864_v51  ;;  %v7052_v51 = vld [vmem:[#allocation52_spill] sm:$0xff] }
 0x597   :  { %4830 = vpow2.f32 %v3865_v49 }
 0x5a0   :  { %v4829_v0 = vpop.eup %4828 }
 0x5a1   :  { %v2844_v35 = vadd.f32 1.0, %v4829_v0  ;;  %v4831_v50 = vpop.eup %4830 }
 0x5a2   :  { %v2845_v10 = vadd.f32 1.0, %v4831_v50 }
 0x5a3   :  { %4832 = vrcp.f32 %v2844_v35 }
 0x5ad   :  { %v4833_v62 = vpop.eup %4832 }
 0x5ae   :  { %v2851_v43 = vmul.f32 %v4833_v62, %v2850_v20 }
 0x5b0   :  { %v2852_v19 = vadd.f32 %v2851_v43, %v7050_v23 }
 0x5b1   :  { %v2896_v34 = vpop.f32.mrb[68].mxu0  ;;  %v2937_v17 = vpop.f32.mrb[52].mxu1 }
 0x5b2   :  { %4834 = vtanh.f32 %v2852_v19  ;;  %v2943_v0 = vadd.f32 %v2896_v34, %v7051_v2  ;;  %v2898_v49 = vpop.f32.mrb[69].mxu0  ;;  %v4366_v35 = vpop.f32.mrb[53].mxu1 }
 0x5b3   :  { %v2944_v6 = vadd.f32 %v2898_v49, %v7052_v51  ;;  %v2900_v63 = vpop.f32.mrb[70].mxu0  ;;  %v2940_v44 = vpop.f32.mrb[54].mxu1  ;;  %4836 = vrcp.f32 %v2845_v10  ;;  %v7053_v10 = vld [vmem:[#allocation44_spill] sm:$0xff] }
 0x5b4   :  { %v3866_v15 = vmul.f32 -1.442695, %v2943_v0  ;;  %v2901_v42 = vpop.f32.mrb[71].mxu0  ;;  %v4367_v13 = vpop.f32.mrb[55].mxu1 }
 0x5b5   :  { %v3867_v43 = vmul.f32 -1.442695, %v2944_v6  ;;  %v6571_v42 = vld [vmem:[%s6883_s10 + $0x1] ss:$0 sm:$0xff] }
 0x5b6   :  { %4838 = vpow2.f32 %v3866_v15  ;;  %v2957_v15 = vadd.f32 %v6571_v42, %v2937_v17 }
 0x5b7   :  { %4840 = vpow2.f32 %v3867_v43 }
 0x5bc   :  { %v4835_v20 = vpop.eup %4834 }
 0x5bd   :  { %v2854_v62 = vsub.f32 %v6451_v53, %v4835_v20  ;;  %v4837_v50 = vpop.eup %4836 }
 0x5bf   :  { %v2855_v23 = vmul.f32 %v4837_v50, %v2854_v62  ;;  %v7063_v62 = vld [vmem:[#allocation33_spill] sm:$0xff] }
 0x5c0   :  { %v4839_v19 = vpop.eup %4838 }
 0x5c1   :  { %v2951_v18 = vadd.f32 1.0, %v4839_v19  ;;  %v6550_v34 = vadd.f32 %v4835_v20, %v2855_v23  ;;  %v4841_v53 = vpop.eup %4840  ;;  %v7064_v19 = vld [vmem:[#allocation34_spill] sm:$0xff] }
 0x5c2   :  { %v2952_v0 = vadd.f32 1.0, %v4841_v53 }
 0x5c3   :  { %4842 = vrcp.f32 %v2951_v18  ;;  %v2857_v44 = vpack.c.bf16 %v6550_v34, %v6550_v34 }
 0x5c5   :  { %2858 = vst [vmem:[%s6884_s11 + $0x10] sm:$0xf] %v2857_v44  ;;  %3002 = vmatmul.mubr.bf16.vlgmr.msra.gmra.mrb[72].mxu0 %v2857_v44  ;;  %4385 = vmatmul.mubr.bf16.vlgmr.msra.gmra.mrb[56].mxu1 %v2857_v44 }
 0x5c6   :  { %3077 = vmatpush1.bf16.msra.mxu0 %v6172_v40  ;;  %4389 = vmatpush3.bf16.msra.mxu1 %v6178_v21 }
 0x5c7   :  { %3078 = vmatprep.subr.bf16.mxu0 %v6184_v22  ;;  %4390 = vmatprep.subr.bf16.mxu1 %v6993_v16 }
 0x5c8   :  { %3108 = vmatprep.mubr.bf16.mxu0 %v6994_v7  ;;  %4404 = vmatprep.mubr.msk.bf16.mxu1 %vm4992_vm0, %v6993_v16 }
 0x5ca   :  { %3079 = vmatpush1.bf16.msra.mxu0 %v6194_v24  ;;  %4391 = vmatpush3.bf16.msra.mxu1 %v6200_v60 }
 0x5cb   :  { %3080 = vmatprep.subr.bf16.mxu0 %v6206_v61  ;;  %4392 = vmatprep.subr.bf16.mxu1 %v6993_v16 }
 0x5cd   :  { %v4843_v63 = vpop.eup %4842 }
 0x5ce   :  { %v2958_v18 = vmul.f32 %v4843_v63, %v2957_v15  ;;  %3081 = vmatpush1.bf16.msra.mxu0 %v6214_v36  ;;  %4393 = vmatpush3.bf16.msra.mxu1 %v6220_v12 }
 0x5cf   :  { %3082 = vmatprep.subr.bf16.mxu0 %v6226_v47  ;;  %4394 = vmatprep.subr.bf16.mxu1 %v6993_v16 }
 0x5d0   :  { %v2959_v2 = vadd.f32 %v2958_v18, %v7053_v10 }
 0x5d2   :  { %4844 = vtanh.f32 %v2959_v2  ;;  %3083 = vmatpush1.bf16.msra.mxu0 %v6234_v54  ;;  %4395 = vmatpush3.bf16.msra.mxu1 %v6240_v55 }
 0x5d3   :  { %3084 = vmatprep.subr.bf16.mxu0 %v6246_v56  ;;  %4396 = vmatprep.subr.bf16.mxu1 %v6993_v16  ;;  %4846 = vrcp.f32 %v2952_v0 }
 0x5d6   :  { %3085 = vmatpush1.bf16.msra.mxu0 %v6253_v58  ;;  %4397 = vmatpush3.bf16.msra.mxu1 %v6259_v59 }
 0x5d7   :  { %3086 = vmatprep.subr.bf16.mxu0 %v6265_v38  ;;  %4398 = vmatprep.subr.bf16.mxu1 %v6993_v16 }
 0x5da   :  { %3087 = vmatpush1.bf16.msra.mxu0 %v6272_v57  ;;  %4399 = vmatpush3.bf16.msra.mxu1 %v6278_v4 }
 0x5db   :  { %3088 = vmatprep.subr.bf16.mxu0 %v6284_v3  ;;  %4400 = vmatprep.subr.bf16.mxu1 %v6993_v16 }
 0x5dc   :  { %v4845_v17 = vpop.eup %4844 }
 0x5dd   :  { %v2961_v49 = vsub.f32 %v6492_v14, %v4845_v17  ;;  %v4847_v35 = vpop.eup %4846 }
 0x5de   :  { %3089 = vmatpush1.bf16.msra.mxu0 %v6292_v11  ;;  %4401 = vmatpush3.bf16.msra.mxu1 %v6298_v39 }
 0x5df   :  { %3090 = vmatprep.subr.bf16.mxu0 %v6304_v8  ;;  %4402 = vmatprep.subr.bf16.mxu1 %v6993_v16  ;;  %v2962_v51 = vmul.f32 %v4847_v35, %v2961_v49  ;;  %v7065_v35 = vld [vmem:[#allocation17_spill] sm:$0xff] }
 0x5e1   :  { %v6596_v6 = vadd.f32 %v4845_v17, %v2962_v51 }
 0x5e2   :  { %3091 = vmatpush1.bf16.msra.mxu0 %v6313_v9  ;;  %4403 = vmatpush3.bf16.msra.mxu1 %v6319_v41 }
 0x5e3   :  { %v2964_v13 = vpack.c.bf16 %v6596_v6, %v6596_v6  ;;  %3183 = vmatprep.subr.bf16.mxu0 %v6073_v25  ;;  %4408 = vmatprep.subr.bf16.mxu1 %v6993_v16  ;;  %v7054_v25 = vld [vmem:[#allocation8_spill] sm:$0xff] }
 0x5e5   :  { %2965 = vst [vmem:[%s6885_s12 + $0xc] sm:$0xf] %v2964_v13  ;;  %3109 = vmatmul.mubr.bf16.vlgmr.msra.gmra.mrb[76].mxu0 %v2964_v13  ;;  %4405 = vmatmul.mubr.bf16.vlgmr.msra.gmra.mrb[60].mxu1 %v2964_v13 }
 0x5e6   :  { %3184 = vmatpush1.bf16.msra.mxu0 %v6083_v26  ;;  %4409 = vmatpush3.bf16.msra.mxu1 %v6089_v27  ;;  %v7055_v26 = vld [vmem:[#allocation7_spill] sm:$0xff]  ;;  %v7056_v27 = vld [vmem:[#allocation9_spill] sm:$0xff] }
 0x5e7   :  { %3185 = vmatprep.subr.bf16.mxu0 %v6095_v28  ;;  %4410 = vmatprep.subr.bf16.mxu1 %v6993_v16  ;;  %v7057_v28 = vld [vmem:[#allocation11_spill] sm:$0xff] }
 0x5e8   :  { %3215 = vmatprep.mubr.bf16.mxu0 %v6994_v7  ;;  %4424 = vmatprep.mubr.msk.bf16.mxu1 %vm4992_vm0, %v6993_v16 }
 0x5ea   :  { %3186 = vmatpush1.bf16.msra.mxu0 %v6105_v29  ;;  %4411 = vmatpush3.bf16.msra.mxu1 %v6111_v30  ;;  %v7058_v29 = vld [vmem:[#allocation10_spill] sm:$0xff]  ;;  %v7059_v30 = vld [vmem:[#allocation12_spill] sm:$0xff] }
 0x5eb   :  { %3187 = vmatprep.subr.bf16.mxu0 %v6117_v31  ;;  %4412 = vmatprep.subr.bf16.mxu1 %v6993_v16  ;;  %v7060_v31 = vld [vmem:[#allocation14_spill] sm:$0xff] }
 0x5ee   :  { %3188 = vmatpush1.bf16.msra.mxu0 %v6124_v32  ;;  %4413 = vmatpush3.bf16.msra.mxu1 %v6344_v1  ;;  %v7061_v32 = vld [vmem:[#allocation13_spill] sm:$0xff] }
 0x5ef   :  { %3189 = vmatprep.subr.bf16.mxu0 %v6131_v33  ;;  %4414 = vmatprep.subr.bf16.mxu1 %v6993_v16  ;;  %v7062_v33 = vld [vmem:[#allocation15_spill] sm:$0xff] }
 0x5f2   :  { %3190 = vmatpush1.bf16.msra.mxu0 %v6352_v37  ;;  %4415 = vmatpush3.bf16.msra.mxu1 %v6358_v48 }
 0x5f3   :  { %3191 = vmatprep.subr.bf16.mxu0 %v6364_v46  ;;  %4416 = vmatprep.subr.bf16.mxu1 %v6993_v16 }
 0x5f6   :  { %3192 = vmatpush1.bf16.msra.mxu0 %v6371_v52  ;;  %4417 = vmatpush3.bf16.msra.mxu1 %v6377_v5 }
 0x5f7   :  { %3193 = vmatprep.subr.bf16.mxu0 %v7037_v45  ;;  %4418 = vmatprep.subr.bf16.mxu1 %v6993_v16 }
 0x5fa   :  { %3194 = vmatpush1.bf16.msra.mxu0 %v7054_v25  ;;  %4419 = vmatpush3.bf16.msra.mxu1 %v7055_v26 }
 0x5fb   :  { %3195 = vmatprep.subr.bf16.mxu0 %v7056_v27  ;;  %4420 = vmatprep.subr.bf16.mxu1 %v6993_v16 }
 0x5fe   :  { %3196 = vmatpush1.bf16.msra.mxu0 %v7057_v28  ;;  %4421 = vmatpush3.bf16.msra.mxu1 %v7058_v29 }
 0x5ff   :  { %3197 = vmatprep.subr.bf16.mxu0 %v7059_v30  ;;  %4422 = vmatprep.subr.bf16.mxu1 %v6993_v16 }
 0x602   :  { %3198 = vmatpush1.bf16.msra.mxu0 %v7060_v31  ;;  %4423 = vmatpush3.bf16.msra.mxu1 %v7061_v32 }
 0x603   :  { %3290 = vmatprep.subr.bf16.mxu0 %v7062_v33  ;;  %4428 = vmatprep.subr.bf16.mxu1 %v6993_v16 }
 0x698   :  { %v3003_v14 = vpop.f32.mrb[72].mxu0  ;;  %v3044_v20 = vpop.f32.mrb[56].mxu1 }
 0x699   :  { %v3050_v50 = vadd.f32 %v3003_v14, %v7063_v62  ;;  %v3005_v43 = vpop.f32.mrb[73].mxu0  ;;  %v4386_v23 = vpop.f32.mrb[57].mxu1  ;;  %v3064_v51 = vadd.f32 %v7065_v35, %v3044_v20  ;;  %v7066_v62 = vld [vmem:[#allocation30_spill] sm:$0xff] }
 0x69a   :  { %v3051_v44 = vadd.f32 %v3005_v43, %v7064_v19  ;;  %v3007_v53 = vpop.f32.mrb[74].mxu0  ;;  %v3047_v15 = vpop.f32.mrb[58].mxu1 }
 0x69b   :  { %v3868_v63 = vmul.f32 -1.442695, %v3050_v50  ;;  %v3008_v18 = vpop.f32.mrb[75].mxu0  ;;  %v4387_v10 = vpop.f32.mrb[59].mxu1  ;;  %v7067_v50 = vld [vmem:[#allocation47_spill] sm:$0xff] }
 0x69c   :  { %v3869_v2 = vmul.f32 -1.442695, %v3051_v44  ;;  %v7068_v44 = vld [vmem:[#allocation49_spill] sm:$0xff] }
 0x69d   :  { %4848 = vpow2.f32 %v3868_v63 }
 0x69e   :  { %4850 = vpow2.f32 %v3869_v2 }
 0x6a7   :  { %v4849_v0 = vpop.eup %4848 }
 0x6a8   :  { %v3058_v17 = vadd.f32 1.0, %v4849_v0  ;;  %v4851_v49 = vpop.eup %4850 }
 0x6a9   :  { %v3059_v33 = vadd.f32 1.0, %v4851_v49 }
 0x6aa   :  { %4852 = vrcp.f32 %v3058_v17 }
 0x6b4   :  { %v4853_v13 = vpop.eup %4852 }
 0x6b5   :  { %v3065_v14 = vmul.f32 %v4853_v13, %v3064_v51 }
 0x6b7   :  { %v3066_v23 = vadd.f32 %v3065_v14, %v7066_v62 }
 0x6b8   :  { %v3110_v43 = vpop.f32.mrb[76].mxu0  ;;  %v3151_v19 = vpop.f32.mrb[60].mxu1 }
 0x6b9   :  { %4854 = vtanh.f32 %v3066_v23  ;;  %v3157_v53 = vadd.f32 %v3110_v43, %v7067_v50  ;;  %v3112_v15 = vpop.f32.mrb[77].mxu0  ;;  %v4406_v63 = vpop.f32.mrb[61].mxu1 }
 0x6ba   :  { %v3158_v18 = vadd.f32 %v3112_v15, %v7068_v44  ;;  %v3114_v10 = vpop.f32.mrb[78].mxu0  ;;  %v3154_v2 = vpop.f32.mrb[62].mxu1  ;;  %4856 = vrcp.f32 %v3059_v33  ;;  %v7074_v15 = vld [vmem:[#allocation24_spill] sm:$0xff] }
 0x6bb   :  { %v3870_v0 = vmul.f32 -1.442695, %v3157_v53  ;;  %v3115_v17 = vpop.f32.mrb[79].mxu0  ;;  %v4407_v20 = vpop.f32.mrb[63].mxu1  ;;  %v7075_v2 = vld [vmem:[#allocation43_spill] sm:$0xff] }
 0x6bc   :  { %v3871_v14 = vmul.f32 -1.442695, %v3158_v18 }
 0x6bd   :  { %4858 = vpow2.f32 %v3870_v0 }
 0x6be   :  { %4860 = vpow2.f32 %v3871_v14 }
 0x6c3   :  { %v4855_v51 = vpop.eup %4854 }
 0x6c4   :  { %v3068_v13 = vsub.f32 %v6550_v34, %v4855_v51  ;;  %v4857_v49 = vpop.eup %4856 }
 0x6c6   :  { %v3069_v62 = vmul.f32 %v4857_v49, %v3068_v13 }
 0x6c7   :  { %v4859_v23 = vpop.eup %4858 }
 0x6c8   :  { %v3165_v35 = vadd.f32 1.0, %v4859_v23  ;;  %v6649_v43 = vadd.f32 %v4855_v51, %v3069_v62  ;;  %v7076_v51 = vld [vmem:[#allocation45_spill] sm:$0xff] }
 0x6ca   :  { %4862 = vrcp.f32 %v3165_v35  ;;  %v3071_v50 = vpack.c.bf16 %v6649_v43, %v6649_v43 }
 0x6cc   :  { %3072 = vst [vmem:[%s6884_s11 + $0x14] sm:$0xf] %v3071_v50  ;;  %3216 = vmatmul.mubr.bf16.vlgmr.msra.gmra.mrb[80].mxu0 %v3071_v50  ;;  %4425 = vmatmul.mubr.bf16.vlgmr.msra.gmra.mrb[64].mxu1 %v3071_v50 }
 0x6cd   :  { %3291 = vmatpush1.bf16.msra.mxu0 %v6172_v40  ;;  %4429 = vmatpush3.bf16.msra.mxu1 %v6178_v21  ;;  %v4861_v40 = vpop.eup %4860  ;;  %v3171_v21 = vadd.f32 %v6571_v42, %v3151_v19 }
 0x6ce   :  { %3292 = vmatprep.subr.bf16.mxu0 %v6184_v22  ;;  %4430 = vmatprep.subr.bf16.mxu1 %v6993_v16 }
 0x6cf   :  { %3322 = vmatprep.mubr.bf16.mxu0 %v6994_v7  ;;  %4444 = vmatprep.mubr.msk.bf16.mxu1 %vm4992_vm0, %v6993_v16 }
 0x6d1   :  { %3293 = vmatpush1.bf16.msra.mxu0 %v6194_v24  ;;  %4431 = vmatpush3.bf16.msra.mxu1 %v6200_v60  ;;  %v7069_v24 = vld [vmem:[#allocation40_spill] sm:$0xff]  ;;  %v3166_v60 = vadd.f32 1.0, %v4861_v40 }
 0x6d2   :  { %3294 = vmatprep.subr.bf16.mxu0 %v6206_v61  ;;  %4432 = vmatprep.subr.bf16.mxu1 %v6993_v16 }
 0x6d4   :  { %v4863_v34 = vpop.eup %4862 }
 0x6d5   :  { %v3172_v22 = vmul.f32 %v4863_v34, %v3171_v21  ;;  %3295 = vmatpush1.bf16.msra.mxu0 %v6214_v36  ;;  %4433 = vmatpush3.bf16.msra.mxu1 %v6220_v12 }
 0x6d6   :  { %3296 = vmatprep.subr.bf16.mxu0 %v6226_v47  ;;  %4434 = vmatprep.subr.bf16.mxu1 %v6993_v16 }
 0x6d7   :  { %v3173_v33 = vadd.f32 %v3172_v22, %v7069_v24 }
 0x6d9   :  { %4864 = vtanh.f32 %v3173_v33  ;;  %3297 = vmatpush1.bf16.msra.mxu0 %v6234_v54  ;;  %4435 = vmatpush3.bf16.msra.mxu1 %v6240_v55 }
 0x6da   :  { %3298 = vmatprep.subr.bf16.mxu0 %v6246_v56  ;;  %4436 = vmatprep.subr.bf16.mxu1 %v6993_v16  ;;  %4866 = vrcp.f32 %v3166_v60  ;;  %v4958_v56 = vld [vmem:[%s6881_s9 + $0x4] ss:$12 sps:$4 sm:$0xff]  }
 0x6dd   :  { %3299 = vmatpush1.bf16.msra.mxu0 %v6253_v58  ;;  %4437 = vmatpush3.bf16.msra.mxu1 %v6259_v59  ;;  %v4959_v58 = vld [vmem:[%s6881_s9] ss:$12 sps:$4 sm:$0xff]   ;;  %v4960_v59 = vld [vmem:[%s6881_s9 + $0x8] ss:$12 sps:$4 sm:$0xff]  }
 0x6de   :  { %3300 = vmatprep.subr.bf16.mxu0 %v6265_v38  ;;  %4438 = vmatprep.subr.bf16.mxu1 %v6993_v16  ;;  %v4961_v38 = vld [vmem:[%s6881_s9 + $0x1c] ss:$12 sps:$4 sm:$0xff]  }
 0x6e1   :  { %3301 = vmatpush1.bf16.msra.mxu0 %v6272_v57  ;;  %4439 = vmatpush3.bf16.msra.mxu1 %v6278_v4  ;;  %v4962_v57 = vld [vmem:[%s6881_s9 + $0x18] ss:$12 sps:$4 sm:$0xff]   ;;  %v4963_v4 = vld [vmem:[%s6881_s9 + $0x20] ss:$12 sps:$4 sm:$0xff]  }
 0x6e2   :  { %3302 = vmatprep.subr.bf16.mxu0 %v6284_v3  ;;  %4440 = vmatprep.subr.bf16.mxu1 %v6993_v16  ;;  %v4964_v3 = vld [vmem:[%s6881_s9 + $0x34] ss:$12 sps:$4 sm:$0xff]  }
 0x6e3   :  { %v4865_v61 = vpop.eup %4864 }
 0x6e4   :  { %v3175_v36 = vsub.f32 %v6596_v6, %v4865_v61  ;;  %v4867_v12 = vpop.eup %4866 }
 0x6e5   :  { %3303 = vmatpush1.bf16.msra.mxu0 %v6292_v11  ;;  %4441 = vmatpush3.bf16.msra.mxu1 %v6298_v39  ;;  %v4965_v11 = vld [vmem:[%s6881_s9 + $0x30] ss:$12 sps:$4 sm:$0xff]   ;;  %v4966_v39 = vld [vmem:[%s6881_s9 + $0x4c] ss:$12 sps:$4 sm:$0xff]  }
 0x6e6   :  { %3304 = vmatprep.subr.bf16.mxu0 %v6304_v8  ;;  %4442 = vmatprep.subr.bf16.mxu1 %v6993_v16  ;;  %v3176_v47 = vmul.f32 %v4867_v12, %v3175_v36  ;;  %v7070_v8 = vld [vmem:[#allocation15_spill] sm:$0xff] }
 0x6e7   :  { %v4968_v12 = vld [vmem:[%s6881_s9 + $0xc8] ss:$12 sps:$4 sm:$0xff]  }
 0x6e8   :  { %v6690_v54 = vadd.f32 %v4865_v61, %v3176_v47  ;;  %v4969_v47 = vld [vmem:[%s6881_s9 + $0xdc] ss:$12 sps:$4 sm:$0xff]  }
 0x6e9   :  { %3305 = vmatpush1.bf16.msra.mxu0 %v6313_v9  ;;  %4443 = vmatpush3.bf16.msra.mxu1 %v6319_v41 }
 0x6ea   :  { %v3178_v55 = vpack.c.bf16 %v6690_v54, %v6690_v54  ;;  %3397 = vmatprep.subr.bf16.mxu0 %v4958_v56  ;;  %4448 = vmatprep.subr.bf16.mxu1 %v6993_v16  ;;  %v4971_v56 = vld [vmem:[%s6881_s9 + $0xe0] ss:$12 sps:$4 sm:$0xff]  }
 0x6ec   :  { %3179 = vst [vmem:[%s6885_s12 + $0x8] sm:$0xf] %v3178_v55  ;;  %3323 = vmatmul.mubr.bf16.vlgmr.msra.gmra.mrb[84].mxu0 %v3178_v55  ;;  %4445 = vmatmul.mubr.bf16.vlgmr.msra.gmra.mrb[68].mxu1 %v3178_v55  ;;  %v4970_v55 = vld [vmem:[%s6881_s9 + $0xd8] ss:$12 sps:$4 sm:$0xff]  }
 0x6ed   :  { %3398 = vmatpush1.bf16.msra.mxu0 %v4959_v58  ;;  %4449 = vmatpush3.bf16.msra.mxu1 %v4960_v59  ;;  %v4972_v58 = vld [vmem:[%s6881_s9 + $0xf4] ss:$12 sps:$4 sm:$0xff]  }
 0x6ee   :  { %3399 = vmatprep.subr.bf16.mxu0 %v4961_v38  ;;  %4450 = vmatprep.subr.bf16.mxu1 %v6993_v16 }
 0x6ef   :  { %3429 = vmatprep.mubr.bf16.mxu0 %v6994_v7  ;;  %4464 = vmatprep.mubr.msk.bf16.mxu1 %vm4992_vm0, %v6993_v16 }
 0x6f1   :  { %3400 = vmatpush1.bf16.msra.mxu0 %v4962_v57  ;;  %4451 = vmatpush3.bf16.msra.mxu1 %v4963_v4  ;;  %v4973_v4 = vld [vmem:[%s6881_s9 + $0xf0] ss:$12 sps:$4 sm:$0xff]  }
 0x6f2   :  { %3401 = vmatprep.subr.bf16.mxu0 %v4964_v3  ;;  %4452 = vmatprep.subr.bf16.mxu1 %v6993_v16  ;;  %v4974_v3 = vld [vmem:[%s6881_s9 + $0xf8] ss:$12 sps:$4 sm:$0xff]  }
 0x6f5   :  { %3402 = vmatpush1.bf16.msra.mxu0 %v4965_v11  ;;  %4453 = vmatpush3.bf16.msra.mxu1 %v6344_v1  ;;  %v7071_v1 = vld [vmem:[#allocation35_spill] sm:$0xff] }
 0x6f6   :  { %3403 = vmatprep.subr.bf16.mxu0 %v4966_v39  ;;  %4454 = vmatprep.subr.bf16.mxu1 %v6993_v16  ;;  %v4975_v11 = vld [vmem:[%s6881_s9 + $0x10c] ss:$12 sps:$4 sm:$0xff]   ;;  %v7077_v39 = vld [vmem:[#allocation46_spill] sm:$0xff] }
 0x6f9   :  { %3404 = vmatpush1.bf16.msra.mxu0 %v6352_v37  ;;  %4455 = vmatpush3.bf16.msra.mxu1 %v6358_v48 }
 0x6fa   :  { %3405 = vmatprep.subr.bf16.mxu0 %v6364_v46  ;;  %4456 = vmatprep.subr.bf16.mxu1 %v6993_v16 }
 0x6fd   :  { %3406 = vmatpush1.bf16.msra.mxu0 %v6371_v52  ;;  %4457 = vmatpush3.bf16.msra.mxu1 %v6377_v5  ;;  %v7072_v52 = vld [vmem:[#allocation36_spill] sm:$0xff] }
 0x6fe   :  { %3407 = vmatprep.subr.bf16.mxu0 %v7037_v45  ;;  %4458 = vmatprep.subr.bf16.mxu1 %v6993_v16 }
 0x701   :  { %3408 = vmatpush1.bf16.msra.mxu0 %v7054_v25  ;;  %4459 = vmatpush3.bf16.msra.mxu1 %v7055_v26 }
 0x702   :  { %3409 = vmatprep.subr.bf16.mxu0 %v7056_v27  ;;  %4460 = vmatprep.subr.bf16.mxu1 %v6993_v16 }
 0x705   :  { %3410 = vmatpush1.bf16.msra.mxu0 %v7057_v28  ;;  %4461 = vmatpush3.bf16.msra.mxu1 %v7058_v29 }
 0x706   :  { %3411 = vmatprep.subr.bf16.mxu0 %v7059_v30  ;;  %4462 = vmatprep.subr.bf16.mxu1 %v6993_v16 }
 0x709   :  { %3412 = vmatpush1.bf16.msra.mxu0 %v7060_v31  ;;  %4463 = vmatpush3.bf16.msra.mxu1 %v7061_v32  ;;  %v7073_v32 = vld [vmem:[#allocation17_spill] sm:$0xff] }
 0x70a   :  { %3504 = vmatprep.subr.bf16.mxu0 %v7070_v8  ;;  %4468 = vmatprep.subr.bf16.mxu1 %v6993_v16 }
 0x79f   :  { %v3217_v9 = vpop.f32.mrb[80].mxu0  ;;  %v3258_v41 = vpop.f32.mrb[64].mxu1 }
 0x7a0   :  { %v3264_v37 = vadd.f32 %v3217_v9, %v7071_v1  ;;  %v3219_v48 = vpop.f32.mrb[81].mxu0  ;;  %v4426_v46 = vpop.f32.mrb[65].mxu1  ;;  %v3278_v35 = vadd.f32 %v7073_v32, %v3258_v41  ;;  %v4976_v41 = vld [vmem:[%s6881_s9 + $0x108] ss:$12 sps:$4 sm:$0xff]   ;;  %v4977_v1 = vld [vmem:[%s6881_s9 + $0x110] ss:$12 sps:$4 sm:$0xff]  }
 0x7a1   :  { %v3265_v5 = vadd.f32 %v3219_v48, %v7072_v52  ;;  %v3221_v45 = vpop.f32.mrb[82].mxu0  ;;  %v3261_v6 = vpop.f32.mrb[66].mxu1  ;;  %v4979_v48 = vld [vmem:[%s6881_s9 + $0x120] ss:$12 sps:$4 sm:$0xff]   ;;  %v4980_v46 = vld [vmem:[%s6881_s9 + $0x128] ss:$12 sps:$4 sm:$0xff]  }
 0x7a2   :  { %v3872_v25 = vmul.f32 -1.442695, %v3264_v37  ;;  %v3222_v26 = vpop.f32.mrb[83].mxu0  ;;  %v4427_v27 = vpop.f32.mrb[67].mxu1  ;;  %v4978_v37 = vld [vmem:[%s6881_s9 + $0x124] ss:$12 sps:$4 sm:$0xff]  }
 0x7a3   :  { %v3873_v28 = vmul.f32 -1.442695, %v3265_v5  ;;  %v4981_v52 = vld [vmem:[%s6881_s9 + $0x13c] ss:$12 sps:$4 sm:$0xff]   ;;  %v4982_v5 = vld [vmem:[%s6881_s9 + $0x138] ss:$12 sps:$4 sm:$0xff]  }
 0x7a4   :  { %4868 = vpow2.f32 %v3872_v25  ;;  %v4983_v45 = vld [vmem:[%s6881_s9 + $0x140] ss:$12 sps:$4 sm:$0xff]  }
 0x7a5   :  { %4870 = vpow2.f32 %v3873_v28  ;;  %v4984_v6 = vld [vmem:[%s6881_s9 + $0x154] ss:$12 sps:$4 sm:$0xff]   ;;  %v4985_v28 = vld [vmem:[%s6881_s9 + $0x150] ss:$12 sps:$4 sm:$0xff]  }
 0x7ae   :  { %v4869_v29 = vpop.eup %4868 }
 0x7af   :  { %v3272_v30 = vadd.f32 1.0, %v4869_v29  ;;  %v4871_v31 = vpop.eup %4870  ;;  %v4986_v29 = vld [vmem:[%s6881_s9 + $0x158] ss:$12 sps:$4 sm:$0xff]  }
 0x7b0   :  { %v3273_v44 = vadd.f32 1.0, %v4871_v31 }
 0x7b1   :  { %4872 = vrcp.f32 %v3272_v30  ;;  %v4987_v30 = vld [vmem:[%s6881_s9 + $0x16c] ss:$12 sps:$4 sm:$0xff]  }
 0x7bb   :  { %v4873_v19 = vpop.eup %4872 }
 0x7bc   :  { %v3279_v53 = vmul.f32 %v4873_v19, %v3278_v35  ;;  %v4988_v35 = vld [vmem:[%s6881_s9 + $0x168] ss:$12 sps:$4 sm:$0xff]   ;;  %v4989_v19 = vld [vmem:[%s6881_s9 + $0x170] ss:$12 sps:$4 sm:$0xff]  }
 0x7be   :  { %v3280_v63 = vadd.f32 %v3279_v53, %v7074_v15 }
 0x7bf   :  { %v3324_v18 = vpop.f32.mrb[84].mxu0  ;;  %v3365_v10 = vpop.f32.mrb[68].mxu1 }
 0x7c0   :  { %4874 = vtanh.f32 %v3280_v63  ;;  %v3371_v0 = vadd.f32 %v3324_v18, %v7075_v2  ;;  %v3326_v17 = vpop.f32.mrb[85].mxu0  ;;  %v4446_v20 = vpop.f32.mrb[69].mxu1  ;;  %v3385_v59 = vadd.f32 %v6571_v42, %v3365_v10  ;;  %v7078_v63 = vld [vmem:[#allocation37_spill] sm:$0xff]  ;;  %v7079_v2 = vld [vmem:[#allocation38_spill] sm:$0xff] }
 0x7c1   :  { %v3372_v13 = vadd.f32 %v3326_v17, %v7076_v51  ;;  %v3328_v49 = vpop.f32.mrb[86].mxu0  ;;  %v3368_v14 = vpop.f32.mrb[70].mxu1  ;;  %4876 = vrcp.f32 %v3273_v44 }
 0x7c2   :  { %v3874_v62 = vmul.f32 -1.442695, %v3371_v0  ;;  %v3329_v23 = vpop.f32.mrb[87].mxu0  ;;  %v4447_v50 = vpop.f32.mrb[71].mxu1 }
 0x7c3   :  { %v3875_v22 = vmul.f32 -1.442695, %v3372_v13 }
 0x7c4   :  { %4878 = vpow2.f32 %v3874_v62 }
 0x7c5   :  { %4880 = vpow2.f32 %v3875_v22  ;;  %v7080_v22 = vld [vmem:[#allocation28_spill] sm:$0xff] }
 0x7ca   :  { %v4875_v40 = vpop.eup %4874 }
 0x7cb   :  { %v3282_v21 = vsub.f32 %v6649_v43, %v4875_v40  ;;  %v4877_v34 = vpop.eup %4876  ;;  %v4967_v43 = vld [vmem:[%s6881_s9 + $0xc0] ss:$12 sps:$4 sm:$0xff]  }
 0x7cd   :  { %v3283_v24 = vmul.f32 %v4877_v34, %v3282_v21 }
 0x7ce   :  { %v4879_v33 = vpop.eup %4878 }
 0x7cf   :  { %v3379_v60 = vadd.f32 1.0, %v4879_v33  ;;  %v6761_v61 = vadd.f32 %v4875_v40, %v3283_v24 }
 0x7d1   :  { %4882 = vrcp.f32 %v3379_v60  ;;  %v3285_v36 = vpack.c.bf16 %v6761_v61, %v6761_v61 }
 0x7d3   :  { %3286 = vst [vmem:[%s6884_s11 + $0x18] sm:$0xf] %v3285_v36  ;;  %3430 = vmatmul.mubr.bf16.vlgmr.msra.gmra.mrb[88].mxu0 %v3285_v36  ;;  %4465 = vmatmul.mubr.bf16.vlgmr.msra.gmra.mrb[72].mxu1 %v3285_v36 }
 0x7d4   :  { %3505 = vmatpush1.bf16.msra.mxu0 %v4967_v43  ;;  %4469 = vmatpush3.bf16.msra.mxu1 %v4968_v12  ;;  %v7081_v43 = vld [vmem:[#allocation39_spill] sm:$0xff] }
 0x7d5   :  { %3506 = vmatprep.subr.bf16.mxu0 %v4969_v47  ;;  %4470 = vmatprep.subr.bf16.mxu1 %v6993_v16 }
 0x7d6   :  { %3536 = vmatprep.mubr.bf16.mxu0 %v6994_v7  ;;  %4484 = vmatprep.mubr.msk.bf16.mxu1 %vm4992_vm0, %v6993_v16  ;;  %v4881_v7 = vpop.eup %4880 }
 0x7d7   :  { %v3380_v9 = vadd.f32 1.0, %v4881_v7 }
 0x7d8   :  { %3507 = vmatpush1.bf16.msra.mxu0 %v4970_v55  ;;  %4471 = vmatpush3.bf16.msra.mxu1 %v4971_v56  ;;  %v7082_v56 = vld [vmem:[#allocation41_spill] sm:$0xff] }
 0x7d9   :  { %3508 = vmatprep.subr.bf16.mxu0 %v4972_v58  ;;  %4472 = vmatprep.subr.bf16.mxu1 %v6993_v16 }
 0x7db   :  { %v4883_v38 = vpop.eup %4882 }
 0x7dc   :  { %v3386_v57 = vmul.f32 %v4883_v38, %v3385_v59  ;;  %3509 = vmatpush1.bf16.msra.mxu0 %v4973_v4  ;;  %4473 = vmatpush3.bf16.msra.mxu1 %v4974_v3 }
 0x7dd   :  { %3510 = vmatprep.subr.bf16.mxu0 %v4975_v11  ;;  %4474 = vmatprep.subr.bf16.mxu1 %v6993_v16 }
 0x7de   :  { %v3387_v8 = vadd.f32 %v3386_v57, %v7077_v39 }
 0x7e0   :  { %4884 = vtanh.f32 %v3387_v8  ;;  %3511 = vmatpush1.bf16.msra.mxu0 %v4976_v41  ;;  %4475 = vmatpush3.bf16.msra.mxu1 %v4977_v1 }
 0x7e1   :  { %3512 = vmatprep.subr.bf16.mxu0 %v4978_v37  ;;  %4476 = vmatprep.subr.bf16.mxu1 %v6993_v16  ;;  %4886 = vrcp.f32 %v3380_v9 }
 0x7e4   :  { %3513 = vmatpush1.bf16.msra.mxu0 %v4979_v48  ;;  %4477 = vmatpush3.bf16.msra.mxu1 %v4980_v46 }
 0x7e5   :  { %3514 = vmatprep.subr.bf16.mxu0 %v4981_v52  ;;  %4478 = vmatprep.subr.bf16.mxu1 %v6993_v16 }
 0x7e8   :  { %3515 = vmatpush1.bf16.msra.mxu0 %v4982_v5  ;;  %4479 = vmatpush3.bf16.msra.mxu1 %v4983_v45  ;;  %v7083_v45 = vld [vmem:[#allocation42_spill] sm:$0xff] }
 0x7e9   :  { %3516 = vmatprep.subr.bf16.mxu0 %v4984_v6  ;;  %4480 = vmatprep.subr.bf16.mxu1 %v6993_v16 }
 0x7ea   :  { %v4885_v25 = vpop.eup %4884 }
 0x7eb   :  { %v3389_v26 = vsub.f32 %v6690_v54, %v4885_v25  ;;  %v4887_v27 = vpop.eup %4886 }
 0x7ec   :  { %3517 = vmatpush1.bf16.msra.mxu0 %v4985_v28  ;;  %4481 = vmatpush3.bf16.msra.mxu1 %v4986_v29 }
 0x7ed   :  { %3518 = vmatprep.subr.bf16.mxu0 %v4987_v30  ;;  %4482 = vmatprep.subr.bf16.mxu1 %v6993_v16  ;;  %v3390_v31 = vmul.f32 %v4887_v27, %v3389_v26 }
 0x7ef   :  { %v6844_v54 = vadd.f32 %v4885_v25, %v3390_v31 }
 0x7f0   :  { %3519 = vmatpush1.bf16.msra.mxu0 %v4988_v35  ;;  %4483 = vmatpush3.bf16.msra.mxu1 %v4989_v19 }
 0x7f1   :  { %v3392_v53 = vpack.c.bf16 %v6844_v54, %v6844_v54 }
 0x7f3   :  { %3393 = vst [vmem:[%s6885_s12 + $0x4] sm:$0xf] %v3392_v53  ;;  %3537 = vmatmul.mubr.bf16.vlgmr.msra.gmra.mrb[92].mxu0 %v3392_v53  ;;  %4485 = vmatmul.mubr.bf16.vlgmr.msra.gmra.mrb[76].mxu1 %v3392_v53 }
 0x8a6   :  { %v3431_v16 = vpop.f32.mrb[88].mxu0  ;;  %v3472_v15 = vpop.f32.mrb[72].mxu1 }
 0x8a7   :  { %v3478_v44 = vadd.f32 %v3431_v16, %v7078_v63  ;;  %v3433_v18 = vpop.f32.mrb[89].mxu0  ;;  %v4466_v10 = vpop.f32.mrb[73].mxu1  ;;  %v3492_v40 = vadd.f32 %v7073_v32, %v3472_v15 }
 0x8a8   :  { %v3479_v0 = vadd.f32 %v3433_v18, %v7079_v2  ;;  %v3435_v17 = vpop.f32.mrb[90].mxu0  ;;  %v3475_v20 = vpop.f32.mrb[74].mxu1 }
 0x8a9   :  { %v3876_v51 = vmul.f32 -1.442695, %v3478_v44  ;;  %v3436_v13 = vpop.f32.mrb[91].mxu0  ;;  %v4467_v49 = vpop.f32.mrb[75].mxu1 }
 0x8aa   :  { %v3877_v14 = vmul.f32 -1.442695, %v3479_v0 }
 0x8ab   :  { %4888 = vpow2.f32 %v3876_v51 }
 0x8ac   :  { %4890 = vpow2.f32 %v3877_v14 }
 0x8b5   :  { %v4889_v62 = vpop.eup %4888 }
 0x8b6   :  { %v3486_v23 = vadd.f32 1.0, %v4889_v62  ;;  %v4891_v50 = vpop.eup %4890 }
 0x8b7   :  { %v3487_v33 = vadd.f32 1.0, %v4891_v50 }
 0x8b8   :  { %4892 = vrcp.f32 %v3486_v23 }
 0x8c2   :  { %v4893_v21 = vpop.eup %4892 }
 0x8c3   :  { %v3493_v34 = vmul.f32 %v4893_v21, %v3492_v40 }
 0x8c5   :  { %v3494_v24 = vadd.f32 %v3493_v34, %v7080_v22 }
 0x8c6   :  { %v3538_v60 = vpop.f32.mrb[92].mxu0  ;;  %v3579_v36 = vpop.f32.mrb[76].mxu1 }
 0x8c7   :  { %4894 = vtanh.f32 %v3494_v24  ;;  %v3585_v12 = vadd.f32 %v3538_v60, %v7081_v43  ;;  %v3540_v47 = vpop.f32.mrb[93].mxu0  ;;  %v4486_v55 = vpop.f32.mrb[77].mxu1  ;;  %v3599_v46 = vadd.f32 %v6571_v42, %v3579_v36 }
 0x8c8   :  { %v3586_v58 = vadd.f32 %v3540_v47, %v7082_v56  ;;  %v3542_v7 = vpop.f32.mrb[94].mxu0  ;;  %v3582_v59 = vpop.f32.mrb[78].mxu1  ;;  %4896 = vrcp.f32 %v3487_v33 }
 0x8c9   :  { %v3878_v38 = vmul.f32 -1.442695, %v3585_v12  ;;  %v3543_v57 = vpop.f32.mrb[95].mxu0  ;;  %v4487_v32 = vpop.f32.mrb[79].mxu1 }
 0x8ca   :  { %v3879_v39 = vmul.f32 -1.442695, %v3586_v58 }
 0x8cb   :  { %4898 = vpow2.f32 %v3878_v38 }
 0x8cc   :  { %4900 = vpow2.f32 %v3879_v39 }
 0x8d1   :  { %v4895_v4 = vpop.eup %4894 }
 0x8d2   :  { %v3496_v3 = vsub.f32 %v6761_v61, %v4895_v4  ;;  %v4897_v11 = vpop.eup %4896 }
 0x8d4   :  { %v3497_v8 = vmul.f32 %v4897_v11, %v3496_v3 }
 0x8d5   :  { %v4899_v9 = vpop.eup %4898 }
 0x8d6   :  { %v3498_v41 = vadd.f32 %v4895_v4, %v3497_v8  ;;  %v3593_v1 = vadd.f32 1.0, %v4899_v9  ;;  %v4901_v48 = vpop.eup %4900 }
 0x8d7   :  { %v3594_v6 = vadd.f32 1.0, %v4901_v48 }
 0x8d8   :  { %v3499_v37 = vpack.c.bf16 %v3498_v41, %v3498_v41  ;;  %4902 = vrcp.f32 %v3593_v1 }
 0x8da   :  { %3500 = vst [vmem:[%s6884_s11 + $0x1c] sm:$0xf] %v3499_v37 }
 0x8e2   :  { %v4903_v52 = vpop.eup %4902 }
 0x8e3   :  { %v3600_v5 = vmul.f32 %v4903_v52, %v3599_v46 }
 0x8e5   :  { %v3601_v61 = vadd.f32 %v3600_v5, %v7083_v45 }
 0x8e7   :  { %4904 = vtanh.f32 %v3601_v61 }
 0x8e8   :  { %4906 = vrcp.f32 %v3594_v6 }
 0x8f1   :  { %v4905_v25 = vpop.eup %4904 }
 0x8f2   :  { %v3603_v26 = vsub.f32 %v6844_v54, %v4905_v25  ;;  %v4907_v27 = vpop.eup %4906 }
 0x8f4   :  { %v3604_v28 = vmul.f32 %v4907_v27, %v3603_v26 }
 0x8f6   :  { %v3605_v29 = vadd.f32 %v4905_v25, %v3604_v28 }
 0x8f8   :  { %v3606_v30 = vpack.c.bf16 %v3605_v29, %v3605_v29 }
 0x8fa   :  { %3607 = vst [vmem:[%s6885_s12] sm:$0xf] %v3606_v30 }

</bundles_post_ra>
